<compile_context>
chip_gen: v7x
topology: tpu7x:2x2x1
jax: 0.10.0
libtpu: 0.0.40
codegen_flags: <defaults>
</compile_context>

<pallas_src>
import numpy as np

import jax
import jax.numpy as jnp
from jax import lax
from jax.experimental import pallas as pl
from jax.experimental.pallas import tpu as pltpu

EPS = 1e-5  # nn.LayerNorm default


# ------------------------------ Pallas kernel -------------------------------

def _netE_fused_kernel(
    p1_ref,                                  # (1, K1, P1) layer-1 patches
    w1_ref, g1_ref, b1_ref,                  # (C1, K1), (C1, P1), (C1, P1)
    s2_ref, w2_ref, g2_ref, b2_ref,          # gather, (KK,Co,Ci), (Co,P), (Co,P)
    s3_ref, w3_ref, g3_ref, b3_ref,
    s4_ref, w4_ref, g4_ref, b4_ref,
    w5_ref,                                  # (9, nz, C4)
    fc1w_ref, fc1b_ref, fc2w_ref, fc2b_ref,  # (2nz,nz),(2nz,1),(nz,2nz),(nz,1)
    o_ref,                                   # (1, nz, 1)
):
    f32 = jnp.float32

    def ln_relu(y, g_ref, b_ref):
        # LayerNorm over the whole per-sample slab (== over [C, H, W]).
        mean = jnp.mean(y)
        var = jnp.mean((y - mean) ** 2)
        y = (y - mean) * lax.rsqrt(var + EPS)
        return jnp.maximum(y * g_ref[...] + b_ref[...], 0.0)

    def conv_gather(a, s_ref, w_ref, p_out):
        # In-kernel im2col: one matmul against a constant 0/1 matrix produces
        # every kernel-tap shift (zero columns == zero padding).
        g = jnp.dot(a.astype(s_ref.dtype), s_ref[...],
                    preferred_element_type=f32)           # (Cin, KK*Pout)
        kk, cout, _ = w_ref.shape
        out = jnp.zeros((cout, p_out), f32)
        for k in range(kk):                               # accumulate over taps
            out = out + jnp.dot(w_ref[k], g[:, k * p_out:(k + 1) * p_out],
                                preferred_element_type=f32)
        return out

    # ---- layer 1: conv (patches precomputed in XLA) + LN + ReLU ----
    a = jnp.dot(w1_ref[...], p1_ref[0], preferred_element_type=f32)  # (C1, P1)
    a = ln_relu(a, g1_ref, b1_ref)

    # ---- layers 2-4: conv + LN + ReLU, activations never leave VMEM ----
    a = ln_relu(conv_gather(a, s2_ref, w2_ref, g2_ref.shape[1]), g2_ref, b2_ref)
    a = ln_relu(conv_gather(a, s3_ref, w3_ref, g3_ref.shape[1]), g3_ref, b3_ref)
    a = ln_relu(conv_gather(a, s4_ref, w4_ref, g4_ref.shape[1]), g4_ref, b4_ref)

    # ---- layer 5: valid 3x3 conv over the remaining 3x3 map -> (nz, 1) ----
    kk5, nz, _ = w5_ref.shape
    z = jnp.zeros((nz, 1), f32)
    for k in range(kk5):
        z = z + jnp.dot(w5_ref[k], a[:, k:k + 1], preferred_element_type=f32)

    # ---- MLP head: Linear -> ReLU -> Linear (column-vector form) ----
    h = jnp.dot(fc1w_ref[...], z, preferred_element_type=f32) + fc1b_ref[...]
    h = jnp.maximum(h, 0.0)
    o_ref[0] = jnp.dot(fc2w_ref[...], h, preferred_element_type=f32) + fc2b_ref[...]


# ------------------------------- JAX glue ------------------------------------

def _im2col_kp(x, kh, kw, sh, sw, ph, pw):
    """x: (N, C, H, W) -> patches (N, C*kh*kw, Ho*Wo) with K on sublanes,
    P on lanes.  Feature order (C, KH, KW) matches weight.reshape(Cout, -1)."""
    n, c, h, w = x.shape
    xp = jnp.pad(x, ((0, 0), (0, 0), (ph, ph), (pw, pw)))
    ho = (h + 2 * ph - kh) // sh + 1
    wo = (w + 2 * pw - kw) // sw + 1
    cols = []
    for i in range(kh):
        for j in range(kw):
            cols.append(xp[:, :, i:i + sh * (ho - 1) + 1:sh,
                           j:j + sw * (wo - 1) + 1:sw])
    stk = jnp.stack(cols, axis=2)                       # (N, C, kh*kw, Ho, Wo)
    return stk.reshape(n, c * kh * kw, ho * wo), ho, wo


def _gather_matrix(h, w, kh, kw, sh, sw, ph, pw, dtype=jnp.float32):
    """Constant 0/1 matrix S (h*w, kh*kw*ho*wo) such that A_flat @ S lays out
    every kernel-tap shift of A; out-of-range (padding) columns are all-zero.
    Column ((ki*kw+kj)*ho + oh)*wo + ow selects source row (sh*oh+ki-ph)*w +
    (sw*ow+kj-pw)."""
    ho = (h + 2 * ph - kh) // sh + 1
    wo = (w + 2 * pw - kw) // sw + 1
    s = np.zeros((h * w, kh * kw * ho * wo), dtype=np.float32)
    col = 0
    for ki in range(kh):
        for kj in range(kw):
            for oh in range(ho):
                for ow in range(wo):
                    hh = sh * oh + ki - ph
                    ww = sw * ow + kj - pw
                    if 0 <= hh < h and 0 <= ww < w:
                        s[hh * w + ww, col] = 1.0
                    col += 1
    return jnp.asarray(s, dtype=dtype), ho, wo


def netE_forward(x, params):
    n = x.shape[0]
    ngf = params["w1"].shape[0]
    nz = params["fc2_w"].shape[0]

    # Layer-1 im2col on the raw input (K on sublanes, P=H*W on lanes).
    p1, h1, w1o = _im2col_kp(x, 5, 4, 2, 2, 0, 1)            # (N, 20, 504)
    k1, np1 = p1.shape[1], p1.shape[2]

    # Constant gather matrices for the in-kernel im2col of layers 2-4.
    # The big layer-2 matrix is stored in bf16 (0/1 exact) to halve its DMA.
    s2, h2, w2o = _gather_matrix(h1, w1o, 5, 4, 2, 1, 1, 0, jnp.bfloat16)
    s3, h3, w3o = _gather_matrix(h2, w2o, 5, 4, 4, 1, 1, 1, jnp.float32)
    s4, h4, w4o = _gather_matrix(h3, w3o, 4, 4, 3, 1, 1, 1, jnp.float32)

    # Parameters in kernel-friendly layouts.
    w1m = params["w1"].reshape(ngf, k1)                      # (C1, K1)
    kstk = lambda w: jnp.transpose(w, (2, 3, 0, 1)).reshape(
        w.shape[2] * w.shape[3], w.shape[0], w.shape[1])     # (KH*KW, Co, Ci)
    w2s, w3s, w4s, w5s = (kstk(params[k]) for k in ("w2", "w3", "w4", "w5"))
    flat = lambda t: t.reshape(t.shape[0], -1)               # (C, H*W)

    ops = [
        p1,
        w1m, flat(params["g1"]), flat(params["b1"]),
        s2, w2s, flat(params["g2"]), flat(params["b2"]),
        s3, w3s, flat(params["g3"]), flat(params["b3"]),
        s4, w4s, flat(params["g4"]), flat(params["b4"]),
        w5s,
        params["fc1_w"], params["fc1_b"][:, None],
        params["fc2_w"], params["fc2_b"][:, None],
    ]

    def const_spec(a):
        return pl.BlockSpec(a.shape, lambda b, _nd=a.ndim: (0,) * _nd)

    in_specs = [pl.BlockSpec((1, k1, np1), lambda b: (b, 0, 0))]
    in_specs += [const_spec(a) for a in ops[1:]]

    out = pl.pallas_call(
        _netE_fused_kernel,
        out_shape=jax.ShapeDtypeStruct((n, nz, 1), jnp.float32),
        grid=(n,),
        in_specs=in_specs,
        out_specs=pl.BlockSpec((1, nz, 1), lambda b: (b, 0, 0)),
        compiler_params=pltpu.CompilerParams(
            dimension_semantics=("parallel",),
            vmem_limit_bytes=32 * 1024 * 1024),
    )(*ops)
    return out.reshape(n, nz)


# --------------------------- reference (pure JAX) ----------------------------

def _ref_forward(x, params):
    def conv(x, w, stride, pad):
        return lax.conv_general_dilated(
            x, w, window_strides=stride,
            padding=[(pad[0], pad[0]), (pad[1], pad[1])],
            dimension_numbers=("NCHW", "OIHW", "NCHW"),
            precision=lax.Precision.HIGHEST)

    def ln_relu(x, g, b):
        m = jnp.mean(x, axis=(1, 2, 3), keepdims=True)
        v = jnp.mean((x - m) ** 2, axis=(1, 2, 3), keepdims=True)
        return jnp.maximum((x - m) * lax.rsqrt(v + EPS) * g[None] + b[None], 0.0)

    x = ln_relu(conv(x, params["w1"], (2, 2), (0, 1)), params["g1"], params["b1"])
    x = ln_relu(conv(x, params["w2"], (2, 1), (1, 0)), params["g2"], params["b2"])
    x = ln_relu(conv(x, params["w3"], (4, 1), (1, 1)), params["g3"], params["b3"])
    x = ln_relu(conv(x, params["w4"], (3, 1), (1, 1)), params["g4"], params["b4"])
    x = conv(x, params["w5"], (1, 1), (0, 0))
    z = x.reshape(x.shape[0], -1)
    h = jnp.maximum(z @ params["fc1_w"].T + params["fc1_b"], 0.0)
    return h @ params["fc2_w"].T + params["fc2_b"]


# ---------------------------------- main --------------------------------------

def _make_params(key, nz, ngf, nc):
    ks = jax.random.split(key, 16)
    nrm = lambda k, s: (0.05 * jax.random.normal(k, s)).astype(jnp.float32)
    return {
        "w1": nrm(ks[0], (ngf, nc, 5, 4)),
        "g1": 1.0 + nrm(ks[1], (ngf, 63, 8)), "b1": nrm(ks[2], (ngf, 63, 8)),
        "w2": nrm(ks[3], (ngf * 2, ngf, 5, 4)),
        "g2": 1.0 + nrm(ks[4], (ngf * 2, 31, 5)), "b2": nrm(ks[5], (ngf * 2, 31, 5)),
        "w3": nrm(ks[6], (ngf * 4, ngf * 2, 5, 4)),
        "g3": 1.0 + nrm(ks[7], (ngf * 4, 8, 4)), "b3": nrm(ks[8], (ngf * 4, 8, 4)),
        "w4": nrm(ks[9], (ngf * 8, ngf * 4, 4, 4)),
        "g4": 1.0 + nrm(ks[10], (ngf * 8, 3, 3)), "b4": nrm(ks[11], (ngf * 8, 3, 3)),
        "w5": nrm(ks[12], (nz, ngf * 8, 3, 3)),
        "fc1_w": nrm(ks[13], (nz * 2, nz)), "fc1_b": nrm(ks[14], (nz * 2,)),
        "fc2_w": nrm(ks[15], (nz, nz * 2)), "fc2_b": jnp.zeros((nz,), jnp.float32),
    }


if __name__ == "__main__":
    nz, ngf, nc, batch = 8, 4, 1, 2
    key = jax.random.PRNGKey(0)
    kx, kp = jax.random.split(key)
    # Input spatial size (129, 16) is implied by the fixed LayerNorm shapes.
    x = jax.random.normal(kx, (batch, nc, 129, 16), dtype=jnp.float32)
    params = _make_params(kp, nz, ngf, nc)

    fwd = jax.jit(netE_forward)
    out = jax.block_until_ready(fwd(x, params))
    assert out.shape == (batch, nz), out.shape

    ref = jax.block_until_ready(_ref_forward(x, params))
    assert jnp.allclose(out, ref, atol=1e-2, rtol=1e-2), (
        float(jnp.max(jnp.abs(out - ref))))

    print("KERNEL_OK")
</pallas_src>

<mosaic_0001>
module attributes {stable_mosaic.version = 11 : i64} {
  func.func @_netE_fused_kernel(%arg0: i32, %arg1: memref<1x20x504xf32, #tpu.memory_space<vmem>>, %arg2: memref<4x20xf32, #tpu.memory_space<vmem>>, %arg3: memref<4x504xf32, #tpu.memory_space<vmem>>, %arg4: memref<4x504xf32, #tpu.memory_space<vmem>>, %arg5: memref<504x3100xbf16, #tpu.memory_space<vmem>>, %arg6: memref<20x8x4xf32, #tpu.memory_space<vmem>>, %arg7: memref<8x155xf32, #tpu.memory_space<vmem>>, %arg8: memref<8x155xf32, #tpu.memory_space<vmem>>, %arg9: memref<155x640xf32, #tpu.memory_space<vmem>>, %arg10: memref<20x16x8xf32, #tpu.memory_space<vmem>>, %arg11: memref<16x32xf32, #tpu.memory_space<vmem>>, %arg12: memref<16x32xf32, #tpu.memory_space<vmem>>, %arg13: memref<32x144xf32, #tpu.memory_space<vmem>>, %arg14: memref<16x32x16xf32, #tpu.memory_space<vmem>>, %arg15: memref<32x9xf32, #tpu.memory_space<vmem>>, %arg16: memref<32x9xf32, #tpu.memory_space<vmem>>, %arg17: memref<9x8x32xf32, #tpu.memory_space<vmem>>, %arg18: memref<16x8xf32, #tpu.memory_space<vmem>>, %arg19: memref<16x1xf32, #tpu.memory_space<vmem>>, %arg20: memref<8x16xf32, #tpu.memory_space<vmem>>, %arg21: memref<8x1xf32, #tpu.memory_space<vmem>>, %arg22: memref<1x8x1xf32, #tpu.memory_space<vmem>>) attributes {dimension_semantics = [#tpu.dimension_semantics<parallel>], iteration_bounds = array<i64: 2>, scalar_prefetch = 0 : i64, scratch_operands = 0 : i64, tpu.core_type = #tpu.core_type<tc>, window_params = [{transform_indices = @transform_0, window_bounds = array<i64: 1, 20, 504>}, {pipeline_mode = #tpu.pipeline_mode<synchronous>, transform_indices = @transform_1, window_bounds = array<i64: 4, 20>}, {pipeline_mode = #tpu.pipeline_mode<synchronous>, transform_indices = @transform_2, window_bounds = array<i64: 4, 504>}, {pipeline_mode = #tpu.pipeline_mode<synchronous>, transform_indices = @transform_3, window_bounds = array<i64: 4, 504>}, {pipeline_mode = #tpu.pipeline_mode<synchronous>, transform_indices = @transform_4, window_bounds = array<i64: 504, 3100>}, {pipeline_mode = #tpu.pipeline_mode<synchronous>, transform_indices = @transform_5, window_bounds = array<i64: 20, 8, 4>}, {pipeline_mode = #tpu.pipeline_mode<synchronous>, transform_indices = @transform_6, window_bounds = array<i64: 8, 155>}, {pipeline_mode = #tpu.pipeline_mode<synchronous>, transform_indices = @transform_7, window_bounds = array<i64: 8, 155>}, {pipeline_mode = #tpu.pipeline_mode<synchronous>, transform_indices = @transform_8, window_bounds = array<i64: 155, 640>}, {pipeline_mode = #tpu.pipeline_mode<synchronous>, transform_indices = @transform_9, window_bounds = array<i64: 20, 16, 8>}, {pipeline_mode = #tpu.pipeline_mode<synchronous>, transform_indices = @transform_10, window_bounds = array<i64: 16, 32>}, {pipeline_mode = #tpu.pipeline_mode<synchronous>, transform_indices = @transform_11, window_bounds = array<i64: 16, 32>}, {pipeline_mode = #tpu.pipeline_mode<synchronous>, transform_indices = @transform_12, window_bounds = array<i64: 32, 144>}, {pipeline_mode = #tpu.pipeline_mode<synchronous>, transform_indices = @transform_13, window_bounds = array<i64: 16, 32, 16>}, {pipeline_mode = #tpu.pipeline_mode<synchronous>, transform_indices = @transform_14, window_bounds = array<i64: 32, 9>}, {pipeline_mode = #tpu.pipeline_mode<synchronous>, transform_indices = @transform_15, window_bounds = array<i64: 32, 9>}, {pipeline_mode = #tpu.pipeline_mode<synchronous>, transform_indices = @transform_16, window_bounds = array<i64: 9, 8, 32>}, {pipeline_mode = #tpu.pipeline_mode<synchronous>, transform_indices = @transform_17, window_bounds = array<i64: 16, 8>}, {pipeline_mode = #tpu.pipeline_mode<synchronous>, transform_indices = @transform_18, window_bounds = array<i64: 16, 1>}, {pipeline_mode = #tpu.pipeline_mode<synchronous>, transform_indices = @transform_19, window_bounds = array<i64: 8, 16>}, {pipeline_mode = #tpu.pipeline_mode<synchronous>, transform_indices = @transform_20, window_bounds = array<i64: 8, 1>}, {transform_indices = @transform_21, window_bounds = array<i64: 1, 8, 1>}]} {
    %c0 = arith.constant 0 : index
    %c0_0 = arith.constant 0 : index
    %0 = vector.load %arg2[%c0, %c0_0] : memref<4x20xf32, #tpu.memory_space<vmem>>, vector<4x20xf32>
    %c0_1 = arith.constant 0 : index
    %c0_2 = arith.constant 0 : index
    %c0_3 = arith.constant 0 : index
    %1 = vector.load %arg1[%c0_1, %c0_2, %c0_3] : memref<1x20x504xf32, #tpu.memory_space<vmem>>, vector<1x20x504xf32>
    %2 = vector.shape_cast %1 : vector<1x20x504xf32> to vector<20x504xf32>
    %cst = arith.constant dense<0.000000e+00> : vector<4x504xf32>
    %3 = tpu.matmul %0, %2, %cst {dimension_numbers = #tpu.dot_dimension_numbers<[1], [0], [0], [1], [0, 0, 1, 1], [], []>} : vector<4x20xf32>, vector<20x504xf32>, vector<4x504xf32> -> vector<4x504xf32>
    %4 = vector.shape_cast %3 : vector<4x504xf32> to vector<1x4x504xf32>
    %cst_4 = arith.constant dense<0.000000e+00> : vector<1xf32>
    %5 = vector.multi_reduction <add>, %4, %cst_4 [1, 2] : vector<1x4x504xf32> to vector<1xf32>
    %6 = vector.shape_cast %5 : vector<1xf32> to vector<1x1x1xf32>
    %7 = vector.extract %6[0, 0, 0] : f32 from vector<1x1x1xf32>
    %cst_5 = arith.constant 2.016000e+03 : f32
    %8 = arith.divf %7, %cst_5 : f32
    %9 = vector.broadcast %8 : f32 to vector<4x504xf32>
    %10 = arith.subf %3, %9 : vector<4x504xf32>
    %11 = arith.mulf %10, %10 : vector<4x504xf32>
    %12 = vector.shape_cast %11 : vector<4x504xf32> to vector<1x4x504xf32>
    %cst_6 = arith.constant dense<0.000000e+00> : vector<1xf32>
    %13 = vector.multi_reduction <add>, %12, %cst_6 [1, 2] : vector<1x4x504xf32> to vector<1xf32>
    %14 = vector.shape_cast %13 : vector<1xf32> to vector<1x1x1xf32>
    %15 = vector.extract %14[0, 0, 0] : f32 from vector<1x1x1xf32>
    %cst_7 = arith.constant 2.016000e+03 : f32
    %16 = arith.divf %15, %cst_7 : f32
    %17 = vector.broadcast %8 : f32 to vector<4x504xf32>
    %18 = arith.subf %3, %17 : vector<4x504xf32>
    %cst_8 = arith.constant 9.99999974E-6 : f32
    %19 = arith.addf %16, %cst_8 : f32
    %20 = math.rsqrt %19 : f32
    %21 = vector.broadcast %20 : f32 to vector<4x504xf32>
    %22 = arith.mulf %18, %21 : vector<4x504xf32>
    %c0_9 = arith.constant 0 : index
    %c0_10 = arith.constant 0 : index
    %23 = vector.load %arg3[%c0_9, %c0_10] : memref<4x504xf32, #tpu.memory_space<vmem>>, vector<4x504xf32>
    %24 = arith.mulf %22, %23 : vector<4x504xf32>
    %c0_11 = arith.constant 0 : index
    %c0_12 = arith.constant 0 : index
    %25 = vector.load %arg4[%c0_11, %c0_12] : memref<4x504xf32, #tpu.memory_space<vmem>>, vector<4x504xf32>
    %26 = arith.addf %24, %25 : vector<4x504xf32>
    %cst_13 = arith.constant 0.000000e+00 : f32
    %27 = vector.broadcast %cst_13 : f32 to vector<4x504xf32>
    %28 = arith.maximumf %26, %27 : vector<4x504xf32>
    %29 = arith.truncf %28 : vector<4x504xf32> to vector<4x504xbf16>
    %c0_14 = arith.constant 0 : index
    %c0_15 = arith.constant 0 : index
    %30 = vector.load %arg5[%c0_14, %c0_15] : memref<504x3100xbf16, #tpu.memory_space<vmem>>, vector<504x3100xbf16>
    %cst_16 = arith.constant dense<0.000000e+00> : vector<4x3100xf32>
    %31 = tpu.matmul %29, %30, %cst_16 {dimension_numbers = #tpu.dot_dimension_numbers<[1], [0], [0], [1], [0, 0, 1, 1], [], []>} : vector<4x504xbf16>, vector<504x3100xbf16>, vector<4x3100xf32> -> vector<4x3100xf32>
    %cst_17 = arith.constant 0.000000e+00 : f32
    %32 = vector.broadcast %cst_17 : f32 to vector<8x155xf32>
    %c0_18 = arith.constant 0 : index
    %c0_19 = arith.constant 0 : index
    %c0_20 = arith.constant 0 : index
    %33 = vector.load %arg6[%c0_18, %c0_19, %c0_20] : memref<20x8x4xf32, #tpu.memory_space<vmem>>, vector<1x8x4xf32>
    %34 = vector.shape_cast %33 : vector<1x8x4xf32> to vector<8x4xf32>
    %35 = vector.extract_strided_slice %31 {offsets = [0, 0], sizes = [4, 155], strides = [1, 1]} : vector<4x3100xf32> to vector<4x155xf32>
    %cst_21 = arith.constant dense<0.000000e+00> : vector<8x155xf32>
    %36 = tpu.matmul %34, %35, %cst_21 {dimension_numbers = #tpu.dot_dimension_numbers<[1], [0], [0], [1], [0, 0, 1, 1], [], []>} : vector<8x4xf32>, vector<4x155xf32>, vector<8x155xf32> -> vector<8x155xf32>
    %37 = arith.addf %32, %36 : vector<8x155xf32>
    %c1 = arith.constant 1 : index
    %c0_22 = arith.constant 0 : index
    %c0_23 = arith.constant 0 : index
    %38 = vector.load %arg6[%c1, %c0_22, %c0_23] : memref<20x8x4xf32, #tpu.memory_space<vmem>>, vector<1x8x4xf32>
    %39 = vector.shape_cast %38 : vector<1x8x4xf32> to vector<8x4xf32>
    %40 = vector.extract_strided_slice %31 {offsets = [0, 155], sizes = [4, 155], strides = [1, 1]} : vector<4x3100xf32> to vector<4x155xf32>
    %cst_24 = arith.constant dense<0.000000e+00> : vector<8x155xf32>
    %41 = tpu.matmul %39, %40, %cst_24 {dimension_numbers = #tpu.dot_dimension_numbers<[1], [0], [0], [1], [0, 0, 1, 1], [], []>} : vector<8x4xf32>, vector<4x155xf32>, vector<8x155xf32> -> vector<8x155xf32>
    %42 = arith.addf %37, %41 : vector<8x155xf32>
    %c2 = arith.constant 2 : index
    %c0_25 = arith.constant 0 : index
    %c0_26 = arith.constant 0 : index
    %43 = vector.load %arg6[%c2, %c0_25, %c0_26] : memref<20x8x4xf32, #tpu.memory_space<vmem>>, vector<1x8x4xf32>
    %44 = vector.shape_cast %43 : vector<1x8x4xf32> to vector<8x4xf32>
    %45 = vector.extract_strided_slice %31 {offsets = [0, 310], sizes = [4, 155], strides = [1, 1]} : vector<4x3100xf32> to vector<4x155xf32>
    %cst_27 = arith.constant dense<0.000000e+00> : vector<8x155xf32>
    %46 = tpu.matmul %44, %45, %cst_27 {dimension_numbers = #tpu.dot_dimension_numbers<[1], [0], [0], [1], [0, 0, 1, 1], [], []>} : vector<8x4xf32>, vector<4x155xf32>, vector<8x155xf32> -> vector<8x155xf32>
    %47 = arith.addf %42, %46 : vector<8x155xf32>
    %c3 = arith.constant 3 : index
    %c0_28 = arith.constant 0 : index
    %c0_29 = arith.constant 0 : index
    %48 = vector.load %arg6[%c3, %c0_28, %c0_29] : memref<20x8x4xf32, #tpu.memory_space<vmem>>, vector<1x8x4xf32>
    %49 = vector.shape_cast %48 : vector<1x8x4xf32> to vector<8x4xf32>
    %50 = vector.extract_strided_slice %31 {offsets = [0, 465], sizes = [4, 155], strides = [1, 1]} : vector<4x3100xf32> to vector<4x155xf32>
    %cst_30 = arith.constant dense<0.000000e+00> : vector<8x155xf32>
    %51 = tpu.matmul %49, %50, %cst_30 {dimension_numbers = #tpu.dot_dimension_numbers<[1], [0], [0], [1], [0, 0, 1, 1], [], []>} : vector<8x4xf32>, vector<4x155xf32>, vector<8x155xf32> -> vector<8x155xf32>
    %52 = arith.addf %47, %51 : vector<8x155xf32>
    %c4 = arith.constant 4 : index
    %c0_31 = arith.constant 0 : index
    %c0_32 = arith.constant 0 : index
    %53 = vector.load %arg6[%c4, %c0_31, %c0_32] : memref<20x8x4xf32, #tpu.memory_space<vmem>>, vector<1x8x4xf32>
    %54 = vector.shape_cast %53 : vector<1x8x4xf32> to vector<8x4xf32>
    %55 = vector.extract_strided_slice %31 {offsets = [0, 620], sizes = [4, 155], strides = [1, 1]} : vector<4x3100xf32> to vector<4x155xf32>
    %cst_33 = arith.constant dense<0.000000e+00> : vector<8x155xf32>
    %56 = tpu.matmul %54, %55, %cst_33 {dimension_numbers = #tpu.dot_dimension_numbers<[1], [0], [0], [1], [0, 0, 1, 1], [], []>} : vector<8x4xf32>, vector<4x155xf32>, vector<8x155xf32> -> vector<8x155xf32>
    %57 = arith.addf %52, %56 : vector<8x155xf32>
    %c5 = arith.constant 5 : index
    %c0_34 = arith.constant 0 : index
    %c0_35 = arith.constant 0 : index
    %58 = vector.load %arg6[%c5, %c0_34, %c0_35] : memref<20x8x4xf32, #tpu.memory_space<vmem>>, vector<1x8x4xf32>
    %59 = vector.shape_cast %58 : vector<1x8x4xf32> to vector<8x4xf32>
    %60 = vector.extract_strided_slice %31 {offsets = [0, 775], sizes = [4, 155], strides = [1, 1]} : vector<4x3100xf32> to vector<4x155xf32>
    %cst_36 = arith.constant dense<0.000000e+00> : vector<8x155xf32>
    %61 = tpu.matmul %59, %60, %cst_36 {dimension_numbers = #tpu.dot_dimension_numbers<[1], [0], [0], [1], [0, 0, 1, 1], [], []>} : vector<8x4xf32>, vector<4x155xf32>, vector<8x155xf32> -> vector<8x155xf32>
    %62 = arith.addf %57, %61 : vector<8x155xf32>
    %c6 = arith.constant 6 : index
    %c0_37 = arith.constant 0 : index
    %c0_38 = arith.constant 0 : index
    %63 = vector.load %arg6[%c6, %c0_37, %c0_38] : memref<20x8x4xf32, #tpu.memory_space<vmem>>, vector<1x8x4xf32>
    %64 = vector.shape_cast %63 : vector<1x8x4xf32> to vector<8x4xf32>
    %65 = vector.extract_strided_slice %31 {offsets = [0, 930], sizes = [4, 155], strides = [1, 1]} : vector<4x3100xf32> to vector<4x155xf32>
    %cst_39 = arith.constant dense<0.000000e+00> : vector<8x155xf32>
    %66 = tpu.matmul %64, %65, %cst_39 {dimension_numbers = #tpu.dot_dimension_numbers<[1], [0], [0], [1], [0, 0, 1, 1], [], []>} : vector<8x4xf32>, vector<4x155xf32>, vector<8x155xf32> -> vector<8x155xf32>
    %67 = arith.addf %62, %66 : vector<8x155xf32>
    %c7 = arith.constant 7 : index
    %c0_40 = arith.constant 0 : index
    %c0_41 = arith.constant 0 : index
    %68 = vector.load %arg6[%c7, %c0_40, %c0_41] : memref<20x8x4xf32, #tpu.memory_space<vmem>>, vector<1x8x4xf32>
    %69 = vector.shape_cast %68 : vector<1x8x4xf32> to vector<8x4xf32>
    %70 = vector.extract_strided_slice %31 {offsets = [0, 1085], sizes = [4, 155], strides = [1, 1]} : vector<4x3100xf32> to vector<4x155xf32>
    %cst_42 = arith.constant dense<0.000000e+00> : vector<8x155xf32>
    %71 = tpu.matmul %69, %70, %cst_42 {dimension_numbers = #tpu.dot_dimension_numbers<[1], [0], [0], [1], [0, 0, 1, 1], [], []>} : vector<8x4xf32>, vector<4x155xf32>, vector<8x155xf32> -> vector<8x155xf32>
    %72 = arith.addf %67, %71 : vector<8x155xf32>
    %c8 = arith.constant 8 : index
    %c0_43 = arith.constant 0 : index
    %c0_44 = arith.constant 0 : index
    %73 = vector.load %arg6[%c8, %c0_43, %c0_44] : memref<20x8x4xf32, #tpu.memory_space<vmem>>, vector<1x8x4xf32>
    %74 = vector.shape_cast %73 : vector<1x8x4xf32> to vector<8x4xf32>
    %75 = vector.extract_strided_slice %31 {offsets = [0, 1240], sizes = [4, 155], strides = [1, 1]} : vector<4x3100xf32> to vector<4x155xf32>
    %cst_45 = arith.constant dense<0.000000e+00> : vector<8x155xf32>
    %76 = tpu.matmul %74, %75, %cst_45 {dimension_numbers = #tpu.dot_dimension_numbers<[1], [0], [0], [1], [0, 0, 1, 1], [], []>} : vector<8x4xf32>, vector<4x155xf32>, vector<8x155xf32> -> vector<8x155xf32>
    %77 = arith.addf %72, %76 : vector<8x155xf32>
    %c9 = arith.constant 9 : index
    %c0_46 = arith.constant 0 : index
    %c0_47 = arith.constant 0 : index
    %78 = vector.load %arg6[%c9, %c0_46, %c0_47] : memref<20x8x4xf32, #tpu.memory_space<vmem>>, vector<1x8x4xf32>
    %79 = vector.shape_cast %78 : vector<1x8x4xf32> to vector<8x4xf32>
    %80 = vector.extract_strided_slice %31 {offsets = [0, 1395], sizes = [4, 155], strides = [1, 1]} : vector<4x3100xf32> to vector<4x155xf32>
    %cst_48 = arith.constant dense<0.000000e+00> : vector<8x155xf32>
    %81 = tpu.matmul %79, %80, %cst_48 {dimension_numbers = #tpu.dot_dimension_numbers<[1], [0], [0], [1], [0, 0, 1, 1], [], []>} : vector<8x4xf32>, vector<4x155xf32>, vector<8x155xf32> -> vector<8x155xf32>
    %82 = arith.addf %77, %81 : vector<8x155xf32>
    %c10 = arith.constant 10 : index
    %c0_49 = arith.constant 0 : index
    %c0_50 = arith.constant 0 : index
    %83 = vector.load %arg6[%c10, %c0_49, %c0_50] : memref<20x8x4xf32, #tpu.memory_space<vmem>>, vector<1x8x4xf32>
    %84 = vector.shape_cast %83 : vector<1x8x4xf32> to vector<8x4xf32>
    %85 = vector.extract_strided_slice %31 {offsets = [0, 1550], sizes = [4, 155], strides = [1, 1]} : vector<4x3100xf32> to vector<4x155xf32>
    %cst_51 = arith.constant dense<0.000000e+00> : vector<8x155xf32>
    %86 = tpu.matmul %84, %85, %cst_51 {dimension_numbers = #tpu.dot_dimension_numbers<[1], [0], [0], [1], [0, 0, 1, 1], [], []>} : vector<8x4xf32>, vector<4x155xf32>, vector<8x155xf32> -> vector<8x155xf32>
    %87 = arith.addf %82, %86 : vector<8x155xf32>
    %c11 = arith.constant 11 : index
    %c0_52 = arith.constant 0 : index
    %c0_53 = arith.constant 0 : index
    %88 = vector.load %arg6[%c11, %c0_52, %c0_53] : memref<20x8x4xf32, #tpu.memory_space<vmem>>, vector<1x8x4xf32>
    %89 = vector.shape_cast %88 : vector<1x8x4xf32> to vector<8x4xf32>
    %90 = vector.extract_strided_slice %31 {offsets = [0, 1705], sizes = [4, 155], strides = [1, 1]} : vector<4x3100xf32> to vector<4x155xf32>
    %cst_54 = arith.constant dense<0.000000e+00> : vector<8x155xf32>
    %91 = tpu.matmul %89, %90, %cst_54 {dimension_numbers = #tpu.dot_dimension_numbers<[1], [0], [0], [1], [0, 0, 1, 1], [], []>} : vector<8x4xf32>, vector<4x155xf32>, vector<8x155xf32> -> vector<8x155xf32>
    %92 = arith.addf %87, %91 : vector<8x155xf32>
    %c12 = arith.constant 12 : index
    %c0_55 = arith.constant 0 : index
    %c0_56 = arith.constant 0 : index
    %93 = vector.load %arg6[%c12, %c0_55, %c0_56] : memref<20x8x4xf32, #tpu.memory_space<vmem>>, vector<1x8x4xf32>
    %94 = vector.shape_cast %93 : vector<1x8x4xf32> to vector<8x4xf32>
    %95 = vector.extract_strided_slice %31 {offsets = [0, 1860], sizes = [4, 155], strides = [1, 1]} : vector<4x3100xf32> to vector<4x155xf32>
    %cst_57 = arith.constant dense<0.000000e+00> : vector<8x155xf32>
    %96 = tpu.matmul %94, %95, %cst_57 {dimension_numbers = #tpu.dot_dimension_numbers<[1], [0], [0], [1], [0, 0, 1, 1], [], []>} : vector<8x4xf32>, vector<4x155xf32>, vector<8x155xf32> -> vector<8x155xf32>
    %97 = arith.addf %92, %96 : vector<8x155xf32>
    %c13 = arith.constant 13 : index
    %c0_58 = arith.constant 0 : index
    %c0_59 = arith.constant 0 : index
    %98 = vector.load %arg6[%c13, %c0_58, %c0_59] : memref<20x8x4xf32, #tpu.memory_space<vmem>>, vector<1x8x4xf32>
    %99 = vector.shape_cast %98 : vector<1x8x4xf32> to vector<8x4xf32>
    %100 = vector.extract_strided_slice %31 {offsets = [0, 2015], sizes = [4, 155], strides = [1, 1]} : vector<4x3100xf32> to vector<4x155xf32>
    %cst_60 = arith.constant dense<0.000000e+00> : vector<8x155xf32>
    %101 = tpu.matmul %99, %100, %cst_60 {dimension_numbers = #tpu.dot_dimension_numbers<[1], [0], [0], [1], [0, 0, 1, 1], [], []>} : vector<8x4xf32>, vector<4x155xf32>, vector<8x155xf32> -> vector<8x155xf32>
    %102 = arith.addf %97, %101 : vector<8x155xf32>
    %c14 = arith.constant 14 : index
    %c0_61 = arith.constant 0 : index
    %c0_62 = arith.constant 0 : index
    %103 = vector.load %arg6[%c14, %c0_61, %c0_62] : memref<20x8x4xf32, #tpu.memory_space<vmem>>, vector<1x8x4xf32>
    %104 = vector.shape_cast %103 : vector<1x8x4xf32> to vector<8x4xf32>
    %105 = vector.extract_strided_slice %31 {offsets = [0, 2170], sizes = [4, 155], strides = [1, 1]} : vector<4x3100xf32> to vector<4x155xf32>
    %cst_63 = arith.constant dense<0.000000e+00> : vector<8x155xf32>
    %106 = tpu.matmul %104, %105, %cst_63 {dimension_numbers = #tpu.dot_dimension_numbers<[1], [0], [0], [1], [0, 0, 1, 1], [], []>} : vector<8x4xf32>, vector<4x155xf32>, vector<8x155xf32> -> vector<8x155xf32>
    %107 = arith.addf %102, %106 : vector<8x155xf32>
    %c15 = arith.constant 15 : index
    %c0_64 = arith.constant 0 : index
    %c0_65 = arith.constant 0 : index
    %108 = vector.load %arg6[%c15, %c0_64, %c0_65] : memref<20x8x4xf32, #tpu.memory_space<vmem>>, vector<1x8x4xf32>
    %109 = vector.shape_cast %108 : vector<1x8x4xf32> to vector<8x4xf32>
    %110 = vector.extract_strided_slice %31 {offsets = [0, 2325], sizes = [4, 155], strides = [1, 1]} : vector<4x3100xf32> to vector<4x155xf32>
    %cst_66 = arith.constant dense<0.000000e+00> : vector<8x155xf32>
    %111 = tpu.matmul %109, %110, %cst_66 {dimension_numbers = #tpu.dot_dimension_numbers<[1], [0], [0], [1], [0, 0, 1, 1], [], []>} : vector<8x4xf32>, vector<4x155xf32>, vector<8x155xf32> -> vector<8x155xf32>
    %112 = arith.addf %107, %111 : vector<8x155xf32>
    %c16 = arith.constant 16 : index
    %c0_67 = arith.constant 0 : index
    %c0_68 = arith.constant 0 : index
    %113 = vector.load %arg6[%c16, %c0_67, %c0_68] : memref<20x8x4xf32, #tpu.memory_space<vmem>>, vector<1x8x4xf32>
    %114 = vector.shape_cast %113 : vector<1x8x4xf32> to vector<8x4xf32>
    %115 = vector.extract_strided_slice %31 {offsets = [0, 2480], sizes = [4, 155], strides = [1, 1]} : vector<4x3100xf32> to vector<4x155xf32>
    %cst_69 = arith.constant dense<0.000000e+00> : vector<8x155xf32>
    %116 = tpu.matmul %114, %115, %cst_69 {dimension_numbers = #tpu.dot_dimension_numbers<[1], [0], [0], [1], [0, 0, 1, 1], [], []>} : vector<8x4xf32>, vector<4x155xf32>, vector<8x155xf32> -> vector<8x155xf32>
    %117 = arith.addf %112, %116 : vector<8x155xf32>
    %c17 = arith.constant 17 : index
    %c0_70 = arith.constant 0 : index
    %c0_71 = arith.constant 0 : index
    %118 = vector.load %arg6[%c17, %c0_70, %c0_71] : memref<20x8x4xf32, #tpu.memory_space<vmem>>, vector<1x8x4xf32>
    %119 = vector.shape_cast %118 : vector<1x8x4xf32> to vector<8x4xf32>
    %120 = vector.extract_strided_slice %31 {offsets = [0, 2635], sizes = [4, 155], strides = [1, 1]} : vector<4x3100xf32> to vector<4x155xf32>
    %cst_72 = arith.constant dense<0.000000e+00> : vector<8x155xf32>
    %121 = tpu.matmul %119, %120, %cst_72 {dimension_numbers = #tpu.dot_dimension_numbers<[1], [0], [0], [1], [0, 0, 1, 1], [], []>} : vector<8x4xf32>, vector<4x155xf32>, vector<8x155xf32> -> vector<8x155xf32>
    %122 = arith.addf %117, %121 : vector<8x155xf32>
    %c18 = arith.constant 18 : index
    %c0_73 = arith.constant 0 : index
    %c0_74 = arith.constant 0 : index
    %123 = vector.load %arg6[%c18, %c0_73, %c0_74] : memref<20x8x4xf32, #tpu.memory_space<vmem>>, vector<1x8x4xf32>
    %124 = vector.shape_cast %123 : vector<1x8x4xf32> to vector<8x4xf32>
    %125 = vector.extract_strided_slice %31 {offsets = [0, 2790], sizes = [4, 155], strides = [1, 1]} : vector<4x3100xf32> to vector<4x155xf32>
    %cst_75 = arith.constant dense<0.000000e+00> : vector<8x155xf32>
    %126 = tpu.matmul %124, %125, %cst_75 {dimension_numbers = #tpu.dot_dimension_numbers<[1], [0], [0], [1], [0, 0, 1, 1], [], []>} : vector<8x4xf32>, vector<4x155xf32>, vector<8x155xf32> -> vector<8x155xf32>
    %127 = arith.addf %122, %126 : vector<8x155xf32>
    %c19 = arith.constant 19 : index
    %c0_76 = arith.constant 0 : index
    %c0_77 = arith.constant 0 : index
    %128 = vector.load %arg6[%c19, %c0_76, %c0_77] : memref<20x8x4xf32, #tpu.memory_space<vmem>>, vector<1x8x4xf32>
    %129 = vector.shape_cast %128 : vector<1x8x4xf32> to vector<8x4xf32>
    %130 = vector.extract_strided_slice %31 {offsets = [0, 2945], sizes = [4, 155], strides = [1, 1]} : vector<4x3100xf32> to vector<4x155xf32>
    %cst_78 = arith.constant dense<0.000000e+00> : vector<8x155xf32>
    %131 = tpu.matmul %129, %130, %cst_78 {dimension_numbers = #tpu.dot_dimension_numbers<[1], [0], [0], [1], [0, 0, 1, 1], [], []>} : vector<8x4xf32>, vector<4x155xf32>, vector<8x155xf32> -> vector<8x155xf32>
    %132 = arith.addf %127, %131 : vector<8x155xf32>
    %133 = vector.shape_cast %132 : vector<8x155xf32> to vector<1x8x155xf32>
    %cst_79 = arith.constant dense<0.000000e+00> : vector<1xf32>
    %134 = vector.multi_reduction <add>, %133, %cst_79 [1, 2] : vector<1x8x155xf32> to vector<1xf32>
    %135 = vector.shape_cast %134 : vector<1xf32> to vector<1x1x1xf32>
    %136 = vector.extract %135[0, 0, 0] : f32 from vector<1x1x1xf32>
    %cst_80 = arith.constant 1.240000e+03 : f32
    %137 = arith.divf %136, %cst_80 : f32
    %138 = vector.broadcast %137 : f32 to vector<8x155xf32>
    %139 = arith.subf %132, %138 : vector<8x155xf32>
    %140 = arith.mulf %139, %139 : vector<8x155xf32>
    %141 = vector.shape_cast %140 : vector<8x155xf32> to vector<1x8x155xf32>
    %cst_81 = arith.constant dense<0.000000e+00> : vector<1xf32>
    %142 = vector.multi_reduction <add>, %141, %cst_81 [1, 2] : vector<1x8x155xf32> to vector<1xf32>
    %143 = vector.shape_cast %142 : vector<1xf32> to vector<1x1x1xf32>
    %144 = vector.extract %143[0, 0, 0] : f32 from vector<1x1x1xf32>
    %cst_82 = arith.constant 1.240000e+03 : f32
    %145 = arith.divf %144, %cst_82 : f32
    %146 = vector.broadcast %137 : f32 to vector<8x155xf32>
    %147 = arith.subf %132, %146 : vector<8x155xf32>
    %cst_83 = arith.constant 9.99999974E-6 : f32
    %148 = arith.addf %145, %cst_83 : f32
    %149 = math.rsqrt %148 : f32
    %150 = vector.broadcast %149 : f32 to vector<8x155xf32>
    %151 = arith.mulf %147, %150 : vector<8x155xf32>
    %c0_84 = arith.constant 0 : index
    %c0_85 = arith.constant 0 : index
    %152 = vector.load %arg7[%c0_84, %c0_85] : memref<8x155xf32, #tpu.memory_space<vmem>>, vector<8x155xf32>
    %153 = arith.mulf %151, %152 : vector<8x155xf32>
    %c0_86 = arith.constant 0 : index
    %c0_87 = arith.constant 0 : index
    %154 = vector.load %arg8[%c0_86, %c0_87] : memref<8x155xf32, #tpu.memory_space<vmem>>, vector<8x155xf32>
    %155 = arith.addf %153, %154 : vector<8x155xf32>
    %cst_88 = arith.constant 0.000000e+00 : f32
    %156 = vector.broadcast %cst_88 : f32 to vector<8x155xf32>
    %157 = arith.maximumf %155, %156 : vector<8x155xf32>
    %c0_89 = arith.constant 0 : index
    %c0_90 = arith.constant 0 : index
    %158 = vector.load %arg9[%c0_89, %c0_90] : memref<155x640xf32, #tpu.memory_space<vmem>>, vector<155x640xf32>
    %cst_91 = arith.constant dense<0.000000e+00> : vector<8x640xf32>
    %159 = tpu.matmul %157, %158, %cst_91 {dimension_numbers = #tpu.dot_dimension_numbers<[1], [0], [0], [1], [0, 0, 1, 1], [], []>} : vector<8x155xf32>, vector<155x640xf32>, vector<8x640xf32> -> vector<8x640xf32>
    %cst_92 = arith.constant 0.000000e+00 : f32
    %160 = vector.broadcast %cst_92 : f32 to vector<16x32xf32>
    %c0_93 = arith.constant 0 : index
    %c0_94 = arith.constant 0 : index
    %c0_95 = arith.constant 0 : index
    %161 = vector.load %arg10[%c0_93, %c0_94, %c0_95] : memref<20x16x8xf32, #tpu.memory_space<vmem>>, vector<1x16x8xf32>
    %162 = vector.shape_cast %161 : vector<1x16x8xf32> to vector<16x8xf32>
    %163 = vector.extract_strided_slice %159 {offsets = [0, 0], sizes = [8, 32], strides = [1, 1]} : vector<8x640xf32> to vector<8x32xf32>
    %cst_96 = arith.constant dense<0.000000e+00> : vector<16x32xf32>
    %164 = tpu.matmul %162, %163, %cst_96 {dimension_numbers = #tpu.dot_dimension_numbers<[1], [0], [0], [1], [0, 0, 1, 1], [], []>} : vector<16x8xf32>, vector<8x32xf32>, vector<16x32xf32> -> vector<16x32xf32>
    %165 = arith.addf %160, %164 : vector<16x32xf32>
    %c1_97 = arith.constant 1 : index
    %c0_98 = arith.constant 0 : index
    %c0_99 = arith.constant 0 : index
    %166 = vector.load %arg10[%c1_97, %c0_98, %c0_99] : memref<20x16x8xf32, #tpu.memory_space<vmem>>, vector<1x16x8xf32>
    %167 = vector.shape_cast %166 : vector<1x16x8xf32> to vector<16x8xf32>
    %168 = vector.extract_strided_slice %159 {offsets = [0, 32], sizes = [8, 32], strides = [1, 1]} : vector<8x640xf32> to vector<8x32xf32>
    %cst_100 = arith.constant dense<0.000000e+00> : vector<16x32xf32>
    %169 = tpu.matmul %167, %168, %cst_100 {dimension_numbers = #tpu.dot_dimension_numbers<[1], [0], [0], [1], [0, 0, 1, 1], [], []>} : vector<16x8xf32>, vector<8x32xf32>, vector<16x32xf32> -> vector<16x32xf32>
    %170 = arith.addf %165, %169 : vector<16x32xf32>
    %c2_101 = arith.constant 2 : index
    %c0_102 = arith.constant 0 : index
    %c0_103 = arith.constant 0 : index
    %171 = vector.load %arg10[%c2_101, %c0_102, %c0_103] : memref<20x16x8xf32, #tpu.memory_space<vmem>>, vector<1x16x8xf32>
    %172 = vector.shape_cast %171 : vector<1x16x8xf32> to vector<16x8xf32>
    %173 = vector.extract_strided_slice %159 {offsets = [0, 64], sizes = [8, 32], strides = [1, 1]} : vector<8x640xf32> to vector<8x32xf32>
    %cst_104 = arith.constant dense<0.000000e+00> : vector<16x32xf32>
    %174 = tpu.matmul %172, %173, %cst_104 {dimension_numbers = #tpu.dot_dimension_numbers<[1], [0], [0], [1], [0, 0, 1, 1], [], []>} : vector<16x8xf32>, vector<8x32xf32>, vector<16x32xf32> -> vector<16x32xf32>
    %175 = arith.addf %170, %174 : vector<16x32xf32>
    %c3_105 = arith.constant 3 : index
    %c0_106 = arith.constant 0 : index
    %c0_107 = arith.constant 0 : index
    %176 = vector.load %arg10[%c3_105, %c0_106, %c0_107] : memref<20x16x8xf32, #tpu.memory_space<vmem>>, vector<1x16x8xf32>
    %177 = vector.shape_cast %176 : vector<1x16x8xf32> to vector<16x8xf32>
    %178 = vector.extract_strided_slice %159 {offsets = [0, 96], sizes = [8, 32], strides = [1, 1]} : vector<8x640xf32> to vector<8x32xf32>
    %cst_108 = arith.constant dense<0.000000e+00> : vector<16x32xf32>
    %179 = tpu.matmul %177, %178, %cst_108 {dimension_numbers = #tpu.dot_dimension_numbers<[1], [0], [0], [1], [0, 0, 1, 1], [], []>} : vector<16x8xf32>, vector<8x32xf32>, vector<16x32xf32> -> vector<16x32xf32>
    %180 = arith.addf %175, %179 : vector<16x32xf32>
    %c4_109 = arith.constant 4 : index
    %c0_110 = arith.constant 0 : index
    %c0_111 = arith.constant 0 : index
    %181 = vector.load %arg10[%c4_109, %c0_110, %c0_111] : memref<20x16x8xf32, #tpu.memory_space<vmem>>, vector<1x16x8xf32>
    %182 = vector.shape_cast %181 : vector<1x16x8xf32> to vector<16x8xf32>
    %183 = vector.extract_strided_slice %159 {offsets = [0, 128], sizes = [8, 32], strides = [1, 1]} : vector<8x640xf32> to vector<8x32xf32>
    %cst_112 = arith.constant dense<0.000000e+00> : vector<16x32xf32>
    %184 = tpu.matmul %182, %183, %cst_112 {dimension_numbers = #tpu.dot_dimension_numbers<[1], [0], [0], [1], [0, 0, 1, 1], [], []>} : vector<16x8xf32>, vector<8x32xf32>, vector<16x32xf32> -> vector<16x32xf32>
    %185 = arith.addf %180, %184 : vector<16x32xf32>
    %c5_113 = arith.constant 5 : index
    %c0_114 = arith.constant 0 : index
    %c0_115 = arith.constant 0 : index
    %186 = vector.load %arg10[%c5_113, %c0_114, %c0_115] : memref<20x16x8xf32, #tpu.memory_space<vmem>>, vector<1x16x8xf32>
    %187 = vector.shape_cast %186 : vector<1x16x8xf32> to vector<16x8xf32>
    %188 = vector.extract_strided_slice %159 {offsets = [0, 160], sizes = [8, 32], strides = [1, 1]} : vector<8x640xf32> to vector<8x32xf32>
    %cst_116 = arith.constant dense<0.000000e+00> : vector<16x32xf32>
    %189 = tpu.matmul %187, %188, %cst_116 {dimension_numbers = #tpu.dot_dimension_numbers<[1], [0], [0], [1], [0, 0, 1, 1], [], []>} : vector<16x8xf32>, vector<8x32xf32>, vector<16x32xf32> -> vector<16x32xf32>
    %190 = arith.addf %185, %189 : vector<16x32xf32>
    %c6_117 = arith.constant 6 : index
    %c0_118 = arith.constant 0 : index
    %c0_119 = arith.constant 0 : index
    %191 = vector.load %arg10[%c6_117, %c0_118, %c0_119] : memref<20x16x8xf32, #tpu.memory_space<vmem>>, vector<1x16x8xf32>
    %192 = vector.shape_cast %191 : vector<1x16x8xf32> to vector<16x8xf32>
    %193 = vector.extract_strided_slice %159 {offsets = [0, 192], sizes = [8, 32], strides = [1, 1]} : vector<8x640xf32> to vector<8x32xf32>
    %cst_120 = arith.constant dense<0.000000e+00> : vector<16x32xf32>
    %194 = tpu.matmul %192, %193, %cst_120 {dimension_numbers = #tpu.dot_dimension_numbers<[1], [0], [0], [1], [0, 0, 1, 1], [], []>} : vector<16x8xf32>, vector<8x32xf32>, vector<16x32xf32> -> vector<16x32xf32>
    %195 = arith.addf %190, %194 : vector<16x32xf32>
    %c7_121 = arith.constant 7 : index
    %c0_122 = arith.constant 0 : index
    %c0_123 = arith.constant 0 : index
    %196 = vector.load %arg10[%c7_121, %c0_122, %c0_123] : memref<20x16x8xf32, #tpu.memory_space<vmem>>, vector<1x16x8xf32>
    %197 = vector.shape_cast %196 : vector<1x16x8xf32> to vector<16x8xf32>
    %198 = vector.extract_strided_slice %159 {offsets = [0, 224], sizes = [8, 32], strides = [1, 1]} : vector<8x640xf32> to vector<8x32xf32>
    %cst_124 = arith.constant dense<0.000000e+00> : vector<16x32xf32>
    %199 = tpu.matmul %197, %198, %cst_124 {dimension_numbers = #tpu.dot_dimension_numbers<[1], [0], [0], [1], [0, 0, 1, 1], [], []>} : vector<16x8xf32>, vector<8x32xf32>, vector<16x32xf32> -> vector<16x32xf32>
    %200 = arith.addf %195, %199 : vector<16x32xf32>
    %c8_125 = arith.constant 8 : index
    %c0_126 = arith.constant 0 : index
    %c0_127 = arith.constant 0 : index
    %201 = vector.load %arg10[%c8_125, %c0_126, %c0_127] : memref<20x16x8xf32, #tpu.memory_space<vmem>>, vector<1x16x8xf32>
    %202 = vector.shape_cast %201 : vector<1x16x8xf32> to vector<16x8xf32>
    %203 = vector.extract_strided_slice %159 {offsets = [0, 256], sizes = [8, 32], strides = [1, 1]} : vector<8x640xf32> to vector<8x32xf32>
    %cst_128 = arith.constant dense<0.000000e+00> : vector<16x32xf32>
    %204 = tpu.matmul %202, %203, %cst_128 {dimension_numbers = #tpu.dot_dimension_numbers<[1], [0], [0], [1], [0, 0, 1, 1], [], []>} : vector<16x8xf32>, vector<8x32xf32>, vector<16x32xf32> -> vector<16x32xf32>
    %205 = arith.addf %200, %204 : vector<16x32xf32>
    %c9_129 = arith.constant 9 : index
    %c0_130 = arith.constant 0 : index
    %c0_131 = arith.constant 0 : index
    %206 = vector.load %arg10[%c9_129, %c0_130, %c0_131] : memref<20x16x8xf32, #tpu.memory_space<vmem>>, vector<1x16x8xf32>
    %207 = vector.shape_cast %206 : vector<1x16x8xf32> to vector<16x8xf32>
    %208 = vector.extract_strided_slice %159 {offsets = [0, 288], sizes = [8, 32], strides = [1, 1]} : vector<8x640xf32> to vector<8x32xf32>
    %cst_132 = arith.constant dense<0.000000e+00> : vector<16x32xf32>
    %209 = tpu.matmul %207, %208, %cst_132 {dimension_numbers = #tpu.dot_dimension_numbers<[1], [0], [0], [1], [0, 0, 1, 1], [], []>} : vector<16x8xf32>, vector<8x32xf32>, vector<16x32xf32> -> vector<16x32xf32>
    %210 = arith.addf %205, %209 : vector<16x32xf32>
    %c10_133 = arith.constant 10 : index
    %c0_134 = arith.constant 0 : index
    %c0_135 = arith.constant 0 : index
    %211 = vector.load %arg10[%c10_133, %c0_134, %c0_135] : memref<20x16x8xf32, #tpu.memory_space<vmem>>, vector<1x16x8xf32>
    %212 = vector.shape_cast %211 : vector<1x16x8xf32> to vector<16x8xf32>
    %213 = vector.extract_strided_slice %159 {offsets = [0, 320], sizes = [8, 32], strides = [1, 1]} : vector<8x640xf32> to vector<8x32xf32>
    %cst_136 = arith.constant dense<0.000000e+00> : vector<16x32xf32>
    %214 = tpu.matmul %212, %213, %cst_136 {dimension_numbers = #tpu.dot_dimension_numbers<[1], [0], [0], [1], [0, 0, 1, 1], [], []>} : vector<16x8xf32>, vector<8x32xf32>, vector<16x32xf32> -> vector<16x32xf32>
    %215 = arith.addf %210, %214 : vector<16x32xf32>
    %c11_137 = arith.constant 11 : index
    %c0_138 = arith.constant 0 : index
    %c0_139 = arith.constant 0 : index
    %216 = vector.load %arg10[%c11_137, %c0_138, %c0_139] : memref<20x16x8xf32, #tpu.memory_space<vmem>>, vector<1x16x8xf32>
    %217 = vector.shape_cast %216 : vector<1x16x8xf32> to vector<16x8xf32>
    %218 = vector.extract_strided_slice %159 {offsets = [0, 352], sizes = [8, 32], strides = [1, 1]} : vector<8x640xf32> to vector<8x32xf32>
    %cst_140 = arith.constant dense<0.000000e+00> : vector<16x32xf32>
    %219 = tpu.matmul %217, %218, %cst_140 {dimension_numbers = #tpu.dot_dimension_numbers<[1], [0], [0], [1], [0, 0, 1, 1], [], []>} : vector<16x8xf32>, vector<8x32xf32>, vector<16x32xf32> -> vector<16x32xf32>
    %220 = arith.addf %215, %219 : vector<16x32xf32>
    %c12_141 = arith.constant 12 : index
    %c0_142 = arith.constant 0 : index
    %c0_143 = arith.constant 0 : index
    %221 = vector.load %arg10[%c12_141, %c0_142, %c0_143] : memref<20x16x8xf32, #tpu.memory_space<vmem>>, vector<1x16x8xf32>
    %222 = vector.shape_cast %221 : vector<1x16x8xf32> to vector<16x8xf32>
    %223 = vector.extract_strided_slice %159 {offsets = [0, 384], sizes = [8, 32], strides = [1, 1]} : vector<8x640xf32> to vector<8x32xf32>
    %cst_144 = arith.constant dense<0.000000e+00> : vector<16x32xf32>
    %224 = tpu.matmul %222, %223, %cst_144 {dimension_numbers = #tpu.dot_dimension_numbers<[1], [0], [0], [1], [0, 0, 1, 1], [], []>} : vector<16x8xf32>, vector<8x32xf32>, vector<16x32xf32> -> vector<16x32xf32>
    %225 = arith.addf %220, %224 : vector<16x32xf32>
    %c13_145 = arith.constant 13 : index
    %c0_146 = arith.constant 0 : index
    %c0_147 = arith.constant 0 : index
    %226 = vector.load %arg10[%c13_145, %c0_146, %c0_147] : memref<20x16x8xf32, #tpu.memory_space<vmem>>, vector<1x16x8xf32>
    %227 = vector.shape_cast %226 : vector<1x16x8xf32> to vector<16x8xf32>
    %228 = vector.extract_strided_slice %159 {offsets = [0, 416], sizes = [8, 32], strides = [1, 1]} : vector<8x640xf32> to vector<8x32xf32>
    %cst_148 = arith.constant dense<0.000000e+00> : vector<16x32xf32>
    %229 = tpu.matmul %227, %228, %cst_148 {dimension_numbers = #tpu.dot_dimension_numbers<[1], [0], [0], [1], [0, 0, 1, 1], [], []>} : vector<16x8xf32>, vector<8x32xf32>, vector<16x32xf32> -> vector<16x32xf32>
    %230 = arith.addf %225, %229 : vector<16x32xf32>
    %c14_149 = arith.constant 14 : index
    %c0_150 = arith.constant 0 : index
    %c0_151 = arith.constant 0 : index
    %231 = vector.load %arg10[%c14_149, %c0_150, %c0_151] : memref<20x16x8xf32, #tpu.memory_space<vmem>>, vector<1x16x8xf32>
    %232 = vector.shape_cast %231 : vector<1x16x8xf32> to vector<16x8xf32>
    %233 = vector.extract_strided_slice %159 {offsets = [0, 448], sizes = [8, 32], strides = [1, 1]} : vector<8x640xf32> to vector<8x32xf32>
    %cst_152 = arith.constant dense<0.000000e+00> : vector<16x32xf32>
    %234 = tpu.matmul %232, %233, %cst_152 {dimension_numbers = #tpu.dot_dimension_numbers<[1], [0], [0], [1], [0, 0, 1, 1], [], []>} : vector<16x8xf32>, vector<8x32xf32>, vector<16x32xf32> -> vector<16x32xf32>
    %235 = arith.addf %230, %234 : vector<16x32xf32>
    %c15_153 = arith.constant 15 : index
    %c0_154 = arith.constant 0 : index
    %c0_155 = arith.constant 0 : index
    %236 = vector.load %arg10[%c15_153, %c0_154, %c0_155] : memref<20x16x8xf32, #tpu.memory_space<vmem>>, vector<1x16x8xf32>
    %237 = vector.shape_cast %236 : vector<1x16x8xf32> to vector<16x8xf32>
    %238 = vector.extract_strided_slice %159 {offsets = [0, 480], sizes = [8, 32], strides = [1, 1]} : vector<8x640xf32> to vector<8x32xf32>
    %cst_156 = arith.constant dense<0.000000e+00> : vector<16x32xf32>
    %239 = tpu.matmul %237, %238, %cst_156 {dimension_numbers = #tpu.dot_dimension_numbers<[1], [0], [0], [1], [0, 0, 1, 1], [], []>} : vector<16x8xf32>, vector<8x32xf32>, vector<16x32xf32> -> vector<16x32xf32>
    %240 = arith.addf %235, %239 : vector<16x32xf32>
    %c16_157 = arith.constant 16 : index
    %c0_158 = arith.constant 0 : index
    %c0_159 = arith.constant 0 : index
    %241 = vector.load %arg10[%c16_157, %c0_158, %c0_159] : memref<20x16x8xf32, #tpu.memory_space<vmem>>, vector<1x16x8xf32>
    %242 = vector.shape_cast %241 : vector<1x16x8xf32> to vector<16x8xf32>
    %243 = vector.extract_strided_slice %159 {offsets = [0, 512], sizes = [8, 32], strides = [1, 1]} : vector<8x640xf32> to vector<8x32xf32>
    %cst_160 = arith.constant dense<0.000000e+00> : vector<16x32xf32>
    %244 = tpu.matmul %242, %243, %cst_160 {dimension_numbers = #tpu.dot_dimension_numbers<[1], [0], [0], [1], [0, 0, 1, 1], [], []>} : vector<16x8xf32>, vector<8x32xf32>, vector<16x32xf32> -> vector<16x32xf32>
    %245 = arith.addf %240, %244 : vector<16x32xf32>
    %c17_161 = arith.constant 17 : index
    %c0_162 = arith.constant 0 : index
    %c0_163 = arith.constant 0 : index
    %246 = vector.load %arg10[%c17_161, %c0_162, %c0_163] : memref<20x16x8xf32, #tpu.memory_space<vmem>>, vector<1x16x8xf32>
    %247 = vector.shape_cast %246 : vector<1x16x8xf32> to vector<16x8xf32>
    %248 = vector.extract_strided_slice %159 {offsets = [0, 544], sizes = [8, 32], strides = [1, 1]} : vector<8x640xf32> to vector<8x32xf32>
    %cst_164 = arith.constant dense<0.000000e+00> : vector<16x32xf32>
    %249 = tpu.matmul %247, %248, %cst_164 {dimension_numbers = #tpu.dot_dimension_numbers<[1], [0], [0], [1], [0, 0, 1, 1], [], []>} : vector<16x8xf32>, vector<8x32xf32>, vector<16x32xf32> -> vector<16x32xf32>
    %250 = arith.addf %245, %249 : vector<16x32xf32>
    %c18_165 = arith.constant 18 : index
    %c0_166 = arith.constant 0 : index
    %c0_167 = arith.constant 0 : index
    %251 = vector.load %arg10[%c18_165, %c0_166, %c0_167] : memref<20x16x8xf32, #tpu.memory_space<vmem>>, vector<1x16x8xf32>
    %252 = vector.shape_cast %251 : vector<1x16x8xf32> to vector<16x8xf32>
    %253 = vector.extract_strided_slice %159 {offsets = [0, 576], sizes = [8, 32], strides = [1, 1]} : vector<8x640xf32> to vector<8x32xf32>
    %cst_168 = arith.constant dense<0.000000e+00> : vector<16x32xf32>
    %254 = tpu.matmul %252, %253, %cst_168 {dimension_numbers = #tpu.dot_dimension_numbers<[1], [0], [0], [1], [0, 0, 1, 1], [], []>} : vector<16x8xf32>, vector<8x32xf32>, vector<16x32xf32> -> vector<16x32xf32>
    %255 = arith.addf %250, %254 : vector<16x32xf32>
    %c19_169 = arith.constant 19 : index
    %c0_170 = arith.constant 0 : index
    %c0_171 = arith.constant 0 : index
    %256 = vector.load %arg10[%c19_169, %c0_170, %c0_171] : memref<20x16x8xf32, #tpu.memory_space<vmem>>, vector<1x16x8xf32>
    %257 = vector.shape_cast %256 : vector<1x16x8xf32> to vector<16x8xf32>
    %258 = vector.extract_strided_slice %159 {offsets = [0, 608], sizes = [8, 32], strides = [1, 1]} : vector<8x640xf32> to vector<8x32xf32>
    %cst_172 = arith.constant dense<0.000000e+00> : vector<16x32xf32>
    %259 = tpu.matmul %257, %258, %cst_172 {dimension_numbers = #tpu.dot_dimension_numbers<[1], [0], [0], [1], [0, 0, 1, 1], [], []>} : vector<16x8xf32>, vector<8x32xf32>, vector<16x32xf32> -> vector<16x32xf32>
    %260 = arith.addf %255, %259 : vector<16x32xf32>
    %261 = vector.shape_cast %260 : vector<16x32xf32> to vector<1x16x32xf32>
    %cst_173 = arith.constant dense<0.000000e+00> : vector<1xf32>
    %262 = vector.multi_reduction <add>, %261, %cst_173 [1, 2] : vector<1x16x32xf32> to vector<1xf32>
    %263 = vector.shape_cast %262 : vector<1xf32> to vector<1x1x1xf32>
    %264 = vector.extract %263[0, 0, 0] : f32 from vector<1x1x1xf32>
    %cst_174 = arith.constant 5.120000e+02 : f32
    %265 = arith.divf %264, %cst_174 : f32
    %266 = vector.broadcast %265 : f32 to vector<16x32xf32>
    %267 = arith.subf %260, %266 : vector<16x32xf32>
    %268 = arith.mulf %267, %267 : vector<16x32xf32>
    %269 = vector.shape_cast %268 : vector<16x32xf32> to vector<1x16x32xf32>
    %cst_175 = arith.constant dense<0.000000e+00> : vector<1xf32>
    %270 = vector.multi_reduction <add>, %269, %cst_175 [1, 2] : vector<1x16x32xf32> to vector<1xf32>
    %271 = vector.shape_cast %270 : vector<1xf32> to vector<1x1x1xf32>
    %272 = vector.extract %271[0, 0, 0] : f32 from vector<1x1x1xf32>
    %cst_176 = arith.constant 5.120000e+02 : f32
    %273 = arith.divf %272, %cst_176 : f32
    %274 = vector.broadcast %265 : f32 to vector<16x32xf32>
    %275 = arith.subf %260, %274 : vector<16x32xf32>
    %cst_177 = arith.constant 9.99999974E-6 : f32
    %276 = arith.addf %273, %cst_177 : f32
    %277 = math.rsqrt %276 : f32
    %278 = vector.broadcast %277 : f32 to vector<16x32xf32>
    %279 = arith.mulf %275, %278 : vector<16x32xf32>
    %c0_178 = arith.constant 0 : index
    %c0_179 = arith.constant 0 : index
    %280 = vector.load %arg11[%c0_178, %c0_179] : memref<16x32xf32, #tpu.memory_space<vmem>>, vector<16x32xf32>
    %281 = arith.mulf %279, %280 : vector<16x32xf32>
    %c0_180 = arith.constant 0 : index
    %c0_181 = arith.constant 0 : index
    %282 = vector.load %arg12[%c0_180, %c0_181] : memref<16x32xf32, #tpu.memory_space<vmem>>, vector<16x32xf32>
    %283 = arith.addf %281, %282 : vector<16x32xf32>
    %cst_182 = arith.constant 0.000000e+00 : f32
    %284 = vector.broadcast %cst_182 : f32 to vector<16x32xf32>
    %285 = arith.maximumf %283, %284 : vector<16x32xf32>
    %c0_183 = arith.constant 0 : index
    %c0_184 = arith.constant 0 : index
    %286 = vector.load %arg13[%c0_183, %c0_184] : memref<32x144xf32, #tpu.memory_space<vmem>>, vector<32x144xf32>
    %cst_185 = arith.constant dense<0.000000e+00> : vector<16x144xf32>
    %287 = tpu.matmul %285, %286, %cst_185 {dimension_numbers = #tpu.dot_dimension_numbers<[1], [0], [0], [1], [0, 0, 1, 1], [], []>} : vector<16x32xf32>, vector<32x144xf32>, vector<16x144xf32> -> vector<16x144xf32>
    %cst_186 = arith.constant 0.000000e+00 : f32
    %288 = vector.broadcast %cst_186 : f32 to vector<32x9xf32>
    %c0_187 = arith.constant 0 : index
    %c0_188 = arith.constant 0 : index
    %c0_189 = arith.constant 0 : index
    %289 = vector.load %arg14[%c0_187, %c0_188, %c0_189] : memref<16x32x16xf32, #tpu.memory_space<vmem>>, vector<1x32x16xf32>
    %290 = vector.shape_cast %289 : vector<1x32x16xf32> to vector<32x16xf32>
    %291 = vector.extract_strided_slice %287 {offsets = [0, 0], sizes = [16, 9], strides = [1, 1]} : vector<16x144xf32> to vector<16x9xf32>
    %cst_190 = arith.constant dense<0.000000e+00> : vector<32x9xf32>
    %292 = tpu.matmul %290, %291, %cst_190 {dimension_numbers = #tpu.dot_dimension_numbers<[1], [0], [0], [1], [0, 0, 1, 1], [], []>} : vector<32x16xf32>, vector<16x9xf32>, vector<32x9xf32> -> vector<32x9xf32>
    %293 = arith.addf %288, %292 : vector<32x9xf32>
    %c1_191 = arith.constant 1 : index
    %c0_192 = arith.constant 0 : index
    %c0_193 = arith.constant 0 : index
    %294 = vector.load %arg14[%c1_191, %c0_192, %c0_193] : memref<16x32x16xf32, #tpu.memory_space<vmem>>, vector<1x32x16xf32>
    %295 = vector.shape_cast %294 : vector<1x32x16xf32> to vector<32x16xf32>
    %296 = vector.extract_strided_slice %287 {offsets = [0, 9], sizes = [16, 9], strides = [1, 1]} : vector<16x144xf32> to vector<16x9xf32>
    %cst_194 = arith.constant dense<0.000000e+00> : vector<32x9xf32>
    %297 = tpu.matmul %295, %296, %cst_194 {dimension_numbers = #tpu.dot_dimension_numbers<[1], [0], [0], [1], [0, 0, 1, 1], [], []>} : vector<32x16xf32>, vector<16x9xf32>, vector<32x9xf32> -> vector<32x9xf32>
    %298 = arith.addf %293, %297 : vector<32x9xf32>
    %c2_195 = arith.constant 2 : index
    %c0_196 = arith.constant 0 : index
    %c0_197 = arith.constant 0 : index
    %299 = vector.load %arg14[%c2_195, %c0_196, %c0_197] : memref<16x32x16xf32, #tpu.memory_space<vmem>>, vector<1x32x16xf32>
    %300 = vector.shape_cast %299 : vector<1x32x16xf32> to vector<32x16xf32>
    %301 = vector.extract_strided_slice %287 {offsets = [0, 18], sizes = [16, 9], strides = [1, 1]} : vector<16x144xf32> to vector<16x9xf32>
    %cst_198 = arith.constant dense<0.000000e+00> : vector<32x9xf32>
    %302 = tpu.matmul %300, %301, %cst_198 {dimension_numbers = #tpu.dot_dimension_numbers<[1], [0], [0], [1], [0, 0, 1, 1], [], []>} : vector<32x16xf32>, vector<16x9xf32>, vector<32x9xf32> -> vector<32x9xf32>
    %303 = arith.addf %298, %302 : vector<32x9xf32>
    %c3_199 = arith.constant 3 : index
    %c0_200 = arith.constant 0 : index
    %c0_201 = arith.constant 0 : index
    %304 = vector.load %arg14[%c3_199, %c0_200, %c0_201] : memref<16x32x16xf32, #tpu.memory_space<vmem>>, vector<1x32x16xf32>
    %305 = vector.shape_cast %304 : vector<1x32x16xf32> to vector<32x16xf32>
    %306 = vector.extract_strided_slice %287 {offsets = [0, 27], sizes = [16, 9], strides = [1, 1]} : vector<16x144xf32> to vector<16x9xf32>
    %cst_202 = arith.constant dense<0.000000e+00> : vector<32x9xf32>
    %307 = tpu.matmul %305, %306, %cst_202 {dimension_numbers = #tpu.dot_dimension_numbers<[1], [0], [0], [1], [0, 0, 1, 1], [], []>} : vector<32x16xf32>, vector<16x9xf32>, vector<32x9xf32> -> vector<32x9xf32>
    %308 = arith.addf %303, %307 : vector<32x9xf32>
    %c4_203 = arith.constant 4 : index
    %c0_204 = arith.constant 0 : index
    %c0_205 = arith.constant 0 : index
    %309 = vector.load %arg14[%c4_203, %c0_204, %c0_205] : memref<16x32x16xf32, #tpu.memory_space<vmem>>, vector<1x32x16xf32>
    %310 = vector.shape_cast %309 : vector<1x32x16xf32> to vector<32x16xf32>
    %311 = vector.extract_strided_slice %287 {offsets = [0, 36], sizes = [16, 9], strides = [1, 1]} : vector<16x144xf32> to vector<16x9xf32>
    %cst_206 = arith.constant dense<0.000000e+00> : vector<32x9xf32>
    %312 = tpu.matmul %310, %311, %cst_206 {dimension_numbers = #tpu.dot_dimension_numbers<[1], [0], [0], [1], [0, 0, 1, 1], [], []>} : vector<32x16xf32>, vector<16x9xf32>, vector<32x9xf32> -> vector<32x9xf32>
    %313 = arith.addf %308, %312 : vector<32x9xf32>
    %c5_207 = arith.constant 5 : index
    %c0_208 = arith.constant 0 : index
    %c0_209 = arith.constant 0 : index
    %314 = vector.load %arg14[%c5_207, %c0_208, %c0_209] : memref<16x32x16xf32, #tpu.memory_space<vmem>>, vector<1x32x16xf32>
    %315 = vector.shape_cast %314 : vector<1x32x16xf32> to vector<32x16xf32>
    %316 = vector.extract_strided_slice %287 {offsets = [0, 45], sizes = [16, 9], strides = [1, 1]} : vector<16x144xf32> to vector<16x9xf32>
    %cst_210 = arith.constant dense<0.000000e+00> : vector<32x9xf32>
    %317 = tpu.matmul %315, %316, %cst_210 {dimension_numbers = #tpu.dot_dimension_numbers<[1], [0], [0], [1], [0, 0, 1, 1], [], []>} : vector<32x16xf32>, vector<16x9xf32>, vector<32x9xf32> -> vector<32x9xf32>
    %318 = arith.addf %313, %317 : vector<32x9xf32>
    %c6_211 = arith.constant 6 : index
    %c0_212 = arith.constant 0 : index
    %c0_213 = arith.constant 0 : index
    %319 = vector.load %arg14[%c6_211, %c0_212, %c0_213] : memref<16x32x16xf32, #tpu.memory_space<vmem>>, vector<1x32x16xf32>
    %320 = vector.shape_cast %319 : vector<1x32x16xf32> to vector<32x16xf32>
    %321 = vector.extract_strided_slice %287 {offsets = [0, 54], sizes = [16, 9], strides = [1, 1]} : vector<16x144xf32> to vector<16x9xf32>
    %cst_214 = arith.constant dense<0.000000e+00> : vector<32x9xf32>
    %322 = tpu.matmul %320, %321, %cst_214 {dimension_numbers = #tpu.dot_dimension_numbers<[1], [0], [0], [1], [0, 0, 1, 1], [], []>} : vector<32x16xf32>, vector<16x9xf32>, vector<32x9xf32> -> vector<32x9xf32>
    %323 = arith.addf %318, %322 : vector<32x9xf32>
    %c7_215 = arith.constant 7 : index
    %c0_216 = arith.constant 0 : index
    %c0_217 = arith.constant 0 : index
    %324 = vector.load %arg14[%c7_215, %c0_216, %c0_217] : memref<16x32x16xf32, #tpu.memory_space<vmem>>, vector<1x32x16xf32>
    %325 = vector.shape_cast %324 : vector<1x32x16xf32> to vector<32x16xf32>
    %326 = vector.extract_strided_slice %287 {offsets = [0, 63], sizes = [16, 9], strides = [1, 1]} : vector<16x144xf32> to vector<16x9xf32>
    %cst_218 = arith.constant dense<0.000000e+00> : vector<32x9xf32>
    %327 = tpu.matmul %325, %326, %cst_218 {dimension_numbers = #tpu.dot_dimension_numbers<[1], [0], [0], [1], [0, 0, 1, 1], [], []>} : vector<32x16xf32>, vector<16x9xf32>, vector<32x9xf32> -> vector<32x9xf32>
    %328 = arith.addf %323, %327 : vector<32x9xf32>
    %c8_219 = arith.constant 8 : index
    %c0_220 = arith.constant 0 : index
    %c0_221 = arith.constant 0 : index
    %329 = vector.load %arg14[%c8_219, %c0_220, %c0_221] : memref<16x32x16xf32, #tpu.memory_space<vmem>>, vector<1x32x16xf32>
    %330 = vector.shape_cast %329 : vector<1x32x16xf32> to vector<32x16xf32>
    %331 = vector.extract_strided_slice %287 {offsets = [0, 72], sizes = [16, 9], strides = [1, 1]} : vector<16x144xf32> to vector<16x9xf32>
    %cst_222 = arith.constant dense<0.000000e+00> : vector<32x9xf32>
    %332 = tpu.matmul %330, %331, %cst_222 {dimension_numbers = #tpu.dot_dimension_numbers<[1], [0], [0], [1], [0, 0, 1, 1], [], []>} : vector<32x16xf32>, vector<16x9xf32>, vector<32x9xf32> -> vector<32x9xf32>
    %333 = arith.addf %328, %332 : vector<32x9xf32>
    %c9_223 = arith.constant 9 : index
    %c0_224 = arith.constant 0 : index
    %c0_225 = arith.constant 0 : index
    %334 = vector.load %arg14[%c9_223, %c0_224, %c0_225] : memref<16x32x16xf32, #tpu.memory_space<vmem>>, vector<1x32x16xf32>
    %335 = vector.shape_cast %334 : vector<1x32x16xf32> to vector<32x16xf32>
    %336 = vector.extract_strided_slice %287 {offsets = [0, 81], sizes = [16, 9], strides = [1, 1]} : vector<16x144xf32> to vector<16x9xf32>
    %cst_226 = arith.constant dense<0.000000e+00> : vector<32x9xf32>
    %337 = tpu.matmul %335, %336, %cst_226 {dimension_numbers = #tpu.dot_dimension_numbers<[1], [0], [0], [1], [0, 0, 1, 1], [], []>} : vector<32x16xf32>, vector<16x9xf32>, vector<32x9xf32> -> vector<32x9xf32>
    %338 = arith.addf %333, %337 : vector<32x9xf32>
    %c10_227 = arith.constant 10 : index
    %c0_228 = arith.constant 0 : index
    %c0_229 = arith.constant 0 : index
    %339 = vector.load %arg14[%c10_227, %c0_228, %c0_229] : memref<16x32x16xf32, #tpu.memory_space<vmem>>, vector<1x32x16xf32>
    %340 = vector.shape_cast %339 : vector<1x32x16xf32> to vector<32x16xf32>
    %341 = vector.extract_strided_slice %287 {offsets = [0, 90], sizes = [16, 9], strides = [1, 1]} : vector<16x144xf32> to vector<16x9xf32>
    %cst_230 = arith.constant dense<0.000000e+00> : vector<32x9xf32>
    %342 = tpu.matmul %340, %341, %cst_230 {dimension_numbers = #tpu.dot_dimension_numbers<[1], [0], [0], [1], [0, 0, 1, 1], [], []>} : vector<32x16xf32>, vector<16x9xf32>, vector<32x9xf32> -> vector<32x9xf32>
    %343 = arith.addf %338, %342 : vector<32x9xf32>
    %c11_231 = arith.constant 11 : index
    %c0_232 = arith.constant 0 : index
    %c0_233 = arith.constant 0 : index
    %344 = vector.load %arg14[%c11_231, %c0_232, %c0_233] : memref<16x32x16xf32, #tpu.memory_space<vmem>>, vector<1x32x16xf32>
    %345 = vector.shape_cast %344 : vector<1x32x16xf32> to vector<32x16xf32>
    %346 = vector.extract_strided_slice %287 {offsets = [0, 99], sizes = [16, 9], strides = [1, 1]} : vector<16x144xf32> to vector<16x9xf32>
    %cst_234 = arith.constant dense<0.000000e+00> : vector<32x9xf32>
    %347 = tpu.matmul %345, %346, %cst_234 {dimension_numbers = #tpu.dot_dimension_numbers<[1], [0], [0], [1], [0, 0, 1, 1], [], []>} : vector<32x16xf32>, vector<16x9xf32>, vector<32x9xf32> -> vector<32x9xf32>
    %348 = arith.addf %343, %347 : vector<32x9xf32>
    %c12_235 = arith.constant 12 : index
    %c0_236 = arith.constant 0 : index
    %c0_237 = arith.constant 0 : index
    %349 = vector.load %arg14[%c12_235, %c0_236, %c0_237] : memref<16x32x16xf32, #tpu.memory_space<vmem>>, vector<1x32x16xf32>
    %350 = vector.shape_cast %349 : vector<1x32x16xf32> to vector<32x16xf32>
    %351 = vector.extract_strided_slice %287 {offsets = [0, 108], sizes = [16, 9], strides = [1, 1]} : vector<16x144xf32> to vector<16x9xf32>
    %cst_238 = arith.constant dense<0.000000e+00> : vector<32x9xf32>
    %352 = tpu.matmul %350, %351, %cst_238 {dimension_numbers = #tpu.dot_dimension_numbers<[1], [0], [0], [1], [0, 0, 1, 1], [], []>} : vector<32x16xf32>, vector<16x9xf32>, vector<32x9xf32> -> vector<32x9xf32>
    %353 = arith.addf %348, %352 : vector<32x9xf32>
    %c13_239 = arith.constant 13 : index
    %c0_240 = arith.constant 0 : index
    %c0_241 = arith.constant 0 : index
    %354 = vector.load %arg14[%c13_239, %c0_240, %c0_241] : memref<16x32x16xf32, #tpu.memory_space<vmem>>, vector<1x32x16xf32>
    %355 = vector.shape_cast %354 : vector<1x32x16xf32> to vector<32x16xf32>
    %356 = vector.extract_strided_slice %287 {offsets = [0, 117], sizes = [16, 9], strides = [1, 1]} : vector<16x144xf32> to vector<16x9xf32>
    %cst_242 = arith.constant dense<0.000000e+00> : vector<32x9xf32>
    %357 = tpu.matmul %355, %356, %cst_242 {dimension_numbers = #tpu.dot_dimension_numbers<[1], [0], [0], [1], [0, 0, 1, 1], [], []>} : vector<32x16xf32>, vector<16x9xf32>, vector<32x9xf32> -> vector<32x9xf32>
    %358 = arith.addf %353, %357 : vector<32x9xf32>
    %c14_243 = arith.constant 14 : index
    %c0_244 = arith.constant 0 : index
    %c0_245 = arith.constant 0 : index
    %359 = vector.load %arg14[%c14_243, %c0_244, %c0_245] : memref<16x32x16xf32, #tpu.memory_space<vmem>>, vector<1x32x16xf32>
    %360 = vector.shape_cast %359 : vector<1x32x16xf32> to vector<32x16xf32>
    %361 = vector.extract_strided_slice %287 {offsets = [0, 126], sizes = [16, 9], strides = [1, 1]} : vector<16x144xf32> to vector<16x9xf32>
    %cst_246 = arith.constant dense<0.000000e+00> : vector<32x9xf32>
    %362 = tpu.matmul %360, %361, %cst_246 {dimension_numbers = #tpu.dot_dimension_numbers<[1], [0], [0], [1], [0, 0, 1, 1], [], []>} : vector<32x16xf32>, vector<16x9xf32>, vector<32x9xf32> -> vector<32x9xf32>
    %363 = arith.addf %358, %362 : vector<32x9xf32>
    %c15_247 = arith.constant 15 : index
    %c0_248 = arith.constant 0 : index
    %c0_249 = arith.constant 0 : index
    %364 = vector.load %arg14[%c15_247, %c0_248, %c0_249] : memref<16x32x16xf32, #tpu.memory_space<vmem>>, vector<1x32x16xf32>
    %365 = vector.shape_cast %364 : vector<1x32x16xf32> to vector<32x16xf32>
    %366 = vector.extract_strided_slice %287 {offsets = [0, 135], sizes = [16, 9], strides = [1, 1]} : vector<16x144xf32> to vector<16x9xf32>
    %cst_250 = arith.constant dense<0.000000e+00> : vector<32x9xf32>
    %367 = tpu.matmul %365, %366, %cst_250 {dimension_numbers = #tpu.dot_dimension_numbers<[1], [0], [0], [1], [0, 0, 1, 1], [], []>} : vector<32x16xf32>, vector<16x9xf32>, vector<32x9xf32> -> vector<32x9xf32>
    %368 = arith.addf %363, %367 : vector<32x9xf32>
    %369 = vector.shape_cast %368 : vector<32x9xf32> to vector<1x32x9xf32>
    %cst_251 = arith.constant dense<0.000000e+00> : vector<1xf32>
    %370 = vector.multi_reduction <add>, %369, %cst_251 [1, 2] : vector<1x32x9xf32> to vector<1xf32>
    %371 = vector.shape_cast %370 : vector<1xf32> to vector<1x1x1xf32>
    %372 = vector.extract %371[0, 0, 0] : f32 from vector<1x1x1xf32>
    %cst_252 = arith.constant 2.880000e+02 : f32
    %373 = arith.divf %372, %cst_252 : f32
    %374 = vector.broadcast %373 : f32 to vector<32x9xf32>
    %375 = arith.subf %368, %374 : vector<32x9xf32>
    %376 = arith.mulf %375, %375 : vector<32x9xf32>
    %377 = vector.shape_cast %376 : vector<32x9xf32> to vector<1x32x9xf32>
    %cst_253 = arith.constant dense<0.000000e+00> : vector<1xf32>
    %378 = vector.multi_reduction <add>, %377, %cst_253 [1, 2] : vector<1x32x9xf32> to vector<1xf32>
    %379 = vector.shape_cast %378 : vector<1xf32> to vector<1x1x1xf32>
    %380 = vector.extract %379[0, 0, 0] : f32 from vector<1x1x1xf32>
    %cst_254 = arith.constant 2.880000e+02 : f32
    %381 = arith.divf %380, %cst_254 : f32
    %382 = vector.broadcast %373 : f32 to vector<32x9xf32>
    %383 = arith.subf %368, %382 : vector<32x9xf32>
    %cst_255 = arith.constant 9.99999974E-6 : f32
    %384 = arith.addf %381, %cst_255 : f32
    %385 = math.rsqrt %384 : f32
    %386 = vector.broadcast %385 : f32 to vector<32x9xf32>
    %387 = arith.mulf %383, %386 : vector<32x9xf32>
    %c0_256 = arith.constant 0 : index
    %c0_257 = arith.constant 0 : index
    %388 = vector.load %arg15[%c0_256, %c0_257] : memref<32x9xf32, #tpu.memory_space<vmem>>, vector<32x9xf32>
    %389 = arith.mulf %387, %388 : vector<32x9xf32>
    %c0_258 = arith.constant 0 : index
    %c0_259 = arith.constant 0 : index
    %390 = vector.load %arg16[%c0_258, %c0_259] : memref<32x9xf32, #tpu.memory_space<vmem>>, vector<32x9xf32>
    %391 = arith.addf %389, %390 : vector<32x9xf32>
    %cst_260 = arith.constant 0.000000e+00 : f32
    %392 = vector.broadcast %cst_260 : f32 to vector<32x9xf32>
    %393 = arith.maximumf %391, %392 : vector<32x9xf32>
    %cst_261 = arith.constant 0.000000e+00 : f32
    %394 = vector.broadcast %cst_261 : f32 to vector<8x1xf32>
    %c0_262 = arith.constant 0 : index
    %c0_263 = arith.constant 0 : index
    %c0_264 = arith.constant 0 : index
    %395 = vector.load %arg17[%c0_262, %c0_263, %c0_264] : memref<9x8x32xf32, #tpu.memory_space<vmem>>, vector<1x8x32xf32>
    %396 = vector.shape_cast %395 : vector<1x8x32xf32> to vector<8x32xf32>
    %397 = vector.extract_strided_slice %393 {offsets = [0, 0], sizes = [32, 1], strides = [1, 1]} : vector<32x9xf32> to vector<32x1xf32>
    %cst_265 = arith.constant dense<0.000000e+00> : vector<8x1xf32>
    %398 = tpu.matmul %396, %397, %cst_265 {dimension_numbers = #tpu.dot_dimension_numbers<[1], [0], [0], [1], [0, 0, 1, 1], [], []>} : vector<8x32xf32>, vector<32x1xf32>, vector<8x1xf32> -> vector<8x1xf32>
    %399 = arith.addf %394, %398 : vector<8x1xf32>
    %c1_266 = arith.constant 1 : index
    %c0_267 = arith.constant 0 : index
    %c0_268 = arith.constant 0 : index
    %400 = vector.load %arg17[%c1_266, %c0_267, %c0_268] : memref<9x8x32xf32, #tpu.memory_space<vmem>>, vector<1x8x32xf32>
    %401 = vector.shape_cast %400 : vector<1x8x32xf32> to vector<8x32xf32>
    %402 = vector.extract_strided_slice %393 {offsets = [0, 1], sizes = [32, 1], strides = [1, 1]} : vector<32x9xf32> to vector<32x1xf32>
    %cst_269 = arith.constant dense<0.000000e+00> : vector<8x1xf32>
    %403 = tpu.matmul %401, %402, %cst_269 {dimension_numbers = #tpu.dot_dimension_numbers<[1], [0], [0], [1], [0, 0, 1, 1], [], []>} : vector<8x32xf32>, vector<32x1xf32>, vector<8x1xf32> -> vector<8x1xf32>
    %404 = arith.addf %399, %403 : vector<8x1xf32>
    %c2_270 = arith.constant 2 : index
    %c0_271 = arith.constant 0 : index
    %c0_272 = arith.constant 0 : index
    %405 = vector.load %arg17[%c2_270, %c0_271, %c0_272] : memref<9x8x32xf32, #tpu.memory_space<vmem>>, vector<1x8x32xf32>
    %406 = vector.shape_cast %405 : vector<1x8x32xf32> to vector<8x32xf32>
    %407 = vector.extract_strided_slice %393 {offsets = [0, 2], sizes = [32, 1], strides = [1, 1]} : vector<32x9xf32> to vector<32x1xf32>
    %cst_273 = arith.constant dense<0.000000e+00> : vector<8x1xf32>
    %408 = tpu.matmul %406, %407, %cst_273 {dimension_numbers = #tpu.dot_dimension_numbers<[1], [0], [0], [1], [0, 0, 1, 1], [], []>} : vector<8x32xf32>, vector<32x1xf32>, vector<8x1xf32> -> vector<8x1xf32>
    %409 = arith.addf %404, %408 : vector<8x1xf32>
    %c3_274 = arith.constant 3 : index
    %c0_275 = arith.constant 0 : index
    %c0_276 = arith.constant 0 : index
    %410 = vector.load %arg17[%c3_274, %c0_275, %c0_276] : memref<9x8x32xf32, #tpu.memory_space<vmem>>, vector<1x8x32xf32>
    %411 = vector.shape_cast %410 : vector<1x8x32xf32> to vector<8x32xf32>
    %412 = vector.extract_strided_slice %393 {offsets = [0, 3], sizes = [32, 1], strides = [1, 1]} : vector<32x9xf32> to vector<32x1xf32>
    %cst_277 = arith.constant dense<0.000000e+00> : vector<8x1xf32>
    %413 = tpu.matmul %411, %412, %cst_277 {dimension_numbers = #tpu.dot_dimension_numbers<[1], [0], [0], [1], [0, 0, 1, 1], [], []>} : vector<8x32xf32>, vector<32x1xf32>, vector<8x1xf32> -> vector<8x1xf32>
    %414 = arith.addf %409, %413 : vector<8x1xf32>
    %c4_278 = arith.constant 4 : index
    %c0_279 = arith.constant 0 : index
    %c0_280 = arith.constant 0 : index
    %415 = vector.load %arg17[%c4_278, %c0_279, %c0_280] : memref<9x8x32xf32, #tpu.memory_space<vmem>>, vector<1x8x32xf32>
    %416 = vector.shape_cast %415 : vector<1x8x32xf32> to vector<8x32xf32>
    %417 = vector.extract_strided_slice %393 {offsets = [0, 4], sizes = [32, 1], strides = [1, 1]} : vector<32x9xf32> to vector<32x1xf32>
    %cst_281 = arith.constant dense<0.000000e+00> : vector<8x1xf32>
    %418 = tpu.matmul %416, %417, %cst_281 {dimension_numbers = #tpu.dot_dimension_numbers<[1], [0], [0], [1], [0, 0, 1, 1], [], []>} : vector<8x32xf32>, vector<32x1xf32>, vector<8x1xf32> -> vector<8x1xf32>
    %419 = arith.addf %414, %418 : vector<8x1xf32>
    %c5_282 = arith.constant 5 : index
    %c0_283 = arith.constant 0 : index
    %c0_284 = arith.constant 0 : index
    %420 = vector.load %arg17[%c5_282, %c0_283, %c0_284] : memref<9x8x32xf32, #tpu.memory_space<vmem>>, vector<1x8x32xf32>
    %421 = vector.shape_cast %420 : vector<1x8x32xf32> to vector<8x32xf32>
    %422 = vector.extract_strided_slice %393 {offsets = [0, 5], sizes = [32, 1], strides = [1, 1]} : vector<32x9xf32> to vector<32x1xf32>
    %cst_285 = arith.constant dense<0.000000e+00> : vector<8x1xf32>
    %423 = tpu.matmul %421, %422, %cst_285 {dimension_numbers = #tpu.dot_dimension_numbers<[1], [0], [0], [1], [0, 0, 1, 1], [], []>} : vector<8x32xf32>, vector<32x1xf32>, vector<8x1xf32> -> vector<8x1xf32>
    %424 = arith.addf %419, %423 : vector<8x1xf32>
    %c6_286 = arith.constant 6 : index
    %c0_287 = arith.constant 0 : index
    %c0_288 = arith.constant 0 : index
    %425 = vector.load %arg17[%c6_286, %c0_287, %c0_288] : memref<9x8x32xf32, #tpu.memory_space<vmem>>, vector<1x8x32xf32>
    %426 = vector.shape_cast %425 : vector<1x8x32xf32> to vector<8x32xf32>
    %427 = vector.extract_strided_slice %393 {offsets = [0, 6], sizes = [32, 1], strides = [1, 1]} : vector<32x9xf32> to vector<32x1xf32>
    %cst_289 = arith.constant dense<0.000000e+00> : vector<8x1xf32>
    %428 = tpu.matmul %426, %427, %cst_289 {dimension_numbers = #tpu.dot_dimension_numbers<[1], [0], [0], [1], [0, 0, 1, 1], [], []>} : vector<8x32xf32>, vector<32x1xf32>, vector<8x1xf32> -> vector<8x1xf32>
    %429 = arith.addf %424, %428 : vector<8x1xf32>
    %c7_290 = arith.constant 7 : index
    %c0_291 = arith.constant 0 : index
    %c0_292 = arith.constant 0 : index
    %430 = vector.load %arg17[%c7_290, %c0_291, %c0_292] : memref<9x8x32xf32, #tpu.memory_space<vmem>>, vector<1x8x32xf32>
    %431 = vector.shape_cast %430 : vector<1x8x32xf32> to vector<8x32xf32>
    %432 = vector.extract_strided_slice %393 {offsets = [0, 7], sizes = [32, 1], strides = [1, 1]} : vector<32x9xf32> to vector<32x1xf32>
    %cst_293 = arith.constant dense<0.000000e+00> : vector<8x1xf32>
    %433 = tpu.matmul %431, %432, %cst_293 {dimension_numbers = #tpu.dot_dimension_numbers<[1], [0], [0], [1], [0, 0, 1, 1], [], []>} : vector<8x32xf32>, vector<32x1xf32>, vector<8x1xf32> -> vector<8x1xf32>
    %434 = arith.addf %429, %433 : vector<8x1xf32>
    %c8_294 = arith.constant 8 : index
    %c0_295 = arith.constant 0 : index
    %c0_296 = arith.constant 0 : index
    %435 = vector.load %arg17[%c8_294, %c0_295, %c0_296] : memref<9x8x32xf32, #tpu.memory_space<vmem>>, vector<1x8x32xf32>
    %436 = vector.shape_cast %435 : vector<1x8x32xf32> to vector<8x32xf32>
    %437 = vector.extract_strided_slice %393 {offsets = [0, 8], sizes = [32, 1], strides = [1, 1]} : vector<32x9xf32> to vector<32x1xf32>
    %cst_297 = arith.constant dense<0.000000e+00> : vector<8x1xf32>
    %438 = tpu.matmul %436, %437, %cst_297 {dimension_numbers = #tpu.dot_dimension_numbers<[1], [0], [0], [1], [0, 0, 1, 1], [], []>} : vector<8x32xf32>, vector<32x1xf32>, vector<8x1xf32> -> vector<8x1xf32>
    %439 = arith.addf %434, %438 : vector<8x1xf32>
    %c0_298 = arith.constant 0 : index
    %c0_299 = arith.constant 0 : index
    %440 = vector.load %arg18[%c0_298, %c0_299] : memref<16x8xf32, #tpu.memory_space<vmem>>, vector<16x8xf32>
    %cst_300 = arith.constant dense<0.000000e+00> : vector<16x1xf32>
    %441 = tpu.matmul %440, %439, %cst_300 {dimension_numbers = #tpu.dot_dimension_numbers<[1], [0], [0], [1], [0, 0, 1, 1], [], []>} : vector<16x8xf32>, vector<8x1xf32>, vector<16x1xf32> -> vector<16x1xf32>
    %c0_301 = arith.constant 0 : index
    %c0_302 = arith.constant 0 : index
    %442 = vector.load %arg19[%c0_301, %c0_302] : memref<16x1xf32, #tpu.memory_space<vmem>>, vector<16x1xf32>
    %443 = arith.addf %441, %442 : vector<16x1xf32>
    %cst_303 = arith.constant 0.000000e+00 : f32
    %444 = vector.broadcast %cst_303 : f32 to vector<16x1xf32>
    %445 = arith.maximumf %443, %444 : vector<16x1xf32>
    %c0_304 = arith.constant 0 : index
    %c0_305 = arith.constant 0 : index
    %446 = vector.load %arg20[%c0_304, %c0_305] : memref<8x16xf32, #tpu.memory_space<vmem>>, vector<8x16xf32>
    %cst_306 = arith.constant dense<0.000000e+00> : vector<8x1xf32>
    %447 = tpu.matmul %446, %445, %cst_306 {dimension_numbers = #tpu.dot_dimension_numbers<[1], [0], [0], [1], [0, 0, 1, 1], [], []>} : vector<8x16xf32>, vector<16x1xf32>, vector<8x1xf32> -> vector<8x1xf32>
    %c0_307 = arith.constant 0 : index
    %c0_308 = arith.constant 0 : index
    %448 = vector.load %arg21[%c0_307, %c0_308] : memref<8x1xf32, #tpu.memory_space<vmem>>, vector<8x1xf32>
    %449 = arith.addf %447, %448 : vector<8x1xf32>
    %c0_309 = arith.constant 0 : index
    %c0_310 = arith.constant 0 : index
    %c0_311 = arith.constant 0 : index
    %450 = vector.load %arg22[%c0_309, %c0_310, %c0_311] : memref<1x8x1xf32, #tpu.memory_space<vmem>>, vector<1x8x1xf32>
    %451 = vector.shape_cast %450 : vector<1x8x1xf32> to vector<8x1xf32>
    %452 = vector.shape_cast %449 : vector<8x1xf32> to vector<1x8x1xf32>
    tpu.vector_store %arg22[%c0_309, %c0_310, %c0_311], %452 {strides = array<i32>} : memref<1x8x1xf32, #tpu.memory_space<vmem>>, vector<1x8x1xf32>,
    return
  }
  func.func @transform_0(%arg0: i32) -> (i32, i32, i32) {
    %c0_i32 = arith.constant 0 : i32
    %c0_i32_0 = arith.constant 0 : i32
    %c0_i32_1 = arith.constant 0 : i32
    return %arg0, %c0_i32, %c0_i32_0 : i32, i32, i32
  }
  func.func @transform_1(%arg0: i32) -> (i32, i32) {
    %c0_i32 = arith.constant 0 : i32
    %c0_i32_0 = arith.constant 0 : i32
    %c0_i32_1 = arith.constant 0 : i32
    return %c0_i32, %c0_i32_0 : i32, i32
  }
  func.func @transform_2(%arg0: i32) -> (i32, i32) {
    %c0_i32 = arith.constant 0 : i32
    %c0_i32_0 = arith.constant 0 : i32
    %c0_i32_1 = arith.constant 0 : i32
    return %c0_i32, %c0_i32_0 : i32, i32
  }
  func.func @transform_3(%arg0: i32) -> (i32, i32) {
    %c0_i32 = arith.constant 0 : i32
    %c0_i32_0 = arith.constant 0 : i32
    %c0_i32_1 = arith.constant 0 : i32
    return %c0_i32, %c0_i32_0 : i32, i32
  }
  func.func @transform_4(%arg0: i32) -> (i32, i32) {
    %c0_i32 = arith.constant 0 : i32
    %c0_i32_0 = arith.constant 0 : i32
    %c0_i32_1 = arith.constant 0 : i32
    return %c0_i32, %c0_i32_0 : i32, i32
  }
  func.func @transform_5(%arg0: i32) -> (i32, i32, i32) {
    %c0_i32 = arith.constant 0 : i32
    %c0_i32_0 = arith.constant 0 : i32
    %c0_i32_1 = arith.constant 0 : i32
    %c0_i32_2 = arith.constant 0 : i32
    return %c0_i32, %c0_i32_0, %c0_i32_1 : i32, i32, i32
  }
  func.func @transform_6(%arg0: i32) -> (i32, i32) {
    %c0_i32 = arith.constant 0 : i32
    %c0_i32_0 = arith.constant 0 : i32
    %c0_i32_1 = arith.constant 0 : i32
    return %c0_i32, %c0_i32_0 : i32, i32
  }
  func.func @transform_7(%arg0: i32) -> (i32, i32) {
    %c0_i32 = arith.constant 0 : i32
    %c0_i32_0 = arith.constant 0 : i32
    %c0_i32_1 = arith.constant 0 : i32
    return %c0_i32, %c0_i32_0 : i32, i32
  }
  func.func @transform_8(%arg0: i32) -> (i32, i32) {
    %c0_i32 = arith.constant 0 : i32
    %c0_i32_0 = arith.constant 0 : i32
    %c0_i32_1 = arith.constant 0 : i32
    return %c0_i32, %c0_i32_0 : i32, i32
  }
  func.func @transform_9(%arg0: i32) -> (i32, i32, i32) {
    %c0_i32 = arith.constant 0 : i32
    %c0_i32_0 = arith.constant 0 : i32
    %c0_i32_1 = arith.constant 0 : i32
    %c0_i32_2 = arith.constant 0 : i32
    return %c0_i32, %c0_i32_0, %c0_i32_1 : i32, i32, i32
  }
  func.func @transform_10(%arg0: i32) -> (i32, i32) {
    %c0_i32 = arith.constant 0 : i32
    %c0_i32_0 = arith.constant 0 : i32
    %c0_i32_1 = arith.constant 0 : i32
    return %c0_i32, %c0_i32_0 : i32, i32
  }
  func.func @transform_11(%arg0: i32) -> (i32, i32) {
    %c0_i32 = arith.constant 0 : i32
    %c0_i32_0 = arith.constant 0 : i32
    %c0_i32_1 = arith.constant 0 : i32
    return %c0_i32, %c0_i32_0 : i32, i32
  }
  func.func @transform_12(%arg0: i32) -> (i32, i32) {
    %c0_i32 = arith.constant 0 : i32
    %c0_i32_0 = arith.constant 0 : i32
    %c0_i32_1 = arith.constant 0 : i32
    return %c0_i32, %c0_i32_0 : i32, i32
  }
  func.func @transform_13(%arg0: i32) -> (i32, i32, i32) {
    %c0_i32 = arith.constant 0 : i32
    %c0_i32_0 = arith.constant 0 : i32
    %c0_i32_1 = arith.constant 0 : i32
    %c0_i32_2 = arith.constant 0 : i32
    return %c0_i32, %c0_i32_0, %c0_i32_1 : i32, i32, i32
  }
  func.func @transform_14(%arg0: i32) -> (i32, i32) {
    %c0_i32 = arith.constant 0 : i32
    %c0_i32_0 = arith.constant 0 : i32
    %c0_i32_1 = arith.constant 0 : i32
    return %c0_i32, %c0_i32_0 : i32, i32
  }
  func.func @transform_15(%arg0: i32) -> (i32, i32) {
    %c0_i32 = arith.constant 0 : i32
    %c0_i32_0 = arith.constant 0 : i32
    %c0_i32_1 = arith.constant 0 : i32
    return %c0_i32, %c0_i32_0 : i32, i32
  }
  func.func @transform_16(%arg0: i32) -> (i32, i32, i32) {
    %c0_i32 = arith.constant 0 : i32
    %c0_i32_0 = arith.constant 0 : i32
    %c0_i32_1 = arith.constant 0 : i32
    %c0_i32_2 = arith.constant 0 : i32
    return %c0_i32, %c0_i32_0, %c0_i32_1 : i32, i32, i32
  }
  func.func @transform_17(%arg0: i32) -> (i32, i32) {
    %c0_i32 = arith.constant 0 : i32
    %c0_i32_0 = arith.constant 0 : i32
    %c0_i32_1 = arith.constant 0 : i32
    return %c0_i32, %c0_i32_0 : i32, i32
  }
  func.func @transform_18(%arg0: i32) -> (i32, i32) {
    %c0_i32 = arith.constant 0 : i32
    %c0_i32_0 = arith.constant 0 : i32
    %c0_i32_1 = arith.constant 0 : i32
    return %c0_i32, %c0_i32_0 : i32, i32
  }
  func.func @transform_19(%arg0: i32) -> (i32, i32) {
    %c0_i32 = arith.constant 0 : i32
    %c0_i32_0 = arith.constant 0 : i32
    %c0_i32_1 = arith.constant 0 : i32
    return %c0_i32, %c0_i32_0 : i32, i32
  }
  func.func @transform_20(%arg0: i32) -> (i32, i32) {
    %c0_i32 = arith.constant 0 : i32
    %c0_i32_0 = arith.constant 0 : i32
    %c0_i32_1 = arith.constant 0 : i32
    return %c0_i32, %c0_i32_0 : i32, i32
  }
  func.func @transform_21(%arg0: i32) -> (i32, i32, i32) {
    %c0_i32 = arith.constant 0 : i32
    %c0_i32_0 = arith.constant 0 : i32
    %c0_i32_1 = arith.constant 0 : i32
    return %arg0, %c0_i32, %c0_i32_0 : i32, i32, i32
  }
}

</mosaic_0001>

<bundles_post_ra>
// kernel: netE_forward.1
= control target key start
LH: loop header
LB: loop body
LE: loop exit
PB: predicated region body
PF: predicated region fallthrough
CT: control target
= control target key end

     0   :  { %s21282_s0 = inlined_call_operand.vmem [shape: f32[2,20,504], index: 0, kind: input, shape index: {}]   ;;  %s21283_s1 = inlined_call_operand.vmem [shape: f32[4,20], index: 1, kind: input, shape index: {}]   ;;  %s21284_s2 = inlined_call_operand.vmem [shape: f32[4,504], index: 2, kind: input, shape index: {}]   ;;  %s21285_s3 = inlined_call_operand.vmem [shape: f32[4,504], index: 3, kind: input, shape index: {}]   ;;  %s21286_s4 = inlined_call_operand.vmem [shape: bf16[504,3100], index: 4, kind: input, shape index: {}]   ;;  %s21287_s5 = inlined_call_operand.vmem [shape: f32[20,8,4], index: 5, kind: input, shape index: {}]   ;;  %s21288_s6 = inlined_call_operand.vmem [shape: f32[8,155], index: 6, kind: input, shape index: {}]   ;;  %s21289_s7 = inlined_call_operand.vmem [shape: f32[8,155], index: 7, kind: input, shape index: {}]   ;;  %s21290_s8 = inlined_call_operand.vmem [shape: f32[155,640], index: 8, kind: input, shape index: {}]   ;;  %s21291_s9 = inlined_call_operand.vmem [shape: f32[20,16,8], index: 9, kind: input, shape index: {}]   ;;  %s21292_s10 = inlined_call_operand.vmem [shape: f32[16,32], index: 10, kind: input, shape index: {}]   ;;  %s21293_s11 = inlined_call_operand.vmem [shape: f32[16,32], index: 11, kind: input, shape index: {}]   ;;  %s21294_s12 = inlined_call_operand.vmem [shape: f32[32,144], index: 12, kind: input, shape index: {}]   ;;  %s21295_s13 = inlined_call_operand.vmem [shape: f32[16,32,16], index: 13, kind: input, shape index: {}]   ;;  %s21296_s14 = inlined_call_operand.vmem [shape: f32[32,9], index: 14, kind: input, shape index: {}]   ;;  %s21297_s15 = inlined_call_operand.vmem [shape: f32[32,9], index: 15, kind: input, shape index: {}]   ;;  %s21298_s16 = inlined_call_operand.vmem [shape: f32[9,8,32], index: 16, kind: input, shape index: {}]   ;;  %s21299_s17 = inlined_call_operand.vmem [shape: f32[16,8], index: 17, kind: input, shape index: {}]   ;;  %s21300_s18 = inlined_call_operand.vmem [shape: f32[16,1], index: 18, kind: input, shape index: {}]   ;;  %s21301_s19 = inlined_call_operand.vmem [shape: f32[8,16], index: 19, kind: input, shape index: {}]   ;;  %s21302_s20 = inlined_call_operand.vmem [shape: f32[8,1], index: 20, kind: input, shape index: {}]   ;;  %s21303_s21 = inlined_call_operand.vmem [shape: f32[2,8,1], index: 21, kind: output, shape index: {}]  }
   0x1   :  { %21318 = sst [smem:[#allocation3_spill]] %s21282_s0 }
   0x2   :  { %21319 = sst [smem:[#allocation4_spill]] %s21283_s1 }
   0x3   :  { %21320 = sst [smem:[#allocation5_spill]] %s21284_s2  ;;  %s17595_s2 = smov 0  }
   0x4   :  { %21321 = sst [smem:[#allocation6_spill]] %s21285_s3 }
   0x5   :  { %21322 = sst [smem:[#allocation7_spill]] %s21286_s4 }
   0x6   :  { %21323 = sst [smem:[#allocation8_spill]] %s21287_s5 }
   0x7 LB: > { %21324 = sst [smem:[#allocation2_spill]] %s17441_s2  ;;  %s13790_s25 = sadd.s32 4294967295, %s17441_s2   ;;  %s17441_s2 = sphi %s17595_s2, %s31_s2  }
   0x8   : > { %p13794_p0 = scmp.ge.s32.totalorder %s17441_s2, 1  ;;  %p587_p1 = scmp.lt.s32.totalorder %s17441_s2, 3 }
   0xa   : > { %p588_p2 = pnand %p13794_p0, %p587_p1 }
   0xb   : > { %p646_p3 = scmp.lt.s32.totalorder (!%p588_p2), %s13790_s25, 1  ;;  %v17443_v0 = vmov (!%p588_p2), 0.0   ;;  %s21325_s28 = sld [smem:[#allocation3_spill]] (!%p588_p2)  ;;  %vm673_vm0 = vcmask (!%p588_p2), 1043456   ;;  %vm669_vm1 = vcmask (!%p588_p2), 162816   ;;  %vm833_vm2 = vcmask (!%p588_p2), 977920  }
   0xc   : > { %591 = sbr.rel (%p588_p2) target bundleno = 5747 (0x1673), region = 104  ;;  %750 = vmatprep.mubr.f32.mxu0 (!%p588_p2), %v17443_v0  ;;  %821 = vmatprep.mubr.f32.mxu1 (!%p588_p2), %v17443_v0  ;;  %s21326_s30 = sld [smem:[#allocation4_spill]] (!%p588_p2)  ;;  %vm5705_vm3 = vcmask (!%p588_p2), 982016   ;;  %vm6857_vm4 = vcmask (!%p588_p2), 826368   ;;  %vm6859_vm5 = vcmask (!%p588_p2), 31744   ;;  %vm7024_vm6 = vcmask (!%p588_p2), 605184  }
   0xd   : > { %s21327_s24 = sld [smem:[#allocation7_spill]] (!%p588_p2)  ;;  %s21310_s27 = smov (!%p588_p2), 101   ;;  %vm7113_vm7 = vcmask (!%p588_p2), 384000   ;;  %vm7294_vm8 = vcmask (!%p588_p2), 990208   ;;  %vm7383_vm9 = vcmask (!%p588_p2), 769024   ;;  %vm7472_vm10 = vcmask (!%p588_p2), 547840  }
   0xe   : > { %s21312_s2 = smov (!%p588_p2), 121   ;;  %s17453_s4 = smov (!%p588_p2), 114   ;;  %vm7561_vm11 = vcmask (!%p588_p2), 326656   ;;  %vm7653_vm12 = vcmask (!%p588_p2), 105472   ;;  %vm7743_vm13 = vcmask (!%p588_p2), 932864   ;;  %vm7832_vm14 = vcmask (!%p588_p2), 711680  }
   0xf   : > { %vm7921_vm15 = vcmask (!%p588_p2), 490496   ;;  %s21333_s0 = smov (!%p588_p2), 101  }
  0x12   : > { %v656_v16 = vld [vmem:[%s21326_s30] sm:$0xf] (!%p588_p2)  ;;  %s17472_s30 = smov (!%p588_p2), 56  }
  0x13   : > { %s21341_s25 = smov (!%p646_p3, %s13790_s25), 1  ;;  %v16251_v52 = vld [vmem:[%s21327_s24] ss:$100 sps:$4 sm:$0xff]   ;;  %v16254_v54 = vld [vmem:[%s21327_s24 + $0x8] ss:$100 sps:$4 sm:$0xff]  }
  0x14   : > { %s16016_s26 = smul.u32 96, %s21341_s25  ;;  %v16253_v53 = vld [vmem:[%s21327_s24 + $0x4] ss:$100 sps:$4 sm:$0xff]   ;;  %v16256_v55 = vld [vmem:[%s21327_s24 + $0xc] ss:$100 sps:$4 sm:$0xff]  }
  0x15   : > { %v16259_v56 = vld [vmem:[%s21327_s24 + $0xcc] ss:$100 sps:$4 sm:$0xff]   ;;  %v16262_v57 = vld [vmem:[%s21327_s24 + $0xd4] ss:$100 sps:$4 sm:$0xff]   ;;  %v16268_v61 = vld [vmem:[%s21327_s24 + $0x19c] ss:$100 sps:$4 sm:$0xff]  }
  0x16   : > { %s650_s29 = scalar_lea.vmem %s21325_s28, %s16016_s26  ;;  %v16257_v58 = vld [vmem:[%s21327_s24 + $0xc8] ss:$100 sps:$4 sm:$0xff]   ;;  %v16260_v59 = vld [vmem:[%s21327_s24 + $0xd0] ss:$100 sps:$4 sm:$0xff]   ;;  %v16266_v63 = vld [vmem:[%s21327_s24 + $0x198] ss:$100 sps:$4 sm:$0xff]  }
  0x17   : > { %v658_v1 = vld [vmem:[%s650_s29 + $0x8] sm:$0xff]  ;;  %v657_v3 = vld [vmem:[%s650_s29] sm:$0xff]  ;;  %v660_v6 = vld [vmem:[%s650_s29 + $0x18] sm:$0xff]  ;;  %s21328_s28 = sld [smem:[#allocation5_spill]] }
  0x18   : > { %v662_v2 = vld [vmem:[%s650_s29 + $0x28] sm:$0xff]  ;;  %v661_v5 = vld [vmem:[%s650_s29 + $0x20] sm:$0xff]  ;;  %v664_v7 = vld [vmem:[%s650_s29 + $0x38] sm:$0xff] }
  0x19   : > { %v15563_v4 = vpack.c.bf16 %v662_v2, %v658_v1  ;;  %v15565_v8 = vpack.c.bf16 %v661_v5, %v657_v3  ;;  %v15567_v9 = vpack.c.bf16 %v664_v7, %v660_v6  ;;  %v659_v10 = vld [vmem:[%s650_s29 + $0x10] sm:$0xff]  ;;  %v666_v12 = vld [vmem:[%s650_s29 + $0x48] sm:$0xf]  ;;  %v665_v14 = vld [vmem:[%s650_s29 + $0x40] sm:$0xf] }
  0x1a   : > { %v663_v11 = vld [vmem:[%s650_s29 + $0x30] sm:$0xff]  ;;  %v668_v15 = vld [vmem:[%s650_s29 + $0x58] sm:$0xf]  ;;  %v16271_v1 = vld [vmem:[%s21327_s24 + $0x25c] ss:$100 sps:$4 sm:$0xff]  }
  0x1b   : > { %15564 = vmatprep.subr.bf16.mxu0 %v15563_v4  ;;  %v15569_v13 = vpack.c.bf16 %v663_v11, %v659_v10  ;;  %15568 = vmatprep.subr.bf16.mxu1 %v15567_v9  ;;  %v667_v17 = vld [vmem:[%s650_s29 + $0x50] sm:$0xf]  ;;  %v16265_v60 = vld [vmem:[%s21327_s24 + $0x194] ss:$100 sps:$4 sm:$0xff]   ;;  %v16274_v2 = vld [vmem:[%s21327_s24 + $0x264] ss:$100 sps:$4 sm:$0xff]  }
  0x1c   : > { %15566 = vmatpush1.bf16.msra.mxu0 %v15565_v8  ;;  %v16263_v62 = vld [vmem:[%s21327_s24 + $0x190] ss:$100 sps:$4 sm:$0xff]   ;;  %v16269_v3 = vld [vmem:[%s21327_s24 + $0x258] ss:$100 sps:$4 sm:$0xff]   ;;  %v16272_v4 = vld [vmem:[%s21327_s24 + $0x260] ss:$100 sps:$4 sm:$0xff]  }
  0x1d   : > { %15570 = vmatpush1.bf16.msra.mxu1 %v15569_v13  ;;  %13797 = vmatprep.subr.msk.mxu0 %vm673_vm0, %v666_v12  ;;  %v16277_v5 = vld [vmem:[%s21327_s24 + $0x324] ss:$100 sps:$4 sm:$0xff]   ;;  %v16280_v6 = vld [vmem:[%s21327_s24 + $0x32c] ss:$100 sps:$4 sm:$0xff]   ;;  %v16286_v10 = vld [vmem:[%s21327_s24 + $0x3f4] ss:$100 sps:$4 sm:$0xff]  }
  0x1e   : > { %13800 = vmatprep.subr.msk.mxu1 %vm673_vm0, %v668_v15  ;;  %v16275_v7 = vld [vmem:[%s21327_s24 + $0x320] ss:$100 sps:$4 sm:$0xff]   ;;  %v16278_v8 = vld [vmem:[%s21327_s24 + $0x328] ss:$100 sps:$4 sm:$0xff]   ;;  %v16284_v12 = vld [vmem:[%s21327_s24 + $0x3f0] ss:$100 sps:$4 sm:$0xff]  }
  0x1f   : > { %v16283_v9 = vld [vmem:[%s21327_s24 + $0x3ec] ss:$100 sps:$4 sm:$0xff]   ;;  %v16289_v13 = vld [vmem:[%s21327_s24 + $0x4b4] ss:$100 sps:$4 sm:$0xff]   ;;  %s17454_s29 = smov 87  }
  0x20   : > { %13798 = vmatpush1.msk.msra.mxu0 %vm673_vm0, %v665_v14  ;;  %v16281_v11 = vld [vmem:[%s21327_s24 + $0x3e8] ss:$100 sps:$4 sm:$0xff]   ;;  %v16292_v14 = vld [vmem:[%s21327_s24 + $0x4bc] ss:$100 sps:$4 sm:$0xff]   ;;  %v16287_v15 = vld [vmem:[%s21327_s24 + $0x4b0] ss:$100 sps:$4 sm:$0xff]  }
  0x21   : > { %13799 = vmatmul.mubr.msk.f32.vlgmr.msra.gmra.mrb[0].mxu0 %vm669_vm1, %v656_v16  ;;  %13801 = vmatpush1.msk.msra.mxu1 %vm673_vm0, %v667_v17  ;;  %v16295_v17 = vld [vmem:[%s21327_s24 + $0x57c] ss:$100 sps:$4 sm:$0xff]  }
  0x22   : > { %13802 = vmatmul.mubr.msk.f32.vlgmr.msra.gmra.mrb[0].mxu1 %vm669_vm1, %v656_v16  ;;  %5784 = vmatprep.subr.bf16.mxu0 %v16253_v53  ;;  %v16290_v16 = vld [vmem:[%s21327_s24 + $0x4b8] ss:$100 sps:$4 sm:$0xff]  }
  0x23   : > { %5866 = vmatprep.subr.bf16.mxu1 %v16256_v55  ;;  %5785 = vmatpush1.bf16.msra.mxu0 %v16251_v52  ;;  %v16344_v52 = vld [vmem:[%s21327_s24 + $0xafc] ss:$100 sps:$4 sm:$0xff]  }
  0x24   : > { %5867 = vmatpush1.bf16.msra.mxu1 %v16254_v54  ;;  %5786 = vmatprep.subr.bf16.mxu0 %v16259_v56  ;;  %v16339_v54 = vld [vmem:[%s21327_s24 + $0xaf0] ss:$100 sps:$4 sm:$0xff]   ;;  %v16342_v55 = vld [vmem:[%s21327_s24 + $0xaf8] ss:$100 sps:$4 sm:$0xff]  }
  0x25   : > { %5868 = vmatprep.subr.bf16.mxu1 %v16262_v57  ;;  %v16347_v57 = vld [vmem:[%s21327_s24 + $0xbbc] ss:$100 sps:$4 sm:$0xff]  }
  0x27   : > { %5787 = vmatpush1.bf16.msra.mxu0 %v16257_v58  ;;  %v16350_v58 = vld [vmem:[%s21327_s24 + $0xbc4] ss:$100 sps:$4 sm:$0xff]  }
  0x28   : > { %5869 = vmatpush1.bf16.msra.mxu1 %v16260_v59  ;;  %5788 = vmatprep.subr.bf16.mxu0 %v16265_v60  ;;  %v16345_v60 = vld [vmem:[%s21327_s24 + $0xbb8] ss:$100 sps:$4 sm:$0xff]  }
  0x29   : > { %5870 = vmatprep.subr.bf16.mxu1 %v16268_v61  ;;  %v16348_v61 = vld [vmem:[%s21327_s24 + $0xbc0] ss:$100 sps:$4 sm:$0xff]  }
  0x2b   : > { %5789 = vmatpush1.bf16.msra.mxu0 %v16263_v62 }
  0x2c   : > { %5871 = vmatpush1.bf16.msra.mxu1 %v16266_v63  ;;  %5790 = vmatprep.subr.bf16.mxu0 %v16271_v1  ;;  %v16353_v63 = vld [vmem:[%s21327_s24 + $0xc84] ss:$100 sps:$4 sm:$0xff]   ;;  %v16356_v1 = vld [vmem:[%s21327_s24 + $0xc8c] ss:$100 sps:$4 sm:$0xff]  }
  0x2d   : > { %5872 = vmatprep.subr.bf16.mxu1 %v16274_v2 }
  0x2f   : > { %5791 = vmatpush1.bf16.msra.mxu0 %v16269_v3 }
  0x30   : > { %5873 = vmatpush1.bf16.msra.mxu1 %v16272_v4  ;;  %5792 = vmatprep.subr.bf16.mxu0 %v16277_v5  ;;  %v885_v5 = vld [vmem:[%s21328_s28] sm:$0xff] }
  0x31   : > { %5874 = vmatprep.subr.bf16.mxu1 %v16280_v6  ;;  %v886_v6 = vld [vmem:[%s21328_s28 + $0x8] sm:$0xff] }
  0x33   : > { %5793 = vmatpush1.bf16.msra.mxu0 %v16275_v7 }
  0x34   : > { %5875 = vmatpush1.bf16.msra.mxu1 %v16278_v8  ;;  %5794 = vmatprep.subr.bf16.mxu0 %v16283_v9  ;;  %v889_v9 = vcombine.high %v885_v5, %v885_v5 }
  0x35   : > { %5876 = vmatprep.subr.bf16.mxu1 %v16286_v10  ;;  %v890_v10 = vcombine.high %v886_v6, %v886_v6 }
  0x37   : > { %5795 = vmatpush1.bf16.msra.mxu0 %v16281_v11 }
  0x38   : > { %5877 = vmatpush1.bf16.msra.mxu1 %v16284_v12  ;;  %5796 = vmatprep.subr.bf16.mxu0 %v16289_v13 }
  0x39   : > { %5878 = vmatprep.subr.bf16.mxu1 %v16292_v14 }
  0x3b   : > { %5797 = vmatpush1.bf16.msra.mxu0 %v16287_v15 }
  0x3c   : > { %5879 = vmatpush1.bf16.msra.mxu1 %v16290_v16  ;;  %5798 = vmatprep.subr.bf16.mxu0 %v16295_v17 }
  0xf4   : > { %v752_v18 = vpop.f32.mrb[0].mxu0 }
  0xf5   : > { %v828_v19 = vsel %vm673_vm0, %v752_v18, 0.0  ;;  %v754_v20 = vpop.f32.mrb[1].mxu0  ;;  %v823_v21 = vpop.f32.mrb[0].mxu1 }
  0xf6   : > { %v829_v22 = vsel %vm673_vm0, %v754_v20, 0.0  ;;  %v831_v23 = vsel %vm673_vm0, %v823_v21, 0.0  ;;  %v825_v24 = vpop.f32.mrb[1].mxu1 }
  0xf7   : > { %v830_v25 = vadd.f32 %v829_v22, %v828_v19  ;;  %v834_v27 = vsel %vm833_vm2, %v825_v24, 0.0  ;;  %v16293_v19 = vld [vmem:[%s21327_s24 + $0x578] ss:$100 sps:$4 sm:$0xff]   ;;  %v16304_v22 = vld [vmem:[%s21327_s24 + $0x64c] ss:$100 sps:$4 sm:$0xff]  }
  0xf8   : > { %5799 = vmatpush1.bf16.msra.mxu0 %v16293_v19 }
  0xf9   : > { %v832_v26 = vadd.f32 %v831_v23, %v830_v25  ;;  %v16299_v23 = vld [vmem:[%s21327_s24 + $0x640] ss:$100 sps:$4 sm:$0xff]   ;;  %v16307_v25 = vld [vmem:[%s21327_s24 + $0x70c] ss:$100 sps:$4 sm:$0xff]  }
  0xfb   : > { %v835_v28 = vadd.f32 %v834_v27, %v832_v26  ;;  %v16310_v26 = vld [vmem:[%s21327_s24 + $0x714] ss:$100 sps:$4 sm:$0xff]   ;;  %v16305_v27 = vld [vmem:[%s21327_s24 + $0x708] ss:$100 sps:$4 sm:$0xff]  }
  0xfd   : > { %836 = vadd.xlane.f32.xlu0 %v835_v28  ;;  %v16308_v28 = vld [vmem:[%s21327_s24 + $0x710] ss:$100 sps:$4 sm:$0xff]  }
 0x18a   : > { %v837_v29 = vpop.xlane.xlu0 %836 }
 0x18b   : > { %v838_v30 = vrot.slane %v837_v29, 4 }
 0x18d   : > { %v839_v31 = vadd.f32 %v838_v30, %v837_v29  ;;  %v16313_v29 = vld [vmem:[%s21327_s24 + $0x7d4] ss:$100 sps:$4 sm:$0xff]   ;;  %v16316_v30 = vld [vmem:[%s21327_s24 + $0x7dc] ss:$100 sps:$4 sm:$0xff]  }
 0x18f   : > { %v840_v32 = vrot.slane %v839_v31, 2 }
 0x191   : > { %v841_v33 = vadd.f32 %v840_v32, %v839_v31  ;;  %v16311_v31 = vld [vmem:[%s21327_s24 + $0x7d0] ss:$100 sps:$4 sm:$0xff]   ;;  %v16314_v32 = vld [vmem:[%s21327_s24 + $0x7d8] ss:$100 sps:$4 sm:$0xff]  }
 0x193   : > { %v842_v34 = vrot.slane %v841_v33, 1 }
 0x195   : > { %v843_v35 = vadd.f32 %v842_v34, %v841_v33  ;;  %v16319_v33 = vld [vmem:[%s21327_s24 + $0x89c] ss:$100 sps:$4 sm:$0xff]   ;;  %v16322_v34 = vld [vmem:[%s21327_s24 + $0x8a4] ss:$100 sps:$4 sm:$0xff]  }
 0x197   : > { %16017 = vpush %v843_v35  ;;  %v16317_v35 = vld [vmem:[%s21327_s24 + $0x898] ss:$100 sps:$4 sm:$0xff]  }
 0x1c8   : > { %s16018_s5 = spop %16017 }
 0x1c9   : > { %s847_s22 = smul.f32 0.0004960318, %s16018_s5  ;;  %s21329_s5 = sld [smem:[#allocation6_spill]] }
 0x1cb   : > { %v848_v36 = vstv %s847_s22  ;;  %s21314_s22 = smov 20  }
 0x1cc   : > { %v17624_v37 = vsub.f32 %v752_v18, %v848_v36  ;;  %v17626_v38 = vsub.f32 %v754_v20, %v848_v36  ;;  %v17628_v39 = vsub.f32 %v823_v21, %v848_v36  ;;  %v17630_v40 = vsub.f32 %v825_v24, %v848_v36  ;;  %v16298_v18 = vld [vmem:[%s21327_s24 + $0x584] ss:$100 sps:$4 sm:$0xff]  }
 0x1cd   : > { %v16296_v20 = vld [vmem:[%s21327_s24 + $0x580] ss:$100 sps:$4 sm:$0xff]   ;;  %5880 = vmatprep.subr.bf16.mxu1 %v16298_v18  ;;  %v16302_v24 = vld [vmem:[%s21327_s24 + $0x648] ss:$100 sps:$4 sm:$0xff]  }
 0x1ce   : > { %v853_v41 = vmul.f32 %v17624_v37, %v17624_v37  ;;  %v854_v42 = vmul.f32 %v17626_v38, %v17626_v38  ;;  %v855_v43 = vmul.f32 %v17628_v39, %v17628_v39  ;;  %v856_v44 = vmul.f32 %v17630_v40, %v17630_v40  ;;  %v16301_v21 = vld [vmem:[%s21327_s24 + $0x644] ss:$100 sps:$4 sm:$0xff]   ;;  %5881 = vmatpush1.bf16.msra.mxu1 %v16296_v20 }
 0x1cf   : > { %5800 = vmatprep.subr.bf16.mxu0 %v16301_v21  ;;  %5882 = vmatprep.subr.bf16.mxu1 %v16304_v22  ;;  %v16320_v36 = vld [vmem:[%s21327_s24 + $0x8a0] ss:$100 sps:$4 sm:$0xff]   ;;  %v898_v8 = vld [vmem:[%s21329_s5 + $0x8] sm:$0xff] }
 0x1d0   : > { %v857_v45 = vsel %vm673_vm0, %v853_v41, 0.0  ;;  %v858_v46 = vsel %vm673_vm0, %v854_v42, 0.0  ;;  %v860_v48 = vsel %vm673_vm0, %v855_v43, 0.0  ;;  %v862_v50 = vsel %vm833_vm2, %v856_v44, 0.0  ;;  %5801 = vmatpush1.bf16.msra.mxu0 %v16299_v23  ;;  %v16325_v41 = vld [vmem:[%s21327_s24 + $0x964] ss:$100 sps:$4 sm:$0xff]  }
 0x1d1   : > { %v859_v47 = vadd.f32 %v858_v46, %v857_v45  ;;  %5802 = vmatprep.subr.bf16.mxu0 %v16307_v25  ;;  %v16328_v42 = vld [vmem:[%s21327_s24 + $0x96c] ss:$100 sps:$4 sm:$0xff]   ;;  %v16323_v43 = vld [vmem:[%s21327_s24 + $0x960] ss:$100 sps:$4 sm:$0xff]   ;;  %v16338_v46 = vld [vmem:[%s21327_s24 + $0xa34] ss:$100 sps:$4 sm:$0xff]   ;;  %v902_v13 = vcombine.high %v898_v8, %v898_v8 }
 0x1d2   : > { %5883 = vmatpush1.bf16.msra.mxu1 %v16302_v24  ;;  %v16326_v44 = vld [vmem:[%s21327_s24 + $0x968] ss:$100 sps:$4 sm:$0xff]   ;;  %v897_v7 = vld [vmem:[%s21329_s5] sm:$0xff]  ;;  %vm8102_vm2 = vcmask 48128  }
 0x1d3   : > { %v861_v49 = vadd.f32 %v860_v48, %v859_v47  ;;  %5884 = vmatprep.subr.bf16.mxu1 %v16310_v26  ;;  %v16335_v45 = vld [vmem:[%s21327_s24 + $0xa2c] ss:$100 sps:$4 sm:$0xff]   ;;  %v901_v12 = vcombine.high %v897_v7, %v897_v7 }
 0x1d4   : > { %5803 = vmatpush1.bf16.msra.mxu0 %v16305_v27  ;;  %v16333_v47 = vld [vmem:[%s21327_s24 + $0xa28] ss:$100 sps:$4 sm:$0xff]   ;;  %v16336_v48 = vld [vmem:[%s21327_s24 + $0xa30] ss:$100 sps:$4 sm:$0xff]  }
 0x1d5   : > { %v863_v51 = vadd.f32 %v862_v50, %v861_v49  ;;  %5804 = vmatprep.subr.bf16.mxu0 %v16313_v29 }
 0x1d6   : > { %5885 = vmatpush1.bf16.msra.mxu1 %v16308_v28 }
 0x1d7   : > { %864 = vadd.xlane.f32.xlu0 %v863_v51  ;;  %5886 = vmatprep.subr.bf16.mxu1 %v16316_v30  ;;  %v16341_v51 = vld [vmem:[%s21327_s24 + $0xaf4] ss:$100 sps:$4 sm:$0xff]  }
 0x1d8   : > { %5805 = vmatpush1.bf16.msra.mxu0 %v16311_v31  ;;  %v16362_v30 = vld [vmem:[%s21327_s24 + $0xd54] ss:$100 sps:$4 sm:$0xff]  }
 0x1d9   : > { %5806 = vmatprep.subr.bf16.mxu0 %v16319_v33  ;;  %v16360_v33 = vld [vmem:[%s21327_s24 + $0xd50] ss:$100 sps:$4 sm:$0xff]  }
 0x1da   : > { %5887 = vmatpush1.bf16.msra.mxu1 %v16314_v32  ;;  %v16357_v32 = vld [vmem:[%s21327_s24 + $0xd48] ss:$100 sps:$4 sm:$0xff]  }
 0x1db   : > { %5888 = vmatprep.subr.bf16.mxu1 %v16322_v34  ;;  %v16365_v34 = vld [vmem:[%s21327_s24 + $0xe14] ss:$100 sps:$4 sm:$0xff]  }
 0x1dc   : > { %5807 = vmatpush1.bf16.msra.mxu0 %v16317_v35  ;;  %v16368_v35 = vld [vmem:[%s21327_s24 + $0xe1c] ss:$100 sps:$4 sm:$0xff]  }
 0x1dd   : > { %5808 = vmatprep.subr.bf16.mxu0 %v16325_v41  ;;  %v16366_v41 = vld [vmem:[%s21327_s24 + $0xe18] ss:$100 sps:$4 sm:$0xff]  }
 0x1de   : > { %5889 = vmatpush1.bf16.msra.mxu1 %v16320_v36  ;;  %v16363_v36 = vld [vmem:[%s21327_s24 + $0xe10] ss:$100 sps:$4 sm:$0xff]  }
 0x1df   : > { %5890 = vmatprep.subr.bf16.mxu1 %v16328_v42  ;;  %v16371_v42 = vld [vmem:[%s21327_s24 + $0xedc] ss:$100 sps:$4 sm:$0xff]  }
 0x1e0   : > { %5809 = vmatpush1.bf16.msra.mxu0 %v16323_v43  ;;  %v16374_v43 = vld [vmem:[%s21327_s24 + $0xee4] ss:$100 sps:$4 sm:$0xff]  }
 0x1e1   : > { %5810 = vmatprep.subr.bf16.mxu0 %v16335_v45  ;;  %v16372_v45 = vld [vmem:[%s21327_s24 + $0xee0] ss:$100 sps:$4 sm:$0xff]  }
 0x1e2   : > { %5891 = vmatpush1.bf16.msra.mxu1 %v16326_v44  ;;  %v16369_v44 = vld [vmem:[%s21327_s24 + $0xed8] ss:$100 sps:$4 sm:$0xff]  }
 0x1e3   : > { %5892 = vmatprep.subr.bf16.mxu1 %v16338_v46  ;;  %v16377_v46 = vld [vmem:[%s21327_s24 + $0xfa4] ss:$100 sps:$4 sm:$0xff]  }
 0x1e4   : > { %5811 = vmatpush1.bf16.msra.mxu0 %v16333_v47  ;;  %v16380_v47 = vld [vmem:[%s21327_s24 + $0xfac] ss:$100 sps:$4 sm:$0xff]  }
 0x1e5   : > { %5812 = vmatprep.subr.bf16.mxu0 %v16341_v51  ;;  %v16386_v51 = vld [vmem:[%s21327_s24 + $0x1074] ss:$100 sps:$4 sm:$0xff]  }
 0x1e6   : > { %5893 = vmatpush1.bf16.msra.mxu1 %v16336_v48  ;;  %v16375_v48 = vld [vmem:[%s21327_s24 + $0xfa0] ss:$100 sps:$4 sm:$0xff]  }
 0x1e7   : > { %5894 = vmatprep.subr.bf16.mxu1 %v16344_v52  ;;  %v16381_v52 = vld [vmem:[%s21327_s24 + $0x1068] ss:$100 sps:$4 sm:$0xff]  }
 0x1e8   : > { %5813 = vmatpush1.bf16.msra.mxu0 %v16339_v54  ;;  %v16389_v54 = vld [vmem:[%s21327_s24 + $0x1134] ss:$100 sps:$4 sm:$0xff]  }
 0x1e9   : > { %5814 = vmatprep.subr.bf16.mxu0 %v16347_v57  ;;  %v16390_v57 = vld [vmem:[%s21327_s24 + $0x1138] ss:$100 sps:$4 sm:$0xff]  }
 0x1ea   : > { %5895 = vmatpush1.bf16.msra.mxu1 %v16342_v55  ;;  %v16392_v55 = vld [vmem:[%s21327_s24 + $0x113c] ss:$100 sps:$4 sm:$0xff]  }
 0x1eb   : > { %5896 = vmatprep.subr.bf16.mxu1 %v16350_v58  ;;  %v16395_v58 = vld [vmem:[%s21327_s24 + $0x11fc] ss:$100 sps:$4 sm:$0xff]  }
 0x1ec   : > { %5815 = vmatpush1.bf16.msra.mxu0 %v16345_v60  ;;  %v16393_v60 = vld [vmem:[%s21327_s24 + $0x11f8] ss:$100 sps:$4 sm:$0xff]  }
 0x1ed   : > { %5825 = vmatprep.subr.bf16.mxu0 %v16353_v63  ;;  %v16404_v63 = vld [vmem:[%s21327_s24 + $0x12cc] ss:$100 sps:$4 sm:$0xff]  }
 0x1ee   : > { %5897 = vmatpush1.bf16.msra.mxu1 %v16348_v61  ;;  %v16396_v61 = vld [vmem:[%s21327_s24 + $0x1200] ss:$100 sps:$4 sm:$0xff]  }
 0x1ef   : > { %5907 = vmatprep.subr.bf16.mxu1 %v16356_v1  ;;  %v16399_v1 = vld [vmem:[%s21327_s24 + $0x12c0] ss:$100 sps:$4 sm:$0xff]  }
 0x264   : > { %v865_v49 = vpop.xlane.xlu0 %864 }
 0x265   : > { %v866_v50 = vrot.slane %v865_v49, 4 }
 0x267   : > { %v867_v53 = vadd.f32 %v866_v50, %v865_v49  ;;  %v16378_v49 = vld [vmem:[%s21327_s24 + $0xfa8] ss:$100 sps:$4 sm:$0xff]  }
 0x268   : > { %v16383_v50 = vld [vmem:[%s21327_s24 + $0x106c] ss:$100 sps:$4 sm:$0xff]  }
 0x269   : > { %v868_v56 = vrot.slane %v867_v53, 2 }
 0x26b   : > { %v869_v59 = vadd.f32 %v868_v56, %v867_v53  ;;  %v16384_v53 = vld [vmem:[%s21327_s24 + $0x1070] ss:$100 sps:$4 sm:$0xff]  }
 0x26c   : > { %v16387_v56 = vld [vmem:[%s21327_s24 + $0x1130] ss:$100 sps:$4 sm:$0xff]  }
 0x26d   : > { %v870_v62 = vrot.slane %v869_v59, 1 }
 0x26f   : > { %v871_v2 = vadd.f32 %v870_v62, %v869_v59  ;;  %v16398_v59 = vld [vmem:[%s21327_s24 + $0x1204] ss:$100 sps:$4 sm:$0xff]  }
 0x270   : > { %v16401_v62 = vld [vmem:[%s21327_s24 + $0x12c4] ss:$100 sps:$4 sm:$0xff]  }
 0x271   : > { %16019 = vpush %v871_v2  ;;  %v16402_v2 = vld [vmem:[%s21327_s24 + $0x12c8] ss:$100 sps:$4 sm:$0xff]  }
 0x2a2   : > { %s16020_s23 = spop %16019 }
 0x2a3   : > { %s875_s1 = smul.f32 0.0004960318, %s16020_s23 }
 0x2a5   : > { %s876_s26 = sadd.f32 1e-05, %s875_s1  ;;  %s17455_s1 = smov 60  }
 0x2a7   : > { %v877_v3 = vstv %s876_s26  ;;  %s21309_s26 = smov 74  }
 0x2a8   : > { %17427 = vrsqrt.f32 %v877_v3  ;;  %v16407_v3 = vld [vmem:[%s21327_s24 + $0x138c] ss:$100 sps:$4 sm:$0xff]  }
 0x2b2   : > { %v17428_v4 = vpop.eup %17427 }
 0x2b3   : > { %16021 = vpush %v17428_v4  ;;  %v16410_v4 = vld [vmem:[%s21327_s24 + $0x1394] ss:$100 sps:$4 sm:$0xff]  }
 0x2e4   : > { %s16022_s23 = spop %16021 }
 0x2e5   : > { %v880_v11 = vstv %s16022_s23  ;;  %s21311_s23 = smov 47  }
 0x2e6   : > { %v881_v14 = vmul.f32 %v880_v11, %v17624_v37  ;;  %v882_v15 = vmul.f32 %v880_v11, %v17626_v38  ;;  %v883_v16 = vmul.f32 %v880_v11, %v17628_v39  ;;  %v884_v17 = vmul.f32 %v880_v11, %v17630_v40  ;;  %v16351_v38 = vld [vmem:[%s21327_s24 + $0xc80] ss:$100 sps:$4 sm:$0xff]   ;;  %v16354_v39 = vld [vmem:[%s21327_s24 + $0xc88] ss:$100 sps:$4 sm:$0xff]  }
 0x2e7   : > { %v16359_v40 = vld [vmem:[%s21327_s24 + $0xd4c] ss:$100 sps:$4 sm:$0xff]   ;;  %v16419_v11 = vld [vmem:[%s21327_s24 + $0x151c] ss:$100 sps:$4 sm:$0xff]  }
 0x2e8   : > { %v893_v18 = vmul.f32 %v885_v5, %v881_v14  ;;  %v894_v19 = vmul.f32 %v889_v9, %v882_v15  ;;  %v895_v20 = vmul.f32 %v886_v6, %v883_v16  ;;  %v896_v21 = vmul.f32 %v890_v10, %v884_v17  ;;  %v16405_v5 = vld [vmem:[%s21327_s24 + $0x1388] ss:$100 sps:$4 sm:$0xff]   ;;  %v16408_v6 = vld [vmem:[%s21327_s24 + $0x1390] ss:$100 sps:$4 sm:$0xff]   ;;  %v16414_v10 = vld [vmem:[%s21327_s24 + $0x1458] ss:$100 sps:$4 sm:$0xff]  }
 0x2e9   : > { %v16411_v9 = vld [vmem:[%s21327_s24 + $0x1450] ss:$100 sps:$4 sm:$0xff]   ;;  %v16420_v14 = vld [vmem:[%s21327_s24 + $0x1520] ss:$100 sps:$4 sm:$0xff]  }
 0x2ea   : > { %v905_v22 = vadd.f32 %v897_v7, %v893_v18  ;;  %v906_v23 = vadd.f32 %v901_v12, %v894_v19  ;;  %v17858_v24 = vadd.f32 %v898_v8, %v895_v20  ;;  %v908_v25 = vadd.f32 %v902_v13, %v896_v21  ;;  %v16413_v7 = vld [vmem:[%s21327_s24 + $0x1454] ss:$100 sps:$4 sm:$0xff]   ;;  %v16416_v8 = vld [vmem:[%s21327_s24 + $0x145c] ss:$100 sps:$4 sm:$0xff]   ;;  %v16422_v12 = vld [vmem:[%s21327_s24 + $0x1524] ss:$100 sps:$4 sm:$0xff]  }
 0x2eb   : > { %v16417_v13 = vld [vmem:[%s21327_s24 + $0x1518] ss:$100 sps:$4 sm:$0xff]   ;;  %v16425_v15 = vld [vmem:[%s21327_s24 + $0x15e4] ss:$100 sps:$4 sm:$0xff]   ;;  %v16428_v16 = vld [vmem:[%s21327_s24 + $0x15ec] ss:$100 sps:$4 sm:$0xff]  }
 0x2ec   : > { %v909_v26 = vmax.f32 %v905_v22, 0.0  ;;  %v910_v27 = vmax.f32 %v906_v23, 0.0  ;;  %v912_v28 = vmax.f32 %v908_v25, 0.0  ;;  %v16423_v17 = vld [vmem:[%s21327_s24 + $0x15e0] ss:$100 sps:$4 sm:$0xff]  }
 0x2ed   : > { %v16426_v18 = vld [vmem:[%s21327_s24 + $0x15e8] ss:$100 sps:$4 sm:$0xff]   ;;  %v16434_v20 = vld [vmem:[%s21327_s24 + $0x16b4] ss:$100 sps:$4 sm:$0xff]   ;;  %v16440_v25 = vld [vmem:[%s21327_s24 + $0x177c] ss:$100 sps:$4 sm:$0xff]  }
 0x2ee   : > { %v17860_v29 = vpack.c.bf16 %v909_v26, %v909_v26  ;;  %v17862_v37 = vpack.c.bf16 %v910_v27, %v910_v27  ;;  %v17878_v31 = vpack.c.bf16 %v912_v28, %v912_v28  ;;  %v16431_v19 = vld [vmem:[%s21327_s24 + $0x16ac] ss:$100 sps:$4 sm:$0xff]   ;;  %v16437_v23 = vld [vmem:[%s21327_s24 + $0x1774] ss:$100 sps:$4 sm:$0xff]   ;;  %v1724_v27 = vld [vmem:[%s21327_s24 + $0x1840] sm:$0xff] }
 0x2ef   : > { %v16429_v21 = vld [vmem:[%s21327_s24 + $0x16a8] ss:$100 sps:$4 sm:$0xff]   ;;  %v16432_v22 = vld [vmem:[%s21327_s24 + $0x16b0] ss:$100 sps:$4 sm:$0xff]   ;;  %v1723_v26 = vld [vmem:[%s21327_s24 + $0x1838] sm:$0xff] }
 0x2f0   : > { %5816 = vmatprep.mubr.bf16.mxu0 %v17862_v37  ;;  %5898 = vmatprep.mubr.bf16.mxu1 %v17862_v37  ;;  %v16435_v28 = vld [vmem:[%s21327_s24 + $0x1770] ss:$100 sps:$4 sm:$0xff]  }
 0x2f1   : > { %5817 = vmatmul.mubr.bf16.vlgmr.msra.gmra.mrb[4].mxu0 %v17860_v29  ;;  %5899 = vmatmul.mubr.bf16.vlgmr.msra.gmra.mrb[4].mxu1 %v17860_v29 }
 0x2f2   : > { %5826 = vmatpush1.bf16.msra.mxu0 %v16351_v38  ;;  %5908 = vmatpush1.bf16.msra.mxu1 %v16354_v39  ;;  %v16438_v38 = vld [vmem:[%s21327_s24 + $0x1778] ss:$100 sps:$4 sm:$0xff]   ;;  %v14578_v39 = vcombine.low %v1723_v26, %v1723_v26 }
 0x2f3   : > { %14604 = vmatprep.mubr.msk.bf16.mxu0 %vm5705_vm3, %v17878_v31  ;;  %14606 = vmatprep.mubr.msk.bf16.mxu1 %vm5705_vm3, %v17878_v31 }
 0x2f4   : > { %5827 = vmatprep.subr.bf16.mxu0 %v16359_v40  ;;  %5909 = vmatprep.subr.bf16.mxu1 %v16362_v30  ;;  %v14579_v40 = vcombine.high %v1723_v26, %v1723_v26  ;;  %v14581_v30 = vcombine.high %v1724_v27, %v1724_v27  ;;  %v16519_v26 = vld [vmem:[%s21327_s24 + $0x974] ss:$100 sps:$4 sm:$0xff]  }
 0x2f6   : > { %5828 = vmatpush1.bf16.msra.mxu0 %v16357_v32  ;;  %5910 = vmatpush1.bf16.msra.mxu1 %v16360_v33  ;;  %v14580_v32 = vcombine.low %v1724_v27, %v1724_v27  ;;  %v5710_v33 = vsel %vm673_vm0, %v14578_v39, 0  ;;  %v16522_v27 = vld [vmem:[%s21327_s24 + $0x97c] ss:$100 sps:$4 sm:$0xff]  }
 0x2f7   : > { %5829 = vmatprep.subr.bf16.mxu0 %v16365_v34  ;;  %5911 = vmatprep.subr.bf16.mxu1 %v16368_v35  ;;  %v911_v34 = vmax.f32 %v17858_v24, 0.0  ;;  %v16445_v24 = vld [vmem:[%s21327_s24 + $0x10] ss:$100 sps:$4 sm:$0xff]   ;;  %v16525_v39 = vld [vmem:[%s21327_s24 + $0xa3c] ss:$100 sps:$4 sm:$0xff]  }
 0x2f8   : > { %v5716_v35 = vsel %vm673_vm0, %v14580_v32, 0  ;;  %v16526_v32 = vld [vmem:[%s21327_s24 + $0xa40] ss:$100 sps:$4 sm:$0xff]  }
 0x2fa   : > { %5830 = vmatpush1.bf16.msra.mxu0 %v16363_v36  ;;  %5912 = vmatpush1.bf16.msra.mxu1 %v16366_v41  ;;  %v16447_v36 = vld [vmem:[%s21327_s24 + $0x14] ss:$100 sps:$4 sm:$0xff]   ;;  %v16450_v41 = vld [vmem:[%s21327_s24 + $0x1c] ss:$100 sps:$4 sm:$0xff]  }
 0x2fb   : > { %5831 = vmatprep.subr.bf16.mxu0 %v16371_v42  ;;  %5913 = vmatprep.subr.bf16.mxu1 %v16374_v43  ;;  %v18068_v42 = vpack.c.bf16 %v911_v34, %v911_v34  ;;  %v16448_v43 = vld [vmem:[%s21327_s24 + $0x18] ss:$100 sps:$4 sm:$0xff]   ;;  %v16534_v34 = vld [vmem:[%s21327_s24 + $0xb0c] ss:$100 sps:$4 sm:$0xff]  }
 0x2fe   : > { %5832 = vmatpush1.bf16.msra.mxu0 %v16369_v44  ;;  %5914 = vmatpush1.bf16.msra.mxu1 %v16372_v45  ;;  %v16453_v44 = vld [vmem:[%s21327_s24 + $0xdc] ss:$100 sps:$4 sm:$0xff]   ;;  %v16456_v45 = vld [vmem:[%s21327_s24 + $0xe4] ss:$100 sps:$4 sm:$0xff]  }
 0x2ff   : > { %5833 = vmatprep.subr.bf16.mxu0 %v16377_v46  ;;  %5915 = vmatprep.subr.bf16.mxu1 %v16380_v47  ;;  %v16451_v46 = vld [vmem:[%s21327_s24 + $0xd8] ss:$100 sps:$4 sm:$0xff]   ;;  %v16454_v47 = vld [vmem:[%s21327_s24 + $0xe0] ss:$100 sps:$4 sm:$0xff]  }
 0x302   : > { %5834 = vmatpush1.bf16.msra.mxu0 %v16375_v48  ;;  %5916 = vmatpush1.bf16.msra.mxu1 %v16378_v49  ;;  %v16459_v48 = vld [vmem:[%s21327_s24 + $0x1a4] ss:$100 sps:$4 sm:$0xff]   ;;  %v16462_v49 = vld [vmem:[%s21327_s24 + $0x1ac] ss:$100 sps:$4 sm:$0xff]  }
 0x303   : > { %5835 = vmatprep.subr.bf16.mxu0 %v16383_v50  ;;  %5917 = vmatprep.subr.bf16.mxu1 %v16386_v51  ;;  %v16457_v50 = vld [vmem:[%s21327_s24 + $0x1a0] ss:$100 sps:$4 sm:$0xff]   ;;  %v16460_v51 = vld [vmem:[%s21327_s24 + $0x1a8] ss:$100 sps:$4 sm:$0xff]  }
 0x306   : > { %5836 = vmatpush1.bf16.msra.mxu0 %v16381_v52  ;;  %5918 = vmatpush1.bf16.msra.mxu1 %v16384_v53  ;;  %v16465_v52 = vld [vmem:[%s21327_s24 + $0x26c] ss:$100 sps:$4 sm:$0xff]   ;;  %v16468_v53 = vld [vmem:[%s21327_s24 + $0x274] ss:$100 sps:$4 sm:$0xff]  }
 0x307   : > { %5837 = vmatprep.subr.bf16.mxu0 %v16389_v54  ;;  %5919 = vmatprep.subr.bf16.mxu1 %v16392_v55  ;;  %v16463_v54 = vld [vmem:[%s21327_s24 + $0x268] ss:$100 sps:$4 sm:$0xff]   ;;  %v16466_v55 = vld [vmem:[%s21327_s24 + $0x270] ss:$100 sps:$4 sm:$0xff]  }
 0x30a   : > { %5838 = vmatpush1.bf16.msra.mxu0 %v16387_v56  ;;  %5920 = vmatpush1.bf16.msra.mxu1 %v16390_v57  ;;  %v16471_v56 = vld [vmem:[%s21327_s24 + $0x334] ss:$100 sps:$4 sm:$0xff]   ;;  %v16474_v57 = vld [vmem:[%s21327_s24 + $0x33c] ss:$100 sps:$4 sm:$0xff]  }
 0x30b   : > { %5839 = vmatprep.subr.bf16.mxu0 %v16395_v58  ;;  %5921 = vmatprep.subr.bf16.mxu1 %v16398_v59  ;;  %v16469_v58 = vld [vmem:[%s21327_s24 + $0x330] ss:$100 sps:$4 sm:$0xff]   ;;  %v16472_v59 = vld [vmem:[%s21327_s24 + $0x338] ss:$100 sps:$4 sm:$0xff]  }
 0x30e   : > { %5840 = vmatpush1.bf16.msra.mxu0 %v16393_v60  ;;  %5922 = vmatpush1.bf16.msra.mxu1 %v16396_v61  ;;  %v16477_v60 = vld [vmem:[%s21327_s24 + $0x3fc] ss:$100 sps:$4 sm:$0xff]   ;;  %v16480_v61 = vld [vmem:[%s21327_s24 + $0x404] ss:$100 sps:$4 sm:$0xff]  }
 0x30f   : > { %5841 = vmatprep.subr.bf16.mxu0 %v16401_v62  ;;  %5923 = vmatprep.subr.bf16.mxu1 %v16404_v63  ;;  %v16475_v62 = vld [vmem:[%s21327_s24 + $0x3f8] ss:$100 sps:$4 sm:$0xff]   ;;  %v16478_v63 = vld [vmem:[%s21327_s24 + $0x400] ss:$100 sps:$4 sm:$0xff]  }
 0x312   : > { %5842 = vmatpush1.bf16.msra.mxu0 %v16399_v1  ;;  %5924 = vmatpush1.bf16.msra.mxu1 %v16402_v2  ;;  %v16483_v1 = vld [vmem:[%s21327_s24 + $0x4c4] ss:$100 sps:$4 sm:$0xff]   ;;  %v16486_v2 = vld [vmem:[%s21327_s24 + $0x4cc] ss:$100 sps:$4 sm:$0xff]  }
 0x313   : > { %5843 = vmatprep.subr.bf16.mxu0 %v16407_v3  ;;  %5925 = vmatprep.subr.bf16.mxu1 %v16410_v4  ;;  %v16481_v3 = vld [vmem:[%s21327_s24 + $0x4c0] ss:$100 sps:$4 sm:$0xff]   ;;  %v16484_v4 = vld [vmem:[%s21327_s24 + $0x4c8] ss:$100 sps:$4 sm:$0xff]  }
 0x316   : > { %5844 = vmatpush1.bf16.msra.mxu0 %v16405_v5  ;;  %5926 = vmatpush1.bf16.msra.mxu1 %v16408_v6  ;;  %v16489_v5 = vld [vmem:[%s21327_s24 + $0x58c] ss:$100 sps:$4 sm:$0xff]   ;;  %v16492_v6 = vld [vmem:[%s21327_s24 + $0x594] ss:$100 sps:$4 sm:$0xff]  }
 0x317   : > { %5845 = vmatprep.subr.bf16.mxu0 %v16413_v7  ;;  %5927 = vmatprep.subr.bf16.mxu1 %v16416_v8  ;;  %v16487_v7 = vld [vmem:[%s21327_s24 + $0x588] ss:$100 sps:$4 sm:$0xff]   ;;  %v16490_v8 = vld [vmem:[%s21327_s24 + $0x590] ss:$100 sps:$4 sm:$0xff]  }
 0x31a   : > { %5846 = vmatpush1.bf16.msra.mxu0 %v16411_v9  ;;  %5928 = vmatpush1.bf16.msra.mxu1 %v16414_v10  ;;  %v16495_v9 = vld [vmem:[%s21327_s24 + $0x654] ss:$100 sps:$4 sm:$0xff]   ;;  %v16498_v10 = vld [vmem:[%s21327_s24 + $0x65c] ss:$100 sps:$4 sm:$0xff]  }
 0x31b   : > { %5847 = vmatprep.subr.bf16.mxu0 %v16419_v11  ;;  %5929 = vmatprep.subr.bf16.mxu1 %v16422_v12  ;;  %v16493_v11 = vld [vmem:[%s21327_s24 + $0x650] ss:$100 sps:$4 sm:$0xff]   ;;  %v16496_v12 = vld [vmem:[%s21327_s24 + $0x658] ss:$100 sps:$4 sm:$0xff]  }
 0x31e   : > { %5848 = vmatpush1.bf16.msra.mxu0 %v16417_v13  ;;  %5930 = vmatpush1.bf16.msra.mxu1 %v16420_v14  ;;  %v16501_v13 = vld [vmem:[%s21327_s24 + $0x71c] ss:$100 sps:$4 sm:$0xff]   ;;  %v16504_v14 = vld [vmem:[%s21327_s24 + $0x724] ss:$100 sps:$4 sm:$0xff]  }
 0x31f   : > { %5849 = vmatprep.subr.bf16.mxu0 %v16425_v15  ;;  %5931 = vmatprep.subr.bf16.mxu1 %v16428_v16  ;;  %v16499_v15 = vld [vmem:[%s21327_s24 + $0x718] ss:$100 sps:$4 sm:$0xff]   ;;  %v16502_v16 = vld [vmem:[%s21327_s24 + $0x720] ss:$100 sps:$4 sm:$0xff]  }
 0x322   : > { %5850 = vmatpush1.bf16.msra.mxu0 %v16423_v17  ;;  %5932 = vmatpush1.bf16.msra.mxu1 %v16426_v18  ;;  %v16507_v17 = vld [vmem:[%s21327_s24 + $0x7e4] ss:$100 sps:$4 sm:$0xff]   ;;  %v16510_v18 = vld [vmem:[%s21327_s24 + $0x7ec] ss:$100 sps:$4 sm:$0xff]  }
 0x323   : > { %5851 = vmatprep.subr.bf16.mxu0 %v16431_v19  ;;  %5933 = vmatprep.subr.bf16.mxu1 %v16434_v20  ;;  %v16505_v19 = vld [vmem:[%s21327_s24 + $0x7e0] ss:$100 sps:$4 sm:$0xff]   ;;  %v16508_v20 = vld [vmem:[%s21327_s24 + $0x7e8] ss:$100 sps:$4 sm:$0xff]  }
 0x326   : > { %5852 = vmatpush1.bf16.msra.mxu0 %v16429_v21  ;;  %5934 = vmatpush1.bf16.msra.mxu1 %v16432_v22  ;;  %v16513_v21 = vld [vmem:[%s21327_s24 + $0x8ac] ss:$100 sps:$4 sm:$0xff]   ;;  %v16516_v22 = vld [vmem:[%s21327_s24 + $0x8b4] ss:$100 sps:$4 sm:$0xff]  }
 0x327   : > { %5853 = vmatprep.subr.bf16.mxu0 %v16437_v23  ;;  %5935 = vmatprep.subr.bf16.mxu1 %v16440_v25  ;;  %v16511_v23 = vld [vmem:[%s21327_s24 + $0x8a8] ss:$100 sps:$4 sm:$0xff]   ;;  %v16514_v25 = vld [vmem:[%s21327_s24 + $0x8b0] ss:$100 sps:$4 sm:$0xff]  }
 0x32a   : > { %5854 = vmatpush1.bf16.msra.mxu0 %v16435_v28  ;;  %5936 = vmatpush1.bf16.msra.mxu1 %v16438_v38  ;;  %v16517_v28 = vld [vmem:[%s21327_s24 + $0x970] ss:$100 sps:$4 sm:$0xff]   ;;  %v16520_v38 = vld [vmem:[%s21327_s24 + $0x978] ss:$100 sps:$4 sm:$0xff]  }
 0x32b   : > { %14603 = vmatprep.subr.msk.bf16.mxu0 %vm673_vm0, %v14579_v40  ;;  %14605 = vmatprep.subr.msk.bf16.mxu1 %vm673_vm0, %v14581_v30  ;;  %v16528_v40 = vld [vmem:[%s21327_s24 + $0xa44] ss:$100 sps:$4 sm:$0xff]   ;;  %v16523_v30 = vld [vmem:[%s21327_s24 + $0xa38] ss:$100 sps:$4 sm:$0xff]  }
 0x32e   : > { %5856 = vmatpush1.bf16.msra.mxu0 %v5710_v33  ;;  %5938 = vmatpush1.bf16.msra.mxu1 %v5716_v35  ;;  %v16531_v33 = vld [vmem:[%s21327_s24 + $0xb04] ss:$100 sps:$4 sm:$0xff]  }
 0x32f   : > { %5948 = vmatprep.subr.bf16.mxu0 %v16447_v36  ;;  %6030 = vmatprep.subr.bf16.mxu1 %v16450_v41  ;;  %v16529_v35 = vld [vmem:[%s21327_s24 + $0xb00] ss:$100 sps:$4 sm:$0xff]   ;;  %v16532_v36 = vld [vmem:[%s21327_s24 + $0xb08] ss:$100 sps:$4 sm:$0xff]  }
 0x330   : > { %v16537_v41 = vld [vmem:[%s21327_s24 + $0xbcc] ss:$100 sps:$4 sm:$0xff]  }
 0x331   : > { %5858 = vmatmul.mubr.bf16.vlgmr.msra.gmra.mrb[4].mxu0 %v18068_v42  ;;  %5940 = vmatmul.mubr.bf16.vlgmr.msra.gmra.mrb[4].mxu1 %v18068_v42 }
 0x332   : > { %5949 = vmatpush1.bf16.msra.mxu0 %v16445_v24  ;;  %5980 = vmatprep.mubr.bf16.mxu0 %v17862_v37  ;;  %v16540_v24 = vld [vmem:[%s21327_s24 + $0xbd4] ss:$100 sps:$4 sm:$0xff]  }
 0x333   : > { %6031 = vmatpush1.bf16.msra.mxu1 %v16448_v43  ;;  %6062 = vmatprep.mubr.bf16.mxu1 %v17862_v37  ;;  %v16535_v43 = vld [vmem:[%s21327_s24 + $0xbc8] ss:$100 sps:$4 sm:$0xff]  }
 0x334   : > { %5950 = vmatprep.subr.bf16.mxu0 %v16453_v44  ;;  %6032 = vmatprep.subr.bf16.mxu1 %v16456_v45  ;;  %v16538_v44 = vld [vmem:[%s21327_s24 + $0xbd0] ss:$100 sps:$4 sm:$0xff]  }
 0x335   : > { %v16543_v45 = vld [vmem:[%s21327_s24 + $0xc94] ss:$100 sps:$4 sm:$0xff]  }
 0x336   : > { %5951 = vmatpush1.bf16.msra.mxu0 %v16451_v46  ;;  %v16546_v46 = vld [vmem:[%s21327_s24 + $0xc9c] ss:$100 sps:$4 sm:$0xff]  }
 0x337   : > { %6033 = vmatpush1.bf16.msra.mxu1 %v16454_v47  ;;  %5952 = vmatprep.subr.bf16.mxu0 %v16459_v48  ;;  %v16541_v47 = vld [vmem:[%s21327_s24 + $0xc90] ss:$100 sps:$4 sm:$0xff]   ;;  %v16544_v48 = vld [vmem:[%s21327_s24 + $0xc98] ss:$100 sps:$4 sm:$0xff]  }
 0x338   : > { %6034 = vmatprep.subr.bf16.mxu1 %v16462_v49  ;;  %v16549_v49 = vld [vmem:[%s21327_s24 + $0xd5c] ss:$100 sps:$4 sm:$0xff]  }
 0x33a   : > { %5953 = vmatpush1.bf16.msra.mxu0 %v16457_v50  ;;  %v16552_v50 = vld [vmem:[%s21327_s24 + $0xd64] ss:$100 sps:$4 sm:$0xff]  }
 0x33b   : > { %6035 = vmatpush1.bf16.msra.mxu1 %v16460_v51  ;;  %5954 = vmatprep.subr.bf16.mxu0 %v16465_v52  ;;  %v16547_v51 = vld [vmem:[%s21327_s24 + $0xd58] ss:$100 sps:$4 sm:$0xff]   ;;  %v16550_v52 = vld [vmem:[%s21327_s24 + $0xd60] ss:$100 sps:$4 sm:$0xff]  }
 0x33c   : > { %6036 = vmatprep.subr.bf16.mxu1 %v16468_v53  ;;  %v16555_v53 = vld [vmem:[%s21327_s24 + $0xe24] ss:$100 sps:$4 sm:$0xff]  }
 0x33e   : > { %5955 = vmatpush1.bf16.msra.mxu0 %v16463_v54  ;;  %v16558_v54 = vld [vmem:[%s21327_s24 + $0xe2c] ss:$100 sps:$4 sm:$0xff]  }
 0x33f   : > { %6037 = vmatpush1.bf16.msra.mxu1 %v16466_v55  ;;  %5956 = vmatprep.subr.bf16.mxu0 %v16471_v56  ;;  %v16553_v55 = vld [vmem:[%s21327_s24 + $0xe20] ss:$100 sps:$4 sm:$0xff]   ;;  %v16556_v56 = vld [vmem:[%s21327_s24 + $0xe28] ss:$100 sps:$4 sm:$0xff]  }
 0x340   : > { %6038 = vmatprep.subr.bf16.mxu1 %v16474_v57  ;;  %v16561_v57 = vld [vmem:[%s21327_s24 + $0xeec] ss:$100 sps:$4 sm:$0xff]  }
 0x342   : > { %5957 = vmatpush1.bf16.msra.mxu0 %v16469_v58  ;;  %v16564_v58 = vld [vmem:[%s21327_s24 + $0xef4] ss:$100 sps:$4 sm:$0xff]  }
 0x343   : > { %6039 = vmatpush1.bf16.msra.mxu1 %v16472_v59  ;;  %5958 = vmatprep.subr.bf16.mxu0 %v16477_v60  ;;  %v16559_v59 = vld [vmem:[%s21327_s24 + $0xee8] ss:$100 sps:$4 sm:$0xff]   ;;  %v16562_v60 = vld [vmem:[%s21327_s24 + $0xef0] ss:$100 sps:$4 sm:$0xff]  }
 0x344   : > { %6040 = vmatprep.subr.bf16.mxu1 %v16480_v61  ;;  %v16567_v61 = vld [vmem:[%s21327_s24 + $0xfb4] ss:$100 sps:$4 sm:$0xff]  }
 0x346   : > { %5959 = vmatpush1.bf16.msra.mxu0 %v16475_v62  ;;  %v16570_v62 = vld [vmem:[%s21327_s24 + $0xfbc] ss:$100 sps:$4 sm:$0xff]  }
 0x347   : > { %6041 = vmatpush1.bf16.msra.mxu1 %v16478_v63  ;;  %5960 = vmatprep.subr.bf16.mxu0 %v16483_v1  ;;  %v16565_v63 = vld [vmem:[%s21327_s24 + $0xfb0] ss:$100 sps:$4 sm:$0xff]   ;;  %v16568_v1 = vld [vmem:[%s21327_s24 + $0xfb8] ss:$100 sps:$4 sm:$0xff]  }
 0x348   : > { %6042 = vmatprep.subr.bf16.mxu1 %v16486_v2  ;;  %v16573_v2 = vld [vmem:[%s21327_s24 + $0x107c] ss:$100 sps:$4 sm:$0xff]  }
 0x34a   : > { %5961 = vmatpush1.bf16.msra.mxu0 %v16481_v3  ;;  %v16576_v3 = vld [vmem:[%s21327_s24 + $0x1084] ss:$100 sps:$4 sm:$0xff]  }
 0x34b   : > { %6043 = vmatpush1.bf16.msra.mxu1 %v16484_v4  ;;  %5962 = vmatprep.subr.bf16.mxu0 %v16489_v5  ;;  %v16571_v4 = vld [vmem:[%s21327_s24 + $0x1078] ss:$100 sps:$4 sm:$0xff]   ;;  %v16574_v5 = vld [vmem:[%s21327_s24 + $0x1080] ss:$100 sps:$4 sm:$0xff]  }
 0x34c   : > { %6044 = vmatprep.subr.bf16.mxu1 %v16492_v6  ;;  %v16579_v6 = vld [vmem:[%s21327_s24 + $0x1144] ss:$100 sps:$4 sm:$0xff]  }
 0x34e   : > { %5963 = vmatpush1.bf16.msra.mxu0 %v16487_v7  ;;  %v16582_v7 = vld [vmem:[%s21327_s24 + $0x114c] ss:$100 sps:$4 sm:$0xff]  }
 0x34f   : > { %6045 = vmatpush1.bf16.msra.mxu1 %v16490_v8  ;;  %5964 = vmatprep.subr.bf16.mxu0 %v16495_v9  ;;  %v16577_v8 = vld [vmem:[%s21327_s24 + $0x1140] ss:$100 sps:$4 sm:$0xff]   ;;  %v16580_v9 = vld [vmem:[%s21327_s24 + $0x1148] ss:$100 sps:$4 sm:$0xff]  }
 0x350   : > { %6046 = vmatprep.subr.bf16.mxu1 %v16498_v10  ;;  %v16585_v10 = vld [vmem:[%s21327_s24 + $0x120c] ss:$100 sps:$4 sm:$0xff]  }
 0x352   : > { %5965 = vmatpush1.bf16.msra.mxu0 %v16493_v11  ;;  %v16588_v11 = vld [vmem:[%s21327_s24 + $0x1214] ss:$100 sps:$4 sm:$0xff]  }
 0x353   : > { %6047 = vmatpush1.bf16.msra.mxu1 %v16496_v12  ;;  %5966 = vmatprep.subr.bf16.mxu0 %v16501_v13  ;;  %v16583_v12 = vld [vmem:[%s21327_s24 + $0x1208] ss:$100 sps:$4 sm:$0xff]   ;;  %v16586_v13 = vld [vmem:[%s21327_s24 + $0x1210] ss:$100 sps:$4 sm:$0xff]  }
 0x354   : > { %6048 = vmatprep.subr.bf16.mxu1 %v16504_v14  ;;  %v16591_v14 = vld [vmem:[%s21327_s24 + $0x12d4] ss:$100 sps:$4 sm:$0xff]  }
 0x356   : > { %5967 = vmatpush1.bf16.msra.mxu0 %v16499_v15  ;;  %v16594_v15 = vld [vmem:[%s21327_s24 + $0x12dc] ss:$100 sps:$4 sm:$0xff]  }
 0x357   : > { %6049 = vmatpush1.bf16.msra.mxu1 %v16502_v16  ;;  %5968 = vmatprep.subr.bf16.mxu0 %v16507_v17  ;;  %v16589_v16 = vld [vmem:[%s21327_s24 + $0x12d0] ss:$100 sps:$4 sm:$0xff]   ;;  %v16592_v17 = vld [vmem:[%s21327_s24 + $0x12d8] ss:$100 sps:$4 sm:$0xff]  }
 0x358   : > { %6050 = vmatprep.subr.bf16.mxu1 %v16510_v18  ;;  %v16597_v18 = vld [vmem:[%s21327_s24 + $0x139c] ss:$100 sps:$4 sm:$0xff]  }
 0x35a   : > { %5969 = vmatpush1.bf16.msra.mxu0 %v16505_v19  ;;  %v16600_v19 = vld [vmem:[%s21327_s24 + $0x13a4] ss:$100 sps:$4 sm:$0xff]  }
 0x35b   : > { %6051 = vmatpush1.bf16.msra.mxu1 %v16508_v20  ;;  %5970 = vmatprep.subr.bf16.mxu0 %v16513_v21  ;;  %v16595_v20 = vld [vmem:[%s21327_s24 + $0x1398] ss:$100 sps:$4 sm:$0xff]   ;;  %v16598_v21 = vld [vmem:[%s21327_s24 + $0x13a0] ss:$100 sps:$4 sm:$0xff]  }
 0x35c   : > { %6052 = vmatprep.subr.bf16.mxu1 %v16516_v22  ;;  %v16603_v22 = vld [vmem:[%s21327_s24 + $0x1464] ss:$100 sps:$4 sm:$0xff]  }
 0x35e   : > { %5971 = vmatpush1.bf16.msra.mxu0 %v16511_v23  ;;  %v16606_v23 = vld [vmem:[%s21327_s24 + $0x146c] ss:$100 sps:$4 sm:$0xff]  }
 0x35f   : > { %6053 = vmatpush1.bf16.msra.mxu1 %v16514_v25  ;;  %5972 = vmatprep.subr.bf16.mxu0 %v16519_v26  ;;  %v16601_v25 = vld [vmem:[%s21327_s24 + $0x1460] ss:$100 sps:$4 sm:$0xff]   ;;  %v16604_v26 = vld [vmem:[%s21327_s24 + $0x1468] ss:$100 sps:$4 sm:$0xff]  }
 0x360   : > { %6054 = vmatprep.subr.bf16.mxu1 %v16522_v27  ;;  %v16609_v27 = vld [vmem:[%s21327_s24 + $0x152c] ss:$100 sps:$4 sm:$0xff]  }
 0x362   : > { %5973 = vmatpush1.bf16.msra.mxu0 %v16517_v28  ;;  %v16612_v28 = vld [vmem:[%s21327_s24 + $0x1534] ss:$100 sps:$4 sm:$0xff]  }
 0x363   : > { %6055 = vmatpush1.bf16.msra.mxu1 %v16520_v38  ;;  %5974 = vmatprep.subr.bf16.mxu0 %v16525_v39  ;;  %v16607_v38 = vld [vmem:[%s21327_s24 + $0x1528] ss:$100 sps:$4 sm:$0xff]   ;;  %v16610_v39 = vld [vmem:[%s21327_s24 + $0x1530] ss:$100 sps:$4 sm:$0xff]  }
 0x364   : > { %6056 = vmatprep.subr.bf16.mxu1 %v16528_v40  ;;  %v16615_v40 = vld [vmem:[%s21327_s24 + $0x15f4] ss:$100 sps:$4 sm:$0xff]  }
 0x366   : > { %5975 = vmatpush1.bf16.msra.mxu0 %v16523_v30  ;;  %v16618_v30 = vld [vmem:[%s21327_s24 + $0x15fc] ss:$100 sps:$4 sm:$0xff]  }
 0x367   : > { %6057 = vmatpush1.bf16.msra.mxu1 %v16526_v32  ;;  %5976 = vmatprep.subr.bf16.mxu0 %v16531_v33  ;;  %v16613_v32 = vld [vmem:[%s21327_s24 + $0x15f0] ss:$100 sps:$4 sm:$0xff]   ;;  %v16616_v33 = vld [vmem:[%s21327_s24 + $0x15f8] ss:$100 sps:$4 sm:$0xff]  }
 0x368   : > { %6058 = vmatprep.subr.bf16.mxu1 %v16534_v34  ;;  %v16621_v34 = vld [vmem:[%s21327_s24 + $0x16bc] ss:$100 sps:$4 sm:$0xff]  }
 0x36a   : > { %5977 = vmatpush1.bf16.msra.mxu0 %v16529_v35  ;;  %v16624_v35 = vld [vmem:[%s21327_s24 + $0x16c4] ss:$100 sps:$4 sm:$0xff]  }
 0x36b   : > { %6059 = vmatpush1.bf16.msra.mxu1 %v16532_v36  ;;  %5978 = vmatprep.subr.bf16.mxu0 %v16537_v41  ;;  %v16619_v36 = vld [vmem:[%s21327_s24 + $0x16b8] ss:$100 sps:$4 sm:$0xff]   ;;  %v16622_v41 = vld [vmem:[%s21327_s24 + $0x16c0] ss:$100 sps:$4 sm:$0xff]  }
 0x36c   : > { %6060 = vmatprep.subr.bf16.mxu1 %v16540_v24  ;;  %v16627_v24 = vld [vmem:[%s21327_s24 + $0x1784] ss:$100 sps:$4 sm:$0xff]  }
 0x36e   : > { %5979 = vmatpush1.bf16.msra.mxu0 %v16535_v43  ;;  %v16630_v43 = vld [vmem:[%s21327_s24 + $0x178c] ss:$100 sps:$4 sm:$0xff]  }
 0x36f   : > { %6061 = vmatpush1.bf16.msra.mxu1 %v16538_v44  ;;  %5989 = vmatprep.subr.bf16.mxu0 %v16543_v45  ;;  %v1725_v44 = vld [vmem:[%s21327_s24 + $0x1848] sm:$0xff]  ;;  %v1726_v45 = vld [vmem:[%s21327_s24 + $0x1850] sm:$0xff] }
 0x370   : > { %6071 = vmatprep.subr.bf16.mxu1 %v16546_v46  ;;  %v16625_v46 = vld [vmem:[%s21327_s24 + $0x1780] ss:$100 sps:$4 sm:$0xff]  }
 0x371   : > { %5981 = vmatmul.mubr.bf16.vlgmr.msra.gmra.mrb[8].mxu0 %v17860_v29 }
 0x372   : > { %6063 = vmatmul.mubr.bf16.vlgmr.msra.gmra.mrb[8].mxu1 %v17860_v29  ;;  %5990 = vmatpush1.bf16.msra.mxu0 %v16541_v47  ;;  %v16628_v47 = vld [vmem:[%s21327_s24 + $0x1788] ss:$100 sps:$4 sm:$0xff]  }
 0x373   : > { %14608 = vmatprep.mubr.msk.bf16.mxu0 %vm5705_vm3, %v17878_v31  ;;  %6072 = vmatpush1.bf16.msra.mxu1 %v16544_v48  ;;  %v14583_v48 = vcombine.high %v1725_v44, %v1725_v44 }
 0x374   : > { %14610 = vmatprep.mubr.msk.bf16.mxu1 %vm5705_vm3, %v17878_v31  ;;  %5991 = vmatprep.subr.bf16.mxu0 %v16549_v49  ;;  %v14582_v49 = vcombine.low %v1725_v44, %v1725_v44  ;;  %v16712_v44 = vld [vmem:[%s21327_s24 + $0x98c] ss:$100 sps:$4 sm:$0xff]  }
 0x375   : > { %6073 = vmatprep.subr.bf16.mxu1 %v16552_v50  ;;  %v14585_v50 = vcombine.high %v1726_v45, %v1726_v45 }
 0x376   : > { %5992 = vmatpush1.bf16.msra.mxu0 %v16547_v51  ;;  %v14584_v51 = vcombine.low %v1726_v45, %v1726_v45  ;;  %v16707_v45 = vld [vmem:[%s21327_s24 + $0x980] ss:$100 sps:$4 sm:$0xff]  }
 0x377   : > { %6074 = vmatpush1.bf16.msra.mxu1 %v16550_v52  ;;  %5993 = vmatprep.subr.bf16.mxu0 %v16555_v53  ;;  %v5722_v52 = vsel %vm673_vm0, %v14582_v49, 0  ;;  %v16637_v53 = vld [vmem:[%s21327_s24 + $0x24] ss:$100 sps:$4 sm:$0xff]  }
 0x378   : > { %6075 = vmatprep.subr.bf16.mxu1 %v16558_v54  ;;  %v5728_v54 = vsel %vm673_vm0, %v14584_v51, 0  ;;  %v16713_v49 = vld [vmem:[%s21327_s24 + $0xa48] ss:$100 sps:$4 sm:$0xff]   ;;  %v16721_v51 = vld [vmem:[%s21327_s24 + $0xb14] ss:$100 sps:$4 sm:$0xff]  }
 0x37a   : > { %5994 = vmatpush1.bf16.msra.mxu0 %v16553_v55  ;;  %v16640_v55 = vld [vmem:[%s21327_s24 + $0x2c] ss:$100 sps:$4 sm:$0xff]  }
 0x37b   : > { %6076 = vmatpush1.bf16.msra.mxu1 %v16556_v56  ;;  %5995 = vmatprep.subr.bf16.mxu0 %v16561_v57  ;;  %v16635_v56 = vld [vmem:[%s21327_s24 + $0x20] ss:$100 sps:$4 sm:$0xff]   ;;  %v16638_v57 = vld [vmem:[%s21327_s24 + $0x28] ss:$100 sps:$4 sm:$0xff]  }
 0x37c   : > { %6077 = vmatprep.subr.bf16.mxu1 %v16564_v58  ;;  %v16643_v58 = vld [vmem:[%s21327_s24 + $0xec] ss:$100 sps:$4 sm:$0xff]  }
 0x37e   : > { %5996 = vmatpush1.bf16.msra.mxu0 %v16559_v59  ;;  %v16646_v59 = vld [vmem:[%s21327_s24 + $0xf4] ss:$100 sps:$4 sm:$0xff]  }
 0x37f   : > { %6078 = vmatpush1.bf16.msra.mxu1 %v16562_v60  ;;  %5997 = vmatprep.subr.bf16.mxu0 %v16567_v61  ;;  %v16641_v60 = vld [vmem:[%s21327_s24 + $0xe8] ss:$100 sps:$4 sm:$0xff]   ;;  %v16644_v61 = vld [vmem:[%s21327_s24 + $0xf0] ss:$100 sps:$4 sm:$0xff]  }
 0x380   : > { %6079 = vmatprep.subr.bf16.mxu1 %v16570_v62  ;;  %v16649_v62 = vld [vmem:[%s21327_s24 + $0x1b4] ss:$100 sps:$4 sm:$0xff]  }
 0x382   : > { %5998 = vmatpush1.bf16.msra.mxu0 %v16565_v63  ;;  %v16652_v63 = vld [vmem:[%s21327_s24 + $0x1bc] ss:$100 sps:$4 sm:$0xff]  }
 0x383   : > { %6080 = vmatpush1.bf16.msra.mxu1 %v16568_v1  ;;  %5999 = vmatprep.subr.bf16.mxu0 %v16573_v2  ;;  %v16647_v1 = vld [vmem:[%s21327_s24 + $0x1b0] ss:$100 sps:$4 sm:$0xff]   ;;  %v16650_v2 = vld [vmem:[%s21327_s24 + $0x1b8] ss:$100 sps:$4 sm:$0xff]  }
 0x384   : > { %6081 = vmatprep.subr.bf16.mxu1 %v16576_v3  ;;  %v16655_v3 = vld [vmem:[%s21327_s24 + $0x27c] ss:$100 sps:$4 sm:$0xff]  }
 0x386   : > { %6000 = vmatpush1.bf16.msra.mxu0 %v16571_v4  ;;  %v16658_v4 = vld [vmem:[%s21327_s24 + $0x284] ss:$100 sps:$4 sm:$0xff]  }
 0x387   : > { %6082 = vmatpush1.bf16.msra.mxu1 %v16574_v5  ;;  %6001 = vmatprep.subr.bf16.mxu0 %v16579_v6  ;;  %v16653_v5 = vld [vmem:[%s21327_s24 + $0x278] ss:$100 sps:$4 sm:$0xff]   ;;  %v16656_v6 = vld [vmem:[%s21327_s24 + $0x280] ss:$100 sps:$4 sm:$0xff]  }
 0x388   : > { %6083 = vmatprep.subr.bf16.mxu1 %v16582_v7  ;;  %v16661_v7 = vld [vmem:[%s21327_s24 + $0x344] ss:$100 sps:$4 sm:$0xff]  }
 0x38a   : > { %6002 = vmatpush1.bf16.msra.mxu0 %v16577_v8  ;;  %v16664_v8 = vld [vmem:[%s21327_s24 + $0x34c] ss:$100 sps:$4 sm:$0xff]  }
 0x38b   : > { %6084 = vmatpush1.bf16.msra.mxu1 %v16580_v9  ;;  %6003 = vmatprep.subr.bf16.mxu0 %v16585_v10  ;;  %v16659_v9 = vld [vmem:[%s21327_s24 + $0x340] ss:$100 sps:$4 sm:$0xff]   ;;  %v16662_v10 = vld [vmem:[%s21327_s24 + $0x348] ss:$100 sps:$4 sm:$0xff]  }
 0x38c   : > { %6085 = vmatprep.subr.bf16.mxu1 %v16588_v11  ;;  %v16667_v11 = vld [vmem:[%s21327_s24 + $0x40c] ss:$100 sps:$4 sm:$0xff]  }
 0x38e   : > { %6004 = vmatpush1.bf16.msra.mxu0 %v16583_v12  ;;  %v16670_v12 = vld [vmem:[%s21327_s24 + $0x414] ss:$100 sps:$4 sm:$0xff]  }
 0x38f   : > { %6086 = vmatpush1.bf16.msra.mxu1 %v16586_v13  ;;  %6005 = vmatprep.subr.bf16.mxu0 %v16591_v14  ;;  %v16665_v13 = vld [vmem:[%s21327_s24 + $0x408] ss:$100 sps:$4 sm:$0xff]   ;;  %v16668_v14 = vld [vmem:[%s21327_s24 + $0x410] ss:$100 sps:$4 sm:$0xff]  }
 0x390   : > { %6087 = vmatprep.subr.bf16.mxu1 %v16594_v15  ;;  %v16673_v15 = vld [vmem:[%s21327_s24 + $0x4d4] ss:$100 sps:$4 sm:$0xff]  }
 0x392   : > { %6006 = vmatpush1.bf16.msra.mxu0 %v16589_v16  ;;  %v16676_v16 = vld [vmem:[%s21327_s24 + $0x4dc] ss:$100 sps:$4 sm:$0xff]  }
 0x393   : > { %6088 = vmatpush1.bf16.msra.mxu1 %v16592_v17  ;;  %6007 = vmatprep.subr.bf16.mxu0 %v16597_v18  ;;  %v16671_v17 = vld [vmem:[%s21327_s24 + $0x4d0] ss:$100 sps:$4 sm:$0xff]   ;;  %v16674_v18 = vld [vmem:[%s21327_s24 + $0x4d8] ss:$100 sps:$4 sm:$0xff]  }
 0x394   : > { %6089 = vmatprep.subr.bf16.mxu1 %v16600_v19  ;;  %v16679_v19 = vld [vmem:[%s21327_s24 + $0x59c] ss:$100 sps:$4 sm:$0xff]  }
 0x396   : > { %6008 = vmatpush1.bf16.msra.mxu0 %v16595_v20  ;;  %v16682_v20 = vld [vmem:[%s21327_s24 + $0x5a4] ss:$100 sps:$4 sm:$0xff]  }
 0x397   : > { %6090 = vmatpush1.bf16.msra.mxu1 %v16598_v21  ;;  %6009 = vmatprep.subr.bf16.mxu0 %v16603_v22  ;;  %v16677_v21 = vld [vmem:[%s21327_s24 + $0x598] ss:$100 sps:$4 sm:$0xff]   ;;  %v16680_v22 = vld [vmem:[%s21327_s24 + $0x5a0] ss:$100 sps:$4 sm:$0xff]  }
 0x398   : > { %6091 = vmatprep.subr.bf16.mxu1 %v16606_v23  ;;  %v16685_v23 = vld [vmem:[%s21327_s24 + $0x664] ss:$100 sps:$4 sm:$0xff]  }
 0x39a   : > { %6010 = vmatpush1.bf16.msra.mxu0 %v16601_v25  ;;  %v16688_v25 = vld [vmem:[%s21327_s24 + $0x66c] ss:$100 sps:$4 sm:$0xff]  }
 0x39b   : > { %6092 = vmatpush1.bf16.msra.mxu1 %v16604_v26  ;;  %6011 = vmatprep.subr.bf16.mxu0 %v16609_v27  ;;  %v16683_v26 = vld [vmem:[%s21327_s24 + $0x660] ss:$100 sps:$4 sm:$0xff]   ;;  %v16686_v27 = vld [vmem:[%s21327_s24 + $0x668] ss:$100 sps:$4 sm:$0xff]  }
 0x39c   : > { %6093 = vmatprep.subr.bf16.mxu1 %v16612_v28  ;;  %v16691_v28 = vld [vmem:[%s21327_s24 + $0x72c] ss:$100 sps:$4 sm:$0xff]  }
 0x39e   : > { %6012 = vmatpush1.bf16.msra.mxu0 %v16607_v38  ;;  %v16694_v38 = vld [vmem:[%s21327_s24 + $0x734] ss:$100 sps:$4 sm:$0xff]  }
 0x39f   : > { %6094 = vmatpush1.bf16.msra.mxu1 %v16610_v39  ;;  %6013 = vmatprep.subr.bf16.mxu0 %v16615_v40  ;;  %v16689_v39 = vld [vmem:[%s21327_s24 + $0x728] ss:$100 sps:$4 sm:$0xff]   ;;  %v16692_v40 = vld [vmem:[%s21327_s24 + $0x730] ss:$100 sps:$4 sm:$0xff]  }
 0x3a0   : > { %6095 = vmatprep.subr.bf16.mxu1 %v16618_v30  ;;  %v16697_v30 = vld [vmem:[%s21327_s24 + $0x7f4] ss:$100 sps:$4 sm:$0xff]  }
 0x3a2   : > { %6014 = vmatpush1.bf16.msra.mxu0 %v16613_v32  ;;  %v16700_v32 = vld [vmem:[%s21327_s24 + $0x7fc] ss:$100 sps:$4 sm:$0xff]  }
 0x3a3   : > { %6096 = vmatpush1.bf16.msra.mxu1 %v16616_v33  ;;  %6015 = vmatprep.subr.bf16.mxu0 %v16621_v34  ;;  %v16695_v33 = vld [vmem:[%s21327_s24 + $0x7f0] ss:$100 sps:$4 sm:$0xff]   ;;  %v16698_v34 = vld [vmem:[%s21327_s24 + $0x7f8] ss:$100 sps:$4 sm:$0xff]  }
 0x3a4   : > { %6097 = vmatprep.subr.bf16.mxu1 %v16624_v35  ;;  %v16703_v35 = vld [vmem:[%s21327_s24 + $0x8bc] ss:$100 sps:$4 sm:$0xff]  }
 0x3a6   : > { %6016 = vmatpush1.bf16.msra.mxu0 %v16619_v36  ;;  %v16706_v36 = vld [vmem:[%s21327_s24 + $0x8c4] ss:$100 sps:$4 sm:$0xff]  }
 0x3a7   : > { %6098 = vmatpush1.bf16.msra.mxu1 %v16622_v41  ;;  %6017 = vmatprep.subr.bf16.mxu0 %v16627_v24  ;;  %v16701_v41 = vld [vmem:[%s21327_s24 + $0x8b8] ss:$100 sps:$4 sm:$0xff]   ;;  %v16704_v24 = vld [vmem:[%s21327_s24 + $0x8c0] ss:$100 sps:$4 sm:$0xff]  }
 0x3a8   : > { %6099 = vmatprep.subr.bf16.mxu1 %v16630_v43  ;;  %v16709_v43 = vld [vmem:[%s21327_s24 + $0x984] ss:$100 sps:$4 sm:$0xff]  }
 0x3aa   : > { %6018 = vmatpush1.bf16.msra.mxu0 %v16625_v46  ;;  %v16710_v46 = vld [vmem:[%s21327_s24 + $0x988] ss:$100 sps:$4 sm:$0xff]  }
 0x3ab   : > { %6100 = vmatpush1.bf16.msra.mxu1 %v16628_v47  ;;  %14607 = vmatprep.subr.msk.bf16.mxu0 %vm673_vm0, %v14583_v48  ;;  %v16715_v47 = vld [vmem:[%s21327_s24 + $0xa4c] ss:$100 sps:$4 sm:$0xff]   ;;  %v16718_v48 = vld [vmem:[%s21327_s24 + $0xa54] ss:$100 sps:$4 sm:$0xff]  }
 0x3ac   : > { %14609 = vmatprep.subr.msk.bf16.mxu1 %vm673_vm0, %v14585_v50  ;;  %v16716_v50 = vld [vmem:[%s21327_s24 + $0xa50] ss:$100 sps:$4 sm:$0xff]  }
 0x3ae   : > { %6020 = vmatpush1.bf16.msra.mxu0 %v5722_v52  ;;  %v16724_v52 = vld [vmem:[%s21327_s24 + $0xb1c] ss:$100 sps:$4 sm:$0xff]  }
 0x3af   : > { %6102 = vmatpush1.bf16.msra.mxu1 %v5728_v54  ;;  %6112 = vmatprep.subr.bf16.mxu0 %v16637_v53  ;;  %v16719_v53 = vld [vmem:[%s21327_s24 + $0xb10] ss:$100 sps:$4 sm:$0xff]   ;;  %v16722_v54 = vld [vmem:[%s21327_s24 + $0xb18] ss:$100 sps:$4 sm:$0xff]  }
 0x3b0   : > { %6194 = vmatprep.subr.bf16.mxu1 %v16640_v55  ;;  %v16727_v55 = vld [vmem:[%s21327_s24 + $0xbdc] ss:$100 sps:$4 sm:$0xff]  }
 0x3b1   : > { %6022 = vmatmul.mubr.bf16.vlgmr.msra.gmra.mrb[8].mxu0 %v18068_v42 }
 0x3b2   : > { %6104 = vmatmul.mubr.bf16.vlgmr.msra.gmra.mrb[8].mxu1 %v18068_v42  ;;  %6113 = vmatpush1.bf16.msra.mxu0 %v16635_v56  ;;  %v16730_v56 = vld [vmem:[%s21327_s24 + $0xbe4] ss:$100 sps:$4 sm:$0xff]  }
 0x3b3   : > { %6144 = vmatprep.mubr.bf16.mxu0 %v17862_v37  ;;  %6195 = vmatpush1.bf16.msra.mxu1 %v16638_v57  ;;  %v16725_v57 = vld [vmem:[%s21327_s24 + $0xbd8] ss:$100 sps:$4 sm:$0xff]  }
 0x3b4   : > { %6226 = vmatprep.mubr.bf16.mxu1 %v17862_v37  ;;  %6114 = vmatprep.subr.bf16.mxu0 %v16643_v58  ;;  %v16728_v58 = vld [vmem:[%s21327_s24 + $0xbe0] ss:$100 sps:$4 sm:$0xff]  }
 0x3b5   : > { %6196 = vmatprep.subr.bf16.mxu1 %v16646_v59  ;;  %v16733_v59 = vld [vmem:[%s21327_s24 + $0xca4] ss:$100 sps:$4 sm:$0xff]  }
 0x3b6   : > { %6115 = vmatpush1.bf16.msra.mxu0 %v16641_v60  ;;  %v16736_v60 = vld [vmem:[%s21327_s24 + $0xcac] ss:$100 sps:$4 sm:$0xff]  }
 0x3b7   : > { %6197 = vmatpush1.bf16.msra.mxu1 %v16644_v61  ;;  %6116 = vmatprep.subr.bf16.mxu0 %v16649_v62  ;;  %v16731_v61 = vld [vmem:[%s21327_s24 + $0xca0] ss:$100 sps:$4 sm:$0xff]   ;;  %v16734_v62 = vld [vmem:[%s21327_s24 + $0xca8] ss:$100 sps:$4 sm:$0xff]  }
 0x3b8   : > { %6198 = vmatprep.subr.bf16.mxu1 %v16652_v63  ;;  %v16739_v63 = vld [vmem:[%s21327_s24 + $0xd6c] ss:$100 sps:$4 sm:$0xff]  }
 0x3ba   : > { %6117 = vmatpush1.bf16.msra.mxu0 %v16647_v1  ;;  %v16742_v1 = vld [vmem:[%s21327_s24 + $0xd74] ss:$100 sps:$4 sm:$0xff]  }
 0x3bb   : > { %6199 = vmatpush1.bf16.msra.mxu1 %v16650_v2  ;;  %6118 = vmatprep.subr.bf16.mxu0 %v16655_v3  ;;  %v16737_v2 = vld [vmem:[%s21327_s24 + $0xd68] ss:$100 sps:$4 sm:$0xff]   ;;  %v16740_v3 = vld [vmem:[%s21327_s24 + $0xd70] ss:$100 sps:$4 sm:$0xff]  }
 0x3bc   : > { %6200 = vmatprep.subr.bf16.mxu1 %v16658_v4  ;;  %v16745_v4 = vld [vmem:[%s21327_s24 + $0xe34] ss:$100 sps:$4 sm:$0xff]  }
 0x3be   : > { %6119 = vmatpush1.bf16.msra.mxu0 %v16653_v5  ;;  %v16748_v5 = vld [vmem:[%s21327_s24 + $0xe3c] ss:$100 sps:$4 sm:$0xff]  }
 0x3bf   : > { %6201 = vmatpush1.bf16.msra.mxu1 %v16656_v6  ;;  %6120 = vmatprep.subr.bf16.mxu0 %v16661_v7  ;;  %v16743_v6 = vld [vmem:[%s21327_s24 + $0xe30] ss:$100 sps:$4 sm:$0xff]   ;;  %v16746_v7 = vld [vmem:[%s21327_s24 + $0xe38] ss:$100 sps:$4 sm:$0xff]  }
 0x3c0   : > { %6202 = vmatprep.subr.bf16.mxu1 %v16664_v8  ;;  %v16751_v8 = vld [vmem:[%s21327_s24 + $0xefc] ss:$100 sps:$4 sm:$0xff]  }
 0x3c2   : > { %6121 = vmatpush1.bf16.msra.mxu0 %v16659_v9  ;;  %v16754_v9 = vld [vmem:[%s21327_s24 + $0xf04] ss:$100 sps:$4 sm:$0xff]  }
 0x3c3   : > { %6203 = vmatpush1.bf16.msra.mxu1 %v16662_v10  ;;  %6122 = vmatprep.subr.bf16.mxu0 %v16667_v11  ;;  %v16749_v10 = vld [vmem:[%s21327_s24 + $0xef8] ss:$100 sps:$4 sm:$0xff]   ;;  %v16752_v11 = vld [vmem:[%s21327_s24 + $0xf00] ss:$100 sps:$4 sm:$0xff]  }
 0x3c4   : > { %6204 = vmatprep.subr.bf16.mxu1 %v16670_v12  ;;  %v16757_v12 = vld [vmem:[%s21327_s24 + $0xfc4] ss:$100 sps:$4 sm:$0xff]  }
 0x3c6   : > { %6123 = vmatpush1.bf16.msra.mxu0 %v16665_v13  ;;  %v16760_v13 = vld [vmem:[%s21327_s24 + $0xfcc] ss:$100 sps:$4 sm:$0xff]  }
 0x3c7   : > { %6205 = vmatpush1.bf16.msra.mxu1 %v16668_v14  ;;  %6124 = vmatprep.subr.bf16.mxu0 %v16673_v15  ;;  %v16755_v14 = vld [vmem:[%s21327_s24 + $0xfc0] ss:$100 sps:$4 sm:$0xff]   ;;  %v16758_v15 = vld [vmem:[%s21327_s24 + $0xfc8] ss:$100 sps:$4 sm:$0xff]  }
 0x3c8   : > { %6206 = vmatprep.subr.bf16.mxu1 %v16676_v16  ;;  %v16766_v16 = vld [vmem:[%s21327_s24 + $0x108c] ss:$100 sps:$4 sm:$0xff]  }
 0x3ca   : > { %6125 = vmatpush1.bf16.msra.mxu0 %v16671_v17  ;;  %v16763_v17 = vld [vmem:[%s21327_s24 + $0x1094] ss:$100 sps:$4 sm:$0xff]  }
 0x3cb   : > { %6207 = vmatpush1.bf16.msra.mxu1 %v16674_v18  ;;  %6126 = vmatprep.subr.bf16.mxu0 %v16679_v19  ;;  %v16764_v18 = vld [vmem:[%s21327_s24 + $0x1088] ss:$100 sps:$4 sm:$0xff]   ;;  %v16761_v19 = vld [vmem:[%s21327_s24 + $0x1090] ss:$100 sps:$4 sm:$0xff]  }
 0x3cc   : > { %6208 = vmatprep.subr.bf16.mxu1 %v16682_v20  ;;  %v16769_v20 = vld [vmem:[%s21327_s24 + $0x1154] ss:$100 sps:$4 sm:$0xff]  }
 0x3ce   : > { %6127 = vmatpush1.bf16.msra.mxu0 %v16677_v21 }
 0x3cf   : > { %6209 = vmatpush1.bf16.msra.mxu1 %v16680_v22  ;;  %6128 = vmatprep.subr.bf16.mxu0 %v16685_v23  ;;  %v16772_v23 = vld [vmem:[%s21327_s24 + $0x115c] ss:$100 sps:$4 sm:$0xff]  }
 0x3d0   : > { %6210 = vmatprep.subr.bf16.mxu1 %v16688_v25 }
 0x3d2   : > { %6129 = vmatpush1.bf16.msra.mxu0 %v16683_v26 }
 0x3d3   : > { %6211 = vmatpush1.bf16.msra.mxu1 %v16686_v27  ;;  %6130 = vmatprep.subr.bf16.mxu0 %v16691_v28 }
 0x3d4   : > { %6212 = vmatprep.subr.bf16.mxu1 %v16694_v38  ;;  %v16767_v38 = vld [vmem:[%s21327_s24 + $0x1150] ss:$100 sps:$4 sm:$0xff]  }
 0x3d6   : > { %6131 = vmatpush1.bf16.msra.mxu0 %v16689_v39 }
 0x3d7   : > { %6213 = vmatpush1.bf16.msra.mxu1 %v16692_v40  ;;  %6132 = vmatprep.subr.bf16.mxu0 %v16697_v30  ;;  %v16770_v30 = vld [vmem:[%s21327_s24 + $0x1158] ss:$100 sps:$4 sm:$0xff]  }
 0x3d8   : > { %6214 = vmatprep.subr.bf16.mxu1 %v16700_v32  ;;  %v16775_v32 = vld [vmem:[%s21327_s24 + $0x121c] ss:$100 sps:$4 sm:$0xff]  }
 0x3da   : > { %6133 = vmatpush1.bf16.msra.mxu0 %v16695_v33  ;;  %v16778_v33 = vld [vmem:[%s21327_s24 + $0x1224] ss:$100 sps:$4 sm:$0xff]  }
 0x3db   : > { %6215 = vmatpush1.bf16.msra.mxu1 %v16698_v34  ;;  %6134 = vmatprep.subr.bf16.mxu0 %v16703_v35  ;;  %v16773_v34 = vld [vmem:[%s21327_s24 + $0x1218] ss:$100 sps:$4 sm:$0xff]   ;;  %v16776_v35 = vld [vmem:[%s21327_s24 + $0x1220] ss:$100 sps:$4 sm:$0xff]  }
 0x3dc   : > { %6216 = vmatprep.subr.bf16.mxu1 %v16706_v36  ;;  %v16781_v36 = vld [vmem:[%s21327_s24 + $0x12e4] ss:$100 sps:$4 sm:$0xff]  }
 0x3de   : > { %6135 = vmatpush1.bf16.msra.mxu0 %v16701_v41  ;;  %v16784_v41 = vld [vmem:[%s21327_s24 + $0x12ec] ss:$100 sps:$4 sm:$0xff]  }
 0x3df   : > { %6217 = vmatpush1.bf16.msra.mxu1 %v16704_v24  ;;  %6136 = vmatprep.subr.bf16.mxu0 %v16709_v43  ;;  %v16779_v24 = vld [vmem:[%s21327_s24 + $0x12e0] ss:$100 sps:$4 sm:$0xff]   ;;  %v16782_v43 = vld [vmem:[%s21327_s24 + $0x12e8] ss:$100 sps:$4 sm:$0xff]  }
 0x3e0   : > { %6218 = vmatprep.subr.bf16.mxu1 %v16712_v44  ;;  %v16787_v44 = vld [vmem:[%s21327_s24 + $0x13ac] ss:$100 sps:$4 sm:$0xff]  }
 0x3e2   : > { %6137 = vmatpush1.bf16.msra.mxu0 %v16707_v45  ;;  %v16790_v45 = vld [vmem:[%s21327_s24 + $0x13b4] ss:$100 sps:$4 sm:$0xff]  }
 0x3e3   : > { %6219 = vmatpush1.bf16.msra.mxu1 %v16710_v46  ;;  %6138 = vmatprep.subr.bf16.mxu0 %v16715_v47  ;;  %v16785_v46 = vld [vmem:[%s21327_s24 + $0x13a8] ss:$100 sps:$4 sm:$0xff]   ;;  %v16788_v47 = vld [vmem:[%s21327_s24 + $0x13b0] ss:$100 sps:$4 sm:$0xff]  }
 0x3e4   : > { %6220 = vmatprep.subr.bf16.mxu1 %v16718_v48  ;;  %v16793_v48 = vld [vmem:[%s21327_s24 + $0x1474] ss:$100 sps:$4 sm:$0xff]  }
 0x3e6   : > { %6139 = vmatpush1.bf16.msra.mxu0 %v16713_v49  ;;  %v16796_v49 = vld [vmem:[%s21327_s24 + $0x147c] ss:$100 sps:$4 sm:$0xff]  }
 0x3e7   : > { %6221 = vmatpush1.bf16.msra.mxu1 %v16716_v50  ;;  %6140 = vmatprep.subr.bf16.mxu0 %v16721_v51  ;;  %v16791_v50 = vld [vmem:[%s21327_s24 + $0x1470] ss:$100 sps:$4 sm:$0xff]   ;;  %v16794_v51 = vld [vmem:[%s21327_s24 + $0x1478] ss:$100 sps:$4 sm:$0xff]  }
 0x3e8   : > { %6222 = vmatprep.subr.bf16.mxu1 %v16724_v52  ;;  %v16799_v52 = vld [vmem:[%s21327_s24 + $0x153c] ss:$100 sps:$4 sm:$0xff]  }
 0x3ea   : > { %6141 = vmatpush1.bf16.msra.mxu0 %v16719_v53  ;;  %v16802_v53 = vld [vmem:[%s21327_s24 + $0x1544] ss:$100 sps:$4 sm:$0xff]  }
 0x3eb   : > { %6223 = vmatpush1.bf16.msra.mxu1 %v16722_v54  ;;  %6142 = vmatprep.subr.bf16.mxu0 %v16727_v55  ;;  %v16797_v54 = vld [vmem:[%s21327_s24 + $0x1538] ss:$100 sps:$4 sm:$0xff]   ;;  %v16800_v55 = vld [vmem:[%s21327_s24 + $0x1540] ss:$100 sps:$4 sm:$0xff]  }
 0x3ec   : > { %6224 = vmatprep.subr.bf16.mxu1 %v16730_v56  ;;  %v16805_v56 = vld [vmem:[%s21327_s24 + $0x1604] ss:$100 sps:$4 sm:$0xff]  }
 0x3ee   : > { %6143 = vmatpush1.bf16.msra.mxu0 %v16725_v57  ;;  %v16808_v57 = vld [vmem:[%s21327_s24 + $0x160c] ss:$100 sps:$4 sm:$0xff]  }
 0x3ef   : > { %6225 = vmatpush1.bf16.msra.mxu1 %v16728_v58  ;;  %6153 = vmatprep.subr.bf16.mxu0 %v16733_v59  ;;  %v16803_v58 = vld [vmem:[%s21327_s24 + $0x1600] ss:$100 sps:$4 sm:$0xff]   ;;  %v16806_v59 = vld [vmem:[%s21327_s24 + $0x1608] ss:$100 sps:$4 sm:$0xff]  }
 0x3f0   : > { %6235 = vmatprep.subr.bf16.mxu1 %v16736_v60  ;;  %v16811_v60 = vld [vmem:[%s21327_s24 + $0x16cc] ss:$100 sps:$4 sm:$0xff]  }
 0x3f1   : > { %6145 = vmatmul.mubr.bf16.vlgmr.msra.gmra.mrb[12].mxu0 %v17860_v29 }
 0x3f2   : > { %6227 = vmatmul.mubr.bf16.vlgmr.msra.gmra.mrb[12].mxu1 %v17860_v29  ;;  %6154 = vmatpush1.bf16.msra.mxu0 %v16731_v61  ;;  %v16814_v61 = vld [vmem:[%s21327_s24 + $0x16d4] ss:$100 sps:$4 sm:$0xff]  }
 0x3f3   : > { %14612 = vmatprep.mubr.msk.bf16.mxu0 %vm5705_vm3, %v17878_v31  ;;  %6236 = vmatpush1.bf16.msra.mxu1 %v16734_v62  ;;  %v16809_v62 = vld [vmem:[%s21327_s24 + $0x16c8] ss:$100 sps:$4 sm:$0xff]  }
 0x3f4   : > { %14614 = vmatprep.mubr.msk.bf16.mxu1 %vm5705_vm3, %v17878_v31  ;;  %6155 = vmatprep.subr.bf16.mxu0 %v16739_v63  ;;  %v16812_v63 = vld [vmem:[%s21327_s24 + $0x16d0] ss:$100 sps:$4 sm:$0xff]  }
 0x3f5   : > { %6237 = vmatprep.subr.bf16.mxu1 %v16742_v1  ;;  %v16817_v1 = vld [vmem:[%s21327_s24 + $0x1794] ss:$100 sps:$4 sm:$0xff]  }
 0x3f6   : > { %6156 = vmatpush1.bf16.msra.mxu0 %v16737_v2  ;;  %v16820_v2 = vld [vmem:[%s21327_s24 + $0x179c] ss:$100 sps:$4 sm:$0xff]  }
 0x3f7   : > { %6238 = vmatpush1.bf16.msra.mxu1 %v16740_v3  ;;  %6157 = vmatprep.subr.bf16.mxu0 %v16745_v4  ;;  %v1727_v3 = vld [vmem:[%s21327_s24 + $0x1858] sm:$0xff]  ;;  %v1728_v4 = vld [vmem:[%s21327_s24 + $0x1860] sm:$0xff] }
 0x3f8   : > { %6239 = vmatprep.subr.bf16.mxu1 %v16748_v5  ;;  %v16815_v5 = vld [vmem:[%s21327_s24 + $0x1790] ss:$100 sps:$4 sm:$0xff]  }
 0x3fa   : > { %6158 = vmatpush1.bf16.msra.mxu0 %v16743_v6  ;;  %v16818_v6 = vld [vmem:[%s21327_s24 + $0x1798] ss:$100 sps:$4 sm:$0xff]  }
 0x3fb   : > { %6240 = vmatpush1.bf16.msra.mxu1 %v16746_v7  ;;  %6159 = vmatprep.subr.bf16.mxu0 %v16751_v8  ;;  %v14587_v7 = vcombine.high %v1727_v3, %v1727_v3  ;;  %v14586_v8 = vcombine.low %v1727_v3, %v1727_v3  ;;  %v16894_v3 = vld [vmem:[%s21327_s24 + $0x8d0] ss:$100 sps:$4 sm:$0xff]  }
 0x3fc   : > { %6241 = vmatprep.subr.bf16.mxu1 %v16754_v9  ;;  %v14589_v9 = vcombine.high %v1728_v4, %v1728_v4 }
 0x3fe   : > { %6160 = vmatpush1.bf16.msra.mxu0 %v16749_v10  ;;  %v14588_v10 = vcombine.low %v1728_v4, %v1728_v4  ;;  %v16899_v4 = vld [vmem:[%s21327_s24 + $0x994] ss:$100 sps:$4 sm:$0xff]  }
 0x3ff   : > { %6242 = vmatpush1.bf16.msra.mxu1 %v16752_v11  ;;  %6161 = vmatprep.subr.bf16.mxu0 %v16757_v12  ;;  %v5734_v11 = vsel %vm673_vm0, %v14586_v8, 0  ;;  %v16827_v12 = vld [vmem:[%s21327_s24 + $0x34] ss:$100 sps:$4 sm:$0xff]   ;;  %v16905_v8 = vld [vmem:[%s21327_s24 + $0xa5c] ss:$100 sps:$4 sm:$0xff]  }
 0x400   : > { %6243 = vmatprep.subr.bf16.mxu1 %v16760_v13  ;;  %v5740_v13 = vsel %vm673_vm0, %v14588_v10, 0  ;;  %v16903_v10 = vld [vmem:[%s21327_s24 + $0xa58] ss:$100 sps:$4 sm:$0xff]  }
 0x402   : > { %6162 = vmatpush1.bf16.msra.mxu0 %v16755_v14  ;;  %v16830_v14 = vld [vmem:[%s21327_s24 + $0x3c] ss:$100 sps:$4 sm:$0xff]  }
 0x403   : > { %6244 = vmatpush1.bf16.msra.mxu1 %v16758_v15  ;;  %6163 = vmatprep.subr.bf16.mxu0 %v16766_v16  ;;  %v16825_v15 = vld [vmem:[%s21327_s24 + $0x30] ss:$100 sps:$4 sm:$0xff]   ;;  %v16828_v16 = vld [vmem:[%s21327_s24 + $0x38] ss:$100 sps:$4 sm:$0xff]  }
 0x404   : > { %v18730_v21 = vpop.f32.mrb[4].mxu0  ;;  %v5941_v22 = vpop.f32.mrb[4].mxu1  ;;  %6245 = vmatprep.subr.bf16.mxu1 %v16763_v17  ;;  %v16833_v17 = vld [vmem:[%s21327_s24 + $0xfc] ss:$100 sps:$4 sm:$0xff]  }
 0x405   : > { %7020 = vrot.lane.b32.xlu0 %v5941_v22, %s21309_s26  ;;  %v18736_v25 = vpop.f32.mrb[5].mxu0  ;;  %v5943_v26 = vpop.f32.mrb[5].mxu1 }
 0x406   : > { %v5945_v27 = vpop.f32.mrb[6].mxu1  ;;  %6164 = vmatpush1.bf16.msra.mxu0 %v16764_v18  ;;  %6853 = vrot.lane.b32.xlu1 %v18736_v25, %s21310_s27  ;;  %v5863_v28 = vpop.f32.mrb[6].mxu0  ;;  %v16836_v18 = vld [vmem:[%s21327_s24 + $0x104] ss:$100 sps:$4 sm:$0xff]  }
 0x407   : > { %6246 = vmatpush1.bf16.msra.mxu1 %v16761_v19  ;;  %v5864_v39 = vpop.f32.mrb[7].mxu0  ;;  %v5946_v40 = vpop.f32.mrb[7].mxu1  ;;  %6165 = vmatprep.subr.bf16.mxu0 %v16769_v20  ;;  %v16831_v19 = vld [vmem:[%s21327_s24 + $0xf8] ss:$100 sps:$4 sm:$0xff]   ;;  %v16834_v20 = vld [vmem:[%s21327_s24 + $0x100] ss:$100 sps:$4 sm:$0xff]  }
 0x408   : > { %6247 = vmatprep.subr.bf16.mxu1 %v16772_v23  ;;  %v16842_v23 = vld [vmem:[%s21327_s24 + $0x1cc] ss:$100 sps:$4 sm:$0xff]  }
 0x409   : > { %v16840_v27 = vld [vmem:[%s21327_s24 + $0x1c8] ss:$100 sps:$4 sm:$0xff]   ;;  %v16846_v40 = vld [vmem:[%s21327_s24 + $0x290] ss:$100 sps:$4 sm:$0xff]  }
 0x40a   : > { %6166 = vmatpush1.bf16.msra.mxu0 %v16767_v38  ;;  %6855 = vrot.lane.b32.xlu1 %v5941_v22, %s21310_s27  ;;  %v16839_v22 = vld [vmem:[%s21327_s24 + $0x1c4] ss:$100 sps:$4 sm:$0xff]   ;;  %v16845_v28 = vld [vmem:[%s21327_s24 + $0x28c] ss:$100 sps:$4 sm:$0xff]   ;;  %v16848_v38 = vld [vmem:[%s21327_s24 + $0x294] ss:$100 sps:$4 sm:$0xff]  }
 0x40b   : > { %6248 = vmatpush1.bf16.msra.mxu1 %v16770_v30  ;;  %6167 = vmatprep.subr.bf16.mxu0 %v16775_v32  ;;  %v16843_v39 = vld [vmem:[%s21327_s24 + $0x288] ss:$100 sps:$4 sm:$0xff]   ;;  %v16851_v30 = vld [vmem:[%s21327_s24 + $0x354] ss:$100 sps:$4 sm:$0xff]   ;;  %v16854_v32 = vld [vmem:[%s21327_s24 + $0x35c] ss:$100 sps:$4 sm:$0xff]  }
 0x40c   : > { %6249 = vmatprep.subr.bf16.mxu1 %v16778_v33  ;;  %v16849_v33 = vld [vmem:[%s21327_s24 + $0x350] ss:$100 sps:$4 sm:$0xff]   ;;  %s17450_s27 = smov 67  }
 0x40e   : > { %6168 = vmatpush1.bf16.msra.mxu0 %v16773_v34  ;;  %7022 = vrot.lane.b32.xlu1 %v5943_v26, %s21309_s26  ;;  %v16852_v34 = vld [vmem:[%s21327_s24 + $0x358] ss:$100 sps:$4 sm:$0xff]   ;;  %s17449_s26 = smov 94  }
 0x40f   : > { %6250 = vmatpush1.bf16.msra.mxu1 %v16776_v35  ;;  %6169 = vmatprep.subr.bf16.mxu0 %v16781_v36  ;;  %v16857_v35 = vld [vmem:[%s21327_s24 + $0x41c] ss:$100 sps:$4 sm:$0xff]   ;;  %v16860_v36 = vld [vmem:[%s21327_s24 + $0x424] ss:$100 sps:$4 sm:$0xff]  }
 0x410   : > { %6251 = vmatprep.subr.bf16.mxu1 %v16784_v41  ;;  %v16855_v41 = vld [vmem:[%s21327_s24 + $0x418] ss:$100 sps:$4 sm:$0xff]  }
 0x412   : > { %6170 = vmatpush1.bf16.msra.mxu0 %v16779_v24  ;;  %7109 = vrot.lane.b32.xlu1 %v5943_v26, %s21311_s23  ;;  %v16837_v26 = vld [vmem:[%s21327_s24 + $0x1c0] ss:$100 sps:$4 sm:$0xff]  }
 0x413   : > { %6252 = vmatpush1.bf16.msra.mxu1 %v16782_v43  ;;  %6171 = vmatprep.subr.bf16.mxu0 %v16787_v44  ;;  %v16858_v24 = vld [vmem:[%s21327_s24 + $0x420] ss:$100 sps:$4 sm:$0xff]   ;;  %v16866_v44 = vld [vmem:[%s21327_s24 + $0x4ec] ss:$100 sps:$4 sm:$0xff]  }
 0x414   : > { %6253 = vmatprep.subr.bf16.mxu1 %v16790_v45  ;;  %v16863_v43 = vld [vmem:[%s21327_s24 + $0x4e4] ss:$100 sps:$4 sm:$0xff]  }
 0x415   : > { %v16861_v45 = vld [vmem:[%s21327_s24 + $0x4e0] ss:$100 sps:$4 sm:$0xff]  }
 0x416   : > { %6172 = vmatpush1.bf16.msra.mxu0 %v16785_v46  ;;  %v16864_v46 = vld [vmem:[%s21327_s24 + $0x4e8] ss:$100 sps:$4 sm:$0xff]  }
 0x417   : > { %6254 = vmatpush1.bf16.msra.mxu1 %v16788_v47  ;;  %6173 = vmatprep.subr.bf16.mxu0 %v16793_v48  ;;  %v16869_v47 = vld [vmem:[%s21327_s24 + $0x5ac] ss:$100 sps:$4 sm:$0xff]   ;;  %v16872_v48 = vld [vmem:[%s21327_s24 + $0x5b4] ss:$100 sps:$4 sm:$0xff]  }
 0x418   : > { %6255 = vmatprep.subr.bf16.mxu1 %v16796_v49  ;;  %v16867_v49 = vld [vmem:[%s21327_s24 + $0x5a8] ss:$100 sps:$4 sm:$0xff]  }
 0x41a   : > { %6174 = vmatpush1.bf16.msra.mxu0 %v16791_v50  ;;  %v16870_v50 = vld [vmem:[%s21327_s24 + $0x5b0] ss:$100 sps:$4 sm:$0xff]  }
 0x41b   : > { %6256 = vmatpush1.bf16.msra.mxu1 %v16794_v51  ;;  %6175 = vmatprep.subr.bf16.mxu0 %v16799_v52  ;;  %v16875_v51 = vld [vmem:[%s21327_s24 + $0x674] ss:$100 sps:$4 sm:$0xff]   ;;  %v16878_v52 = vld [vmem:[%s21327_s24 + $0x67c] ss:$100 sps:$4 sm:$0xff]  }
 0x41c   : > { %6257 = vmatprep.subr.bf16.mxu1 %v16802_v53  ;;  %v16873_v53 = vld [vmem:[%s21327_s24 + $0x670] ss:$100 sps:$4 sm:$0xff]  }
 0x41e   : > { %6176 = vmatpush1.bf16.msra.mxu0 %v16797_v54  ;;  %v16876_v54 = vld [vmem:[%s21327_s24 + $0x678] ss:$100 sps:$4 sm:$0xff]  }
 0x41f   : > { %6258 = vmatpush1.bf16.msra.mxu1 %v16800_v55  ;;  %6177 = vmatprep.subr.bf16.mxu0 %v16805_v56  ;;  %v16881_v55 = vld [vmem:[%s21327_s24 + $0x73c] ss:$100 sps:$4 sm:$0xff]   ;;  %v16884_v56 = vld [vmem:[%s21327_s24 + $0x744] ss:$100 sps:$4 sm:$0xff]  }
 0x420   : > { %6259 = vmatprep.subr.bf16.mxu1 %v16808_v57  ;;  %v16879_v57 = vld [vmem:[%s21327_s24 + $0x738] ss:$100 sps:$4 sm:$0xff]  }
 0x422   : > { %6178 = vmatpush1.bf16.msra.mxu0 %v16803_v58  ;;  %v16882_v58 = vld [vmem:[%s21327_s24 + $0x740] ss:$100 sps:$4 sm:$0xff]  }
 0x423   : > { %6260 = vmatpush1.bf16.msra.mxu1 %v16806_v59  ;;  %6179 = vmatprep.subr.bf16.mxu0 %v16811_v60  ;;  %v16887_v59 = vld [vmem:[%s21327_s24 + $0x804] ss:$100 sps:$4 sm:$0xff]   ;;  %v16890_v60 = vld [vmem:[%s21327_s24 + $0x80c] ss:$100 sps:$4 sm:$0xff]  }
 0x424   : > { %6261 = vmatprep.subr.bf16.mxu1 %v16814_v61  ;;  %v16885_v61 = vld [vmem:[%s21327_s24 + $0x800] ss:$100 sps:$4 sm:$0xff]  }
 0x426   : > { %6180 = vmatpush1.bf16.msra.mxu0 %v16809_v62  ;;  %v16888_v62 = vld [vmem:[%s21327_s24 + $0x808] ss:$100 sps:$4 sm:$0xff]  }
 0x427   : > { %6262 = vmatpush1.bf16.msra.mxu1 %v16812_v63  ;;  %6181 = vmatprep.subr.bf16.mxu0 %v16817_v1  ;;  %v16893_v63 = vld [vmem:[%s21327_s24 + $0x8cc] ss:$100 sps:$4 sm:$0xff]   ;;  %v16896_v1 = vld [vmem:[%s21327_s24 + $0x8d4] ss:$100 sps:$4 sm:$0xff]  }
 0x428   : > { %6263 = vmatprep.subr.bf16.mxu1 %v16820_v2  ;;  %v16891_v2 = vld [vmem:[%s21327_s24 + $0x8c8] ss:$100 sps:$4 sm:$0xff]  }
 0x42a   : > { %6182 = vmatpush1.bf16.msra.mxu0 %v16815_v5  ;;  %v16902_v5 = vld [vmem:[%s21327_s24 + $0x99c] ss:$100 sps:$4 sm:$0xff]  }
 0x42b   : > { %6264 = vmatpush1.bf16.msra.mxu1 %v16818_v6  ;;  %14611 = vmatprep.subr.msk.bf16.mxu0 %vm673_vm0, %v14587_v7  ;;  %v16897_v6 = vld [vmem:[%s21327_s24 + $0x990] ss:$100 sps:$4 sm:$0xff]   ;;  %v16900_v7 = vld [vmem:[%s21327_s24 + $0x998] ss:$100 sps:$4 sm:$0xff]  }
 0x42c   : > { %14613 = vmatprep.subr.msk.bf16.mxu1 %vm673_vm0, %v14589_v9  ;;  %v16908_v9 = vld [vmem:[%s21327_s24 + $0xa64] ss:$100 sps:$4 sm:$0xff]  }
 0x42e   : > { %6184 = vmatpush1.bf16.msra.mxu0 %v5734_v11  ;;  %v16906_v11 = vld [vmem:[%s21327_s24 + $0xa60] ss:$100 sps:$4 sm:$0xff]  }
 0x42f   : > { %6266 = vmatpush1.bf16.msra.mxu1 %v5740_v13  ;;  %6276 = vmatprep.subr.bf16.mxu0 %v16827_v12  ;;  %v16911_v12 = vld [vmem:[%s21327_s24 + $0xb24] ss:$100 sps:$4 sm:$0xff]   ;;  %v16914_v13 = vld [vmem:[%s21327_s24 + $0xb2c] ss:$100 sps:$4 sm:$0xff]  }
 0x430   : > { %6358 = vmatprep.subr.bf16.mxu1 %v16830_v14  ;;  %v16909_v14 = vld [vmem:[%s21327_s24 + $0xb20] ss:$100 sps:$4 sm:$0xff]  }
 0x431   : > { %6186 = vmatmul.mubr.bf16.vlgmr.msra.gmra.mrb[12].mxu0 %v18068_v42 }
 0x432   : > { %6268 = vmatmul.mubr.bf16.vlgmr.msra.gmra.mrb[12].mxu1 %v18068_v42  ;;  %6277 = vmatpush1.bf16.msra.mxu0 %v16825_v15  ;;  %v16912_v15 = vld [vmem:[%s21327_s24 + $0xb28] ss:$100 sps:$4 sm:$0xff]  }
 0x433   : > { %6308 = vmatprep.mubr.bf16.mxu0 %v17862_v37  ;;  %6359 = vmatpush1.bf16.msra.mxu1 %v16828_v16  ;;  %v16917_v16 = vld [vmem:[%s21327_s24 + $0xbec] ss:$100 sps:$4 sm:$0xff]  }
 0x434   : > { %6390 = vmatprep.mubr.bf16.mxu1 %v17862_v37  ;;  %6278 = vmatprep.subr.bf16.mxu0 %v16833_v17  ;;  %v16920_v17 = vld [vmem:[%s21327_s24 + $0xbf4] ss:$100 sps:$4 sm:$0xff]  }
 0x435   : > { %6360 = vmatprep.subr.bf16.mxu1 %v16836_v18  ;;  %v16915_v18 = vld [vmem:[%s21327_s24 + $0xbe8] ss:$100 sps:$4 sm:$0xff]  }
 0x436   : > { %6279 = vmatpush1.bf16.msra.mxu0 %v16831_v19  ;;  %v16918_v19 = vld [vmem:[%s21327_s24 + $0xbf0] ss:$100 sps:$4 sm:$0xff]  }
 0x437   : > { %6361 = vmatpush1.bf16.msra.mxu1 %v16834_v20  ;;  %6280 = vmatprep.subr.bf16.mxu0 %v16839_v22  ;;  %v16923_v20 = vld [vmem:[%s21327_s24 + $0xcb4] ss:$100 sps:$4 sm:$0xff]   ;;  %v16926_v22 = vld [vmem:[%s21327_s24 + $0xcbc] ss:$100 sps:$4 sm:$0xff]  }
 0x438   : > { %6362 = vmatprep.subr.bf16.mxu1 %v16842_v23  ;;  %v16921_v23 = vld [vmem:[%s21327_s24 + $0xcb0] ss:$100 sps:$4 sm:$0xff]  }
 0x43a   : > { %6281 = vmatpush1.bf16.msra.mxu0 %v16837_v26  ;;  %v16924_v26 = vld [vmem:[%s21327_s24 + $0xcb8] ss:$100 sps:$4 sm:$0xff]  }
 0x43b   : > { %6363 = vmatpush1.bf16.msra.mxu1 %v16840_v27  ;;  %6282 = vmatprep.subr.bf16.mxu0 %v16845_v28  ;;  %v16929_v27 = vld [vmem:[%s21327_s24 + $0xd7c] ss:$100 sps:$4 sm:$0xff]   ;;  %v16932_v28 = vld [vmem:[%s21327_s24 + $0xd84] ss:$100 sps:$4 sm:$0xff]  }
 0x43c   : > { %6364 = vmatprep.subr.bf16.mxu1 %v16848_v38  ;;  %v16927_v38 = vld [vmem:[%s21327_s24 + $0xd78] ss:$100 sps:$4 sm:$0xff]  }
 0x43e   : > { %6283 = vmatpush1.bf16.msra.mxu0 %v16843_v39  ;;  %v16930_v39 = vld [vmem:[%s21327_s24 + $0xd80] ss:$100 sps:$4 sm:$0xff]  }
 0x43f   : > { %6365 = vmatpush1.bf16.msra.mxu1 %v16846_v40  ;;  %6284 = vmatprep.subr.bf16.mxu0 %v16851_v30  ;;  %v16935_v40 = vld [vmem:[%s21327_s24 + $0xe44] ss:$100 sps:$4 sm:$0xff]   ;;  %v16938_v30 = vld [vmem:[%s21327_s24 + $0xe4c] ss:$100 sps:$4 sm:$0xff]  }
 0x440   : > { %6366 = vmatprep.subr.bf16.mxu1 %v16854_v32  ;;  %v16933_v32 = vld [vmem:[%s21327_s24 + $0xe40] ss:$100 sps:$4 sm:$0xff]  }
 0x442   : > { %6285 = vmatpush1.bf16.msra.mxu0 %v16849_v33  ;;  %v16936_v33 = vld [vmem:[%s21327_s24 + $0xe48] ss:$100 sps:$4 sm:$0xff]  }
 0x443   : > { %6367 = vmatpush1.bf16.msra.mxu1 %v16852_v34  ;;  %6286 = vmatprep.subr.bf16.mxu0 %v16857_v35  ;;  %v16941_v34 = vld [vmem:[%s21327_s24 + $0xf0c] ss:$100 sps:$4 sm:$0xff]   ;;  %v16944_v35 = vld [vmem:[%s21327_s24 + $0xf14] ss:$100 sps:$4 sm:$0xff]  }
 0x444   : > { %6368 = vmatprep.subr.bf16.mxu1 %v16860_v36  ;;  %v16939_v36 = vld [vmem:[%s21327_s24 + $0xf08] ss:$100 sps:$4 sm:$0xff]  }
 0x446   : > { %6287 = vmatpush1.bf16.msra.mxu0 %v16855_v41  ;;  %v16942_v41 = vld [vmem:[%s21327_s24 + $0xf10] ss:$100 sps:$4 sm:$0xff]  }
 0x447   : > { %6369 = vmatpush1.bf16.msra.mxu1 %v16858_v24  ;;  %6288 = vmatprep.subr.bf16.mxu0 %v16863_v43  ;;  %v16947_v24 = vld [vmem:[%s21327_s24 + $0xfd4] ss:$100 sps:$4 sm:$0xff]   ;;  %v16950_v43 = vld [vmem:[%s21327_s24 + $0xfdc] ss:$100 sps:$4 sm:$0xff]  }
 0x448   : > { %6370 = vmatprep.subr.bf16.mxu1 %v16866_v44  ;;  %v16945_v44 = vld [vmem:[%s21327_s24 + $0xfd0] ss:$100 sps:$4 sm:$0xff]  }
 0x44a   : > { %6289 = vmatpush1.bf16.msra.mxu0 %v16861_v45  ;;  %v16948_v45 = vld [vmem:[%s21327_s24 + $0xfd8] ss:$100 sps:$4 sm:$0xff]  }
 0x44b   : > { %6371 = vmatpush1.bf16.msra.mxu1 %v16864_v46  ;;  %6290 = vmatprep.subr.bf16.mxu0 %v16869_v47  ;;  %v16956_v46 = vld [vmem:[%s21327_s24 + $0x109c] ss:$100 sps:$4 sm:$0xff]   ;;  %v16953_v47 = vld [vmem:[%s21327_s24 + $0x10a4] ss:$100 sps:$4 sm:$0xff]  }
 0x44c   : > { %6372 = vmatprep.subr.bf16.mxu1 %v16872_v48  ;;  %v16954_v48 = vld [vmem:[%s21327_s24 + $0x1098] ss:$100 sps:$4 sm:$0xff]  }
 0x44e   : > { %6291 = vmatpush1.bf16.msra.mxu0 %v16867_v49  ;;  %v16951_v49 = vld [vmem:[%s21327_s24 + $0x10a0] ss:$100 sps:$4 sm:$0xff]  }
 0x44f   : > { %6373 = vmatpush1.bf16.msra.mxu1 %v16870_v50  ;;  %6292 = vmatprep.subr.bf16.mxu0 %v16875_v51  ;;  %v16962_v50 = vld [vmem:[%s21327_s24 + $0x1164] ss:$100 sps:$4 sm:$0xff]  }
 0x450   : > { %6374 = vmatprep.subr.bf16.mxu1 %v16878_v52  ;;  %v16959_v52 = vld [vmem:[%s21327_s24 + $0x116c] ss:$100 sps:$4 sm:$0xff]  }
 0x452   : > { %6293 = vmatpush1.bf16.msra.mxu0 %v16873_v53 }
 0x453   : > { %6375 = vmatpush1.bf16.msra.mxu1 %v16876_v54  ;;  %6294 = vmatprep.subr.bf16.mxu0 %v16881_v55  ;;  %v16957_v55 = vld [vmem:[%s21327_s24 + $0x1168] ss:$100 sps:$4 sm:$0xff]  }
 0x454   : > { %6376 = vmatprep.subr.bf16.mxu1 %v16884_v56 }
 0x456   : > { %6295 = vmatpush1.bf16.msra.mxu0 %v16879_v57 }
 0x457   : > { %6377 = vmatpush1.bf16.msra.mxu1 %v16882_v58  ;;  %6296 = vmatprep.subr.bf16.mxu0 %v16887_v59  ;;  %v16960_v58 = vld [vmem:[%s21327_s24 + $0x1160] ss:$100 sps:$4 sm:$0xff]  }
 0x458   : > { %6378 = vmatprep.subr.bf16.mxu1 %v16890_v60 }
 0x45a   : > { %6297 = vmatpush1.bf16.msra.mxu0 %v16885_v61  ;;  %v16965_v61 = vld [vmem:[%s21327_s24 + $0x122c] ss:$100 sps:$4 sm:$0xff]  }
 0x45b   : > { %6379 = vmatpush1.bf16.msra.mxu1 %v16888_v62  ;;  %6298 = vmatprep.subr.bf16.mxu0 %v16893_v63  ;;  %v16968_v63 = vld [vmem:[%s21327_s24 + $0x1234] ss:$100 sps:$4 sm:$0xff]  }
 0x45c   : > { %6380 = vmatprep.subr.bf16.mxu1 %v16896_v1  ;;  %v16963_v1 = vld [vmem:[%s21327_s24 + $0x1228] ss:$100 sps:$4 sm:$0xff]  }
 0x45e   : > { %6299 = vmatpush1.bf16.msra.mxu0 %v16891_v2  ;;  %v16966_v2 = vld [vmem:[%s21327_s24 + $0x1230] ss:$100 sps:$4 sm:$0xff]  }
 0x45f   : > { %6381 = vmatpush1.bf16.msra.mxu1 %v16894_v3  ;;  %6300 = vmatprep.subr.bf16.mxu0 %v16899_v4  ;;  %v16971_v3 = vld [vmem:[%s21327_s24 + $0x12f4] ss:$100 sps:$4 sm:$0xff]   ;;  %v16974_v4 = vld [vmem:[%s21327_s24 + $0x12fc] ss:$100 sps:$4 sm:$0xff]  }
 0x460   : > { %6382 = vmatprep.subr.bf16.mxu1 %v16902_v5  ;;  %v16969_v5 = vld [vmem:[%s21327_s24 + $0x12f0] ss:$100 sps:$4 sm:$0xff]  }
 0x462   : > { %6301 = vmatpush1.bf16.msra.mxu0 %v16897_v6  ;;  %v16972_v6 = vld [vmem:[%s21327_s24 + $0x12f8] ss:$100 sps:$4 sm:$0xff]  }
 0x463   : > { %6383 = vmatpush1.bf16.msra.mxu1 %v16900_v7  ;;  %6302 = vmatprep.subr.bf16.mxu0 %v16905_v8  ;;  %v16977_v7 = vld [vmem:[%s21327_s24 + $0x13bc] ss:$100 sps:$4 sm:$0xff]   ;;  %v16980_v8 = vld [vmem:[%s21327_s24 + $0x13c4] ss:$100 sps:$4 sm:$0xff]  }
 0x464   : > { %6384 = vmatprep.subr.bf16.mxu1 %v16908_v9  ;;  %v16975_v9 = vld [vmem:[%s21327_s24 + $0x13b8] ss:$100 sps:$4 sm:$0xff]  }
 0x466   : > { %6303 = vmatpush1.bf16.msra.mxu0 %v16903_v10  ;;  %v16978_v10 = vld [vmem:[%s21327_s24 + $0x13c0] ss:$100 sps:$4 sm:$0xff]  }
 0x467   : > { %6385 = vmatpush1.bf16.msra.mxu1 %v16906_v11  ;;  %6304 = vmatprep.subr.bf16.mxu0 %v16911_v12  ;;  %v16983_v11 = vld [vmem:[%s21327_s24 + $0x1484] ss:$100 sps:$4 sm:$0xff]   ;;  %v16986_v12 = vld [vmem:[%s21327_s24 + $0x148c] ss:$100 sps:$4 sm:$0xff]  }
 0x468   : > { %6386 = vmatprep.subr.bf16.mxu1 %v16914_v13  ;;  %v16981_v13 = vld [vmem:[%s21327_s24 + $0x1480] ss:$100 sps:$4 sm:$0xff]  }
 0x46a   : > { %6305 = vmatpush1.bf16.msra.mxu0 %v16909_v14  ;;  %v16984_v14 = vld [vmem:[%s21327_s24 + $0x1488] ss:$100 sps:$4 sm:$0xff]  }
 0x46b   : > { %6387 = vmatpush1.bf16.msra.mxu1 %v16912_v15  ;;  %6306 = vmatprep.subr.bf16.mxu0 %v16917_v16  ;;  %v16989_v15 = vld [vmem:[%s21327_s24 + $0x154c] ss:$100 sps:$4 sm:$0xff]   ;;  %v16992_v16 = vld [vmem:[%s21327_s24 + $0x1554] ss:$100 sps:$4 sm:$0xff]  }
 0x46c   : > { %6388 = vmatprep.subr.bf16.mxu1 %v16920_v17  ;;  %v16987_v17 = vld [vmem:[%s21327_s24 + $0x1548] ss:$100 sps:$4 sm:$0xff]  }
 0x46e   : > { %6307 = vmatpush1.bf16.msra.mxu0 %v16915_v18  ;;  %v16990_v18 = vld [vmem:[%s21327_s24 + $0x1550] ss:$100 sps:$4 sm:$0xff]  }
 0x46f   : > { %6389 = vmatpush1.bf16.msra.mxu1 %v16918_v19  ;;  %6317 = vmatprep.subr.bf16.mxu0 %v16923_v20  ;;  %v16995_v19 = vld [vmem:[%s21327_s24 + $0x1614] ss:$100 sps:$4 sm:$0xff]   ;;  %v16998_v20 = vld [vmem:[%s21327_s24 + $0x161c] ss:$100 sps:$4 sm:$0xff]  }
 0x470   : > { %6399 = vmatprep.subr.bf16.mxu1 %v16926_v22  ;;  %v16993_v22 = vld [vmem:[%s21327_s24 + $0x1610] ss:$100 sps:$4 sm:$0xff]  }
 0x471   : > { %6309 = vmatmul.mubr.bf16.vlgmr.msra.gmra.mrb[16].mxu0 %v17860_v29 }
 0x472   : > { %6391 = vmatmul.mubr.bf16.vlgmr.msra.gmra.mrb[16].mxu1 %v17860_v29  ;;  %6318 = vmatpush1.bf16.msra.mxu0 %v16921_v23  ;;  %v16996_v23 = vld [vmem:[%s21327_s24 + $0x1618] ss:$100 sps:$4 sm:$0xff]  }
 0x473   : > { %14616 = vmatprep.mubr.msk.bf16.mxu0 %vm5705_vm3, %v17878_v31  ;;  %6400 = vmatpush1.bf16.msra.mxu1 %v16924_v26  ;;  %v17001_v26 = vld [vmem:[%s21327_s24 + $0x16dc] ss:$100 sps:$4 sm:$0xff]  }
 0x474   : > { %14618 = vmatprep.mubr.msk.bf16.mxu1 %vm5705_vm3, %v17878_v31  ;;  %6319 = vmatprep.subr.bf16.mxu0 %v16929_v27  ;;  %v17004_v27 = vld [vmem:[%s21327_s24 + $0x16e4] ss:$100 sps:$4 sm:$0xff]  }
 0x475   : > { %6401 = vmatprep.subr.bf16.mxu1 %v16932_v28  ;;  %v16999_v28 = vld [vmem:[%s21327_s24 + $0x16d8] ss:$100 sps:$4 sm:$0xff]  }
 0x476   : > { %6320 = vmatpush1.bf16.msra.mxu0 %v16927_v38  ;;  %v17002_v38 = vld [vmem:[%s21327_s24 + $0x16e0] ss:$100 sps:$4 sm:$0xff]  }
 0x477   : > { %6402 = vmatpush1.bf16.msra.mxu1 %v16930_v39  ;;  %6321 = vmatprep.subr.bf16.mxu0 %v16935_v40  ;;  %v17007_v39 = vld [vmem:[%s21327_s24 + $0x17a4] ss:$100 sps:$4 sm:$0xff]   ;;  %v17010_v40 = vld [vmem:[%s21327_s24 + $0x17ac] ss:$100 sps:$4 sm:$0xff]  }
 0x478   : > { %6403 = vmatprep.subr.bf16.mxu1 %v16938_v30  ;;  %v1729_v30 = vld [vmem:[%s21327_s24 + $0x1868] sm:$0xff] }
 0x47a   : > { %6322 = vmatpush1.bf16.msra.mxu0 %v16933_v32  ;;  %v1730_v32 = vld [vmem:[%s21327_s24 + $0x1870] sm:$0xff] }
 0x47b   : > { %6404 = vmatpush1.bf16.msra.mxu1 %v16936_v33  ;;  %6323 = vmatprep.subr.bf16.mxu0 %v16941_v34  ;;  %v17005_v33 = vld [vmem:[%s21327_s24 + $0x17a0] ss:$100 sps:$4 sm:$0xff]   ;;  %v17008_v34 = vld [vmem:[%s21327_s24 + $0x17a8] ss:$100 sps:$4 sm:$0xff]  }
 0x47c   : > { %6405 = vmatprep.subr.bf16.mxu1 %v16944_v35  ;;  %v14591_v35 = vcombine.high %v1729_v30, %v1729_v30 }
 0x47e   : > { %6324 = vmatpush1.bf16.msra.mxu0 %v16939_v36  ;;  %v14590_v36 = vcombine.low %v1729_v30, %v1729_v30  ;;  %v17084_v30 = vld [vmem:[%s21327_s24 + $0x8e0] ss:$100 sps:$4 sm:$0xff]  }
 0x47f   : > { %6406 = vmatpush1.bf16.msra.mxu1 %v16942_v41  ;;  %6325 = vmatprep.subr.bf16.mxu0 %v16947_v24  ;;  %v14593_v41 = vcombine.high %v1730_v32, %v1730_v32  ;;  %v14592_v24 = vcombine.low %v1730_v32, %v1730_v32  ;;  %v17089_v32 = vld [vmem:[%s21327_s24 + $0x9a4] ss:$100 sps:$4 sm:$0xff]  }
 0x480   : > { %6407 = vmatprep.subr.bf16.mxu1 %v16950_v43  ;;  %v5746_v43 = vsel %vm673_vm0, %v14590_v36, 0  ;;  %v17095_v36 = vld [vmem:[%s21327_s24 + $0xa6c] ss:$100 sps:$4 sm:$0xff]  }
 0x482   : > { %6326 = vmatpush1.bf16.msra.mxu0 %v16945_v44  ;;  %v17017_v44 = vld [vmem:[%s21327_s24 + $0x44] ss:$100 sps:$4 sm:$0xff]  }
 0x483   : > { %6408 = vmatpush1.bf16.msra.mxu1 %v16948_v45  ;;  %6327 = vmatprep.subr.bf16.mxu0 %v16956_v46  ;;  %v5752_v45 = vsel %vm673_vm0, %v14592_v24, 0  ;;  %v17020_v46 = vld [vmem:[%s21327_s24 + $0x4c] ss:$100 sps:$4 sm:$0xff]  }
 0x484   : > { %v6023_v51 = vpop.f32.mrb[8].mxu0  ;;  %6409 = vmatprep.subr.bf16.mxu1 %v16953_v47  ;;  %v17015_v47 = vld [vmem:[%s21327_s24 + $0x40] ss:$100 sps:$4 sm:$0xff]   ;;  %v17093_v24 = vld [vmem:[%s21327_s24 + $0xa68] ss:$100 sps:$4 sm:$0xff]  }
 0x485   : > { %v6105_v53 = vpop.f32.mrb[8].mxu1  ;;  %7111 = vrot.lane.b32.xlu1 %v6023_v51, %s21311_s23  ;;  %v6025_v54 = vpop.f32.mrb[9].mxu0  ;;  %s21330_s23 = sld [smem:[#allocation8_spill]] }
 0x486   : > { %7290 = vrot.lane.b32.xlu0 %v6105_v53, %s21312_s2  ;;  %v6107_v56 = vpop.f32.mrb[9].mxu1  ;;  %v6027_v57 = vpop.f32.mrb[10].mxu0  ;;  %6328 = vmatpush1.bf16.msra.mxu0 %v16954_v48  ;;  %v17018_v48 = vld [vmem:[%s21327_s24 + $0x48] ss:$100 sps:$4 sm:$0xff]  }
 0x487   : > { %v6109_v59 = vpop.f32.mrb[10].mxu1  ;;  %6410 = vmatpush1.bf16.msra.mxu1 %v16951_v49  ;;  %v6028_v60 = vpop.f32.mrb[11].mxu0  ;;  %6329 = vmatprep.subr.bf16.mxu0 %v16962_v50  ;;  %v17023_v49 = vld [vmem:[%s21327_s24 + $0x10c] ss:$100 sps:$4 sm:$0xff]   ;;  %v17026_v50 = vld [vmem:[%s21327_s24 + $0x114] ss:$100 sps:$4 sm:$0xff]  }
 0x488   : > { %v6110_v62 = vpop.f32.mrb[11].mxu1  ;;  %6411 = vmatprep.subr.bf16.mxu1 %v16959_v52  ;;  %v17024_v52 = vld [vmem:[%s21327_s24 + $0x110] ss:$100 sps:$4 sm:$0xff]   ;;  %v17035_v57 = vld [vmem:[%s21327_s24 + $0x29c] ss:$100 sps:$4 sm:$0xff]  }
 0x489   : > { %7203 = vrot.lane.b32.xlu1 %v6105_v53, %s21314_s22  ;;  %v17029_v53 = vld [vmem:[%s21327_s24 + $0x1d4] ss:$100 sps:$4 sm:$0xff]   ;;  %v17036_v60 = vld [vmem:[%s21327_s24 + $0x2a0] ss:$100 sps:$4 sm:$0xff]   ;;  %v17044_v62 = vld [vmem:[%s21327_s24 + $0x36c] ss:$100 sps:$4 sm:$0xff]  }
 0x48a   : > { %7379 = vrot.lane.b32.xlu0 %v6107_v56, %s17449_s26  ;;  %6330 = vmatpush1.bf16.msra.mxu0 %v16960_v58  ;;  %v17038_v58 = vld [vmem:[%s21327_s24 + $0x2a4] ss:$100 sps:$4 sm:$0xff]   ;;  %v17033_v59 = vld [vmem:[%s21327_s24 + $0x298] ss:$100 sps:$4 sm:$0xff]  }
 0x48b   : > { %6412 = vmatpush1.bf16.msra.mxu1 %v16957_v55  ;;  %6331 = vmatprep.subr.bf16.mxu0 %v16965_v61  ;;  %v17027_v55 = vld [vmem:[%s21327_s24 + $0x1d0] ss:$100 sps:$4 sm:$0xff]   ;;  %v17041_v61 = vld [vmem:[%s21327_s24 + $0x364] ss:$100 sps:$4 sm:$0xff]  }
 0x48c   : > { %6413 = vmatprep.subr.bf16.mxu1 %v16968_v63  ;;  %v17039_v63 = vld [vmem:[%s21327_s24 + $0x360] ss:$100 sps:$4 sm:$0xff]  }
 0x48d   : > { %7201 = vrot.lane.b32.xlu1 %v6025_v54, %s21314_s22  ;;  %v17032_v54 = vld [vmem:[%s21327_s24 + $0x1dc] ss:$100 sps:$4 sm:$0xff]  }
 0x48e   : > { %6332 = vmatpush1.bf16.msra.mxu0 %v16963_v1  ;;  %v17042_v1 = vld [vmem:[%s21327_s24 + $0x368] ss:$100 sps:$4 sm:$0xff]  }
 0x48f   : > { %6414 = vmatpush1.bf16.msra.mxu1 %v16966_v2  ;;  %6333 = vmatprep.subr.bf16.mxu0 %v16971_v3  ;;  %v17047_v2 = vld [vmem:[%s21327_s24 + $0x42c] ss:$100 sps:$4 sm:$0xff]   ;;  %v17050_v3 = vld [vmem:[%s21327_s24 + $0x434] ss:$100 sps:$4 sm:$0xff]  }
 0x490   : > { %6415 = vmatprep.subr.bf16.mxu1 %v16974_v4  ;;  %v17045_v4 = vld [vmem:[%s21327_s24 + $0x428] ss:$100 sps:$4 sm:$0xff]  }
 0x491   : > { %7199 = vrot.lane.b32.xlu1 %v6023_v51, %s21314_s22  ;;  %v17021_v51 = vld [vmem:[%s21327_s24 + $0x108] ss:$100 sps:$4 sm:$0xff]   ;;  %s17460_s22 = smov 53  }
 0x492   : > { %6334 = vmatpush1.bf16.msra.mxu0 %v16969_v5  ;;  %v17048_v5 = vld [vmem:[%s21327_s24 + $0x430] ss:$100 sps:$4 sm:$0xff]  }
 0x493   : > { %6416 = vmatpush1.bf16.msra.mxu1 %v16972_v6  ;;  %6335 = vmatprep.subr.bf16.mxu0 %v16977_v7  ;;  %v17053_v6 = vld [vmem:[%s21327_s24 + $0x4f4] ss:$100 sps:$4 sm:$0xff]   ;;  %v17056_v7 = vld [vmem:[%s21327_s24 + $0x4fc] ss:$100 sps:$4 sm:$0xff]  }
 0x494   : > { %6417 = vmatprep.subr.bf16.mxu1 %v16980_v8  ;;  %v17051_v8 = vld [vmem:[%s21327_s24 + $0x4f0] ss:$100 sps:$4 sm:$0xff]  }
 0x495   : > { %7292 = vrot.lane.b32.xlu1 %v6107_v56, %s21312_s2  ;;  %v17030_v56 = vld [vmem:[%s21327_s24 + $0x1d8] ss:$100 sps:$4 sm:$0xff]   ;;  %s17451_s2 = smov 40  }
 0x496   : > { %6336 = vmatpush1.bf16.msra.mxu0 %v16975_v9  ;;  %v17054_v9 = vld [vmem:[%s21327_s24 + $0x4f8] ss:$100 sps:$4 sm:$0xff]  }
 0x497   : > { %6418 = vmatpush1.bf16.msra.mxu1 %v16978_v10  ;;  %6337 = vmatprep.subr.bf16.mxu0 %v16983_v11  ;;  %v17059_v10 = vld [vmem:[%s21327_s24 + $0x5bc] ss:$100 sps:$4 sm:$0xff]   ;;  %v17062_v11 = vld [vmem:[%s21327_s24 + $0x5c4] ss:$100 sps:$4 sm:$0xff]  }
 0x498   : > { %6419 = vmatprep.subr.bf16.mxu1 %v16986_v12  ;;  %v17057_v12 = vld [vmem:[%s21327_s24 + $0x5b8] ss:$100 sps:$4 sm:$0xff]  }
 0x49a   : > { %6338 = vmatpush1.bf16.msra.mxu0 %v16981_v13  ;;  %v17060_v13 = vld [vmem:[%s21327_s24 + $0x5c0] ss:$100 sps:$4 sm:$0xff]  }
 0x49b   : > { %6420 = vmatpush1.bf16.msra.mxu1 %v16984_v14  ;;  %6339 = vmatprep.subr.bf16.mxu0 %v16989_v15  ;;  %v17065_v14 = vld [vmem:[%s21327_s24 + $0x684] ss:$100 sps:$4 sm:$0xff]   ;;  %v17068_v15 = vld [vmem:[%s21327_s24 + $0x68c] ss:$100 sps:$4 sm:$0xff]  }
 0x49c   : > { %6421 = vmatprep.subr.bf16.mxu1 %v16992_v16  ;;  %v17063_v16 = vld [vmem:[%s21327_s24 + $0x680] ss:$100 sps:$4 sm:$0xff]  }
 0x49e   : > { %6340 = vmatpush1.bf16.msra.mxu0 %v16987_v17  ;;  %v17066_v17 = vld [vmem:[%s21327_s24 + $0x688] ss:$100 sps:$4 sm:$0xff]  }
 0x49f   : > { %6422 = vmatpush1.bf16.msra.mxu1 %v16990_v18  ;;  %6341 = vmatprep.subr.bf16.mxu0 %v16995_v19  ;;  %v17071_v18 = vld [vmem:[%s21327_s24 + $0x74c] ss:$100 sps:$4 sm:$0xff]   ;;  %v17074_v19 = vld [vmem:[%s21327_s24 + $0x754] ss:$100 sps:$4 sm:$0xff]  }
 0x4a0   : > { %6423 = vmatprep.subr.bf16.mxu1 %v16998_v20  ;;  %v17069_v20 = vld [vmem:[%s21327_s24 + $0x748] ss:$100 sps:$4 sm:$0xff]  }
 0x4a2   : > { %6342 = vmatpush1.bf16.msra.mxu0 %v16993_v22  ;;  %v17072_v22 = vld [vmem:[%s21327_s24 + $0x750] ss:$100 sps:$4 sm:$0xff]  }
 0x4a3   : > { %6424 = vmatpush1.bf16.msra.mxu1 %v16996_v23  ;;  %6343 = vmatprep.subr.bf16.mxu0 %v17001_v26  ;;  %v17077_v23 = vld [vmem:[%s21327_s24 + $0x814] ss:$100 sps:$4 sm:$0xff]   ;;  %v17080_v26 = vld [vmem:[%s21327_s24 + $0x81c] ss:$100 sps:$4 sm:$0xff]  }
 0x4a4   : > { %6425 = vmatprep.subr.bf16.mxu1 %v17004_v27  ;;  %v17075_v27 = vld [vmem:[%s21327_s24 + $0x810] ss:$100 sps:$4 sm:$0xff]  }
 0x4a6   : > { %6344 = vmatpush1.bf16.msra.mxu0 %v16999_v28  ;;  %v17078_v28 = vld [vmem:[%s21327_s24 + $0x818] ss:$100 sps:$4 sm:$0xff]  }
 0x4a7   : > { %6426 = vmatpush1.bf16.msra.mxu1 %v17002_v38  ;;  %6345 = vmatprep.subr.bf16.mxu0 %v17007_v39  ;;  %v17083_v38 = vld [vmem:[%s21327_s24 + $0x8dc] ss:$100 sps:$4 sm:$0xff]   ;;  %v17086_v39 = vld [vmem:[%s21327_s24 + $0x8e4] ss:$100 sps:$4 sm:$0xff]  }
 0x4a8   : > { %6427 = vmatprep.subr.bf16.mxu1 %v17010_v40  ;;  %v17081_v40 = vld [vmem:[%s21327_s24 + $0x8d8] ss:$100 sps:$4 sm:$0xff]  }
 0x4aa   : > { %6346 = vmatpush1.bf16.msra.mxu0 %v17005_v33  ;;  %v17092_v33 = vld [vmem:[%s21327_s24 + $0x9ac] ss:$100 sps:$4 sm:$0xff]  }
 0x4ab   : > { %6428 = vmatpush1.bf16.msra.mxu1 %v17008_v34  ;;  %14615 = vmatprep.subr.msk.bf16.mxu0 %vm673_vm0, %v14591_v35  ;;  %v17087_v34 = vld [vmem:[%s21327_s24 + $0x9a0] ss:$100 sps:$4 sm:$0xff]   ;;  %v17090_v35 = vld [vmem:[%s21327_s24 + $0x9a8] ss:$100 sps:$4 sm:$0xff]  }
 0x4ac   : > { %14617 = vmatprep.subr.msk.bf16.mxu1 %vm673_vm0, %v14593_v41  ;;  %v17098_v41 = vld [vmem:[%s21327_s24 + $0xa74] ss:$100 sps:$4 sm:$0xff]  }
 0x4ae   : > { %6348 = vmatpush1.bf16.msra.mxu0 %v5746_v43  ;;  %v17096_v43 = vld [vmem:[%s21327_s24 + $0xa70] ss:$100 sps:$4 sm:$0xff]  }
 0x4af   : > { %6430 = vmatpush1.bf16.msra.mxu1 %v5752_v45  ;;  %6440 = vmatprep.subr.bf16.mxu0 %v17017_v44  ;;  %v17101_v44 = vld [vmem:[%s21327_s24 + $0xb34] ss:$100 sps:$4 sm:$0xff]   ;;  %v17104_v45 = vld [vmem:[%s21327_s24 + $0xb3c] ss:$100 sps:$4 sm:$0xff]  }
 0x4b0   : > { %6522 = vmatprep.subr.bf16.mxu1 %v17020_v46  ;;  %v17099_v46 = vld [vmem:[%s21327_s24 + $0xb30] ss:$100 sps:$4 sm:$0xff]  }
 0x4b1   : > { %6350 = vmatmul.mubr.bf16.vlgmr.msra.gmra.mrb[16].mxu0 %v18068_v42 }
 0x4b2   : > { %6432 = vmatmul.mubr.bf16.vlgmr.msra.gmra.mrb[16].mxu1 %v18068_v42  ;;  %6441 = vmatpush1.bf16.msra.mxu0 %v17015_v47  ;;  %v17102_v47 = vld [vmem:[%s21327_s24 + $0xb38] ss:$100 sps:$4 sm:$0xff]  }
 0x4b3   : > { %6472 = vmatprep.mubr.bf16.mxu0 %v17862_v37  ;;  %6523 = vmatpush1.bf16.msra.mxu1 %v17018_v48  ;;  %v17107_v48 = vld [vmem:[%s21327_s24 + $0xbfc] ss:$100 sps:$4 sm:$0xff]  }
 0x4b4   : > { %6554 = vmatprep.mubr.bf16.mxu1 %v17862_v37  ;;  %6442 = vmatprep.subr.bf16.mxu0 %v17023_v49  ;;  %v17110_v49 = vld [vmem:[%s21327_s24 + $0xc04] ss:$100 sps:$4 sm:$0xff]  }
 0x4b5   : > { %6524 = vmatprep.subr.bf16.mxu1 %v17026_v50  ;;  %v17105_v50 = vld [vmem:[%s21327_s24 + $0xbf8] ss:$100 sps:$4 sm:$0xff]  }
 0x4b6   : > { %6443 = vmatpush1.bf16.msra.mxu0 %v17021_v51  ;;  %v17108_v51 = vld [vmem:[%s21327_s24 + $0xc00] ss:$100 sps:$4 sm:$0xff]  }
 0x4b7   : > { %6525 = vmatpush1.bf16.msra.mxu1 %v17024_v52  ;;  %6444 = vmatprep.subr.bf16.mxu0 %v17029_v53  ;;  %v17113_v52 = vld [vmem:[%s21327_s24 + $0xcc4] ss:$100 sps:$4 sm:$0xff]   ;;  %v17116_v53 = vld [vmem:[%s21327_s24 + $0xccc] ss:$100 sps:$4 sm:$0xff]  }
 0x4b8   : > { %6526 = vmatprep.subr.bf16.mxu1 %v17032_v54  ;;  %v17111_v54 = vld [vmem:[%s21327_s24 + $0xcc0] ss:$100 sps:$4 sm:$0xff]  }
 0x4ba   : > { %6445 = vmatpush1.bf16.msra.mxu0 %v17027_v55  ;;  %v17114_v55 = vld [vmem:[%s21327_s24 + $0xcc8] ss:$100 sps:$4 sm:$0xff]  }
 0x4bb   : > { %6527 = vmatpush1.bf16.msra.mxu1 %v17030_v56  ;;  %6446 = vmatprep.subr.bf16.mxu0 %v17035_v57  ;;  %v17119_v56 = vld [vmem:[%s21327_s24 + $0xd8c] ss:$100 sps:$4 sm:$0xff]   ;;  %v17122_v57 = vld [vmem:[%s21327_s24 + $0xd94] ss:$100 sps:$4 sm:$0xff]  }
 0x4bc   : > { %6528 = vmatprep.subr.bf16.mxu1 %v17038_v58  ;;  %v17117_v58 = vld [vmem:[%s21327_s24 + $0xd88] ss:$100 sps:$4 sm:$0xff]  }
 0x4be   : > { %6447 = vmatpush1.bf16.msra.mxu0 %v17033_v59  ;;  %v17120_v59 = vld [vmem:[%s21327_s24 + $0xd90] ss:$100 sps:$4 sm:$0xff]  }
 0x4bf   : > { %6529 = vmatpush1.bf16.msra.mxu1 %v17036_v60  ;;  %6448 = vmatprep.subr.bf16.mxu0 %v17041_v61  ;;  %v17125_v60 = vld [vmem:[%s21327_s24 + $0xe54] ss:$100 sps:$4 sm:$0xff]   ;;  %v17128_v61 = vld [vmem:[%s21327_s24 + $0xe5c] ss:$100 sps:$4 sm:$0xff]  }
 0x4c0   : > { %6530 = vmatprep.subr.bf16.mxu1 %v17044_v62  ;;  %v17123_v62 = vld [vmem:[%s21327_s24 + $0xe50] ss:$100 sps:$4 sm:$0xff]  }
 0x4c2   : > { %6449 = vmatpush1.bf16.msra.mxu0 %v17039_v63  ;;  %v17126_v63 = vld [vmem:[%s21327_s24 + $0xe58] ss:$100 sps:$4 sm:$0xff]  }
 0x4c3   : > { %6531 = vmatpush1.bf16.msra.mxu1 %v17042_v1  ;;  %6450 = vmatprep.subr.bf16.mxu0 %v17047_v2  ;;  %v17131_v1 = vld [vmem:[%s21327_s24 + $0xf1c] ss:$100 sps:$4 sm:$0xff]   ;;  %v17134_v2 = vld [vmem:[%s21327_s24 + $0xf24] ss:$100 sps:$4 sm:$0xff]  }
 0x4c4   : > { %6532 = vmatprep.subr.bf16.mxu1 %v17050_v3  ;;  %v17129_v3 = vld [vmem:[%s21327_s24 + $0xf18] ss:$100 sps:$4 sm:$0xff]  }
 0x4c6   : > { %6451 = vmatpush1.bf16.msra.mxu0 %v17045_v4  ;;  %v17132_v4 = vld [vmem:[%s21327_s24 + $0xf20] ss:$100 sps:$4 sm:$0xff]  }
 0x4c7   : > { %6533 = vmatpush1.bf16.msra.mxu1 %v17048_v5  ;;  %6452 = vmatprep.subr.bf16.mxu0 %v17053_v6  ;;  %v17137_v5 = vld [vmem:[%s21327_s24 + $0xfe4] ss:$100 sps:$4 sm:$0xff]   ;;  %v17140_v6 = vld [vmem:[%s21327_s24 + $0xfec] ss:$100 sps:$4 sm:$0xff]  }
 0x4c8   : > { %6534 = vmatprep.subr.bf16.mxu1 %v17056_v7  ;;  %v17135_v7 = vld [vmem:[%s21327_s24 + $0xfe0] ss:$100 sps:$4 sm:$0xff]  }
 0x4ca   : > { %6453 = vmatpush1.bf16.msra.mxu0 %v17051_v8  ;;  %v17138_v8 = vld [vmem:[%s21327_s24 + $0xfe8] ss:$100 sps:$4 sm:$0xff]  }
 0x4cb   : > { %6535 = vmatpush1.bf16.msra.mxu1 %v17054_v9  ;;  %6454 = vmatprep.subr.bf16.mxu0 %v17059_v10  ;;  %v17143_v9 = vld [vmem:[%s21327_s24 + $0x10ac] ss:$100 sps:$4 sm:$0xff]   ;;  %v17146_v10 = vld [vmem:[%s21327_s24 + $0x10b4] ss:$100 sps:$4 sm:$0xff]  }
 0x4cc   : > { %6536 = vmatprep.subr.bf16.mxu1 %v17062_v11  ;;  %v17141_v11 = vld [vmem:[%s21327_s24 + $0x10a8] ss:$100 sps:$4 sm:$0xff]  }
 0x4ce   : > { %6455 = vmatpush1.bf16.msra.mxu0 %v17057_v12  ;;  %v17144_v12 = vld [vmem:[%s21327_s24 + $0x10b0] ss:$100 sps:$4 sm:$0xff]  }
 0x4cf   : > { %6537 = vmatpush1.bf16.msra.mxu1 %v17060_v13  ;;  %6456 = vmatprep.subr.bf16.mxu0 %v17065_v14  ;;  %v17149_v13 = vld [vmem:[%s21327_s24 + $0x1174] ss:$100 sps:$4 sm:$0xff]  }
 0x4d0   : > { %6538 = vmatprep.subr.bf16.mxu1 %v17068_v15  ;;  %v17152_v15 = vld [vmem:[%s21327_s24 + $0x117c] ss:$100 sps:$4 sm:$0xff]  }
 0x4d2   : > { %6457 = vmatpush1.bf16.msra.mxu0 %v17063_v16 }
 0x4d3   : > { %6539 = vmatpush1.bf16.msra.mxu1 %v17066_v17  ;;  %6458 = vmatprep.subr.bf16.mxu0 %v17071_v18 }
 0x4d4   : > { %6540 = vmatprep.subr.bf16.mxu1 %v17074_v19 }
 0x4d6   : > { %6459 = vmatpush1.bf16.msra.mxu0 %v17069_v20  ;;  %v17147_v20 = vld [vmem:[%s21327_s24 + $0x1170] ss:$100 sps:$4 sm:$0xff]  }
 0x4d7   : > { %6541 = vmatpush1.bf16.msra.mxu1 %v17072_v22  ;;  %6460 = vmatprep.subr.bf16.mxu0 %v17077_v23  ;;  %v17150_v23 = vld [vmem:[%s21327_s24 + $0x1178] ss:$100 sps:$4 sm:$0xff]  }
 0x4d8   : > { %6542 = vmatprep.subr.bf16.mxu1 %v17080_v26  ;;  %v17155_v26 = vld [vmem:[%s21327_s24 + $0x123c] ss:$100 sps:$4 sm:$0xff]  }
 0x4da   : > { %6461 = vmatpush1.bf16.msra.mxu0 %v17075_v27 }
 0x4db   : > { %6543 = vmatpush1.bf16.msra.mxu1 %v17078_v28  ;;  %6462 = vmatprep.subr.bf16.mxu0 %v17083_v38  ;;  %v17158_v38 = vld [vmem:[%s21327_s24 + $0x1244] ss:$100 sps:$4 sm:$0xff]  }
 0x4dc   : > { %6544 = vmatprep.subr.bf16.mxu1 %v17086_v39  ;;  %v17153_v39 = vld [vmem:[%s21327_s24 + $0x1238] ss:$100 sps:$4 sm:$0xff]  }
 0x4de   : > { %6463 = vmatpush1.bf16.msra.mxu0 %v17081_v40  ;;  %v17156_v40 = vld [vmem:[%s21327_s24 + $0x1240] ss:$100 sps:$4 sm:$0xff]  }
 0x4df   : > { %6545 = vmatpush1.bf16.msra.mxu1 %v17084_v30  ;;  %6464 = vmatprep.subr.bf16.mxu0 %v17089_v32  ;;  %v17161_v30 = vld [vmem:[%s21327_s24 + $0x1304] ss:$100 sps:$4 sm:$0xff]   ;;  %v17164_v32 = vld [vmem:[%s21327_s24 + $0x130c] ss:$100 sps:$4 sm:$0xff]  }
 0x4e0   : > { %6546 = vmatprep.subr.bf16.mxu1 %v17092_v33  ;;  %v17159_v33 = vld [vmem:[%s21327_s24 + $0x1300] ss:$100 sps:$4 sm:$0xff]  }
 0x4e2   : > { %6465 = vmatpush1.bf16.msra.mxu0 %v17087_v34  ;;  %v17162_v34 = vld [vmem:[%s21327_s24 + $0x1308] ss:$100 sps:$4 sm:$0xff]  }
 0x4e3   : > { %6547 = vmatpush1.bf16.msra.mxu1 %v17090_v35  ;;  %6466 = vmatprep.subr.bf16.mxu0 %v17095_v36  ;;  %v17167_v35 = vld [vmem:[%s21327_s24 + $0x13cc] ss:$100 sps:$4 sm:$0xff]   ;;  %v17170_v36 = vld [vmem:[%s21327_s24 + $0x13d4] ss:$100 sps:$4 sm:$0xff]  }
 0x4e4   : > { %6548 = vmatprep.subr.bf16.mxu1 %v17098_v41  ;;  %v17165_v41 = vld [vmem:[%s21327_s24 + $0x13c8] ss:$100 sps:$4 sm:$0xff]  }
 0x4e6   : > { %6467 = vmatpush1.bf16.msra.mxu0 %v17093_v24  ;;  %v17168_v24 = vld [vmem:[%s21327_s24 + $0x13d0] ss:$100 sps:$4 sm:$0xff]  }
 0x4e7   : > { %6549 = vmatpush1.bf16.msra.mxu1 %v17096_v43  ;;  %6468 = vmatprep.subr.bf16.mxu0 %v17101_v44  ;;  %v17173_v43 = vld [vmem:[%s21327_s24 + $0x1494] ss:$100 sps:$4 sm:$0xff]   ;;  %v17176_v44 = vld [vmem:[%s21327_s24 + $0x149c] ss:$100 sps:$4 sm:$0xff]  }
 0x4e8   : > { %6550 = vmatprep.subr.bf16.mxu1 %v17104_v45  ;;  %v17171_v45 = vld [vmem:[%s21327_s24 + $0x1490] ss:$100 sps:$4 sm:$0xff]  }
 0x4ea   : > { %6469 = vmatpush1.bf16.msra.mxu0 %v17099_v46  ;;  %v17174_v46 = vld [vmem:[%s21327_s24 + $0x1498] ss:$100 sps:$4 sm:$0xff]  }
 0x4eb   : > { %6551 = vmatpush1.bf16.msra.mxu1 %v17102_v47  ;;  %6470 = vmatprep.subr.bf16.mxu0 %v17107_v48  ;;  %v17179_v47 = vld [vmem:[%s21327_s24 + $0x155c] ss:$100 sps:$4 sm:$0xff]   ;;  %v17182_v48 = vld [vmem:[%s21327_s24 + $0x1564] ss:$100 sps:$4 sm:$0xff]  }
 0x4ec   : > { %6552 = vmatprep.subr.bf16.mxu1 %v17110_v49  ;;  %v17177_v49 = vld [vmem:[%s21327_s24 + $0x1558] ss:$100 sps:$4 sm:$0xff]  }
 0x4ee   : > { %6471 = vmatpush1.bf16.msra.mxu0 %v17105_v50  ;;  %v17180_v50 = vld [vmem:[%s21327_s24 + $0x1560] ss:$100 sps:$4 sm:$0xff]  }
 0x4ef   : > { %6553 = vmatpush1.bf16.msra.mxu1 %v17108_v51  ;;  %6481 = vmatprep.subr.bf16.mxu0 %v17113_v52  ;;  %v17185_v51 = vld [vmem:[%s21327_s24 + $0x1624] ss:$100 sps:$4 sm:$0xff]   ;;  %v17188_v52 = vld [vmem:[%s21327_s24 + $0x162c] ss:$100 sps:$4 sm:$0xff]  }
 0x4f0   : > { %6563 = vmatprep.subr.bf16.mxu1 %v17116_v53  ;;  %v17183_v53 = vld [vmem:[%s21327_s24 + $0x1620] ss:$100 sps:$4 sm:$0xff]  }
 0x4f1   : > { %6473 = vmatmul.mubr.bf16.vlgmr.msra.gmra.mrb[20].mxu0 %v17860_v29 }
 0x4f2   : > { %6555 = vmatmul.mubr.bf16.vlgmr.msra.gmra.mrb[20].mxu1 %v17860_v29  ;;  %6482 = vmatpush1.bf16.msra.mxu0 %v17111_v54  ;;  %v17186_v54 = vld [vmem:[%s21327_s24 + $0x1628] ss:$100 sps:$4 sm:$0xff]  }
 0x4f3   : > { %14620 = vmatprep.mubr.msk.bf16.mxu0 %vm5705_vm3, %v17878_v31  ;;  %6564 = vmatpush1.bf16.msra.mxu1 %v17114_v55  ;;  %v17191_v55 = vld [vmem:[%s21327_s24 + $0x16ec] ss:$100 sps:$4 sm:$0xff]  }
 0x4f4   : > { %14622 = vmatprep.mubr.msk.bf16.mxu1 %vm5705_vm3, %v17878_v31  ;;  %6483 = vmatprep.subr.bf16.mxu0 %v17119_v56  ;;  %v17194_v56 = vld [vmem:[%s21327_s24 + $0x16f4] ss:$100 sps:$4 sm:$0xff]  }
 0x4f5   : > { %6565 = vmatprep.subr.bf16.mxu1 %v17122_v57  ;;  %v17189_v57 = vld [vmem:[%s21327_s24 + $0x16e8] ss:$100 sps:$4 sm:$0xff]  }
 0x4f6   : > { %6484 = vmatpush1.bf16.msra.mxu0 %v17117_v58  ;;  %v17192_v58 = vld [vmem:[%s21327_s24 + $0x16f0] ss:$100 sps:$4 sm:$0xff]  }
 0x4f7   : > { %6566 = vmatpush1.bf16.msra.mxu1 %v17120_v59  ;;  %6485 = vmatprep.subr.bf16.mxu0 %v17125_v60  ;;  %v17197_v59 = vld [vmem:[%s21327_s24 + $0x17b4] ss:$100 sps:$4 sm:$0xff]   ;;  %v17200_v60 = vld [vmem:[%s21327_s24 + $0x17bc] ss:$100 sps:$4 sm:$0xff]  }
 0x4f8   : > { %6567 = vmatprep.subr.bf16.mxu1 %v17128_v61  ;;  %v1731_v61 = vld [vmem:[%s21327_s24 + $0x1878] sm:$0xff] }
 0x4fa   : > { %6486 = vmatpush1.bf16.msra.mxu0 %v17123_v62  ;;  %v1732_v62 = vld [vmem:[%s21327_s24 + $0x1880] sm:$0xff] }
 0x4fb   : > { %6568 = vmatpush1.bf16.msra.mxu1 %v17126_v63  ;;  %6487 = vmatprep.subr.bf16.mxu0 %v17131_v1  ;;  %v17195_v63 = vld [vmem:[%s21327_s24 + $0x17b0] ss:$100 sps:$4 sm:$0xff]   ;;  %v17198_v1 = vld [vmem:[%s21327_s24 + $0x17b8] ss:$100 sps:$4 sm:$0xff]  }
 0x4fc   : > { %6569 = vmatprep.subr.bf16.mxu1 %v17134_v2  ;;  %v14595_v2 = vcombine.high %v1731_v61, %v1731_v61 }
 0x4fe   : > { %6488 = vmatpush1.bf16.msra.mxu0 %v17129_v3  ;;  %v14594_v3 = vcombine.low %v1731_v61, %v1731_v61  ;;  %v17274_v61 = vld [vmem:[%s21327_s24 + $0x8f0] ss:$100 sps:$4 sm:$0xff]  }
 0x4ff   : > { %6570 = vmatpush1.bf16.msra.mxu1 %v17132_v4  ;;  %6489 = vmatprep.subr.bf16.mxu0 %v17137_v5  ;;  %v14597_v4 = vcombine.high %v1732_v62, %v1732_v62  ;;  %v14596_v5 = vcombine.low %v1732_v62, %v1732_v62  ;;  %v17279_v62 = vld [vmem:[%s21327_s24 + $0x9b4] ss:$100 sps:$4 sm:$0xff]  }
 0x500   : > { %6571 = vmatprep.subr.bf16.mxu1 %v17140_v6  ;;  %v5758_v6 = vsel %vm673_vm0, %v14594_v3, 0  ;;  %v17285_v3 = vld [vmem:[%s21327_s24 + $0xa7c] ss:$100 sps:$4 sm:$0xff]  }
 0x502   : > { %6490 = vmatpush1.bf16.msra.mxu0 %v17135_v7  ;;  %v17207_v7 = vld [vmem:[%s21327_s24 + $0x54] ss:$100 sps:$4 sm:$0xff]  }
 0x503   : > { %6572 = vmatpush1.bf16.msra.mxu1 %v17138_v8  ;;  %6491 = vmatprep.subr.bf16.mxu0 %v17143_v9  ;;  %v5764_v8 = vsel %vm673_vm0, %v14596_v5, 0  ;;  %v17210_v9 = vld [vmem:[%s21327_s24 + $0x5c] ss:$100 sps:$4 sm:$0xff]  }
 0x504   : > { %v6187_v14 = vpop.f32.mrb[12].mxu0  ;;  %6573 = vmatprep.subr.bf16.mxu1 %v17146_v10  ;;  %v17205_v10 = vld [vmem:[%s21327_s24 + $0x50] ss:$100 sps:$4 sm:$0xff]   ;;  %v17283_v5 = vld [vmem:[%s21327_s24 + $0xa78] ss:$100 sps:$4 sm:$0xff]  }
 0x505   : > { %v6269_v16 = vpop.f32.mrb[12].mxu1  ;;  %7468 = vrot.lane.b32.xlu0 %v6187_v14, %s17450_s27  ;;  %7381 = vrot.lane.b32.xlu1 %v6187_v14, %s17449_s26  ;;  %v6189_v17 = vpop.f32.mrb[13].mxu0  ;;  %v17211_v14 = vld [vmem:[%s21327_s24 + $0x118] ss:$100 sps:$4 sm:$0xff]   ;;  %s17457_s26 = smov 6  }
 0x506   : > { %v6271_v18 = vpop.f32.mrb[13].mxu1  ;;  %v6191_v19 = vpop.f32.mrb[14].mxu0  ;;  %6492 = vmatpush1.bf16.msra.mxu0 %v17141_v11  ;;  %v17208_v11 = vld [vmem:[%s21327_s24 + $0x58] ss:$100 sps:$4 sm:$0xff]  }
 0x507   : > { %v6273_v22 = vpop.f32.mrb[14].mxu1  ;;  %6574 = vmatpush1.bf16.msra.mxu1 %v17144_v12  ;;  %6493 = vmatprep.subr.bf16.mxu0 %v17149_v13  ;;  %v6192_v28 = vpop.f32.mrb[15].mxu0  ;;  %v17213_v12 = vld [vmem:[%s21327_s24 + $0x11c] ss:$100 sps:$4 sm:$0xff]   ;;  %v17216_v13 = vld [vmem:[%s21327_s24 + $0x124] ss:$100 sps:$4 sm:$0xff]  }
 0x508   : > { %v6274_v27 = vpop.f32.mrb[15].mxu1  ;;  %6575 = vmatprep.subr.bf16.mxu1 %v17152_v15  ;;  %v17214_v15 = vld [vmem:[%s21327_s24 + $0x120] ss:$100 sps:$4 sm:$0xff]   ;;  %v17220_v19 = vld [vmem:[%s21327_s24 + $0x1e8] ss:$100 sps:$4 sm:$0xff]  }
 0x509   : > { %7557 = vrot.lane.b32.xlu0 %v6189_v17, %s17451_s2  ;;  %7470 = vrot.lane.b32.xlu1 %v6189_v17, %s17450_s27  ;;  %s17452_s27 = smov 13   ;;  %v17222_v17 = vld [vmem:[%s21327_s24 + $0x1ec] ss:$100 sps:$4 sm:$0xff]   ;;  %v17228_v22 = vld [vmem:[%s21327_s24 + $0x2b4] ss:$100 sps:$4 sm:$0xff]  }
 0x50a   : > { %6494 = vmatpush1.bf16.msra.mxu0 %v17147_v20  ;;  %v17225_v20 = vld [vmem:[%s21327_s24 + $0x2ac] ss:$100 sps:$4 sm:$0xff]   ;;  %v17231_v27 = vld [vmem:[%s21327_s24 + $0x374] ss:$100 sps:$4 sm:$0xff]   ;;  %v17234_v28 = vld [vmem:[%s21327_s24 + $0x37c] ss:$100 sps:$4 sm:$0xff]  }
 0x50b   : > { %6576 = vmatpush1.bf16.msra.mxu1 %v17150_v23  ;;  %6495 = vmatprep.subr.bf16.mxu0 %v17155_v26  ;;  %v17223_v23 = vld [vmem:[%s21327_s24 + $0x2a8] ss:$100 sps:$4 sm:$0xff]   ;;  %v17226_v26 = vld [vmem:[%s21327_s24 + $0x2b0] ss:$100 sps:$4 sm:$0xff]  }
 0x50c   : > { %6577 = vmatprep.subr.bf16.mxu1 %v17158_v38  ;;  %v17229_v38 = vld [vmem:[%s21327_s24 + $0x370] ss:$100 sps:$4 sm:$0xff]  }
 0x50d   : > { %7649 = vrot.lane.b32.xlu0 %v6271_v18, %s17452_s27  ;;  %7559 = vrot.lane.b32.xlu1 %v6269_v16, %s17451_s2  ;;  %v17217_v18 = vld [vmem:[%s21327_s24 + $0x1e0] ss:$100 sps:$4 sm:$0xff]   ;;  %s21334_s2 = smov 74  }
 0x50e   : > { %6496 = vmatpush1.bf16.msra.mxu0 %v17153_v39  ;;  %v17232_v39 = vld [vmem:[%s21327_s24 + $0x378] ss:$100 sps:$4 sm:$0xff]  }
 0x50f   : > { %6578 = vmatpush1.bf16.msra.mxu1 %v17156_v40  ;;  %6497 = vmatprep.subr.bf16.mxu0 %v17161_v30  ;;  %v17237_v40 = vld [vmem:[%s21327_s24 + $0x43c] ss:$100 sps:$4 sm:$0xff]   ;;  %v17240_v30 = vld [vmem:[%s21327_s24 + $0x444] ss:$100 sps:$4 sm:$0xff]  }
 0x510   : > { %6579 = vmatprep.subr.bf16.mxu1 %v17164_v32  ;;  %v17235_v32 = vld [vmem:[%s21327_s24 + $0x438] ss:$100 sps:$4 sm:$0xff]  }
 0x511   : > { %7647 = vrot.lane.b32.xlu0 %v6269_v16, %s17452_s27  ;;  %v17219_v16 = vld [vmem:[%s21327_s24 + $0x1e4] ss:$100 sps:$4 sm:$0xff]  }
 0x512   : > { %6498 = vmatpush1.bf16.msra.mxu0 %v17159_v33  ;;  %v17238_v33 = vld [vmem:[%s21327_s24 + $0x440] ss:$100 sps:$4 sm:$0xff]  }
 0x513   : > { %6580 = vmatpush1.bf16.msra.mxu1 %v17162_v34  ;;  %6499 = vmatprep.subr.bf16.mxu0 %v17167_v35  ;;  %v17243_v34 = vld [vmem:[%s21327_s24 + $0x504] ss:$100 sps:$4 sm:$0xff]   ;;  %v17246_v35 = vld [vmem:[%s21327_s24 + $0x50c] ss:$100 sps:$4 sm:$0xff]  }
 0x514   : > { %6581 = vmatprep.subr.bf16.mxu1 %v17170_v36  ;;  %v17241_v36 = vld [vmem:[%s21327_s24 + $0x500] ss:$100 sps:$4 sm:$0xff]  }
 0x516   : > { %6500 = vmatpush1.bf16.msra.mxu0 %v17165_v41  ;;  %v17244_v41 = vld [vmem:[%s21327_s24 + $0x508] ss:$100 sps:$4 sm:$0xff]  }
 0x517   : > { %6582 = vmatpush1.bf16.msra.mxu1 %v17168_v24  ;;  %6501 = vmatprep.subr.bf16.mxu0 %v17173_v43  ;;  %v17249_v24 = vld [vmem:[%s21327_s24 + $0x5cc] ss:$100 sps:$4 sm:$0xff]   ;;  %v17252_v43 = vld [vmem:[%s21327_s24 + $0x5d4] ss:$100 sps:$4 sm:$0xff]  }
 0x518   : > { %6583 = vmatprep.subr.bf16.mxu1 %v17176_v44  ;;  %v17247_v44 = vld [vmem:[%s21327_s24 + $0x5c8] ss:$100 sps:$4 sm:$0xff]  }
 0x51a   : > { %6502 = vmatpush1.bf16.msra.mxu0 %v17171_v45  ;;  %v17250_v45 = vld [vmem:[%s21327_s24 + $0x5d0] ss:$100 sps:$4 sm:$0xff]  }
 0x51b   : > { %6584 = vmatpush1.bf16.msra.mxu1 %v17174_v46  ;;  %6503 = vmatprep.subr.bf16.mxu0 %v17179_v47  ;;  %v17255_v46 = vld [vmem:[%s21327_s24 + $0x694] ss:$100 sps:$4 sm:$0xff]   ;;  %v17258_v47 = vld [vmem:[%s21327_s24 + $0x69c] ss:$100 sps:$4 sm:$0xff]  }
 0x51c   : > { %6585 = vmatprep.subr.bf16.mxu1 %v17182_v48  ;;  %v17253_v48 = vld [vmem:[%s21327_s24 + $0x690] ss:$100 sps:$4 sm:$0xff]  }
 0x51e   : > { %6504 = vmatpush1.bf16.msra.mxu0 %v17177_v49  ;;  %v17256_v49 = vld [vmem:[%s21327_s24 + $0x698] ss:$100 sps:$4 sm:$0xff]  }
 0x51f   : > { %6586 = vmatpush1.bf16.msra.mxu1 %v17180_v50  ;;  %6505 = vmatprep.subr.bf16.mxu0 %v17185_v51  ;;  %v17261_v50 = vld [vmem:[%s21327_s24 + $0x75c] ss:$100 sps:$4 sm:$0xff]   ;;  %v17264_v51 = vld [vmem:[%s21327_s24 + $0x764] ss:$100 sps:$4 sm:$0xff]  }
 0x520   : > { %6587 = vmatprep.subr.bf16.mxu1 %v17188_v52  ;;  %v17259_v52 = vld [vmem:[%s21327_s24 + $0x758] ss:$100 sps:$4 sm:$0xff]  }
 0x522   : > { %6506 = vmatpush1.bf16.msra.mxu0 %v17183_v53  ;;  %v17262_v53 = vld [vmem:[%s21327_s24 + $0x760] ss:$100 sps:$4 sm:$0xff]  }
 0x523   : > { %6588 = vmatpush1.bf16.msra.mxu1 %v17186_v54  ;;  %6507 = vmatprep.subr.bf16.mxu0 %v17191_v55  ;;  %v17267_v54 = vld [vmem:[%s21327_s24 + $0x824] ss:$100 sps:$4 sm:$0xff]   ;;  %v17270_v55 = vld [vmem:[%s21327_s24 + $0x82c] ss:$100 sps:$4 sm:$0xff]  }
 0x524   : > { %6589 = vmatprep.subr.bf16.mxu1 %v17194_v56  ;;  %v17265_v56 = vld [vmem:[%s21327_s24 + $0x820] ss:$100 sps:$4 sm:$0xff]  }
 0x526   : > { %6508 = vmatpush1.bf16.msra.mxu0 %v17189_v57  ;;  %v17268_v57 = vld [vmem:[%s21327_s24 + $0x828] ss:$100 sps:$4 sm:$0xff]  }
 0x527   : > { %6590 = vmatpush1.bf16.msra.mxu1 %v17192_v58  ;;  %6509 = vmatprep.subr.bf16.mxu0 %v17197_v59  ;;  %v17273_v58 = vld [vmem:[%s21327_s24 + $0x8ec] ss:$100 sps:$4 sm:$0xff]   ;;  %v17276_v59 = vld [vmem:[%s21327_s24 + $0x8f4] ss:$100 sps:$4 sm:$0xff]  }
 0x528   : > { %6591 = vmatprep.subr.bf16.mxu1 %v17200_v60  ;;  %v17271_v60 = vld [vmem:[%s21327_s24 + $0x8e8] ss:$100 sps:$4 sm:$0xff]  }
 0x52a   : > { %6510 = vmatpush1.bf16.msra.mxu0 %v17195_v63  ;;  %v17282_v63 = vld [vmem:[%s21327_s24 + $0x9bc] ss:$100 sps:$4 sm:$0xff]  }
 0x52b   : > { %6592 = vmatpush1.bf16.msra.mxu1 %v17198_v1  ;;  %14619 = vmatprep.subr.msk.bf16.mxu0 %vm673_vm0, %v14595_v2  ;;  %v17277_v1 = vld [vmem:[%s21327_s24 + $0x9b0] ss:$100 sps:$4 sm:$0xff]   ;;  %v17280_v2 = vld [vmem:[%s21327_s24 + $0x9b8] ss:$100 sps:$4 sm:$0xff]  }
 0x52c   : > { %14621 = vmatprep.subr.msk.bf16.mxu1 %vm673_vm0, %v14597_v4  ;;  %v17288_v4 = vld [vmem:[%s21327_s24 + $0xa84] ss:$100 sps:$4 sm:$0xff]  }
 0x52e   : > { %6512 = vmatpush1.bf16.msra.mxu0 %v5758_v6  ;;  %v17286_v6 = vld [vmem:[%s21327_s24 + $0xa80] ss:$100 sps:$4 sm:$0xff]  }
 0x52f   : > { %6594 = vmatpush1.bf16.msra.mxu1 %v5764_v8  ;;  %6604 = vmatprep.subr.bf16.mxu0 %v17207_v7  ;;  %v17291_v7 = vld [vmem:[%s21327_s24 + $0xb44] ss:$100 sps:$4 sm:$0xff]   ;;  %v17294_v8 = vld [vmem:[%s21327_s24 + $0xb4c] ss:$100 sps:$4 sm:$0xff]  }
 0x530   : > { %6686 = vmatprep.subr.bf16.mxu1 %v17210_v9  ;;  %v17289_v9 = vld [vmem:[%s21327_s24 + $0xb40] ss:$100 sps:$4 sm:$0xff]  }
 0x531   : > { %6514 = vmatmul.mubr.bf16.vlgmr.msra.gmra.mrb[20].mxu0 %v18068_v42 }
 0x532   : > { %6596 = vmatmul.mubr.bf16.vlgmr.msra.gmra.mrb[20].mxu1 %v18068_v42  ;;  %6605 = vmatpush1.bf16.msra.mxu0 %v17205_v10  ;;  %v17292_v10 = vld [vmem:[%s21327_s24 + $0xb48] ss:$100 sps:$4 sm:$0xff]  }
 0x533   : > { %6636 = vmatprep.mubr.bf16.mxu0 %v17862_v37  ;;  %6687 = vmatpush1.bf16.msra.mxu1 %v17208_v11  ;;  %v17297_v11 = vld [vmem:[%s21327_s24 + $0xc0c] ss:$100 sps:$4 sm:$0xff]  }
 0x534   : > { %6718 = vmatprep.mubr.bf16.mxu1 %v17862_v37  ;;  %6606 = vmatprep.subr.bf16.mxu0 %v17213_v12  ;;  %v17300_v12 = vld [vmem:[%s21327_s24 + $0xc14] ss:$100 sps:$4 sm:$0xff]  }
 0x535   : > { %6688 = vmatprep.subr.bf16.mxu1 %v17216_v13  ;;  %v17295_v13 = vld [vmem:[%s21327_s24 + $0xc08] ss:$100 sps:$4 sm:$0xff]  }
 0x536   : > { %6607 = vmatpush1.bf16.msra.mxu0 %v17211_v14  ;;  %v17298_v14 = vld [vmem:[%s21327_s24 + $0xc10] ss:$100 sps:$4 sm:$0xff]  }
 0x537   : > { %6689 = vmatpush1.bf16.msra.mxu1 %v17214_v15  ;;  %6608 = vmatprep.subr.bf16.mxu0 %v17219_v16  ;;  %v17303_v15 = vld [vmem:[%s21327_s24 + $0xcd4] ss:$100 sps:$4 sm:$0xff]   ;;  %v17306_v16 = vld [vmem:[%s21327_s24 + $0xcdc] ss:$100 sps:$4 sm:$0xff]  }
 0x538   : > { %6690 = vmatprep.subr.bf16.mxu1 %v17222_v17  ;;  %v17301_v17 = vld [vmem:[%s21327_s24 + $0xcd0] ss:$100 sps:$4 sm:$0xff]  }
 0x53a   : > { %6609 = vmatpush1.bf16.msra.mxu0 %v17217_v18  ;;  %v17304_v18 = vld [vmem:[%s21327_s24 + $0xcd8] ss:$100 sps:$4 sm:$0xff]  }
 0x53b   : > { %6691 = vmatpush1.bf16.msra.mxu1 %v17220_v19  ;;  %6610 = vmatprep.subr.bf16.mxu0 %v17225_v20  ;;  %v17309_v19 = vld [vmem:[%s21327_s24 + $0xd9c] ss:$100 sps:$4 sm:$0xff]   ;;  %v17312_v20 = vld [vmem:[%s21327_s24 + $0xda4] ss:$100 sps:$4 sm:$0xff]  }
 0x53c   : > { %6692 = vmatprep.subr.bf16.mxu1 %v17228_v22  ;;  %v17307_v22 = vld [vmem:[%s21327_s24 + $0xd98] ss:$100 sps:$4 sm:$0xff]  }
 0x53e   : > { %6611 = vmatpush1.bf16.msra.mxu0 %v17223_v23  ;;  %v17310_v23 = vld [vmem:[%s21327_s24 + $0xda0] ss:$100 sps:$4 sm:$0xff]  }
 0x53f   : > { %6693 = vmatpush1.bf16.msra.mxu1 %v17226_v26  ;;  %6612 = vmatprep.subr.bf16.mxu0 %v17231_v27  ;;  %v17315_v26 = vld [vmem:[%s21327_s24 + $0xe64] ss:$100 sps:$4 sm:$0xff]   ;;  %v17318_v27 = vld [vmem:[%s21327_s24 + $0xe6c] ss:$100 sps:$4 sm:$0xff]  }
 0x540   : > { %6694 = vmatprep.subr.bf16.mxu1 %v17234_v28  ;;  %v17313_v28 = vld [vmem:[%s21327_s24 + $0xe60] ss:$100 sps:$4 sm:$0xff]  }
 0x542   : > { %6613 = vmatpush1.bf16.msra.mxu0 %v17229_v38  ;;  %v17316_v38 = vld [vmem:[%s21327_s24 + $0xe68] ss:$100 sps:$4 sm:$0xff]  }
 0x543   : > { %6695 = vmatpush1.bf16.msra.mxu1 %v17232_v39  ;;  %6614 = vmatprep.subr.bf16.mxu0 %v17237_v40  ;;  %v17321_v39 = vld [vmem:[%s21327_s24 + $0xf2c] ss:$100 sps:$4 sm:$0xff]   ;;  %v17324_v40 = vld [vmem:[%s21327_s24 + $0xf34] ss:$100 sps:$4 sm:$0xff]  }
 0x544   : > { %6696 = vmatprep.subr.bf16.mxu1 %v17240_v30  ;;  %v17319_v30 = vld [vmem:[%s21327_s24 + $0xf28] ss:$100 sps:$4 sm:$0xff]  }
 0x546   : > { %6615 = vmatpush1.bf16.msra.mxu0 %v17235_v32  ;;  %v17322_v32 = vld [vmem:[%s21327_s24 + $0xf30] ss:$100 sps:$4 sm:$0xff]  }
 0x547   : > { %6697 = vmatpush1.bf16.msra.mxu1 %v17238_v33  ;;  %6616 = vmatprep.subr.bf16.mxu0 %v17243_v34  ;;  %v17327_v33 = vld [vmem:[%s21327_s24 + $0xff4] ss:$100 sps:$4 sm:$0xff]   ;;  %v17330_v34 = vld [vmem:[%s21327_s24 + $0xffc] ss:$100 sps:$4 sm:$0xff]  }
 0x548   : > { %6698 = vmatprep.subr.bf16.mxu1 %v17246_v35  ;;  %v17325_v35 = vld [vmem:[%s21327_s24 + $0xff0] ss:$100 sps:$4 sm:$0xff]  }
 0x54a   : > { %6617 = vmatpush1.bf16.msra.mxu0 %v17241_v36  ;;  %v17328_v36 = vld [vmem:[%s21327_s24 + $0xff8] ss:$100 sps:$4 sm:$0xff]  }
 0x54b   : > { %6699 = vmatpush1.bf16.msra.mxu1 %v17244_v41  ;;  %6618 = vmatprep.subr.bf16.mxu0 %v17249_v24  ;;  %v17333_v41 = vld [vmem:[%s21327_s24 + $0x10bc] ss:$100 sps:$4 sm:$0xff]   ;;  %v17336_v24 = vld [vmem:[%s21327_s24 + $0x10c4] ss:$100 sps:$4 sm:$0xff]  }
 0x54c   : > { %6700 = vmatprep.subr.bf16.mxu1 %v17252_v43  ;;  %v17331_v43 = vld [vmem:[%s21327_s24 + $0x10b8] ss:$100 sps:$4 sm:$0xff]  }
 0x54e   : > { %6619 = vmatpush1.bf16.msra.mxu0 %v17247_v44  ;;  %v17334_v44 = vld [vmem:[%s21327_s24 + $0x10c0] ss:$100 sps:$4 sm:$0xff]  }
 0x54f   : > { %6701 = vmatpush1.bf16.msra.mxu1 %v17250_v45  ;;  %6620 = vmatprep.subr.bf16.mxu0 %v17255_v46  ;;  %v17339_v45 = vld [vmem:[%s21327_s24 + $0x1184] ss:$100 sps:$4 sm:$0xff]  }
 0x550   : > { %6702 = vmatprep.subr.bf16.mxu1 %v17258_v47  ;;  %v17342_v47 = vld [vmem:[%s21327_s24 + $0x118c] ss:$100 sps:$4 sm:$0xff]  }
 0x552   : > { %6621 = vmatpush1.bf16.msra.mxu0 %v17253_v48 }
 0x553   : > { %6703 = vmatpush1.bf16.msra.mxu1 %v17256_v49  ;;  %6622 = vmatprep.subr.bf16.mxu0 %v17261_v50 }
 0x554   : > { %6704 = vmatprep.subr.bf16.mxu1 %v17264_v51 }
 0x556   : > { %6623 = vmatpush1.bf16.msra.mxu0 %v17259_v52  ;;  %v17337_v52 = vld [vmem:[%s21327_s24 + $0x1180] ss:$100 sps:$4 sm:$0xff]  }
 0x557   : > { %6705 = vmatpush1.bf16.msra.mxu1 %v17262_v53  ;;  %6624 = vmatprep.subr.bf16.mxu0 %v17267_v54  ;;  %v17340_v53 = vld [vmem:[%s21327_s24 + $0x1188] ss:$100 sps:$4 sm:$0xff]  }
 0x558   : > { %6706 = vmatprep.subr.bf16.mxu1 %v17270_v55 }
 0x55a   : > { %6625 = vmatpush1.bf16.msra.mxu0 %v17265_v56  ;;  %v17345_v56 = vld [vmem:[%s21327_s24 + $0x124c] ss:$100 sps:$4 sm:$0xff]  }
 0x55b   : > { %6707 = vmatpush1.bf16.msra.mxu1 %v17268_v57  ;;  %6626 = vmatprep.subr.bf16.mxu0 %v17273_v58  ;;  %v17348_v58 = vld [vmem:[%s21327_s24 + $0x1254] ss:$100 sps:$4 sm:$0xff]  }
 0x55c   : > { %6708 = vmatprep.subr.bf16.mxu1 %v17276_v59  ;;  %v17343_v59 = vld [vmem:[%s21327_s24 + $0x1248] ss:$100 sps:$4 sm:$0xff]  }
 0x55e   : > { %6627 = vmatpush1.bf16.msra.mxu0 %v17271_v60  ;;  %v17346_v60 = vld [vmem:[%s21327_s24 + $0x1250] ss:$100 sps:$4 sm:$0xff]  }
 0x55f   : > { %6709 = vmatpush1.bf16.msra.mxu1 %v17274_v61  ;;  %6628 = vmatprep.subr.bf16.mxu0 %v17279_v62  ;;  %v17351_v61 = vld [vmem:[%s21327_s24 + $0x1314] ss:$100 sps:$4 sm:$0xff]   ;;  %v17354_v62 = vld [vmem:[%s21327_s24 + $0x131c] ss:$100 sps:$4 sm:$0xff]  }
 0x560   : > { %6710 = vmatprep.subr.bf16.mxu1 %v17282_v63  ;;  %v17349_v63 = vld [vmem:[%s21327_s24 + $0x1310] ss:$100 sps:$4 sm:$0xff]  }
 0x562   : > { %6629 = vmatpush1.bf16.msra.mxu0 %v17277_v1  ;;  %v17352_v1 = vld [vmem:[%s21327_s24 + $0x1318] ss:$100 sps:$4 sm:$0xff]  }
 0x563   : > { %6711 = vmatpush1.bf16.msra.mxu1 %v17280_v2  ;;  %6630 = vmatprep.subr.bf16.mxu0 %v17285_v3  ;;  %v17357_v2 = vld [vmem:[%s21327_s24 + $0x13dc] ss:$100 sps:$4 sm:$0xff]   ;;  %v17360_v3 = vld [vmem:[%s21327_s24 + $0x13e4] ss:$100 sps:$4 sm:$0xff]  }
 0x564   : > { %6712 = vmatprep.subr.bf16.mxu1 %v17288_v4  ;;  %v17355_v4 = vld [vmem:[%s21327_s24 + $0x13d8] ss:$100 sps:$4 sm:$0xff]  }
 0x566   : > { %6631 = vmatpush1.bf16.msra.mxu0 %v17283_v5  ;;  %v17358_v5 = vld [vmem:[%s21327_s24 + $0x13e0] ss:$100 sps:$4 sm:$0xff]  }
 0x567   : > { %6713 = vmatpush1.bf16.msra.mxu1 %v17286_v6  ;;  %6632 = vmatprep.subr.bf16.mxu0 %v17291_v7  ;;  %v17363_v6 = vld [vmem:[%s21327_s24 + $0x14a4] ss:$100 sps:$4 sm:$0xff]   ;;  %v17366_v7 = vld [vmem:[%s21327_s24 + $0x14ac] ss:$100 sps:$4 sm:$0xff]  }
 0x568   : > { %6714 = vmatprep.subr.bf16.mxu1 %v17294_v8  ;;  %v17361_v8 = vld [vmem:[%s21327_s24 + $0x14a0] ss:$100 sps:$4 sm:$0xff]  }
 0x56a   : > { %6633 = vmatpush1.bf16.msra.mxu0 %v17289_v9  ;;  %v17364_v9 = vld [vmem:[%s21327_s24 + $0x14a8] ss:$100 sps:$4 sm:$0xff]  }
 0x56b   : > { %6715 = vmatpush1.bf16.msra.mxu1 %v17292_v10  ;;  %6634 = vmatprep.subr.bf16.mxu0 %v17297_v11  ;;  %v17369_v10 = vld [vmem:[%s21327_s24 + $0x156c] ss:$100 sps:$4 sm:$0xff]   ;;  %v17372_v11 = vld [vmem:[%s21327_s24 + $0x1574] ss:$100 sps:$4 sm:$0xff]  }
 0x56c   : > { %6716 = vmatprep.subr.bf16.mxu1 %v17300_v12  ;;  %v17367_v12 = vld [vmem:[%s21327_s24 + $0x1568] ss:$100 sps:$4 sm:$0xff]  }
 0x56e   : > { %6635 = vmatpush1.bf16.msra.mxu0 %v17295_v13  ;;  %v17370_v13 = vld [vmem:[%s21327_s24 + $0x1570] ss:$100 sps:$4 sm:$0xff]  }
 0x56f   : > { %6717 = vmatpush1.bf16.msra.mxu1 %v17298_v14  ;;  %6645 = vmatprep.subr.bf16.mxu0 %v17303_v15  ;;  %v17375_v14 = vld [vmem:[%s21327_s24 + $0x1634] ss:$100 sps:$4 sm:$0xff]   ;;  %v17378_v15 = vld [vmem:[%s21327_s24 + $0x163c] ss:$100 sps:$4 sm:$0xff]  }
 0x570   : > { %6727 = vmatprep.subr.bf16.mxu1 %v17306_v16  ;;  %v17373_v16 = vld [vmem:[%s21327_s24 + $0x1630] ss:$100 sps:$4 sm:$0xff]  }
 0x571   : > { %6637 = vmatmul.mubr.bf16.vlgmr.msra.gmra.mrb[24].mxu0 %v17860_v29 }
 0x572   : > { %6719 = vmatmul.mubr.bf16.vlgmr.msra.gmra.mrb[24].mxu1 %v17860_v29  ;;  %6646 = vmatpush1.bf16.msra.mxu0 %v17301_v17  ;;  %v17376_v17 = vld [vmem:[%s21327_s24 + $0x1638] ss:$100 sps:$4 sm:$0xff]  }
 0x573   : > { %14624 = vmatprep.mubr.msk.bf16.mxu0 %vm5705_vm3, %v17878_v31  ;;  %6728 = vmatpush1.bf16.msra.mxu1 %v17304_v18  ;;  %v17381_v18 = vld [vmem:[%s21327_s24 + $0x16fc] ss:$100 sps:$4 sm:$0xff]  }
 0x574   : > { %14626 = vmatprep.mubr.msk.bf16.mxu1 %vm5705_vm3, %v17878_v31  ;;  %6647 = vmatprep.subr.bf16.mxu0 %v17309_v19  ;;  %v17384_v19 = vld [vmem:[%s21327_s24 + $0x1704] ss:$100 sps:$4 sm:$0xff]  }
 0x575   : > { %6729 = vmatprep.subr.bf16.mxu1 %v17312_v20  ;;  %v17379_v20 = vld [vmem:[%s21327_s24 + $0x16f8] ss:$100 sps:$4 sm:$0xff]  }
 0x576   : > { %6648 = vmatpush1.bf16.msra.mxu0 %v17307_v22  ;;  %v17382_v22 = vld [vmem:[%s21327_s24 + $0x1700] ss:$100 sps:$4 sm:$0xff]  }
 0x577   : > { %6730 = vmatpush1.bf16.msra.mxu1 %v17310_v23  ;;  %6649 = vmatprep.subr.bf16.mxu0 %v17315_v26  ;;  %v17387_v23 = vld [vmem:[%s21327_s24 + $0x17c4] ss:$100 sps:$4 sm:$0xff]   ;;  %v17390_v26 = vld [vmem:[%s21327_s24 + $0x17cc] ss:$100 sps:$4 sm:$0xff]  }
 0x578   : > { %6731 = vmatprep.subr.bf16.mxu1 %v17318_v27  ;;  %v1733_v27 = vld [vmem:[%s21327_s24 + $0x1888] sm:$0xff] }
 0x57a   : > { %6650 = vmatpush1.bf16.msra.mxu0 %v17313_v28  ;;  %v1734_v28 = vld [vmem:[%s21327_s24 + $0x1890] sm:$0xff] }
 0x57b   : > { %6732 = vmatpush1.bf16.msra.mxu1 %v17316_v38  ;;  %6651 = vmatprep.subr.bf16.mxu0 %v17321_v39  ;;  %v17385_v38 = vld [vmem:[%s21327_s24 + $0x17c0] ss:$100 sps:$4 sm:$0xff]   ;;  %v17388_v39 = vld [vmem:[%s21327_s24 + $0x17c8] ss:$100 sps:$4 sm:$0xff]  }
 0x57c   : > { %6733 = vmatprep.subr.bf16.mxu1 %v17324_v40  ;;  %v14599_v40 = vcombine.high %v1733_v27, %v1733_v27 }
 0x57e   : > { %6652 = vmatpush1.bf16.msra.mxu0 %v17319_v30  ;;  %v14598_v30 = vcombine.low %v1733_v27, %v1733_v27 }
 0x57f   : > { %6734 = vmatpush1.bf16.msra.mxu1 %v17322_v32  ;;  %6653 = vmatprep.subr.bf16.mxu0 %v17327_v33  ;;  %v14601_v32 = vcombine.high %v1734_v28, %v1734_v28  ;;  %v14600_v33 = vcombine.low %v1734_v28, %v1734_v28 }
 0x580   : > { %6735 = vmatprep.subr.bf16.mxu1 %v17330_v34  ;;  %v5770_v34 = vsel %vm673_vm0, %v14598_v30, 0 }
 0x582   : > { %6654 = vmatpush1.bf16.msra.mxu0 %v17325_v35  ;;  %v17395_v35 = vld [vmem:[%s21327_s24 + $0x6a0] ss:$100 sps:$4 sm:$0xff]  }
 0x583   : > { %6736 = vmatpush1.bf16.msra.mxu1 %v17328_v36  ;;  %6655 = vmatprep.subr.bf16.mxu0 %v17333_v41  ;;  %v5776_v36 = vsel %vm673_vm0, %v14600_v33, 0  ;;  %v17396_v41 = vld [vmem:[%s21327_s24 + $0x1320] ss:$100 sps:$4 sm:$0xff]  }
 0x584   : > { %v6351_v46 = vpop.f32.mrb[16].mxu0  ;;  %6737 = vmatprep.subr.bf16.mxu1 %v17336_v24  ;;  %v17397_v24 = vld [vmem:[%s21327_s24 + $0x60] ss:$100 sps:$4 sm:$0xff]  }
 0x585   : > { %v6433_v48 = vpop.f32.mrb[16].mxu1  ;;  %7651 = vrot.lane.b32.xlu1 %v6351_v46, %s17452_s27  ;;  %v6353_v49 = vpop.f32.mrb[17].mxu0  ;;  %s17461_s27 = smov 26  }
 0x586   : > { %v6435_v50 = vpop.f32.mrb[17].mxu1  ;;  %6656 = vmatpush1.bf16.msra.mxu0 %v17331_v43  ;;  %7741 = vrot.lane.b32.xlu0 %v6353_v49, %s17453_s4  ;;  %v6355_v51 = vpop.f32.mrb[18].mxu0  ;;  %v17398_v43 = vld [vmem:[%s21327_s24 + $0xce0] ss:$100 sps:$4 sm:$0xff]  }
 0x587   : > { %v6437_v54 = vpop.f32.mrb[18].mxu1  ;;  %6738 = vmatpush1.bf16.msra.mxu1 %v17334_v44  ;;  %v6356_v55 = vpop.f32.mrb[19].mxu0  ;;  %6657 = vmatprep.subr.bf16.mxu0 %v17339_v45  ;;  %v17399_v44 = vld [vmem:[%s21327_s24 + $0x768] ss:$100 sps:$4 sm:$0xff]   ;;  %v17408_v51 = vld [vmem:[%s21327_s24 + $0x1578] ss:$100 sps:$4 sm:$0xff]  }
 0x588   : > { %v6438_v57 = vpop.f32.mrb[19].mxu1  ;;  %6739 = vmatprep.subr.bf16.mxu1 %v17342_v47  ;;  %v17400_v45 = vld [vmem:[%s21327_s24 + $0x13e8] ss:$100 sps:$4 sm:$0xff]   ;;  %v17411_v54 = vld [vmem:[%s21327_s24 + $0x9c0] ss:$100 sps:$4 sm:$0xff]  }
 0x589   : > { %7739 = vrot.lane.b32.xlu1 %v6351_v46, %s17453_s4  ;;  %v17401_v46 = vld [vmem:[%s21327_s24 + $0x128] ss:$100 sps:$4 sm:$0xff]   ;;  %v17412_v55 = vld [vmem:[%s21327_s24 + $0x1640] ss:$100 sps:$4 sm:$0xff]   ;;  %s17459_s4 = smov 80  }
 0x58a   : > { %6658 = vmatpush1.bf16.msra.mxu0 %v17337_v52  ;;  %7830 = vrot.lane.b32.xlu0 %v6433_v48, %s17454_s29  ;;  %v17402_v47 = vld [vmem:[%s21327_s24 + $0xda8] ss:$100 sps:$4 sm:$0xff]   ;;  %v17409_v52 = vld [vmem:[%s21327_s24 + $0x2b8] ss:$100 sps:$4 sm:$0xff]   ;;  %v17414_v57 = vld [vmem:[%s21327_s24 + $0x1000] ss:$100 sps:$4 sm:$0xff]  }
 0x58b   : > { %6740 = vmatpush1.bf16.msra.mxu1 %v17340_v53  ;;  %6659 = vmatprep.subr.bf16.mxu0 %v17345_v56  ;;  %v17410_v53 = vld [vmem:[%s21327_s24 + $0xf38] ss:$100 sps:$4 sm:$0xff]   ;;  %v17413_v56 = vld [vmem:[%s21327_s24 + $0x380] ss:$100 sps:$4 sm:$0xff]  }
 0x58c   : > { %6741 = vmatprep.subr.bf16.mxu1 %v17348_v58  ;;  %v17415_v58 = vld [vmem:[%s21327_s24 + $0xa88] ss:$100 sps:$4 sm:$0xff]  }
 0x58d   : > { %7828 = vrot.lane.b32.xlu1 %v6353_v49, %s17454_s29  ;;  %v17404_v49 = vld [vmem:[%s21327_s24 + $0x14b0] ss:$100 sps:$4 sm:$0xff]   ;;  %s17466_s29 = smov 96  }
 0x58e   : > { %6660 = vmatpush1.bf16.msra.mxu0 %v17343_v59  ;;  %7919 = vrot.lane.b32.xlu0 %v6435_v50, %s17455_s1  ;;  %v17416_v59 = vld [vmem:[%s21327_s24 + $0x1708] ss:$100 sps:$4 sm:$0xff]  }
 0x58f   : > { %6742 = vmatpush1.bf16.msra.mxu1 %v17346_v60  ;;  %6661 = vmatprep.subr.bf16.mxu0 %v17351_v61  ;;  %v17417_v60 = vld [vmem:[%s21327_s24 + $0x448] ss:$100 sps:$4 sm:$0xff]  }
 0x590   : > { %6743 = vmatprep.subr.bf16.mxu1 %v17354_v62  ;;  %v17418_v61 = vld [vmem:[%s21327_s24 + $0x10c8] ss:$100 sps:$4 sm:$0xff]   ;;  %v17419_v62 = vld [vmem:[%s21327_s24 + $0xb50] ss:$100 sps:$4 sm:$0xff]  }
 0x591   : > { %7917 = vrot.lane.b32.xlu1 %v6433_v48, %s17455_s1  ;;  %s17456_s1 = smov 33   ;;  %v17403_v48 = vld [vmem:[%s21327_s24 + $0x830] ss:$100 sps:$4 sm:$0xff]  }
 0x592   : > { %6662 = vmatpush1.bf16.msra.mxu0 %v17349_v63  ;;  %v6854_v63 = vpop.permute.xlu1 %6853 }
 0x593   : > { %6744 = vmatpush1.bf16.msra.mxu1 %v17352_v1  ;;  %6663 = vmatprep.subr.bf16.mxu0 %v17357_v2  ;;  %v17420_v1 = vld [vmem:[%s21327_s24 + $0x17d0] ss:$100 sps:$4 sm:$0xff]  }
 0x594   : > { %6745 = vmatprep.subr.bf16.mxu1 %v17360_v3  ;;  %v17421_v2 = vld [vmem:[%s21327_s24 + $0x510] ss:$100 sps:$4 sm:$0xff]  }
 0x595   : > { %8006 = vrot.lane.b32.xlu1 %v6435_v50, %s17456_s1  ;;  %v17406_v50 = vld [vmem:[%s21327_s24 + $0xe70] ss:$100 sps:$4 sm:$0xff]  }
 0x596   : > { %6664 = vmatpush1.bf16.msra.mxu0 %v17355_v4  ;;  %v17422_v3 = vld [vmem:[%s21327_s24 + $0x1190] ss:$100 sps:$4 sm:$0xff]   ;;  %v17423_v4 = vld [vmem:[%s21327_s24 + $0xc18] ss:$100 sps:$4 sm:$0xff]  }
 0x597   : > { %6746 = vmatpush1.bf16.msra.mxu1 %v17358_v5  ;;  %6665 = vmatprep.subr.bf16.mxu0 %v17363_v6  ;;  %v17424_v5 = vld [vmem:[%s21327_s24 + $0x1898] ss:$0 sps:$4 sm:$0xff]   ;;  %v6856_v6 = vpop.permute.xlu1 %6855 }
 0x598   : > { %6747 = vmatprep.subr.bf16.mxu1 %v17366_v7  ;;  %v17425_v7 = vld [vmem:[%s21327_s24 + $0x5d8] ss:$100 sps:$4 sm:$0xff]  }
 0x59a   : > { %6666 = vmatpush1.bf16.msra.mxu0 %v17361_v8  ;;  %v17426_v8 = vld [vmem:[%s21327_s24 + $0x1258] ss:$100 sps:$4 sm:$0xff]  }
 0x59b   : > { %6748 = vmatpush1.bf16.msra.mxu1 %v17364_v9  ;;  %6667 = vmatprep.subr.bf16.mxu0 %v17369_v10  ;;  %v7023_v9 = vpop.permute.xlu1 %7022  ;;  %v6858_v10 = vsel %vm6857_vm4, %v6854_v63, %v6856_v6  ;;  %vm8281_vm4 = vcmask 654336  }
 0x59c   : > { %6749 = vmatprep.subr.bf16.mxu1 %v17372_v11 }
 0x59e   : > { %6668 = vmatpush1.bf16.msra.mxu0 %v17367_v12  ;;  %v14628_v12 = vld [vmem:[%s21330_s23 + $0x8] sm:$0xff] }
 0x59f   : > { %6750 = vmatpush1.bf16.msra.mxu1 %v17370_v13  ;;  %6669 = vmatprep.subr.bf16.mxu0 %v17375_v14  ;;  %v7110_v11 = vpop.permute.xlu1 %7109 }
 0x5a0   : > { %6751 = vmatprep.subr.bf16.mxu1 %v17378_v15  ;;  %v14635_v15 = vld [vmem:[%s21330_s23 + $0x10] sm:$0xff] }
 0x5a2   : > { %6670 = vmatpush1.bf16.msra.mxu0 %v17373_v16 }
 0x5a3   : > { %6752 = vmatpush1.bf16.msra.mxu1 %v17376_v17  ;;  %6671 = vmatprep.subr.bf16.mxu0 %v17381_v18  ;;  %v7112_v13 = vpop.permute.xlu1 %7111 }
 0x5a4   : > { %6753 = vmatprep.subr.bf16.mxu1 %v17384_v19  ;;  %v7114_v16 = vsel %vm7113_vm7, %v7110_v11, %v7112_v13  ;;  %v14639_v19 = vld [vmem:[%s21330_s23 + $0x18] sm:$0xff]  ;;  %vm8462_vm7 = vcmask 211968  }
 0x5a6   : > { %6672 = vmatpush1.bf16.msra.mxu0 %v17379_v20 }
 0x5a7   : > { %6754 = vmatpush1.bf16.msra.mxu1 %v17382_v22  ;;  %6673 = vmatprep.subr.bf16.mxu0 %v17387_v23  ;;  %v14643_v23 = vld [vmem:[%s21330_s23 + $0x20] sm:$0xff] }
 0x5a8   : > { %6755 = vmatprep.subr.bf16.mxu1 %v17390_v26 }
 0x5aa   : > { %6674 = vmatpush1.bf16.msra.mxu0 %v17385_v38  ;;  %v14647_v38 = vld [vmem:[%s21330_s23 + $0x28] sm:$0xff] }
 0x5ab   : > { %6756 = vmatpush1.bf16.msra.mxu1 %v17388_v39  ;;  %14623 = vmatprep.subr.msk.bf16.mxu0 %vm673_vm0, %v14599_v40 }
 0x5ac   : > { %14625 = vmatprep.subr.msk.bf16.mxu1 %vm673_vm0, %v14601_v32 }
 0x5ae   : > { %6676 = vmatpush1.bf16.msra.mxu0 %v5770_v34 }
 0x5af   : > { %6758 = vmatpush1.bf16.msra.mxu1 %v5776_v36  ;;  %14941 = vmatprep.subr.bf16.mxu0 %v17395_v35 }
 0x5b0   : > { %14963 = vmatprep.subr.bf16.mxu1 %v17396_v41 }
 0x5b1   : > { %6678 = vmatmul.mubr.bf16.vlgmr.msra.gmra.mrb[24].mxu0 %v18068_v42 }
 0x5b2   : > { %6760 = vmatmul.mubr.bf16.vlgmr.msra.gmra.mrb[24].mxu1 %v18068_v42  ;;  %14942 = vmatpush3.bf16.msra.mxu0 %v17397_v24  ;;  %v14651_v24 = vld [vmem:[%s21330_s23 + $0x30] sm:$0xff] }
 0x5b3   : > { %6800 = vmatprep.mubr.bf16.mxu0 %v17862_v37  ;;  %14964 = vmatpush3.bf16.msra.mxu1 %v17398_v43  ;;  %v17405_v37 = vld [vmem:[%s21327_s24 + $0x1f0] ss:$100 sps:$4 sm:$0xff]  }
 0x5b4   : > { %14627 = vmatprep.mubr.msk.bf16.mxu1 %vm5705_vm3, %v17878_v31  ;;  %14943 = vmatprep.subr.bf16.mxu0 %v17399_v44  ;;  %v17407_v31 = vld [vmem:[%s21327_s24 + $0x8f8] ss:$100 sps:$4 sm:$0xff]   ;;  %vm8192_vm3 = vcmask 875520  }
 0x5b5   : > { %14965 = vmatprep.subr.bf16.mxu1 %v17400_v45 }
 0x5b6   : > { %14944 = vmatpush3.bf16.msra.mxu0 %v17401_v46 }
 0x5b7   : > { %14966 = vmatpush3.bf16.msra.mxu1 %v17402_v47  ;;  %14945 = vmatprep.subr.bf16.mxu0 %v17403_v48 }
 0x5b8   : > { %14967 = vmatprep.subr.bf16.mxu1 %v17404_v49  ;;  %v14655_v49 = vld [vmem:[%s21330_s23 + $0x38] sm:$0xff] }
 0x5ba   : > { %14946 = vmatpush3.bf16.msra.mxu0 %v17405_v37 }
 0x5bb   : > { %14968 = vmatpush3.bf16.msra.mxu1 %v17406_v50  ;;  %14947 = vmatprep.subr.bf16.mxu0 %v17407_v31 }
 0x5bc   : > { %14969 = vmatprep.subr.bf16.mxu1 %v17408_v51 }
 0x5be   : > { %14948 = vmatpush3.bf16.msra.mxu0 %v17409_v52 }
 0x5bf   : > { %14970 = vmatpush3.bf16.msra.mxu1 %v17410_v53  ;;  %14949 = vmatprep.subr.bf16.mxu0 %v17411_v54  ;;  %v14659_v53 = vld [vmem:[%s21330_s23 + $0x40] sm:$0xff] }
 0x5c0   : > { %14971 = vmatprep.subr.bf16.mxu1 %v17412_v55 }
 0x5c2   : > { %14950 = vmatpush3.bf16.msra.mxu0 %v17413_v56 }
 0x5c3   : > { %14972 = vmatpush3.bf16.msra.mxu1 %v17414_v57  ;;  %14951 = vmatprep.subr.bf16.mxu0 %v17415_v58  ;;  %v14663_v57 = vld [vmem:[%s21330_s23 + $0x48] sm:$0xff] }
 0x5c4   : > { %14973 = vmatprep.subr.bf16.mxu1 %v17416_v59 }
 0x5c6   : > { %14952 = vmatpush3.bf16.msra.mxu0 %v17417_v60 }
 0x5c7   : > { %14974 = vmatpush3.bf16.msra.mxu1 %v17418_v61  ;;  %14953 = vmatprep.subr.bf16.mxu0 %v17419_v62  ;;  %v14667_v61 = vld [vmem:[%s21330_s23 + $0x50] sm:$0xff] }
 0x5c8   : > { %14975 = vmatprep.subr.bf16.mxu1 %v17420_v1 }
 0x5ca   : > { %14954 = vmatpush3.bf16.msra.mxu0 %v17421_v2  ;;  %v14671_v2 = vld [vmem:[%s21330_s23 + $0x58] sm:$0xff] }
 0x5cb   : > { %14976 = vmatpush3.bf16.msra.mxu1 %v17422_v3  ;;  %14955 = vmatprep.subr.bf16.mxu0 %v17423_v4  ;;  %v14675_v4 = vld [vmem:[%s21330_s23 + $0x60] sm:$0xff] }
 0x5cc   : > { %16015 = vmatprep.subr.msk.bf16.mxu1 %vm673_vm0, %v17424_v5 }
 0x5ce   : > { %14956 = vmatpush3.bf16.msra.mxu0 %v17425_v7  ;;  %v14679_v7 = vld [vmem:[%s21330_s23 + $0x68] sm:$0xff] }
 0x5cf   : > { %14978 = vmatpush3.bf16.msra.mxu1 %v17426_v8  ;;  %14629 = vmatprep.subr.msk.mxu0 %vm673_vm0, %v6856_v6 }
 0x5d1   : > { %6801 = vmatmul.mubr.bf16.vlgmr.msra.gmra.mrb[28].mxu0 %v17860_v29  ;;  %v6848_v29 = vld [vmem:[%s21330_s23] sm:$0xff] }
 0x5d2   : > { %6841 = vmatmul.mubr.bf16.vlgmr.msra.gmra.mrb[28].mxu1 %v18068_v42  ;;  %14630 = vmatpush1.msk.msra.mxu0 %vm673_vm0, %v6858_v10  ;;  %v7021_v42 = vpop.permute.xlu0 %7020 }
 0x5d3   : > { %14632 = vmatprep.subr.msk.mxu0 %vm673_vm0, %v18736_v25  ;;  %6931 = vmatprep.mubr.f32.mxu0 %v17443_v0  ;;  %v7204_v25 = vpop.permute.xlu1 %7203  ;;  %v7025_v14 = vsel %vm7024_vm6, %v7021_v42, %v7023_v9  ;;  %v14683_v42 = vld [vmem:[%s21330_s23 + $0x70] sm:$0xff]  ;;  %vm8370_vm6 = vcmask 433152  }
 0x5d6   : > { %v7291_v26 = vpop.permute.xlu0 %7290 }
 0x5d9   : > { %14631 = vmatmul.mubr.msk.f32.vlgmr.msra.gmra.mrb[2].mxu0 %vm6859_vm5, %v14628_v12 }
 0x5da   : > { %14633 = vmatpush1.msk.msra.mxu0 %vm673_vm0, %v18730_v21  ;;  %7010 = vmatprep.mubr.f32.mxu0 %v17443_v0  ;;  %v7202_v21 = vpop.permute.xlu1 %7201  ;;  %v7380_v39 = vpop.permute.xlu0 %7379 }
 0x5db   : > { %14636 = vmatprep.subr.msk.mxu0 %vm673_vm0, %v7023_v9  ;;  %v7206_v17 = vsel %vm669_vm1, %v7202_v21, %v7204_v25 }
 0x5de   : > { %v7200_v18 = vpop.permute.xlu1 %7199  ;;  %v7469_v32 = vpop.permute.xlu0 %7468 }
 0x5df   : > { %v7205_v20 = vsel %vm669_vm1, %v7200_v18, %v7202_v21  ;;  %vm8010_vm1 = vcmask 269312  }
 0x5e1   : > { %14634 = vmatmul.mubr.msk.f32.vlgmr.msra.gmra.mrb[2].mxu0 %vm6859_vm5, %v6848_v29 }
 0x5e2   : > { %14637 = vmatpush1.msk.msra.mxu0 %vm673_vm0, %v7025_v14  ;;  %7097 = vmatprep.mubr.f32.mxu0 %v17443_v0  ;;  %v7293_v22 = vpop.permute.xlu1 %7292  ;;  %v7558_v47 = vpop.permute.xlu0 %7557 }
 0x5e3   : > { %14640 = vmatprep.subr.msk.mxu0 %vm673_vm0, %v7112_v13  ;;  %v7295_v27 = vsel %vm7294_vm8, %v7291_v26, %v7293_v22  ;;  %vm8552_vm8 = vcmask 1039360  }
 0x5e6   : > { %v7382_v28 = vpop.permute.xlu1 %7381  ;;  %v7650_v50 = vpop.permute.xlu0 %7649 }
 0x5e7   : > { %v7384_v40 = vsel %vm7383_vm9, %v7380_v39, %v7382_v28  ;;  %vm8634_vm9 = vcmask 220160  }
 0x5e9   : > { %14638 = vmatmul.mubr.msk.f32.vlgmr.msra.gmra.mrb[2].mxu0 %vm6859_vm5, %v14635_v15 }
 0x5ea   : > { %14641 = vmatpush1.msk.msra.mxu0 %vm673_vm0, %v7114_v16  ;;  %7186 = vmatprep.mubr.f32.mxu0 %v17443_v0  ;;  %v7471_v30 = vpop.permute.xlu1 %7470  ;;  %v7648_v52 = vpop.permute.xlu0 %7647 }
 0x5eb   : > { %14644 = vmatprep.subr.msk.mxu0 %vm673_vm0, %v7206_v17  ;;  %v7473_v46 = vsel %vm7472_vm10, %v7469_v32, %v7471_v30  ;;  %v7654_v54 = vsel %vm7653_vm12, %v7648_v52, %v7650_v50 }
 0x5ee   : > { %v7560_v48 = vpop.permute.xlu1 %7559 }
 0x5ef   : > { %v7562_v31 = vsel %vm7561_vm11, %v7558_v47, %v7560_v48  ;;  %vm9025_vm11 = vcmask 64512  }
 0x5f1   : > { %14642 = vmatmul.mubr.msk.f32.vlgmr.msra.gmra.mrb[2].mxu0 %vm6859_vm5, %v14639_v19 }
 0x5f2   : > { %14645 = vmatpush1.msk.msra.mxu0 %vm673_vm0, %v7205_v20  ;;  %7278 = vmatprep.mubr.f32.mxu0 %v17443_v0 }
 0x5f3   : > { %14648 = vmatprep.subr.msk.mxu0 %vm673_vm0, %v7293_v22  ;;  %v14687_v22 = vld [vmem:[%s21330_s23 + $0x78] sm:$0xff] }
 0x5f7   : > { %v7652_v37 = vpop.permute.xlu1 %7651 }
 0x5f8   : > { %v7655_v51 = vsel %vm7653_vm12, %v7650_v50, %v7652_v37  ;;  %v7742_v55 = vpop.permute.xlu0 %7741  ;;  %v14695_v37 = vld [vmem:[%s21330_s23 + $0x88] sm:$0xff]  ;;  %vm10782_vm12 = vcmask 261120  }
 0x5f9   : > { %14646 = vmatmul.mubr.msk.f32.vlgmr.msra.gmra.mrb[2].mxu0 %vm6859_vm5, %v14643_v23 }
 0x5fa   : > { %14649 = vmatpush1.msk.msra.mxu0 %vm673_vm0, %v7295_v27  ;;  %7367 = vmatprep.mubr.f32.mxu0 %v17443_v0 }
 0x5fb   : > { %14652 = vmatprep.subr.msk.mxu0 %vm673_vm0, %v7382_v28  ;;  %v7740_v56 = vpop.permute.xlu1 %7739 }
 0x5fc   : > { %v7744_v58 = vsel %vm7743_vm13, %v7740_v56, %v7742_v55  ;;  %v7831_v59 = vpop.permute.xlu0 %7830  ;;  %vm10943_vm13 = vcmask 130048  }
 0x5ff   : > { %v7829_v60 = vpop.permute.xlu1 %7828 }
 0x600   : > { %v7833_v62 = vsel %vm7832_vm14, %v7829_v60, %v7831_v59  ;;  %v7920_v63 = vpop.permute.xlu0 %7919  ;;  %vm12497_vm14 = vcmask 15360  }
 0x601   : > { %14650 = vmatmul.mubr.msk.f32.vlgmr.msra.gmra.mrb[2].mxu0 %vm6859_vm5, %v14647_v38 }
 0x602   : > { %14653 = vmatpush1.msk.msra.mxu0 %vm673_vm0, %v7384_v40  ;;  %7456 = vmatprep.mubr.f32.mxu0 %v17443_v0 }
 0x603   : > { %14656 = vmatprep.subr.msk.mxu0 %vm673_vm0, %v7471_v30  ;;  %v7918_v1 = vpop.permute.xlu1 %7917 }
 0x604   : > { %v6515_v33 = vpop.f32.mrb[20].mxu0  ;;  %v7922_v3 = vsel %vm7921_vm15, %v7918_v1, %v7920_v63  ;;  %vm12715_vm15 = vcmask 72704  }
 0x605   : > { %v6597_v34 = vpop.f32.mrb[20].mxu1  ;;  %8008 = vrot.lane.b32.xlu0 %v6515_v33, %s17456_s1  ;;  %v6517_v35 = vpop.f32.mrb[21].mxu0  ;;  %s17458_s1 = smov 107  }
 0x606   : > { %v6599_v36 = vpop.f32.mrb[21].mxu1  ;;  %8098 = vrot.lane.b32.xlu1 %v6517_v35, %s17457_s26  ;;  %v6519_v41 = vpop.f32.mrb[22].mxu0 }
 0x607   : > { %v6601_v43 = vpop.f32.mrb[22].mxu1  ;;  %v6520_v45 = vpop.f32.mrb[23].mxu0 }
 0x608   : > { %v6602_v44 = vpop.f32.mrb[23].mxu1  ;;  %v8007_v5 = vpop.permute.xlu1 %8006  ;;  %v14691_v43 = vld [vmem:[%s21330_s23 + $0x80] sm:$0xff] }
 0x609   : > { %14654 = vmatmul.mubr.msk.f32.vlgmr.msra.gmra.mrb[2].mxu0 %vm6859_vm5, %v14651_v24  ;;  %8100 = vrot.lane.b32.xlu0 %v6597_v34, %s17457_s26 }
 0x60a   : > { %14657 = vmatpush1.msk.msra.mxu0 %vm673_vm0, %v7473_v46  ;;  %8096 = vrot.lane.b32.xlu1 %v6515_v33, %s17457_s26  ;;  %s17471_s26 = smov 83  }
 0x60b   : > { %14660 = vmatprep.subr.msk.mxu0 %vm673_vm0, %v7560_v48  ;;  %7545 = vmatprep.mubr.f32.mxu0 %v17443_v0 }
 0x60d   : > { %8188 = vrot.lane.b32.xlu0 %v6597_v34, %s17458_s1 }
 0x60e   : > { %8190 = vrot.lane.b32.xlu1 %v6599_v36, %s17458_s1  ;;  %s17465_s1 = smov 64  }
 0x611   : > { %14658 = vmatmul.mubr.msk.f32.vlgmr.msra.gmra.mrb[2].mxu0 %vm6859_vm5, %v14655_v49  ;;  %8277 = vrot.lane.b32.xlu0 %v6599_v36, %s17459_s4 }
 0x612   : > { %14661 = vmatpush1.msk.msra.mxu0 %vm673_vm0, %v7562_v31  ;;  %7634 = vmatprep.mubr.f32.mxu0 %v17443_v0 }
 0x613   : > { %14664 = vmatprep.subr.msk.mxu0 %vm673_vm0, %v7655_v51  ;;  %v14699_v51 = vld [vmem:[%s21330_s23 + $0x90] sm:$0xff] }
 0x619   : > { %14662 = vmatmul.mubr.msk.f32.vlgmr.msra.gmra.mrb[2].mxu0 %vm6859_vm5, %v14659_v53 }
 0x61a   : > { %14665 = vmatpush1.msk.msra.mxu0 %vm673_vm0, %v7654_v54  ;;  %7727 = vmatprep.mubr.f32.mxu0 %v17443_v0  ;;  %v14703_v54 = vld [vmem:[%s21330_s23 + $0x98] sm:$0xff] }
 0x61b   : > { %14668 = vmatprep.subr.msk.mxu0 %vm673_vm0, %v7742_v55 }
 0x621   : > { %14666 = vmatmul.mubr.msk.f32.vlgmr.msra.gmra.mrb[2].mxu0 %vm6859_vm5, %v14663_v57 }
 0x622   : > { %14669 = vmatpush1.msk.msra.mxu0 %vm673_vm0, %v7744_v58  ;;  %7816 = vmatprep.mubr.f32.mxu0 %v17443_v0 }
 0x623   : > { %14672 = vmatprep.subr.msk.mxu0 %vm673_vm0, %v7831_v59 }
 0x629   : > { %14670 = vmatmul.mubr.msk.f32.vlgmr.msra.gmra.mrb[2].mxu0 %vm6859_vm5, %v14667_v61 }
 0x62a   : > { %14673 = vmatpush1.msk.msra.mxu0 %vm673_vm0, %v7833_v62  ;;  %7905 = vmatprep.mubr.f32.mxu0 %v17443_v0 }
 0x62b   : > { %14676 = vmatprep.subr.msk.mxu0 %vm673_vm0, %v7920_v63 }
 0x631   : > { %14674 = vmatmul.mubr.msk.f32.vlgmr.msra.gmra.mrb[2].mxu0 %vm6859_vm5, %v14671_v2 }
 0x632   : > { %14677 = vmatpush1.msk.msra.mxu0 %vm673_vm0, %v7922_v3  ;;  %7994 = vmatprep.mubr.f32.mxu0 %v17443_v0 }
 0x639   : > { %14678 = vmatmul.mubr.msk.f32.vlgmr.msra.gmra.mrb[2].mxu0 %vm6859_vm5, %v14675_v4 }
 0x63a   : > { %8083 = vmatprep.mubr.f32.mxu0 %v17443_v0 }
 0x677   : > { %v8009_v6 = vpop.permute.xlu0 %8008 }
 0x678   : > { %v8011_v8 = vsel %vm8010_vm1, %v8007_v5, %v8009_v6  ;;  %14680 = vmatprep.subr.msk.mxu0 %vm673_vm0, %v8009_v6  ;;  %v8099_v9 = vpop.permute.xlu1 %8098  ;;  %vm17478_vm1 = vmmov 0  }
 0x679   : > { %14681 = vmatpush1.msk.msra.mxu0 %vm673_vm0, %v8011_v8 }
 0x67a   : > { %14682 = vmatmul.mubr.msk.f32.vlgmr.msra.gmra.mrb[2].mxu0 %vm6859_vm5, %v14679_v7 }
 0x67b   : > { %v8101_v10 = vpop.permute.xlu0 %8100  ;;  %8176 = vmatprep.mubr.f32.mxu0 %v17443_v0 }
 0x67c   : > { %v8104_v11 = vsel %vm8102_vm2, %v8099_v9, %v8101_v10  ;;  %v8097_v12 = vpop.permute.xlu1 %8096 }
 0x67d   : > { %v8103_v13 = vsel %vm8102_vm2, %v8097_v12, %v8099_v9  ;;  %14684 = vmatprep.subr.msk.mxu0 %vm673_vm0, %v8104_v11  ;;  %v8686_v11 = vld [vmem:[%s21290_s8 + $0x8] sm:$0xff]  ;;  %v8691_v12 = vld [vmem:[%s21290_s8 + $0x30] sm:$0xff]  ;;  %vm13735_vm2 = vcmask 7168  }
 0x67e   : > { %14685 = vmatpush1.msk.msra.mxu0 %vm673_vm0, %v8103_v13  ;;  %v8685_v13 = vld [vmem:[%s21290_s8] sm:$0xff] }
 0x67f   : > { %v8189_v29 = vpop.permute.xlu0 %8188 }
 0x680   : > { %v8191_v25 = vpop.permute.xlu1 %8190 }
 0x681   : > { %v8193_v14 = vsel %vm8192_vm3, %v8189_v29, %v8191_v25  ;;  %14688 = vmatprep.subr.msk.mxu0 %vm673_vm0, %v8191_v25  ;;  %v15571_v29 = vpack.c.bf16 %v8691_v12, %v8686_v11  ;;  %v8696_v25 = vld [vmem:[%s21290_s8 + $0x58] sm:$0xff] }
 0x682   : > { %14686 = vmatmul.mubr.msk.f32.vlgmr.msra.gmra.mrb[2].mxu0 %vm6859_vm5, %v14683_v42  ;;  %v8690_v42 = vld [vmem:[%s21290_s8 + $0x28] sm:$0xff] }
 0x683   : > { %14689 = vmatpush1.msk.msra.mxu0 %vm673_vm0, %v8193_v14  ;;  %8265 = vmatprep.mubr.f32.mxu0 %v17443_v0  ;;  %v8278_v36 = vpop.permute.xlu0 %8277  ;;  %v8701_v14 = vld [vmem:[%s21290_s8 + $0x80] sm:$0xff] }
 0x684   : > { %v6679_v21 = vpop.f32.mrb[24].mxu0  ;;  %15572 = vmatprep.subr.bf16.mxu1 %v15571_v29 }
 0x685   : > { %v6761_v15 = vpop.f32.mrb[24].mxu1  ;;  %8366 = vrot.lane.b32.xlu0 %v6679_v21, %s17460_s22  ;;  %8279 = vrot.lane.b32.xlu1 %v6679_v21, %s17459_s4  ;;  %v6681_v16 = vpop.f32.mrb[25].mxu0  ;;  %s21315_s4 = smov 127   ;;  %v15573_v21 = vpack.c.bf16 %v8690_v42, %v8685_v13  ;;  %v8780_v13 = vld [vmem:[%s21290_s8 + $0x2f8] sm:$0x7] }
 0x686   : > { %v6763_v17 = vpop.f32.mrb[25].mxu1  ;;  %v6683_v18 = vpop.f32.mrb[26].mxu0 }
 0x687   : > { %v6765_v19 = vpop.f32.mrb[26].mxu1  ;;  %v6684_v20 = vpop.f32.mrb[27].mxu0  ;;  %v8706_v18 = vld [vmem:[%s21290_s8 + $0xa8] sm:$0xff]  ;;  %15574 = vmatpush1.bf16.msra.mxu1 %v15573_v21 }
 0x688   : > { %v6766_v23 = vpop.f32.mrb[27].mxu1  ;;  %v8711_v19 = vld [vmem:[%s21290_s8 + $0xd0] sm:$0xff] }
 0x689   : > { %8458 = vrot.lane.b32.xlu0 %v6761_v15, %s17461_s27  ;;  %8368 = vrot.lane.b32.xlu1 %v6681_v16, %s17460_s22  ;;  %v15575_v15 = vpack.c.bf16 %v8701_v14, %v8696_v25  ;;  %v8705_v23 = vld [vmem:[%s21290_s8 + $0xa0] sm:$0xff]  ;;  %v8688_v25 = vld [vmem:[%s21290_s8 + $0x18] sm:$0xff]  ;;  %s17473_s22 = smov 65  }
 0x68a   : > { %14690 = vmatmul.mubr.msk.f32.vlgmr.msra.gmra.mrb[2].mxu0 %vm6859_vm5, %v14687_v22  ;;  %v15579_v22 = vpack.c.bf16 %v8711_v19, %v8706_v18  ;;  %v8693_v14 = vld [vmem:[%s21290_s8 + $0x40] sm:$0xff] }
 0x68b   : > { %8354 = vmatprep.mubr.f32.mxu0 %v17443_v0  ;;  %15576 = vmatprep.subr.bf16.mxu1 %v15575_v15  ;;  %v15613_v15 = vpack.c.bf16 %v8693_v14, %v8688_v25  ;;  %v8757_v25 = vld [vmem:[%s21290_s8 + $0x240] sm:$0xff]  ;;  %v8762_v14 = vld [vmem:[%s21290_s8 + $0x268] sm:$0xff] }
 0x68d   : > { %8456 = vrot.lane.b32.xlu0 %v6681_v16, %s17461_s27  ;;  %8460 = vrot.lane.b32.xlu1 %v6763_v17, %s17461_s27  ;;  %v8695_v16 = vld [vmem:[%s21290_s8 + $0x50] sm:$0xff] }
 0x691   : > { %8548 = vrot.lane.b32.xlu1 %v6763_v17, %s21315_s4  ;;  %v8700_v17 = vld [vmem:[%s21290_s8 + $0x78] sm:$0xff] }
 0x692   : > { %v15577_v20 = vpack.c.bf16 %v8700_v17, %v8695_v16 }
 0x694   : > { %15578 = vmatpush1.bf16.msra.mxu1 %v15577_v20  ;;  %v8675_v20 = vld [vmem:[%s21288_s6] sm:$0xff] }
 0x695   : > { %15580 = vmatprep.subr.bf16.mxu1 %v15579_v22  ;;  %v8676_v22 = vld [vmem:[%s21288_s6 + $0x8] sm:$0xff] }
 0x6a4   : > { %v14957_v26 = vpop.f32.mrb[28].mxu0 }
 0x6a5   : > { %v14979_v27 = vpop.f32.mrb[28].mxu1  ;;  %v14958_v28 = vpop.f32.mrb[29].mxu0 }
 0x6a6   : > { %v14959_v38 = vadd.f32 %v14958_v28, %v14957_v26  ;;  %v14980_v39 = vpop.f32.mrb[29].mxu1  ;;  %v14960_v40 = vpop.f32.mrb[30].mxu0  ;;  %v8710_v26 = vld [vmem:[%s21290_s8 + $0xc8] sm:$0xff]  ;;  %v8721_v28 = vld [vmem:[%s21290_s8 + $0x120] sm:$0xff] }
 0x6a7   : > { %v14981_v30 = vadd.f32 %v14980_v39, %v14979_v27  ;;  %v14982_v32 = vpop.f32.mrb[30].mxu1  ;;  %v14961_v33 = vpop.f32.mrb[31].mxu0  ;;  %v8716_v27 = vld [vmem:[%s21290_s8 + $0xf8] sm:$0xff]  ;;  %v8715_v40 = vld [vmem:[%s21290_s8 + $0xf0] sm:$0xff] }
 0x6a8   : > { %v14983_v34 = vpop.f32.mrb[31].mxu1  ;;  %v15583_v39 = vpack.c.bf16 %v8721_v28, %v8716_v27  ;;  %v8726_v32 = vld [vmem:[%s21290_s8 + $0x148] sm:$0xff]  ;;  %v8731_v33 = vld [vmem:[%s21290_s8 + $0x170] sm:$0xff]  ;;  %v8679_v27 = vld [vmem:[%s21289_s7] sm:$0xff] }
 0x6a9   : > { %v6843_v35 = vadd.f32 %v14981_v30, %v14959_v38  ;;  %v15581_v38 = vpack.c.bf16 %v8710_v26, %v8705_v23  ;;  %v8720_v30 = vld [vmem:[%s21290_s8 + $0x118] sm:$0xff]  ;;  %v8680_v28 = vld [vmem:[%s21289_s7 + $0x8] sm:$0xff] }
 0x6aa   : > { %v15585_v34 = vpack.c.bf16 %v8720_v30, %v8715_v40  ;;  %v8687_v40 = vld [vmem:[%s21290_s8 + $0x10] sm:$0xff] }
 0x6ab   : > { %8550 = vrot.lane.b32.xlu0 %v6843_v35, %s21315_s4  ;;  %15582 = vmatpush1.bf16.msra.mxu1 %v15581_v38  ;;  %v15587_v35 = vpack.c.bf16 %v8731_v33, %v8726_v32  ;;  %v8698_v32 = vld [vmem:[%s21290_s8 + $0x68] sm:$0xff]  ;;  %v8703_v33 = vld [vmem:[%s21290_s8 + $0x90] sm:$0xff] }
 0x6ac   : > { %15584 = vmatprep.subr.bf16.mxu1 %v15583_v39 }
 0x6af   : > { %15586 = vmatpush1.bf16.msra.mxu1 %v15585_v34 }
 0x6b0   : > { %15588 = vmatprep.subr.bf16.mxu1 %v15587_v35 }
 0x6f7   : > { %v8367_v41 = vpop.permute.xlu0 %8366  ;;  %v8280_v24 = vpop.permute.xlu1 %8279 }
 0x6f8   : > { %v8282_v44 = vsel %vm8281_vm4, %v8278_v36, %v8280_v24  ;;  %14692 = vmatprep.subr.msk.mxu0 %vm673_vm0, %v8280_v24  ;;  %v8725_v36 = vld [vmem:[%s21290_s8 + $0x140] sm:$0xff]  ;;  %v8736_v24 = vld [vmem:[%s21290_s8 + $0x198] sm:$0xff] }
 0x6f9   : > { %14693 = vmatpush1.msk.msra.mxu0 %vm673_vm0, %v8282_v44 }
 0x6fa   : > { %14694 = vmatmul.mubr.msk.f32.vlgmr.msra.gmra.mrb[2].mxu0 %vm6859_vm5, %v14691_v43  ;;  %v8741_v43 = vld [vmem:[%s21290_s8 + $0x1c0] sm:$0xff] }
 0x6fb   : > { %v8459_v45 = vpop.permute.xlu0 %8458  ;;  %v8369_v46 = vpop.permute.xlu1 %8368  ;;  %8443 = vmatprep.mubr.f32.mxu0 %v17443_v0 }
 0x6fc   : > { %v8371_v47 = vsel %vm8370_vm6, %v8367_v41, %v8369_v46  ;;  %14696 = vmatprep.subr.msk.mxu0 %vm673_vm0, %v8369_v46  ;;  %v8730_v41 = vld [vmem:[%s21290_s8 + $0x168] sm:$0xff]  ;;  %v8735_v46 = vld [vmem:[%s21290_s8 + $0x190] sm:$0xff] }
 0x6fd   : > { %14697 = vmatpush1.msk.msra.mxu0 %vm673_vm0, %v8371_v47  ;;  %v15589_v44 = vpack.c.bf16 %v8730_v41, %v8725_v36  ;;  %v8740_v47 = vld [vmem:[%s21290_s8 + $0x1b8] sm:$0xff]  ;;  %v15617_v41 = vpack.c.bf16 %v8703_v33, %v8698_v32 }
 0x6fe   : > { %v8704_v32 = vld [vmem:[%s21290_s8 + $0x98] sm:$0xff] }
 0x6ff   : > { %v8457_v48 = vpop.permute.xlu0 %8456  ;;  %v8461_v49 = vpop.permute.xlu1 %8460  ;;  %15590 = vmatpush1.bf16.msra.mxu1 %v15589_v44  ;;  %v8708_v44 = vld [vmem:[%s21290_s8 + $0xb8] sm:$0xff] }
 0x700   : > { %v8463_v50 = vsel %vm8462_vm7, %v8457_v48, %v8459_v45  ;;  %v8464_v31 = vsel %vm8462_vm7, %v8459_v45, %v8461_v49  ;;  %v15591_v45 = vpack.c.bf16 %v8741_v43, %v8736_v24  ;;  %v8746_v48 = vld [vmem:[%s21290_s8 + $0x1e8] sm:$0xff]  ;;  %v8751_v49 = vld [vmem:[%s21290_s8 + $0x210] sm:$0xff]  ;;  %v8697_v24 = vld [vmem:[%s21290_s8 + $0x60] sm:$0xff] }
 0x701   : > { %14700 = vmatprep.subr.msk.mxu0 %vm673_vm0, %v8464_v31  ;;  %v8745_v31 = vld [vmem:[%s21290_s8 + $0x1e0] sm:$0xff]  ;;  %v8702_v43 = vld [vmem:[%s21290_s8 + $0x88] sm:$0xff] }
 0x702   : > { %14698 = vmatmul.mubr.msk.f32.vlgmr.msra.gmra.mrb[2].mxu0 %vm6859_vm5, %v14695_v37  ;;  %v15593_v37 = vpack.c.bf16 %v8740_v47, %v8735_v46  ;;  %15592 = vmatprep.subr.bf16.mxu1 %v15591_v45  ;;  %v8713_v45 = vld [vmem:[%s21290_s8 + $0xe0] sm:$0xff]  ;;  %v15619_v46 = vpack.c.bf16 %v8702_v43, %v8697_v24  ;;  %v8719_v43 = vld [vmem:[%s21290_s8 + $0x110] sm:$0xff] }
 0x703   : > { %14701 = vmatpush1.msk.msra.mxu0 %vm673_vm0, %v8463_v50  ;;  %8536 = vmatprep.mubr.f32.mxu0 %v17443_v0  ;;  %v8549_v52 = vpop.permute.xlu1 %8548  ;;  %v15595_v50 = vpack.c.bf16 %v8751_v49, %v8746_v48  ;;  %v15621_v47 = vpack.c.bf16 %v8713_v45, %v8708_v44  ;;  %v8707_v48 = vld [vmem:[%s21290_s8 + $0xb0] sm:$0xff]  ;;  %v8712_v49 = vld [vmem:[%s21290_s8 + $0xd8] sm:$0xff]  ;;  %v8729_v45 = vld [vmem:[%s21290_s8 + $0x160] sm:$0xff] }
 0x704   : > { %15594 = vmatpush1.bf16.msra.mxu1 %v15593_v37  ;;  %v8718_v37 = vld [vmem:[%s21290_s8 + $0x108] sm:$0xff] }
 0x705   : > { %15596 = vmatprep.subr.bf16.mxu1 %v15595_v50  ;;  %v8723_v50 = vld [vmem:[%s21290_s8 + $0x130] sm:$0xff] }
 0x70a   : > { %14702 = vmatmul.mubr.msk.f32.vlgmr.msra.gmra.mrb[2].mxu0 %vm6859_vm5, %v14699_v51  ;;  %v8750_v51 = vld [vmem:[%s21290_s8 + $0x208] sm:$0xff] }
 0x70b   : > { %8625 = vmatprep.mubr.f32.mxu0 %v17443_v0 }
 0x71d   : > { %v8551_v53 = vpop.permute.xlu0 %8550 }
 0x71e   : > { %v8553_v55 = vsel %vm8552_vm8, %v8549_v52, %v8551_v53  ;;  %14704 = vmatprep.subr.msk.mxu0 %vm673_vm0, %v8551_v53  ;;  %v8756_v52 = vld [vmem:[%s21290_s8 + $0x238] sm:$0xff]  ;;  %v8761_v53 = vld [vmem:[%s21290_s8 + $0x260] sm:$0xff] }
 0x71f   : > { %14705 = vmatpush1.msk.msra.mxu0 %vm673_vm0, %v8553_v55  ;;  %v15599_v55 = vpack.c.bf16 %v8761_v53, %v8756_v52  ;;  %vm8788_vm0 = vcmask 1042432   ;;  %v8717_v52 = vld [vmem:[%s21290_s8 + $0x100] sm:$0xff]  ;;  %v8722_v53 = vld [vmem:[%s21290_s8 + $0x128] sm:$0xff] }
 0x720   : > { %14706 = vmatmul.mubr.msk.f32.vlgmr.msra.gmra.mrb[2].mxu0 %vm6859_vm5, %v14703_v54  ;;  %v15597_v54 = vpack.c.bf16 %v8750_v51, %v8745_v31  ;;  %vm17463_vm5 = vmmov 1   ;;  %v15623_v31 = vpack.c.bf16 %v8712_v49, %v8707_v48  ;;  %v15625_v51 = vpack.c.bf16 %v8723_v50, %v8718_v37  ;;  %v8739_v48 = vld [vmem:[%s21290_s8 + $0x1b0] sm:$0xff]  ;;  %v8744_v49 = vld [vmem:[%s21290_s8 + $0x1d8] sm:$0xff]  ;;  %v8749_v50 = vld [vmem:[%s21290_s8 + $0x200] sm:$0xff] }
 0x721   : > { %vm20423_vm10 = vmpackc.low %vm8788_vm0, %vm17463_vm5  ;;  %v15671_v37 = vpack.c.bf16 %v8744_v49, %v8739_v48  ;;  %v14770_v48 = vld [vmem:[%s21291_s9 + $0xe8] sm:$0xff]  ;;  %v14773_v49 = vld [vmem:[%s21291_s9 + $0xf0] sm:$0xff] }
 0x722   : > { %15598 = vmatpush1.bf16.msra.mxu1 %v15597_v54  ;;  %v8728_v54 = vld [vmem:[%s21290_s8 + $0x158] sm:$0xff] }
 0x723   : > { %15600 = vmatprep.subr.bf16.mxu1 %v15599_v55  ;;  %v8733_v55 = vld [vmem:[%s21290_s8 + $0x180] sm:$0xff] }
 0x7f3   : > { %v8627_v56 = vpop.f32.mrb[2].mxu0 }
 0x7f4   : > { %v8629_v57 = vpop.f32.mrb[3].mxu0 }
 0x7f5   : > { %v8635_v58 = vsel %vm8634_vm9, %v8629_v57, 0.0 }
 0x7f6   : > { %v8636_v59 = vadd.f32 %v8635_v58, %v8627_v56 }
 0x7f8   : > { %8637 = vadd.xlane.f32.xlu1 %v8636_v59 }
 0x885   : > { %v8638_v60 = vpop.xlane.xlu1 %8637 }
 0x886   : > { %v8639_v61 = vrot.slane %v8638_v60, 4 }
 0x888   : > { %v8640_v62 = vadd.f32 %v8639_v61, %v8638_v60  ;;  %v8766_v60 = vld [vmem:[%s21290_s8 + $0x288] sm:$0xff]  ;;  %v8771_v61 = vld [vmem:[%s21290_s8 + $0x2b0] sm:$0xff] }
 0x88a   : > { %v8641_v63 = vrot.slane %v8640_v62, 2 }
 0x88c   : > { %v8642_v1 = vadd.f32 %v8641_v63, %v8640_v62  ;;  %v15603_v63 = vpack.c.bf16 %v8771_v61, %v8766_v60  ;;  %v8738_v60 = vld [vmem:[%s21290_s8 + $0x1a8] sm:$0xff]  ;;  %v8743_v61 = vld [vmem:[%s21290_s8 + $0x1d0] sm:$0xff] }
 0x88e   : > { %v8643_v2 = vrot.slane %v8642_v1, 1 }
 0x890   : > { %v8644_v3 = vadd.f32 %v8643_v2, %v8642_v1  ;;  %v8765_v1 = vld [vmem:[%s21290_s8 + $0x280] sm:$0xff]  ;;  %v8770_v2 = vld [vmem:[%s21290_s8 + $0x2a8] sm:$0xff] }
 0x892   : > { %16023 = vpush %v8644_v3  ;;  %v15605_v3 = vpack.c.bf16 %v8770_v2, %v8765_v1  ;;  %v8737_v1 = vld [vmem:[%s21290_s8 + $0x1a0] sm:$0xff]  ;;  %v8742_v2 = vld [vmem:[%s21290_s8 + $0x1c8] sm:$0xff] }
 0x8c3   : > { %s16024_s27 = spop %16023 }
 0x8c4   : > { %s8648_s3 = smul.f32 0.0008064516, %s16024_s27 }
 0x8c6   : > { %v8649_v4 = vstv %s8648_s3 }
 0x8c7   : > { %v20297_v5 = vsub.f32 %v8627_v56, %v8649_v4  ;;  %v20299_v6 = vsub.f32 %v8629_v57, %v8649_v4  ;;  %v8755_v56 = vld [vmem:[%s21290_s8 + $0x230] sm:$0xff]  ;;  %v8760_v57 = vld [vmem:[%s21290_s8 + $0x258] sm:$0xff] }
 0x8c8   : > { %v15601_v58 = vpack.c.bf16 %v8760_v57, %v8755_v56  ;;  %v15627_v56 = vpack.c.bf16 %v8722_v53, %v8717_v52  ;;  %v15629_v57 = vpack.c.bf16 %v8733_v55, %v8728_v54  ;;  %v8759_v52 = vld [vmem:[%s21290_s8 + $0x250] sm:$0xff]  ;;  %v8764_v53 = vld [vmem:[%s21290_s8 + $0x278] sm:$0xff]  ;;  %v8769_v55 = vld [vmem:[%s21290_s8 + $0x2a0] sm:$0xff] }
 0x8c9   : > { %v8653_v7 = vmul.f32 %v20299_v6, %v20299_v6  ;;  %v8652_v8 = vmul.f32 %v20297_v5, %v20297_v5  ;;  %v15677_v54 = vpack.c.bf16 %v8764_v53, %v8759_v52  ;;  %v14781_v52 = vld [vmem:[%s21291_s9 + $0x110] sm:$0xff] }
 0x8ca   : > { %15602 = vmatpush1.bf16.msra.mxu1 %v15601_v58  ;;  %v8727_v58 = vld [vmem:[%s21290_s8 + $0x150] sm:$0xff] }
 0x8cb   : > { %v8654_v9 = vsel %vm8634_vm9, %v8653_v7, 0.0  ;;  %15604 = vmatprep.subr.bf16.mxu1 %v15603_v63  ;;  %v8776_v7 = vld [vmem:[%s21290_s8 + $0x2d8] sm:$0xff]  ;;  %v15633_v63 = vpack.c.bf16 %v8743_v61, %v8738_v60  ;;  %v14715_v61 = vld [vmem:[%s21291_s9 + $0x10] sm:$0xff] }
 0x8cc   : > { %v8655_v10 = vadd.f32 %v8654_v9, %v8652_v8  ;;  %v8781_v9 = vld [vmem:[%s21290_s8 + $0x300] sm:$0x7]  ;;  %15194 = vmatprep.mubr.msk.f32.mxu0 %vm9025_vm11, %v14715_v61 }
 0x8cd   : > { %v15607_v11 = vpack.c.bf16 %v8781_v9, %v8776_v7  ;;  %v15635_v7 = vpack.c.bf16 %v8742_v2, %v8737_v1  ;;  %v8747_v9 = vld [vmem:[%s21290_s8 + $0x1f0] sm:$0xff] }
 0x8ce   : > { %8656 = vadd.xlane.f32.xlu0 %v8655_v10  ;;  %15606 = vmatpush1.bf16.msra.mxu1 %v15605_v3  ;;  %v8775_v10 = vld [vmem:[%s21290_s8 + $0x2d0] sm:$0xff]  ;;  %v8748_v3 = vld [vmem:[%s21290_s8 + $0x1f8] sm:$0xff] }
 0x8cf   : > { %v15610_v42 = vpack.c.bf16 %v8780_v13, %v8775_v10  ;;  %15609 = vmatprep.subr.msk.bf16.mxu1 %vm20423_vm10, %v15607_v11  ;;  %v8752_v10 = vld [vmem:[%s21290_s8 + $0x218] sm:$0xff]  ;;  %v8758_v11 = vld [vmem:[%s21290_s8 + $0x248] sm:$0xff]  ;;  %v8763_v13 = vld [vmem:[%s21290_s8 + $0x270] sm:$0xff] }
 0x8d2   : > { %15612 = vmatpush1.bf16.msk.msra.mxu1 %vm20423_vm10, %v15610_v42  ;;  %v15641_v42 = vpack.c.bf16 %v8763_v13, %v8758_v11  ;;  %v14722_v13 = vld [vmem:[%s21291_s9 + $0x28] sm:$0xff] }
 0x8d3   : > { %15614 = vmatprep.subr.bf16.mxu1 %v15613_v15  ;;  %v8773_v15 = vld [vmem:[%s21290_s8 + $0x2c0] sm:$0xff] }
 0x95b   : > { %v8657_v59 = vpop.xlane.xlu0 %8656 }
 0x95c   : > { %v8658_v62 = vrot.slane %v8657_v59, 4 }
 0x95e   : > { %v8659_v4 = vadd.f32 %v8658_v62, %v8657_v59  ;;  %v8732_v59 = vld [vmem:[%s21290_s8 + $0x178] sm:$0xff] }
 0x95f   : > { %v15631_v62 = vpack.c.bf16 %v8732_v59, %v8727_v58  ;;  %v8779_v58 = vld [vmem:[%s21290_s8 + $0x2f0] sm:$0xff]  ;;  %v8784_v59 = vld [vmem:[%s21290_s8 + $0x318] sm:$0x7] }
 0x960   : > { %v8660_v8 = vrot.slane %v8659_v4, 2  ;;  %v15683_v60 = vpack.c.bf16 %v8784_v59, %v8779_v58  ;;  %v14789_v58 = vld [vmem:[%s21291_s9 + $0x130] sm:$0xff]  ;;  %v14790_v59 = vld [vmem:[%s21291_s9 + $0x138] sm:$0xff] }
 0x962   : > { %v8661_v29 = vadd.f32 %v8660_v8, %v8659_v4  ;;  %v8753_v4 = vld [vmem:[%s21290_s8 + $0x220] sm:$0xff] }
 0x963   : > { %v15637_v8 = vpack.c.bf16 %v8753_v4, %v8748_v3  ;;  %v14716_v4 = vld [vmem:[%s21291_s9 + $0x18] sm:$0xff] }
 0x964   : > { %v8662_v21 = vrot.slane %v8661_v29, 1 }
 0x966   : > { %v8663_v16 = vadd.f32 %v8662_v21, %v8661_v29  ;;  %v15639_v29 = vpack.c.bf16 %v8752_v10, %v8747_v9  ;;  %v8768_v21 = vld [vmem:[%s21290_s8 + $0x298] sm:$0xff]  ;;  %v9017_v9 = vld [vmem:[%s21291_s9 + $0x8] sm:$0xff]  ;;  %v14721_v10 = vld [vmem:[%s21291_s9 + $0x20] sm:$0xff] }
 0x968   : > { %16025 = vpush %v8663_v16  ;;  %v15643_v16 = vpack.c.bf16 %v8762_v14, %v8757_v25  ;;  %v14729_v25 = vld [vmem:[%s21291_s9 + $0x40] sm:$0xff] }
 0x999   : > { %s16026_s4 = spop %16025 }
 0x99a   : > { %s8667_s27 = smul.f32 0.0008064516, %s16026_s4  ;;  %s17467_s4 = smov 32  }
 0x99c   : > { %s8668_s5 = sadd.f32 1e-05, %s8667_s27 }
 0x99e   : > { %v8669_v17 = vstv %s8668_s5 }
 0x99f   : > { %17429 = vrsqrt.f32 %v8669_v17  ;;  %v15645_v17 = vpack.c.bf16 %v8773_v15, %v8768_v21  ;;  %v14730_v21 = vld [vmem:[%s21291_s9 + $0x48] sm:$0xff]  ;;  %v14733_v15 = vld [vmem:[%s21291_s9 + $0x50] sm:$0xff] }
 0x9a9   : > { %v17430_v18 = vpop.eup %17429 }
 0x9aa   : > { %16027 = vpush %v17430_v18  ;;  %v8767_v18 = vld [vmem:[%s21290_s8 + $0x290] sm:$0xff] }
 0x9db   : > { %s16028_s3 = spop %16027 }
 0x9dc   : > { %v8672_v19 = vstv %s16028_s3 }
 0x9dd   : > { %v8673_v23 = vmul.f32 %v8672_v19, %v20297_v5  ;;  %v8674_v26 = vmul.f32 %v8672_v19, %v20299_v6  ;;  %v8692_v5 = vld [vmem:[%s21290_s8 + $0x38] sm:$0xff] }
 0x9de   : > { %v15615_v36 = vpack.c.bf16 %v8692_v5, %v8687_v40  ;;  %v8772_v19 = vld [vmem:[%s21290_s8 + $0x2b8] sm:$0xff]  ;;  %v8694_v40 = vld [vmem:[%s21290_s8 + $0x48] sm:$0xff] }
 0x9df   : > { %v8677_v38 = vmul.f32 %v8675_v20, %v8673_v23  ;;  %v8678_v39 = vmul.f32 %v8676_v22, %v8674_v26  ;;  %v8778_v20 = vld [vmem:[%s21290_s8 + $0x2e8] sm:$0xff]  ;;  %v8783_v22 = vld [vmem:[%s21290_s8 + $0x310] sm:$0x7]  ;;  %v15647_v23 = vpack.c.bf16 %v8772_v19, %v8767_v18  ;;  %v14737_v18 = vld [vmem:[%s21291_s9 + $0x60] sm:$0xff] }
 0x9e0   : > { %v15649_v26 = vpack.c.bf16 %v8783_v22, %v8778_v20  ;;  %v14738_v20 = vld [vmem:[%s21291_s9 + $0x68] sm:$0xff]  ;;  %v14741_v22 = vld [vmem:[%s21291_s9 + $0x70] sm:$0xff] }
 0x9e1   : > { %v8681_v30 = vadd.f32 %v8679_v27, %v8677_v38  ;;  %v8682_v6 = vadd.f32 %v8680_v28, %v8678_v39  ;;  %v8777_v27 = vld [vmem:[%s21290_s8 + $0x2e0] sm:$0xff]  ;;  %v8782_v28 = vld [vmem:[%s21290_s8 + $0x308] sm:$0x7] }
 0x9e2   : > { %v15652_v38 = vpack.c.bf16 %v8782_v28, %v8777_v27  ;;  %v8689_v39 = vld [vmem:[%s21290_s8 + $0x20] sm:$0xff]  ;;  %v14746_v28 = vld [vmem:[%s21291_s9 + $0x88] sm:$0xff] }
 0x9e3   : > { %v20466_v34 = vmax.f32 %v8681_v30, 0.0  ;;  %v20468_v35 = vmax.f32 %v8682_v6, 0.0  ;;  %v15656_v5 = vpack.c.bf16 %v8694_v40, %v8689_v39  ;;  %v17464_v30 = vmov 0.0|0.0   ;;  %v8699_v6 = vld [vmem:[%s21290_s8 + $0x70] sm:$0xff]  ;;  %v14750_v40 = vld [vmem:[%s21291_s9 + $0x98] sm:$0xff] }
 0x9e4   : > { %v15659_v33 = vpack.c.bf16 %v8704_v32, %v8699_v6  ;;  %v14754_v32 = vld [vmem:[%s21291_s9 + $0xa8] sm:$0xff] }
 0x9e5   : > { %14709 = vmatprep.mubr.msk.f32.mxu1 %vm8634_vm9, %v20468_v35 }
 0x9e6   : > { %8869 = vmatmul.mubr.f32.vlgmr.msra.gmra.mrb[2].mxu1 %v20466_v34 }
 0x9e7   : > { %15616 = vmatpush1.bf16.msra.mxu1 %v15615_v36  ;;  %14712 = vmatprep.mubr.msk.f32.mxu1 %vm8634_vm9, %v20468_v35  ;;  %v8709_v36 = vld [vmem:[%s21290_s8 + $0xc0] sm:$0xff] }
 0x9e8   : > { %15618 = vmatprep.subr.bf16.mxu1 %v15617_v41  ;;  %v8714_v41 = vld [vmem:[%s21290_s8 + $0xe8] sm:$0xff] }
 0x9e9   : > { %v15662_v24 = vpack.c.bf16 %v8714_v41, %v8709_v36  ;;  %v14758_v36 = vld [vmem:[%s21291_s9 + $0xb8] sm:$0xff]  ;;  %v14761_v41 = vld [vmem:[%s21291_s9 + $0xc0] sm:$0xff] }
 0x9eb   : > { %15620 = vmatpush1.bf16.msra.mxu1 %v15619_v46  ;;  %v8734_v46 = vld [vmem:[%s21290_s8 + $0x188] sm:$0xff] }
 0x9ec   : > { %15622 = vmatprep.subr.bf16.mxu1 %v15621_v47  ;;  %v15668_v47 = vpack.c.bf16 %v8734_v46, %v8729_v45  ;;  %v14766_v45 = vld [vmem:[%s21291_s9 + $0xd8] sm:$0xff]  ;;  %v14769_v46 = vld [vmem:[%s21291_s9 + $0xe0] sm:$0xff] }
 0x9ef   : > { %15624 = vmatpush1.bf16.msra.mxu1 %v15623_v31  ;;  %v8754_v31 = vld [vmem:[%s21290_s8 + $0x228] sm:$0xff] }
 0x9f0   : > { %15626 = vmatprep.subr.bf16.mxu1 %v15625_v51  ;;  %v15674_v51 = vpack.c.bf16 %v8754_v31, %v8749_v50  ;;  %v14777_v50 = vld [vmem:[%s21291_s9 + $0x100] sm:$0xff] }
 0x9f3   : > { %15628 = vmatpush1.bf16.msra.mxu1 %v15627_v56  ;;  %v8774_v56 = vld [vmem:[%s21290_s8 + $0x2c8] sm:$0xff] }
 0x9f4   : > { %15630 = vmatprep.subr.bf16.mxu1 %v15629_v57  ;;  %v15680_v57 = vpack.c.bf16 %v8774_v56, %v8769_v55  ;;  %v14785_v55 = vld [vmem:[%s21291_s9 + $0x120] sm:$0xff] }
 0x9f7   : > { %15632 = vmatpush1.bf16.msra.mxu1 %v15631_v62 }
 0x9f8   : > { %15634 = vmatprep.subr.bf16.mxu1 %v15633_v63 }
 0x9fb   : > { %15636 = vmatpush1.bf16.msra.mxu1 %v15635_v7  ;;  %v9016_v7 = vld [vmem:[%s21291_s9] sm:$0xff] }
 0x9fc   : > { %15638 = vmatprep.subr.bf16.mxu1 %v15637_v8 }
 0x9ff   : > { %15640 = vmatpush1.bf16.msra.mxu1 %v15639_v29  ;;  %v14725_v29 = vld [vmem:[%s21291_s9 + $0x30] sm:$0xff] }
 0xa00   : > { %15642 = vmatprep.subr.bf16.mxu1 %v15641_v42  ;;  %v14726_v42 = vld [vmem:[%s21291_s9 + $0x38] sm:$0xff] }
 0xa03   : > { %15644 = vmatpush1.bf16.msra.mxu1 %v15643_v16 }
 0xa04   : > { %15646 = vmatprep.subr.bf16.mxu1 %v15645_v17  ;;  %v14734_v17 = vld [vmem:[%s21291_s9 + $0x58] sm:$0xff] }
 0xa07   : > { %15648 = vmatpush1.bf16.msra.mxu1 %v15647_v23  ;;  %v14742_v23 = vld [vmem:[%s21291_s9 + $0x78] sm:$0xff] }
 0xa08   : > { %15651 = vmatprep.subr.msk.bf16.mxu1 %vm20423_vm10, %v15649_v26  ;;  %v14745_v26 = vld [vmem:[%s21291_s9 + $0x80] sm:$0xff] }
 0xa0b   : > { %15654 = vmatpush1.bf16.msk.msra.mxu1 %vm20423_vm10, %v15652_v38  ;;  %v14749_v38 = vld [vmem:[%s21291_s9 + $0x90] sm:$0xff] }
 0xa0c   : > { %15655 = vmatprep.subr.bf16.mxu1 %v17464_v30 }
 0xa0e   : > { %8940 = vmatmul.mubr.f32.vlgmr.msra.gmra.mrb[32].mxu1 %v20466_v34 }
 0xa0f   : > { %15657 = vmatpush1.bf16.msra.mxu1 %v15656_v5  ;;  %14714 = vmatprep.mubr.msk.f32.mxu1 %vm8634_vm9, %v20468_v35  ;;  %v8724_v35 = vld [vmem:[%s21290_s8 + $0x138] sm:$0xff]  ;;  %v14753_v5 = vld [vmem:[%s21291_s9 + $0xa0] sm:$0xff] }
 0xa10   : > { %15658 = vmatprep.subr.bf16.mxu1 %v17464_v30  ;;  %v15665_v44 = vpack.c.bf16 %v8724_v35, %v8719_v43  ;;  %v14762_v43 = vld [vmem:[%s21291_s9 + $0xc8] sm:$0xff]  ;;  %v14765_v35 = vld [vmem:[%s21291_s9 + $0xd0] sm:$0xff] }
 0xa13   : > { %15660 = vmatpush1.bf16.msra.mxu1 %v15659_v33  ;;  %v14757_v33 = vld [vmem:[%s21291_s9 + $0xb0] sm:$0xff] }
 0xa14   : > { %15661 = vmatprep.subr.bf16.mxu1 %v17464_v30 }
 0xa17   : > { %15663 = vmatpush1.bf16.msra.mxu1 %v15662_v24 }
 0xa18   : > { %15664 = vmatprep.subr.bf16.mxu1 %v17464_v30 }
 0xa1b   : > { %15666 = vmatpush1.bf16.msra.mxu1 %v15665_v44 }
 0xa1c   : > { %15667 = vmatprep.subr.bf16.mxu1 %v17464_v30 }
 0xa1f   : > { %15669 = vmatpush1.bf16.msra.mxu1 %v15668_v47 }
 0xa20   : > { %15670 = vmatprep.subr.bf16.mxu1 %v17464_v30 }
 0xa23   : > { %15672 = vmatpush1.bf16.msra.mxu1 %v15671_v37  ;;  %v14774_v37 = vld [vmem:[%s21291_s9 + $0xf8] sm:$0xff] }
 0xa24   : > { %15673 = vmatprep.subr.bf16.mxu1 %v17464_v30 }
 0xa27   : > { %15675 = vmatpush1.bf16.msra.mxu1 %v15674_v51  ;;  %v14778_v51 = vld [vmem:[%s21291_s9 + $0x108] sm:$0xff] }
 0xa28   : > { %15676 = vmatprep.subr.bf16.mxu1 %v17464_v30 }
 0xa2b   : > { %15678 = vmatpush1.bf16.msra.mxu1 %v15677_v54  ;;  %v14782_v54 = vld [vmem:[%s21291_s9 + $0x118] sm:$0xff] }
 0xa2c   : > { %15679 = vmatprep.subr.bf16.mxu1 %v17464_v30 }
 0xa2f   : > { %15681 = vmatpush1.bf16.msra.mxu1 %v15680_v57  ;;  %v14786_v57 = vld [vmem:[%s21291_s9 + $0x128] sm:$0xff] }
 0xa30   : > { %15682 = vmatprep.subr.bf16.mxu1 %v17464_v30 }
 0xa33   : > { %15685 = vmatpush1.bf16.msk.msra.mxu1 %vm20423_vm10, %v15683_v60 }
 0xa36   : > { %9011 = vmatmul.mubr.f32.vlgmr.msra.gmra.mrb[34].mxu1 %v20466_v34 }
 0xab9   : > { %v8870_v62 = vpop.f32.mrb[2].mxu1 }
 0xaba   : > { %9191 = vrot.lane.b32.xlu1 %v8870_v62, %s17465_s1  ;;  %9022 = vrot.lane.b32.xlu0 %v8870_v62, %s17466_s29  ;;  %v8872_v63 = vpop.f32.mrb[3].mxu1 }
 0xabe   : > { %9280 = vrot.lane.b32.xlu1 %v8870_v62, %s17467_s4  ;;  %9456 = vrot.lane.b32.xlu0 %v8872_v63, %s17466_s29 }
 0xac2   : > { %9545 = vrot.lane.b32.xlu1 %v8872_v63, %s17465_s1  ;;  %9634 = vrot.lane.b32.xlu0 %v8872_v63, %s17467_s4 }
 0xae1   : > { %v20661_v12 = vpop.f32.mrb[32].mxu1 }
 0xae2   : > { %9899 = vrot.lane.b32.xlu0 %v20661_v12, %s17465_s1  ;;  %9810 = vrot.lane.b32.xlu1 %v20661_v12, %s17466_s29  ;;  %v20665_v34 = vpop.f32.mrb[33].mxu1 }
 0xae6   : > { %9988 = vrot.lane.b32.xlu1 %v20661_v12, %s17467_s4  ;;  %10164 = vrot.lane.b32.xlu0 %v20665_v34, %s17466_s29 }
 0xaea   : > { %10253 = vrot.lane.b32.xlu1 %v20665_v34, %s17465_s1  ;;  %10342 = vrot.lane.b32.xlu0 %v20665_v34, %s17467_s4 }
 0xb09   : > { %v20671_v1 = vpop.f32.mrb[34].mxu1 }
 0xb0a   : > { %10607 = vrot.lane.b32.xlu0 %v20671_v1, %s17465_s1  ;;  %10518 = vrot.lane.b32.xlu1 %v20671_v1, %s17466_s29  ;;  %v9014_v2 = vpop.f32.mrb[35].mxu1 }
 0xb0e   : > { %10696 = vrot.lane.b32.xlu1 %v20671_v1, %s17467_s4 }
 0xb2c   : > { %v9023_v3 = vpop.permute.xlu0 %9022  ;;  %v9192_v8 = vpop.permute.xlu1 %9191 }
 0xb2d   : > { %15192 = vmatprep.subr.mxu0 %v9023_v3 }
 0xb2e   : > { %15193 = vmatpush3.msra.mxu0 %v9023_v3 }
 0xb2f   : > { %15195 = vmatmul.mubr.msk.f32.vlgmr.msra.gmra.mrb[32].mxu0 %vm9025_vm11, %v14716_v4  ;;  %15197 = vmatprep.subr.mxu0 %v8870_v62 }
 0xb30   : > { %15198 = vmatpush3.msra.mxu0 %v8870_v62  ;;  %15199 = vmatprep.mubr.msk.f32.mxu0 %vm9025_vm11, %v9016_v7  ;;  %v9281_v11 = vpop.permute.xlu1 %9280  ;;  %v9457_v14 = vpop.permute.xlu0 %9456 }
 0xb31   : > { %15202 = vmatprep.subr.mxu0 %v9192_v8 }
 0xb34   : > { %v9546_v16 = vpop.permute.xlu1 %9545  ;;  %v9635_v19 = vpop.permute.xlu0 %9634 }
 0xb37   : > { %15200 = vmatmul.mubr.msk.f32.vlgmr.msra.gmra.mrb[32].mxu0 %vm9025_vm11, %v9017_v9 }
 0xb38   : > { %15203 = vmatpush3.msra.mxu0 %v9192_v8  ;;  %15204 = vmatprep.mubr.msk.f32.mxu0 %vm9025_vm11, %v14721_v10 }
 0xb39   : > { %15207 = vmatprep.subr.mxu0 %v9281_v11 }
 0xb3f   : > { %15205 = vmatmul.mubr.msk.f32.vlgmr.msra.gmra.mrb[32].mxu0 %vm9025_vm11, %v14722_v13 }
 0xb40   : > { %15208 = vmatpush3.msra.mxu0 %v9281_v11  ;;  %15209 = vmatprep.mubr.msk.f32.mxu0 %vm9025_vm11, %v14725_v29 }
 0xb41   : > { %15212 = vmatprep.subr.mxu0 %v8872_v63 }
 0xb47   : > { %15210 = vmatmul.mubr.msk.f32.vlgmr.msra.gmra.mrb[32].mxu0 %vm9025_vm11, %v14726_v42 }
 0xb48   : > { %15213 = vmatpush3.msra.mxu0 %v8872_v63  ;;  %15214 = vmatprep.mubr.msk.f32.mxu0 %vm9025_vm11, %v14729_v25 }
 0xb49   : > { %15217 = vmatprep.subr.mxu0 %v9457_v14 }
 0xb4f   : > { %15215 = vmatmul.mubr.msk.f32.vlgmr.msra.gmra.mrb[32].mxu0 %vm9025_vm11, %v14730_v21 }
 0xb50   : > { %15218 = vmatpush3.msra.mxu0 %v9457_v14  ;;  %15219 = vmatprep.mubr.msk.f32.mxu0 %vm9025_vm11, %v14733_v15  ;;  %v10836_v15 = vld [vmem:[%s21294_s12 + $0x8] sm:$0xff] }
 0xb51   : > { %15222 = vmatprep.subr.mxu0 %v9546_v16 }
 0xb54   : > { %v9811_v27 = vpop.permute.xlu1 %9810  ;;  %v9900_v39 = vpop.permute.xlu0 %9899 }
 0xb57   : > { %15220 = vmatmul.mubr.msk.f32.vlgmr.msra.gmra.mrb[32].mxu0 %vm9025_vm11, %v14734_v17 }
 0xb58   : > { %15223 = vmatpush3.msra.mxu0 %v9546_v16  ;;  %15224 = vmatprep.mubr.msk.f32.mxu0 %vm9025_vm11, %v14737_v18  ;;  %v9989_v6 = vpop.permute.xlu1 %9988  ;;  %v10165_v24 = vpop.permute.xlu0 %10164  ;;  %v10838_v16 = vld [vmem:[%s21294_s12 + $0x18] sm:$0xff] }
 0xb59   : > { %15227 = vmatprep.subr.mxu0 %v9635_v19  ;;  %v15686_v18 = vpack.c.bf16 %v10838_v16, %v10836_v15  ;;  %v10929_v15 = vld [vmem:[%s21295_s13 + $0x18] sm:$0xff]  ;;  %v14807_v16 = vld [vmem:[%s21295_s13 + $0x40] sm:$0xff] }
 0xb5c   : > { %v10254_v44 = vpop.permute.xlu1 %10253  ;;  %v10343_v47 = vpop.permute.xlu0 %10342 }
 0xb5f   : > { %15225 = vmatmul.mubr.msk.f32.vlgmr.msra.gmra.mrb[32].mxu0 %vm9025_vm11, %v14738_v20  ;;  %v10837_v20 = vld [vmem:[%s21294_s12 + $0x10] sm:$0xff] }
 0xb60   : > { %15228 = vmatpush3.msra.mxu0 %v9635_v19  ;;  %15229 = vmatprep.mubr.msk.f32.mxu0 %vm9025_vm11, %v14741_v22  ;;  %v10835_v19 = vld [vmem:[%s21294_s12] sm:$0xff] }
 0xb61   : > { %15232 = vmatprep.subr.mxu0 %v20661_v12  ;;  %v15688_v22 = vpack.c.bf16 %v10837_v20, %v10835_v19  ;;  %v14808_v19 = vld [vmem:[%s21295_s13 + $0x48] sm:$0xff]  ;;  %v14809_v20 = vld [vmem:[%s21295_s13 + $0x50] sm:$0xff] }
 0xb67   : > { %15230 = vmatmul.mubr.msk.f32.vlgmr.msra.gmra.mrb[32].mxu0 %vm9025_vm11, %v14742_v23 }
 0xb68   : > { %15233 = vmatpush3.msra.mxu0 %v20661_v12  ;;  %15234 = vmatprep.mubr.msk.f32.mxu0 %vm9025_vm11, %v14745_v26  ;;  %v10840_v26 = vld [vmem:[%s21294_s12 + $0x28] sm:$0xff] }
 0xb69   : > { %15237 = vmatprep.subr.mxu0 %v9811_v27 }
 0xb6f   : > { %15235 = vmatmul.mubr.msk.f32.vlgmr.msra.gmra.mrb[32].mxu0 %vm9025_vm11, %v14746_v28  ;;  %v10842_v28 = vld [vmem:[%s21294_s12 + $0x38] sm:$0xff] }
 0xb70   : > { %15238 = vmatpush3.msra.mxu0 %v9811_v27  ;;  %15239 = vmatprep.mubr.msk.f32.mxu0 %vm9025_vm11, %v14749_v38  ;;  %v10839_v38 = vld [vmem:[%s21294_s12 + $0x20] sm:$0xff] }
 0xb71   : > { %15242 = vmatprep.subr.mxu0 %v9900_v39 }
 0xb77   : > { %15240 = vmatmul.mubr.msk.f32.vlgmr.msra.gmra.mrb[32].mxu0 %vm9025_vm11, %v14750_v40  ;;  %v15690_v40 = vpack.c.bf16 %v10842_v28, %v10840_v26  ;;  %v14810_v26 = vld [vmem:[%s21295_s13 + $0x58] sm:$0xff] }
 0xb78   : > { %15243 = vmatpush3.msra.mxu0 %v9900_v39  ;;  %15244 = vmatprep.mubr.msk.f32.mxu0 %vm9025_vm11, %v14753_v5  ;;  %v10841_v39 = vld [vmem:[%s21294_s12 + $0x30] sm:$0xff] }
 0xb79   : > { %15247 = vmatprep.subr.mxu0 %v9989_v6  ;;  %v15692_v5 = vpack.c.bf16 %v10841_v39, %v10839_v38  ;;  %v14816_v39 = vld [vmem:[%s21295_s13 + $0x68] sm:$0xff] }
 0xb7c   : > { %v10519_v31 = vpop.permute.xlu1 %10518  ;;  %v10608_v53 = vpop.permute.xlu0 %10607 }
 0xb7f   : > { %15245 = vmatmul.mubr.msk.f32.vlgmr.msra.gmra.mrb[32].mxu0 %vm9025_vm11, %v14754_v32 }
 0xb80   : > { %15248 = vmatpush3.msra.mxu0 %v9989_v6  ;;  %15249 = vmatprep.mubr.msk.f32.mxu0 %vm9025_vm11, %v14757_v33  ;;  %v10697_v56 = vpop.permute.xlu1 %10696 }
 0xb81   : > { %15252 = vmatprep.subr.mxu0 %v20665_v34 }
 0xb87   : > { %15250 = vmatmul.mubr.msk.f32.vlgmr.msra.gmra.mrb[32].mxu0 %vm9025_vm11, %v14758_v36 }
 0xb88   : > { %15253 = vmatpush3.msra.mxu0 %v20665_v34  ;;  %15254 = vmatprep.mubr.msk.f32.mxu0 %vm9025_vm11, %v14761_v41 }
 0xb89   : > { %15257 = vmatprep.subr.mxu0 %v10165_v24 }
 0xb8f   : > { %15255 = vmatmul.mubr.msk.f32.vlgmr.msra.gmra.mrb[32].mxu0 %vm9025_vm11, %v14762_v43  ;;  %v10825_v43 = vld [vmem:[%s21292_s10] sm:$0xff] }
 0xb90   : > { %15258 = vmatpush3.msra.mxu0 %v10165_v24  ;;  %15259 = vmatprep.mubr.msk.f32.mxu0 %vm9025_vm11, %v14765_v35  ;;  %v10826_v35 = vld [vmem:[%s21292_s10 + $0x8] sm:$0xff] }
 0xb91   : > { %15262 = vmatprep.subr.mxu0 %v10254_v44 }
 0xb97   : > { %15260 = vmatmul.mubr.msk.f32.vlgmr.msra.gmra.mrb[32].mxu0 %vm9025_vm11, %v14766_v45 }
 0xb98   : > { %15263 = vmatpush3.msra.mxu0 %v10254_v44  ;;  %15264 = vmatprep.mubr.msk.f32.mxu0 %vm9025_vm11, %v14769_v46  ;;  %v10829_v46 = vld [vmem:[%s21293_s11] sm:$0xff] }
 0xb99   : > { %15267 = vmatprep.subr.mxu0 %v10343_v47 }
 0xb9f   : > { %15265 = vmatmul.mubr.msk.f32.vlgmr.msra.gmra.mrb[32].mxu0 %vm9025_vm11, %v14770_v48 }
 0xba0   : > { %15268 = vmatpush3.msra.mxu0 %v10343_v47  ;;  %15269 = vmatprep.mubr.msk.f32.mxu0 %vm9025_vm11, %v14773_v49  ;;  %v10830_v49 = vld [vmem:[%s21293_s11 + $0x8] sm:$0xff] }
 0xba1   : > { %15272 = vmatprep.subr.mxu0 %v20671_v1 }
 0xba7   : > { %15270 = vmatmul.mubr.msk.f32.vlgmr.msra.gmra.mrb[32].mxu0 %vm9025_vm11, %v14774_v37 }
 0xba8   : > { %15273 = vmatpush3.msra.mxu0 %v20671_v1  ;;  %15274 = vmatprep.mubr.msk.f32.mxu0 %vm9025_vm11, %v14777_v50 }
 0xba9   : > { %15277 = vmatprep.subr.mxu0 %v10519_v31 }
 0xbaf   : > { %15275 = vmatmul.mubr.msk.f32.vlgmr.msra.gmra.mrb[32].mxu0 %vm9025_vm11, %v14778_v51 }
 0xbb0   : > { %15278 = vmatpush3.msra.mxu0 %v10519_v31  ;;  %15279 = vmatprep.mubr.msk.f32.mxu0 %vm9025_vm11, %v14781_v52 }
 0xbb1   : > { %15282 = vmatprep.subr.mxu0 %v10608_v53 }
 0xbb7   : > { %15280 = vmatmul.mubr.msk.f32.vlgmr.msra.gmra.mrb[32].mxu0 %vm9025_vm11, %v14782_v54 }
 0xbb8   : > { %15283 = vmatpush3.msra.mxu0 %v10608_v53  ;;  %15284 = vmatprep.mubr.msk.f32.mxu0 %vm9025_vm11, %v14785_v55  ;;  %v14795_v53 = vld [vmem:[%s21295_s13 + $0x20] sm:$0xff] }
 0xbb9   : > { %15287 = vmatprep.subr.mxu0 %v10697_v56  ;;  %15296 = vmatprep.mubr.msk.f32.mxu1 %vm10943_vm13, %v14795_v53 }
 0xbbf   : > { %15285 = vmatmul.mubr.msk.f32.vlgmr.msra.gmra.mrb[32].mxu0 %vm9025_vm11, %v14786_v57 }
 0xbc0   : > { %15288 = vmatpush3.msra.mxu0 %v10697_v56  ;;  %15289 = vmatprep.mubr.msk.f32.mxu0 %vm9025_vm11, %v14789_v58 }
 0xbc1   : > { %15687 = vmatprep.subr.bf16.mxu0 %v15686_v18 }
 0xbc7   : > { %15290 = vmatmul.mubr.msk.f32.vlgmr.msra.gmra.mrb[32].mxu0 %vm9025_vm11, %v14790_v59 }
 0xbc8   : > { %10913 = vmatprep.mubr.f32.mxu0 %v17443_v0  ;;  %15689 = vmatpush1.bf16.msra.mxu0 %v15688_v22 }
 0xbc9   : > { %15691 = vmatprep.subr.bf16.mxu0 %v15690_v40  ;;  %v14817_v40 = vld [vmem:[%s21295_s13 + $0x70] sm:$0xff] }
 0xbcc   : > { %15693 = vmatpush1.bf16.msra.mxu0 %v15692_v5 }
 0xbcd   : > { %15758 = vmatprep.subr.bf16.mxu0 %v17464_v30 }
 0xc9a   : > { %v15291_v60 = vpop.f32.mrb[32].mxu0 }
 0xc9b   : > { %v10784_v61 = vsel %vm10782_vm12, %v15291_v60, 0.0  ;;  %v10771_v62 = vpop.f32.mrb[33].mxu0 }
 0xc9c   : > { %v10783_v63 = vsel %vm10782_vm12, %v10771_v62, 0.0 }
 0xc9d   : > { %v10785_v12 = vadd.f32 %v10784_v61, %v10783_v63 }
 0xc9f   : > { %10786 = vadd.xlane.f32.xlu0 %v10785_v12 }
 0xd2c   : > { %v10787_v34 = vpop.xlane.xlu0 %10786 }
 0xd2d   : > { %v10788_v1 = vrot.slane %v10787_v34, 4 }
 0xd2f   : > { %v10789_v2 = vadd.f32 %v10788_v1, %v10787_v34 }
 0xd31   : > { %v10790_v3 = vrot.slane %v10789_v2, 2 }
 0xd33   : > { %v10791_v4 = vadd.f32 %v10790_v3, %v10789_v2 }
 0xd35   : > { %v10792_v7 = vrot.slane %v10791_v4, 1 }
 0xd37   : > { %v10793_v8 = vadd.f32 %v10792_v7, %v10791_v4  ;;  %v14796_v4 = vld [vmem:[%s21295_s13 + $0x28] sm:$0xff]  ;;  %v14797_v7 = vld [vmem:[%s21295_s13 + $0x30] sm:$0xff] }
 0xd39   : > { %16029 = vpush %v10793_v8 }
 0xd6a   : > { %s16030_s5 = spop %16029 }
 0xd6b   : > { %s10797_s3 = smul.f32 0.001953125, %s16030_s5  ;;  %s17469_s5 = smov 119  }
 0xd6d   : > { %v10798_v9 = vstv %s10797_s3  ;;  %s17470_s3 = smov 92  }
 0xd6e   : > { %v10799_v10 = vsub.f32 %v10771_v62, %v10798_v9  ;;  %v10800_v11 = vsub.f32 %v15291_v60, %v10798_v9 }
 0xd70   : > { %v10801_v13 = vmul.f32 %v10799_v10, %v10799_v10  ;;  %v10802_v29 = vmul.f32 %v10800_v11, %v10800_v11 }
 0xd72   : > { %v10803_v42 = vsel %vm10782_vm12, %v10801_v13, 0.0  ;;  %v10804_v25 = vsel %vm10782_vm12, %v10802_v29, 0.0 }
 0xd73   : > { %v10805_v14 = vadd.f32 %v10804_v25, %v10803_v42  ;;  %v10927_v42 = vld [vmem:[%s21295_s13 + $0x8] sm:$0xff]  ;;  %v10928_v25 = vld [vmem:[%s21295_s13 + $0x10] sm:$0xff] }
 0xd75   : > { %10806 = vadd.xlane.f32.xlu1 %v10805_v14 }
 0xe02   : > { %v10807_v21 = vpop.xlane.xlu1 %10806 }
 0xe03   : > { %v10808_v17 = vrot.slane %v10807_v21, 4 }
 0xe05   : > { %v10809_v23 = vadd.f32 %v10808_v17, %v10807_v21 }
 0xe07   : > { %v10810_v27 = vrot.slane %v10809_v23, 2 }
 0xe09   : > { %v10811_v6 = vadd.f32 %v10810_v27, %v10809_v23  ;;  %v14815_v27 = vld [vmem:[%s21295_s13 + $0x60] sm:$0xff] }
 0xe0b   : > { %v10812_v32 = vrot.slane %v10811_v6, 1 }
 0xe0d   : > { %v10813_v33 = vadd.f32 %v10812_v32, %v10811_v6  ;;  %v14818_v32 = vld [vmem:[%s21295_s13 + $0x78] sm:$0xff] }
 0xe0f   : > { %16031 = vpush %v10813_v33  ;;  %v14823_v33 = vld [vmem:[%s21295_s13 + $0x80] sm:$0xff] }
 0xe40   : > { %s16032_s1 = spop %16031 }
 0xe41   : > { %s10817_s29 = smul.f32 0.001953125, %s16032_s1  ;;  %s17474_s1 = smov 38  }
 0xe43   : > { %s10818_s4 = sadd.f32 1e-05, %s10817_s29  ;;  %s21335_s29 = smov 47  }
 0xe45   : > { %v10819_v36 = vstv %s10818_s4  ;;  %s21336_s4 = smov 20  }
 0xe46   : > { %17431 = vrsqrt.f32 %v10819_v36 }
 0xe50   : > { %v17432_v41 = vpop.eup %17431 }
 0xe51   : > { %16033 = vpush %v17432_v41 }
 0xe82   : > { %s16034_s27 = spop %16033 }
 0xe83   : > { %v10822_v24 = vstv %s16034_s27  ;;  %s17468_s27 = smov 110  }
 0xe84   : > { %v10823_v44 = vmul.f32 %v10822_v24, %v10799_v10  ;;  %v10824_v45 = vmul.f32 %v10822_v24, %v10800_v11  ;;  %v14798_v10 = vld [vmem:[%s21295_s13 + $0x38] sm:$0xff]  ;;  %v10926_v11 = vld [vmem:[%s21295_s13] sm:$0xff]  ;;  %v14824_v24 = vld [vmem:[%s21295_s13 + $0x88] sm:$0xff] }
 0xe86   : > { %v10827_v47 = vmul.f32 %v10825_v43, %v10823_v44  ;;  %v10828_v48 = vmul.f32 %v10826_v35, %v10824_v45  ;;  %v14825_v43 = vld [vmem:[%s21295_s13 + $0x90] sm:$0xff]  ;;  %v14826_v45 = vld [vmem:[%s21295_s13 + $0x98] sm:$0xff] }
 0xe88   : > { %v10831_v37 = vadd.f32 %v10829_v46, %v10827_v47  ;;  %v10832_v50 = vadd.f32 %v10830_v49, %v10828_v48  ;;  %v14831_v46 = vld [vmem:[%s21295_s13 + $0xa0] sm:$0xff]  ;;  %v14832_v49 = vld [vmem:[%s21295_s13 + $0xa8] sm:$0xff] }
 0xe8a   : > { %v10833_v31 = vmax.f32 %v10831_v37, 0.0  ;;  %v10834_v51 = vmax.f32 %v10832_v50, 0.0  ;;  %v14833_v37 = vld [vmem:[%s21295_s13 + $0xb0] sm:$0xff] }
 0xe8c   : > { %14793 = vmatmul.mubr.msk.f32.vlgmr.msra.gmra.mrb[34].mxu0 %vm10782_vm12, %v10833_v31 }
 0xe8d   : > { %10919 = vmatprep.mubr.f32.mxu0 %v17443_v0 }
 0xe90   : > { %14794 = vmatmul.mubr.msk.f32.gmra.mrb[36].mxu0 %vm10782_vm12, %v10834_v51  ;;  %v14834_v51 = vld [vmem:[%s21295_s13 + $0xb8] sm:$0xff] }
 0xe91   : > { %15460 = vmatprep.mubr.msk.f32.mxu0 %vm17478_vm1, %v17443_v0 }
 0xf5f   : > { %v10915_v52 = vpop.f32.mrb[34].mxu0 }
 0xf60   : > { %v10917_v54 = vpop.f32.mrb[35].mxu0 }
 0xf61   : > { %v16156_v55 = vpack.i.bf16 %v10917_v54, %v10915_v52 }
 0xf63   : > { %v10921_v56 = vpop.f32.mrb[36].mxu0 }
 0xf64   : > { %v10923_v57 = vpop.f32.mrb[37].mxu0  ;;  %v16096_v58 = vpack.i.bf16 %v10921_v56, %v10915_v52  ;;  %v15698_v61 = vpack.c.bf16 %v10921_v56, %v10915_v52  ;;  %v14839_v52 = vld [vmem:[%s21295_s13 + $0xc0] sm:$0xff] }
 0xf65   : > { %v16166_v59 = vpack.i.bf16 %v10923_v57, %v10917_v54  ;;  %v16161_v60 = vpack.i.bf16 %v10923_v57, %v10921_v56  ;;  %v14841_v56 = vld [vmem:[%s21295_s13 + $0xd0] sm:$0xff] }
 0xf66   : > { %16097 = vrot.lane.b32.xlu1 %v16096_v58, %s17468_s27  ;;  %16092 = vrot.lane.b32.xlu0 %v16096_v58, %s17469_s5  ;;  %s17475_s27 = smov 29   ;;  %s17476_s5 = smov 2  }
 0xf6a   : > { %16107 = vrot.lane.b32.xlu1 %v16096_v58, %s17470_s3  ;;  %16102 = vrot.lane.b32.xlu0 %v16096_v58, %s21333_s0  ;;  %s17477_s3 = smov 11   ;;  %s21337_s0 = smov 121  }
 0xf6e   : > { %16117 = vrot.lane.b32.xlu1 %v16096_v58, %s21334_s2  ;;  %16112 = vrot.lane.b32.xlu0 %v16096_v58, %s17471_s26 }
 0xf72   : > { %16127 = vrot.lane.b32.xlu1 %v16096_v58, %s17472_s30  ;;  %16122 = vrot.lane.b32.xlu0 %v16096_v58, %s17473_s22  ;;  %s17481_s30 = smov 124   ;;  %s17483_s22 = smov 122  }
 0xf76   : > { %16137 = vrot.lane.b32.xlu1 %v16096_v58, %s17474_s1  ;;  %16132 = vrot.lane.b32.xlu0 %v16096_v58, %s21335_s29  ;;  %s17484_s1 = smov 120  }
 0xf7a   : > { %16147 = vrot.lane.b32.xlu1 %v16096_v58, %s21336_s4  ;;  %16142 = vrot.lane.b32.xlu0 %v16096_v58, %s17475_s27 }
 0xf7e   : > { %16157 = vrot.lane.b32.xlu1 %v16156_v55, %s17476_s5  ;;  %16152 = vrot.lane.b32.xlu0 %v16096_v58, %s17477_s3  ;;  %v14840_v55 = vld [vmem:[%s21295_s13 + $0xc8] sm:$0xff] }
 0xf82   : > { %16167 = vrot.lane.b32.xlu1 %v16166_v59, %s21337_s0  ;;  %16162 = vrot.lane.b32.xlu0 %v16161_v60, %s17476_s5  ;;  %v14842_v59 = vld [vmem:[%s21295_s13 + $0xd8] sm:$0xff]  ;;  %v14847_v60 = vld [vmem:[%s21295_s13 + $0xe0] sm:$0xff] }
 0xfd8   : > { %v16093_v62 = vpop.permute.xlu0 %16092  ;;  %v16098_v34 = vpop.permute.xlu1 %16097 }
 0xfd9   : > { %v16095_v63 = vunpack.i.h.bf16 %v16093_v62  ;;  %v16094_v12 = vunpack.i.l.bf16 %v16093_v62  ;;  %v16100_v2 = vunpack.i.h.bf16 %v16098_v34  ;;  %v16099_v3 = vunpack.i.l.bf16 %v16098_v34 }
 0xfdb   : > { %v15694_v1 = vpack.c.bf16 %v16095_v63, %v16094_v12  ;;  %v15702_v8 = vpack.c.bf16 %v16100_v2, %v16099_v3  ;;  %v14848_v63 = vld [vmem:[%s21295_s13 + $0xe8] sm:$0xff]  ;;  %v14849_v12 = vld [vmem:[%s21295_s13 + $0xf0] sm:$0xff]  ;;  %v14850_v2 = vld [vmem:[%s21295_s13 + $0xf8] sm:$0xff] }
 0xfdc   : > { %v16103_v9 = vpop.permute.xlu0 %16102  ;;  %v16108_v21 = vpop.permute.xlu1 %16107  ;;  %v14855_v3 = vld [vmem:[%s21295_s13 + $0x100] sm:$0xff] }
 0xfdd   : > { %15695 = vmatprep.subr.bf16.mxu1 %v15694_v1  ;;  %v16105_v13 = vunpack.i.h.bf16 %v16103_v9  ;;  %v16104_v29 = vunpack.i.l.bf16 %v16103_v9  ;;  %v16110_v17 = vunpack.i.h.bf16 %v16108_v21  ;;  %v16109_v18 = vunpack.i.l.bf16 %v16108_v21  ;;  %v14857_v9 = vld [vmem:[%s21295_s13 + $0x110] sm:$0xff] }
 0xfde   : > { %15697 = vmatpush3.bf16.msra.mxu1 %v15694_v1  ;;  %v14865_v21 = vld [vmem:[%s21295_s13 + $0x130] sm:$0xff] }
 0xfdf   : > { %15699 = vmatprep.subr.bf16.mxu1 %v15698_v61  ;;  %v15706_v14 = vpack.c.bf16 %v16105_v13, %v16104_v29  ;;  %v15710_v22 = vpack.c.bf16 %v16110_v17, %v16109_v18  ;;  %v14858_v13 = vld [vmem:[%s21295_s13 + $0x118] sm:$0xff]  ;;  %v14863_v29 = vld [vmem:[%s21295_s13 + $0x120] sm:$0xff] }
 0xfe0   : > { %v16113_v23 = vpop.permute.xlu0 %16112  ;;  %v16118_v6 = vpop.permute.xlu1 %16117  ;;  %v14866_v17 = vld [vmem:[%s21295_s13 + $0x138] sm:$0xff]  ;;  %v14871_v18 = vld [vmem:[%s21295_s13 + $0x140] sm:$0xff] }
 0xfe1   : > { %15297 = vmatmul.mubr.msk.f32.vlgmr.msra.gmra.mrb[36].mxu1 %vm10943_vm13, %v14796_v4  ;;  %v16115_v28 = vunpack.i.h.bf16 %v16113_v23  ;;  %v16114_v38 = vunpack.i.l.bf16 %v16113_v23  ;;  %v16120_v36 = vunpack.i.h.bf16 %v16118_v6  ;;  %v16119_v41 = vunpack.i.l.bf16 %v16118_v6  ;;  %v14873_v23 = vld [vmem:[%s21295_s13 + $0x150] sm:$0xff] }
 0xfe2   : > { %15701 = vmatpush3.bf16.msra.mxu1 %v15698_v61  ;;  %15299 = vmatprep.mubr.msk.f32.mxu1 %vm10943_vm13, %v14797_v7 }
 0xfe3   : > { %15703 = vmatprep.subr.bf16.mxu1 %v15702_v8  ;;  %v15714_v5 = vpack.c.bf16 %v16115_v28, %v16114_v38  ;;  %v15718_v35 = vpack.c.bf16 %v16120_v36, %v16119_v41  ;;  %v14874_v28 = vld [vmem:[%s21295_s13 + $0x158] sm:$0xff]  ;;  %v14879_v38 = vld [vmem:[%s21295_s13 + $0x160] sm:$0xff] }
 0xfe4   : > { %v16123_v44 = vpop.permute.xlu0 %16122  ;;  %v16128_v31 = vpop.permute.xlu1 %16127 }
 0xfe5   : > { %15300 = vmatmul.mubr.msk.f32.gmra.mrb[38].mxu1 %vm10943_vm13, %v14798_v10  ;;  %v16125_v47 = vunpack.i.h.bf16 %v16123_v44  ;;  %v16124_v48 = vunpack.i.l.bf16 %v16123_v44  ;;  %v16130_v53 = vunpack.i.h.bf16 %v16128_v31  ;;  %v16129_v54 = vunpack.i.l.bf16 %v16128_v31  ;;  %v14890_v31 = vld [vmem:[%s21295_s13 + $0x198] sm:$0xff] }
 0xfe6   : > { %15306 = vmatprep.mubr.msk.f32.mxu1 %vm10943_vm13, %v10926_v11 }
 0xfe7   : > { %v15722_v50 = vpack.c.bf16 %v16125_v47, %v16124_v48  ;;  %v15726_v57 = vpack.c.bf16 %v16130_v53, %v16129_v54  ;;  %v14889_v48 = vld [vmem:[%s21295_s13 + $0x190] sm:$0xff]  ;;  %v14896_v54 = vld [vmem:[%s21295_s13 + $0x1a8] sm:$0xff] }
 0xfe8   : > { %v16133_v58 = vpop.permute.xlu0 %16132  ;;  %v16138_v1 = vpop.permute.xlu1 %16137 }
 0xfe9   : > { %15307 = vmatmul.mubr.msk.f32.vlgmr.msra.gmra.mrb[36].mxu1 %vm10943_vm13, %v10927_v42  ;;  %v16135_v61 = vunpack.i.h.bf16 %v16133_v58  ;;  %v16134_v62 = vunpack.i.l.bf16 %v16133_v58  ;;  %v16140_v4 = vunpack.i.h.bf16 %v16138_v1  ;;  %v16139_v7 = vunpack.i.l.bf16 %v16138_v1  ;;  %v14903_v58 = vld [vmem:[%s21295_s13 + $0x1c0] sm:$0xff] }
 0xfea   : > { %15705 = vmatpush3.bf16.msra.mxu1 %v15702_v8  ;;  %15309 = vmatprep.mubr.msk.f32.mxu1 %vm10943_vm13, %v10928_v25  ;;  %v14856_v8 = vld [vmem:[%s21295_s13 + $0x108] sm:$0xff] }
 0xfeb   : > { %15707 = vmatprep.subr.bf16.mxu1 %v15706_v14  ;;  %v15730_v34 = vpack.c.bf16 %v16135_v61, %v16134_v62  ;;  %v15734_v10 = vpack.c.bf16 %v16140_v4, %v16139_v7  ;;  %v14906_v61 = vld [vmem:[%s21295_s13 + $0x1d8] sm:$0xff]  ;;  %v14911_v62 = vld [vmem:[%s21295_s13 + $0x1e0] sm:$0xff] }
 0xfec   : > { %v16143_v11 = vpop.permute.xlu0 %16142 }
 0xfed   : > { %15310 = vmatmul.mubr.msk.f32.gmra.mrb[38].mxu1 %vm10943_vm13, %v10929_v15  ;;  %v16145_v42 = vunpack.i.h.bf16 %v16143_v11  ;;  %v16144_v25 = vunpack.i.l.bf16 %v16143_v11 }
 0xfee   : > { %15316 = vmatprep.mubr.msk.f32.mxu1 %vm10943_vm13, %v14807_v16  ;;  %v16148_v16 = vpop.permute.xlu1 %16147 }
 0xfef   : > { %v15738_v15 = vpack.c.bf16 %v16145_v42, %v16144_v25 }
 0xff1   : > { %15317 = vmatmul.mubr.msk.f32.vlgmr.msra.gmra.mrb[36].mxu1 %vm10943_vm13, %v14808_v19  ;;  %v16150_v19 = vunpack.i.h.bf16 %v16148_v16 }
 0xff2   : > { %15709 = vmatpush3.bf16.msra.mxu1 %v15706_v14  ;;  %15319 = vmatprep.mubr.msk.f32.mxu1 %vm10943_vm13, %v14809_v20  ;;  %v14864_v14 = vld [vmem:[%s21295_s13 + $0x128] sm:$0xff]  ;;  %v16149_v20 = vunpack.i.l.bf16 %v16148_v16 }
 0xff3   : > { %15711 = vmatprep.subr.bf16.mxu1 %v15710_v22 }
 0xff5   : > { %15320 = vmatmul.mubr.msk.f32.gmra.mrb[38].mxu1 %vm10943_vm13, %v14810_v26  ;;  %v15742_v26 = vpack.c.bf16 %v16150_v19, %v16149_v20 }
 0xff6   : > { %15326 = vmatprep.mubr.msk.f32.mxu1 %vm10943_vm13, %v14815_v27  ;;  %v16153_v27 = vpop.permute.xlu0 %16152 }
 0xff9   : > { %15327 = vmatmul.mubr.msk.f32.vlgmr.msra.gmra.mrb[36].mxu1 %vm10943_vm13, %v14816_v39  ;;  %v16155_v39 = vunpack.i.h.bf16 %v16153_v27 }
 0xffa   : > { %15713 = vmatpush3.bf16.msra.mxu1 %v15710_v22  ;;  %15329 = vmatprep.mubr.msk.f32.mxu1 %vm10943_vm13, %v14817_v40  ;;  %v14872_v22 = vld [vmem:[%s21295_s13 + $0x148] sm:$0xff]  ;;  %v16154_v40 = vunpack.i.l.bf16 %v16153_v27  ;;  %v16163_v6 = vpop.permute.xlu0 %16162 }
 0xffb   : > { %15715 = vmatprep.subr.bf16.mxu1 %v15714_v5  ;;  %v16165_v41 = vunpack.i.h.bf16 %v16163_v6 }
 0xffc   : > { %v15746_v36 = vpack.c.bf16 %v16155_v39, %v16154_v40 }
 0xffd   : > { %15330 = vmatmul.mubr.msk.f32.gmra.mrb[38].mxu1 %vm10943_vm13, %v14818_v32  ;;  %v14881_v32 = vld [vmem:[%s21295_s13 + $0x170] sm:$0xff] }
 0xffe   : > { %15336 = vmatprep.mubr.msk.f32.mxu1 %vm10943_vm13, %v14823_v33  ;;  %v16158_v33 = vpop.permute.xlu1 %16157 }
 0xfff   : > { %v16160_v44 = vunpack.i.h.bf16 %v16158_v33 }
0x1001   : > { %15337 = vmatmul.mubr.msk.f32.vlgmr.msra.gmra.mrb[36].mxu1 %vm10943_vm13, %v14824_v24  ;;  %v16164_v24 = vunpack.i.l.bf16 %v16163_v6 }
0x1002   : > { %15717 = vmatpush3.bf16.msra.mxu1 %v15714_v5  ;;  %15339 = vmatprep.mubr.msk.f32.mxu1 %vm10943_vm13, %v14825_v43  ;;  %v14880_v5 = vld [vmem:[%s21295_s13 + $0x168] sm:$0xff]  ;;  %v14882_v43 = vld [vmem:[%s21295_s13 + $0x178] sm:$0xff] }
0x1003   : > { %15719 = vmatprep.subr.bf16.mxu1 %v15718_v35  ;;  %v12499_v47 = vsel %vm12497_vm14, %v16164_v24, %v16165_v41 }
0x1005   : > { %15340 = vmatmul.mubr.msk.f32.gmra.mrb[38].mxu1 %vm10943_vm13, %v14826_v45  ;;  %v16159_v45 = vunpack.i.l.bf16 %v16158_v33 }
0x1006   : > { %15346 = vmatprep.mubr.msk.f32.mxu1 %vm10943_vm13, %v14831_v46  ;;  %v14888_v46 = vld [vmem:[%s21295_s13 + $0x188] sm:$0xff] }
0x1009   : > { %15347 = vmatmul.mubr.msk.f32.vlgmr.msra.gmra.mrb[36].mxu1 %vm10943_vm13, %v14832_v49  ;;  %v12498_v49 = vsel %vm12497_vm14, %v16159_v45, %v16160_v44 }
0x100a   : > { %15721 = vmatpush3.bf16.msra.mxu1 %v15718_v35  ;;  %15349 = vmatprep.mubr.msk.f32.mxu1 %vm10943_vm13, %v14833_v37  ;;  %v14887_v35 = vld [vmem:[%s21295_s13 + $0x180] sm:$0xff]  ;;  %v15750_v37 = vpack.c.bf16 %v12499_v47, %v12498_v49 }
0x100b   : > { %15723 = vmatprep.subr.bf16.mxu1 %v15722_v50  ;;  %v12772_v49 = vld [vmem:[%s21296_s14] sm:$0xff] }
0x100d   : > { %15350 = vmatmul.mubr.msk.f32.gmra.mrb[38].mxu1 %vm10943_vm13, %v14834_v51  ;;  %v14895_v51 = vld [vmem:[%s21295_s13 + $0x1a0] sm:$0xff] }
0x100e   : > { %15356 = vmatprep.mubr.msk.f32.mxu1 %vm10943_vm13, %v14839_v52 }
0x1011   : > { %15357 = vmatmul.mubr.msk.f32.vlgmr.msra.gmra.mrb[36].mxu1 %vm10943_vm13, %v14840_v55  ;;  %v14897_v55 = vld [vmem:[%s21295_s13 + $0x1b0] sm:$0xff] }
0x1012   : > { %15725 = vmatpush3.bf16.msra.mxu1 %v15722_v50  ;;  %15359 = vmatprep.mubr.msk.f32.mxu1 %vm10943_vm13, %v14841_v56  ;;  %v16168_v50 = vpop.permute.xlu1 %16167 }
0x1013   : > { %15727 = vmatprep.subr.bf16.mxu1 %v15726_v57  ;;  %v16170_v52 = vunpack.i.h.bf16 %v16168_v50  ;;  %v16169_v53 = vunpack.i.l.bf16 %v16168_v50  ;;  %v12773_v50 = vld [vmem:[%s21296_s14 + $0x8] sm:$0xff] }
0x1015   : > { %15360 = vmatmul.mubr.msk.f32.gmra.mrb[38].mxu1 %vm10943_vm13, %v14842_v59  ;;  %v15754_v56 = vpack.c.bf16 %v16170_v52, %v16169_v53  ;;  %v14904_v59 = vld [vmem:[%s21295_s13 + $0x1c8] sm:$0xff] }
0x1016   : > { %15366 = vmatprep.mubr.msk.f32.mxu1 %vm10943_vm13, %v14847_v60  ;;  %v14905_v60 = vld [vmem:[%s21295_s13 + $0x1d0] sm:$0xff] }
0x1019   : > { %15367 = vmatmul.mubr.msk.f32.vlgmr.msra.gmra.mrb[36].mxu1 %vm10943_vm13, %v14848_v63  ;;  %v14912_v63 = vld [vmem:[%s21295_s13 + $0x1e8] sm:$0xff] }
0x101a   : > { %15729 = vmatpush3.bf16.msra.mxu1 %v15726_v57  ;;  %15369 = vmatprep.mubr.msk.f32.mxu1 %vm10943_vm13, %v14849_v12  ;;  %v14898_v57 = vld [vmem:[%s21295_s13 + $0x1b8] sm:$0xff]  ;;  %v14913_v12 = vld [vmem:[%s21295_s13 + $0x1f0] sm:$0xff] }
0x101b   : > { %15731 = vmatprep.subr.bf16.mxu1 %v15730_v34 }
0x101d   : > { %15370 = vmatmul.mubr.msk.f32.gmra.mrb[38].mxu1 %vm10943_vm13, %v14850_v2 }
0x101e   : > { %15376 = vmatprep.mubr.msk.f32.mxu1 %vm10943_vm13, %v14855_v3 }
0x1021   : > { %15377 = vmatmul.mubr.msk.f32.vlgmr.msra.gmra.mrb[36].mxu1 %vm10943_vm13, %v14856_v8 }
0x1022   : > { %15733 = vmatpush3.bf16.msra.mxu1 %v15730_v34  ;;  %15379 = vmatprep.mubr.msk.f32.mxu1 %vm10943_vm13, %v14857_v9  ;;  %v14914_v34 = vld [vmem:[%s21295_s13 + $0x1f8] sm:$0xff] }
0x1023   : > { %15735 = vmatprep.subr.bf16.mxu1 %v15734_v10 }
0x1025   : > { %15380 = vmatmul.mubr.msk.f32.gmra.mrb[38].mxu1 %vm10943_vm13, %v14858_v13 }
0x1026   : > { %15386 = vmatprep.mubr.msk.f32.mxu1 %vm10943_vm13, %v14863_v29 }
0x1029   : > { %15387 = vmatmul.mubr.msk.f32.vlgmr.msra.gmra.mrb[36].mxu1 %vm10943_vm13, %v14864_v14 }
0x102a   : > { %15737 = vmatpush3.bf16.msra.mxu1 %v15734_v10  ;;  %15389 = vmatprep.mubr.msk.f32.mxu1 %vm10943_vm13, %v14865_v21 }
0x102b   : > { %15739 = vmatprep.subr.bf16.mxu1 %v15738_v15 }
0x102d   : > { %15390 = vmatmul.mubr.msk.f32.gmra.mrb[38].mxu1 %vm10943_vm13, %v14866_v17 }
0x102e   : > { %15396 = vmatprep.mubr.msk.f32.mxu1 %vm10943_vm13, %v14871_v18 }
0x1031   : > { %15397 = vmatmul.mubr.msk.f32.vlgmr.msra.gmra.mrb[36].mxu1 %vm10943_vm13, %v14872_v22 }
0x1032   : > { %15741 = vmatpush3.bf16.msra.mxu1 %v15738_v15  ;;  %15399 = vmatprep.mubr.msk.f32.mxu1 %vm10943_vm13, %v14873_v23 }
0x1033   : > { %15743 = vmatprep.subr.bf16.mxu1 %v15742_v26 }
0x1035   : > { %15400 = vmatmul.mubr.msk.f32.gmra.mrb[38].mxu1 %vm10943_vm13, %v14874_v28 }
0x1036   : > { %15406 = vmatprep.mubr.msk.f32.mxu1 %vm10943_vm13, %v14879_v38 }
0x1039   : > { %15407 = vmatmul.mubr.msk.f32.vlgmr.msra.gmra.mrb[36].mxu1 %vm10943_vm13, %v14880_v5 }
0x103a   : > { %15745 = vmatpush3.bf16.msra.mxu1 %v15742_v26  ;;  %15409 = vmatprep.mubr.msk.f32.mxu1 %vm10943_vm13, %v14881_v32 }
0x103b   : > { %15747 = vmatprep.subr.bf16.mxu1 %v15746_v36 }
0x103d   : > { %15410 = vmatmul.mubr.msk.f32.gmra.mrb[38].mxu1 %vm10943_vm13, %v14882_v43 }
0x103e   : > { %15416 = vmatprep.mubr.msk.f32.mxu1 %vm10943_vm13, %v14887_v35 }
0x1041   : > { %15417 = vmatmul.mubr.msk.f32.vlgmr.msra.gmra.mrb[36].mxu1 %vm10943_vm13, %v14888_v46 }
0x1042   : > { %15749 = vmatpush3.bf16.msra.mxu1 %v15746_v36  ;;  %15419 = vmatprep.mubr.msk.f32.mxu1 %vm10943_vm13, %v14889_v48 }
0x1043   : > { %15751 = vmatprep.subr.bf16.mxu1 %v15750_v37 }
0x1045   : > { %15420 = vmatmul.mubr.msk.f32.gmra.mrb[38].mxu1 %vm10943_vm13, %v14890_v31  ;;  %v12774_v31 = vld [vmem:[%s21296_s14 + $0x10] sm:$0xff] }
0x1046   : > { %15426 = vmatprep.mubr.msk.f32.mxu1 %vm10943_vm13, %v14895_v51  ;;  %v12775_v51 = vld [vmem:[%s21296_s14 + $0x18] sm:$0xff] }
0x1049   : > { %15427 = vmatmul.mubr.msk.f32.vlgmr.msra.gmra.mrb[36].mxu1 %vm10943_vm13, %v14896_v54 }
0x104a   : > { %15753 = vmatpush3.bf16.msra.mxu1 %v15750_v37  ;;  %15429 = vmatprep.mubr.msk.f32.mxu1 %vm10943_vm13, %v14897_v55 }
0x104b   : > { %15755 = vmatprep.subr.bf16.mxu1 %v15754_v56 }
0x104d   : > { %15430 = vmatmul.mubr.msk.f32.gmra.mrb[38].mxu1 %vm10943_vm13, %v14898_v57  ;;  %v12781_v57 = vld [vmem:[%s21297_s15 + $0x8] sm:$0xff] }
0x104e   : > { %15436 = vmatprep.mubr.msk.f32.mxu1 %vm10943_vm13, %v14903_v58  ;;  %v12782_v58 = vld [vmem:[%s21297_s15 + $0x10] sm:$0xff] }
0x1051   : > { %15437 = vmatmul.mubr.msk.f32.vlgmr.msra.gmra.mrb[36].mxu1 %vm10943_vm13, %v14904_v59  ;;  %v12783_v59 = vld [vmem:[%s21297_s15 + $0x18] sm:$0xff] }
0x1052   : > { %15757 = vmatpush3.bf16.msra.mxu1 %v15754_v56  ;;  %15439 = vmatprep.mubr.msk.f32.mxu1 %vm10943_vm13, %v14905_v60  ;;  %v12780_v56 = vld [vmem:[%s21297_s15] sm:$0xff] }
0x1055   : > { %15440 = vmatmul.mubr.msk.f32.gmra.mrb[38].mxu1 %vm10943_vm13, %v14906_v61 }
0x1056   : > { %15446 = vmatprep.mubr.msk.f32.mxu1 %vm10943_vm13, %v14911_v62 }
0x1059   : > { %15447 = vmatmul.mubr.msk.f32.vlgmr.msra.gmra.mrb[36].mxu1 %vm10943_vm13, %v14912_v63 }
0x105a   : > { %15449 = vmatprep.mubr.msk.f32.mxu1 %vm10943_vm13, %v14913_v12 }
0x105d   : > { %15450 = vmatmul.mubr.msk.f32.gmra.mrb[38].mxu1 %vm10943_vm13, %v14914_v34 }
0x112c   : > { %v15448_v1 = vpop.f32.mrb[36].mxu1 }
0x112d   : > { %v12717_v2 = vsel %vm12715_vm15, %v15448_v1, 0.0  ;;  %v12692_v3 = vpop.f32.mrb[37].mxu1 }
0x112e   : > { %v12716_v4 = vsel %vm12715_vm15, %v12692_v3, 0.0 }
0x112f   : > { %v12718_v7 = vadd.f32 %v12717_v2, %v12716_v4 }
0x1130   : > { %v15451_v8 = vpop.f32.mrb[38].mxu1 }
0x1131   : > { %v12702_v9 = vpop.f32.mrb[39].mxu1  ;;  %v12721_v13 = vsel %vm12715_vm15, %v15451_v8, 0.0 }
0x1132   : > { %v12719_v10 = vsel %vm12715_vm15, %v12702_v9, 0.0 }
0x1133   : > { %v12720_v11 = vadd.f32 %v12719_v10, %v12718_v7 }
0x1135   : > { %v12722_v29 = vadd.f32 %v12721_v13, %v12720_v11 }
0x1137   : > { %12723 = vadd.xlane.f32.xlu0 %v12722_v29 }
0x11c4   : > { %v12724_v42 = vpop.xlane.xlu0 %12723 }
0x11c5   : > { %v12725_v25 = vrot.slane %v12724_v42, 4 }
0x11c7   : > { %v12726_v14 = vadd.f32 %v12725_v25, %v12724_v42 }
0x11c9   : > { %v12727_v21 = vrot.slane %v12726_v14, 2 }
0x11cb   : > { %v12728_v15 = vadd.f32 %v12727_v21, %v12726_v14 }
0x11cd   : > { %v12729_v16 = vrot.slane %v12728_v15, 1 }
0x11cf   : > { %v12730_v17 = vadd.f32 %v12729_v16, %v12728_v15 }
0x11d1   : > { %16035 = vpush %v12730_v17 }
0x1202   : > { %s16036_s4 = spop %16035 }
0x1203   : > { %s12734_s27 = smul.f32 0.0034722222, %s16036_s4 }
0x1205   : > { %v12735_v18 = vstv %s12734_s27 }
0x1206   : > { %v12736_v19 = vsub.f32 %v12692_v3, %v12735_v18  ;;  %v12737_v20 = vsub.f32 %v15448_v1, %v12735_v18  ;;  %v12738_v22 = vsub.f32 %v12702_v9, %v12735_v18  ;;  %v12739_v23 = vsub.f32 %v15451_v8, %v12735_v18  ;;  %v14919_v18 = vld [vmem:[%s21298_s16 + $0x8] sm:$0xff] }
0x1208   : > { %v12740_v26 = vmul.f32 %v12736_v19, %v12736_v19  ;;  %v12741_v27 = vmul.f32 %v12737_v20, %v12737_v20  ;;  %v12742_v28 = vmul.f32 %v12738_v22, %v12738_v22  ;;  %v12743_v38 = vmul.f32 %v12739_v23, %v12739_v23 }
0x120a   : > { %v12744_v39 = vsel %vm12715_vm15, %v12740_v26, 0.0  ;;  %v12745_v40 = vsel %vm12715_vm15, %v12741_v27, 0.0  ;;  %v12747_v6 = vsel %vm12715_vm15, %v12742_v28, 0.0  ;;  %v12749_v33 = vsel %vm12715_vm15, %v12743_v38, 0.0  ;;  %v12792_v26 = vld [vmem:[%s21298_s16] sm:$0xff] }
0x120b   : > { %v12746_v5 = vadd.f32 %v12745_v40, %v12744_v39 }
0x120d   : > { %v12748_v32 = vadd.f32 %v12747_v6, %v12746_v5 }
0x120f   : > { %v12750_v36 = vadd.f32 %v12749_v33, %v12748_v32  ;;  %v14922_v33 = vld [vmem:[%s21298_s16 + $0x10] sm:$0xff] }
0x1211   : > { %12751 = vadd.xlane.f32.xlu1 %v12750_v36 }
0x129e   : > { %v12752_v41 = vpop.xlane.xlu1 %12751 }
0x129f   : > { %v12753_v24 = vrot.slane %v12752_v41, 4 }
0x12a1   : > { %v12754_v43 = vadd.f32 %v12753_v24, %v12752_v41 }
0x12a3   : > { %v12755_v35 = vrot.slane %v12754_v43, 2 }
0x12a5   : > { %v12756_v44 = vadd.f32 %v12755_v35, %v12754_v43 }
0x12a7   : > { %v12757_v45 = vrot.slane %v12756_v44, 1 }
0x12a9   : > { %v12758_v46 = vadd.f32 %v12757_v45, %v12756_v44 }
0x12ab   : > { %16037 = vpush %v12758_v46 }
0x12dc   : > { %s16038_s5 = spop %16037 }
0x12dd   : > { %s12762_s3 = smul.f32 0.0034722222, %s16038_s5  ;;  %s21338_s5 = smov 127  }
0x12df   : > { %s12763_s2 = sadd.f32 1e-05, %s12762_s3  ;;  %s17479_s3 = smov 126  }
0x12e1   : > { %v12764_v47 = vstv %s12763_s2  ;;  %s17480_s2 = smov 125  }
0x12e2   : > { %17433 = vrsqrt.f32 %v12764_v47  ;;  %v14924_v47 = vld [vmem:[%s21298_s16 + $0x18] sm:$0xff] }
0x12ec   : > { %v17434_v48 = vpop.eup %17433 }
0x12ed   : > { %16039 = vpush %v17434_v48 }
0x131e   : > { %s16040_s26 = spop %16039 }
0x131f   : > { %v12767_v37 = vstv %s16040_s26  ;;  %s17482_s26 = smov 123  }
0x1320   : > { %v12768_v52 = vmul.f32 %v12767_v37, %v12736_v19  ;;  %v12769_v53 = vmul.f32 %v12767_v37, %v12737_v20  ;;  %v12770_v54 = vmul.f32 %v12767_v37, %v12738_v22  ;;  %v12771_v55 = vmul.f32 %v12767_v37, %v12739_v23 }
0x1322   : > { %v12776_v60 = vmul.f32 %v12772_v49, %v12768_v52  ;;  %v12777_v61 = vmul.f32 %v12773_v50, %v12769_v53  ;;  %v12778_v62 = vmul.f32 %v12774_v31, %v12770_v54  ;;  %v12779_v63 = vmul.f32 %v12775_v51, %v12771_v55  ;;  %v14926_v54 = vld [vmem:[%s21298_s16 + $0x20] sm:$0xff] }
0x1324   : > { %v12784_v12 = vadd.f32 %v12780_v56, %v12776_v60  ;;  %v12785_v34 = vadd.f32 %v12781_v57, %v12777_v61  ;;  %v12786_v1 = vadd.f32 %v12782_v58, %v12778_v62  ;;  %v12787_v2 = vadd.f32 %v12783_v59, %v12779_v63  ;;  %v14928_v63 = vld [vmem:[%s21298_s16 + $0x28] sm:$0xff] }
0x1326   : > { %v12788_v3 = vmax.f32 %v12784_v12, 0.0  ;;  %v12789_v4 = vmax.f32 %v12785_v34, 0.0  ;;  %v12790_v7 = vmax.f32 %v12786_v1, 0.0  ;;  %v12791_v8 = vmax.f32 %v12787_v2, 0.0 }
0x1328   : > { %v16176_v9 = vpack.i.bf16 %v12791_v8, %v12790_v7  ;;  %v16171_v10 = vpack.i.bf16 %v12789_v4, %v12788_v3  ;;  %v15765_v11 = vpack.c.bf16 %v12789_v4, %v12788_v3  ;;  %v15768_v13 = vpack.c.bf16 %v12791_v8, %v12790_v7 }
0x132a   : > { %16177 = vrot.lane.b32.xlu1 %v16176_v9, %s21338_s5  ;;  %16172 = vrot.lane.b32.xlu0 %v16171_v10, %s21338_s5 }
0x132e   : > { %16187 = vrot.lane.b32.xlu1 %v16176_v9, %s17479_s3  ;;  %16182 = vrot.lane.b32.xlu0 %v16171_v10, %s17479_s3 }
0x1332   : > { %16197 = vrot.lane.b32.xlu1 %v16176_v9, %s17480_s2  ;;  %16192 = vrot.lane.b32.xlu0 %v16171_v10, %s17480_s2  ;;  %s13796_s2 = sshll.u32 %s21341_s25, 3 }
0x1333   : > { %s654_s29 = scalar_lea.vmem %s21303_s21, %s13796_s2 }
0x1336   : > { %16207 = vrot.lane.b32.xlu1 %v16176_v9, %s17481_s30  ;;  %16202 = vrot.lane.b32.xlu0 %v16171_v10, %s17481_s30 }
0x133a   : > { %16217 = vrot.lane.b32.xlu1 %v16176_v9, %s17482_s26  ;;  %16212 = vrot.lane.b32.xlu0 %v16171_v10, %s17482_s26 }
0x133e   : > { %16227 = vrot.lane.b32.xlu1 %v16176_v9, %s17483_s22  ;;  %16222 = vrot.lane.b32.xlu0 %v16171_v10, %s17483_s22 }
0x1342   : > { %16237 = vrot.lane.b32.xlu1 %v16176_v9, %s21337_s0  ;;  %16232 = vrot.lane.b32.xlu0 %v16171_v10, %s21337_s0 }
0x1346   : > { %16247 = vrot.lane.b32.xlu1 %v16176_v9, %s17484_s1  ;;  %16242 = vrot.lane.b32.xlu0 %v16171_v10, %s17484_s1  ;;  %v14930_v9 = vld [vmem:[%s21298_s16 + $0x30] sm:$0xff] }
0x139c   : > { %v16178_v29 = vpop.permute.xlu1 %16177  ;;  %v16173_v42 = vpop.permute.xlu0 %16172 }
0x139d   : > { %v16175_v25 = vunpack.i.h.bf16 %v16173_v42  ;;  %v16174_v14 = vunpack.i.l.bf16 %v16173_v42  ;;  %v16180_v21 = vunpack.i.h.bf16 %v16178_v29  ;;  %v16179_v15 = vunpack.i.l.bf16 %v16178_v29 }
0x139f   : > { %v15759_v16 = vpack.c.bf16 %v16175_v25, %v16174_v14  ;;  %v15762_v17 = vpack.c.bf16 %v16180_v21, %v16179_v15  ;;  %v14932_v15 = vld [vmem:[%s21298_s16 + $0x38] sm:$0xff] }
0x13a0   : > { %v16183_v19 = vpop.permute.xlu0 %16182  ;;  %v16188_v23 = vpop.permute.xlu1 %16187 }
0x13a1   : > { %15760 = vmatpush3.bf16.msra.mxu0 %v15759_v16  ;;  %v16185_v20 = vunpack.i.h.bf16 %v16183_v19  ;;  %v16184_v22 = vunpack.i.l.bf16 %v16183_v19  ;;  %v16190_v27 = vunpack.i.h.bf16 %v16188_v23  ;;  %v16189_v28 = vunpack.i.l.bf16 %v16188_v23 }
0x13a2   : > { %15761 = vmatprep.subr.bf16.mxu0 %v17464_v30 }
0x13a3   : > { %v15771_v38 = vpack.c.bf16 %v16185_v20, %v16184_v22  ;;  %v15774_v40 = vpack.c.bf16 %v16190_v27, %v16189_v28  ;;  %v14934_v20 = vld [vmem:[%s21298_s16 + $0x40] sm:$0xff]  ;;  %v13576_v28 = vld [vmem:[%s21300_s18 + $0x8] sm:$0xff] }
0x13a4   : > { %v16193_v39 = vpop.permute.xlu0 %16192  ;;  %v16198_v32 = vpop.permute.xlu1 %16197  ;;  %v13573_v22 = vld [vmem:[%s21299_s17] sm:$0xff] }
0x13a5   : > { %15763 = vmatpush3.bf16.msra.mxu0 %v15762_v17  ;;  %v16195_v5 = vunpack.i.h.bf16 %v16193_v39  ;;  %v16194_v6 = vunpack.i.l.bf16 %v16193_v39  ;;  %v16200_v36 = vunpack.i.h.bf16 %v16198_v32  ;;  %v16199_v41 = vunpack.i.l.bf16 %v16198_v32 }
0x13a6   : > { %15764 = vmatprep.subr.bf16.mxu0 %v17464_v30 }
0x13a7   : > { %v15777_v24 = vpack.c.bf16 %v16195_v5, %v16194_v6  ;;  %v15780_v35 = vpack.c.bf16 %v16200_v36, %v16199_v41 }
0x13a8   : > { %15461 = vmatmul.mubr.msk.f32.vlgmr.msra.gmra.mrb[38].mxu0 %vm10782_vm12, %v14919_v18  ;;  %v16203_v43 = vpop.permute.xlu0 %16202  ;;  %v16208_v46 = vpop.permute.xlu1 %16207 }
0x13a9   : > { %15766 = vmatpush3.bf16.msra.mxu0 %v15765_v11  ;;  %15471 = vmatprep.mubr.msk.f32.mxu0 %vm17478_vm1, %v17443_v0  ;;  %v16205_v44 = vunpack.i.h.bf16 %v16203_v43  ;;  %v16204_v45 = vunpack.i.l.bf16 %v16203_v43  ;;  %v16210_v48 = vunpack.i.h.bf16 %v16208_v46  ;;  %v16209_v49 = vunpack.i.l.bf16 %v16208_v46 }
0x13aa   : > { %15767 = vmatprep.subr.bf16.mxu0 %v17464_v30 }
0x13ab   : > { %v15783_v37 = vpack.c.bf16 %v16205_v44, %v16204_v45  ;;  %v15786_v31 = vpack.c.bf16 %v16210_v48, %v16209_v49 }
0x13ac   : > { %v16213_v50 = vpop.permute.xlu0 %16212  ;;  %v16218_v53 = vpop.permute.xlu1 %16217 }
0x13ad   : > { %15769 = vmatpush3.bf16.msra.mxu0 %v15768_v13  ;;  %v16215_v51 = vunpack.i.h.bf16 %v16213_v50  ;;  %v16214_v52 = vunpack.i.l.bf16 %v16213_v50  ;;  %v16220_v55 = vunpack.i.h.bf16 %v16218_v53  ;;  %v16219_v56 = vunpack.i.l.bf16 %v16218_v53 }
0x13ae   : > { %15770 = vmatprep.subr.bf16.mxu0 %v17464_v30 }
0x13af   : > { %v15789_v57 = vpack.c.bf16 %v16215_v51, %v16214_v52  ;;  %v15792_v59 = vpack.c.bf16 %v16220_v55, %v16219_v56 }
0x13b0   : > { %15472 = vmatmul.mubr.msk.f32.vlgmr.msra.gmra.mrb[38].mxu0 %vm10782_vm12, %v12792_v26  ;;  %v16223_v58 = vpop.permute.xlu0 %16222  ;;  %v16228_v62 = vpop.permute.xlu1 %16227  ;;  %v13574_v26 = vld [vmem:[%s21299_s17 + $0x8] sm:$0xff] }
0x13b1   : > { %15772 = vmatpush3.bf16.msra.mxu0 %v15771_v38  ;;  %15482 = vmatprep.mubr.msk.f32.mxu0 %vm17478_vm1, %v17443_v0  ;;  %v16225_v60 = vunpack.i.h.bf16 %v16223_v58  ;;  %v16224_v61 = vunpack.i.l.bf16 %v16223_v58  ;;  %v16230_v12 = vunpack.i.h.bf16 %v16228_v62  ;;  %v16229_v34 = vunpack.i.l.bf16 %v16228_v62  ;;  %v13575_v38 = vld [vmem:[%s21300_s18] sm:$0xff] }
0x13b2   : > { %15773 = vmatprep.subr.bf16.mxu0 %v17464_v30 }
0x13b3   : > { %v15795_v1 = vpack.c.bf16 %v16225_v60, %v16224_v61  ;;  %v15798_v3 = vpack.c.bf16 %v16230_v12, %v16229_v34 }
0x13b4   : > { %v16233_v2 = vpop.permute.xlu0 %16232  ;;  %v16238_v8 = vpop.permute.xlu1 %16237 }
0x13b5   : > { %15775 = vmatpush3.bf16.msra.mxu0 %v15774_v40  ;;  %v16235_v4 = vunpack.i.h.bf16 %v16233_v2  ;;  %v16234_v7 = vunpack.i.l.bf16 %v16233_v2  ;;  %v16240_v10 = vunpack.i.h.bf16 %v16238_v8  ;;  %v16239_v11 = vunpack.i.l.bf16 %v16238_v8 }
0x13b6   : > { %15776 = vmatprep.subr.bf16.mxu0 %v17464_v30 }
0x13b7   : > { %v15801_v13 = vpack.c.bf16 %v16235_v4, %v16234_v7  ;;  %v15804_v42 = vpack.c.bf16 %v16240_v10, %v16239_v11 }
0x13b8   : > { %15483 = vmatmul.mubr.msk.f32.vlgmr.msra.gmra.mrb[38].mxu0 %vm10782_vm12, %v14922_v33  ;;  %v16243_v29 = vpop.permute.xlu0 %16242  ;;  %v16248_v21 = vpop.permute.xlu1 %16247 }
0x13b9   : > { %15778 = vmatpush3.bf16.msra.mxu0 %v15777_v24  ;;  %15493 = vmatprep.mubr.msk.f32.mxu0 %vm17478_vm1, %v17443_v0  ;;  %v16245_v25 = vunpack.i.h.bf16 %v16243_v29  ;;  %v16244_v14 = vunpack.i.l.bf16 %v16243_v29  ;;  %v16250_v16 = vunpack.i.h.bf16 %v16248_v21  ;;  %v16249_v17 = vunpack.i.l.bf16 %v16248_v21 }
0x13ba   : > { %15779 = vmatprep.subr.bf16.mxu0 %v17464_v30 }
0x13bb   : > { %v15807_v18 = vpack.c.bf16 %v16245_v25, %v16244_v14  ;;  %v15810_v19 = vpack.c.bf16 %v16250_v16, %v16249_v17 }
0x13bd   : > { %15781 = vmatpush3.bf16.msra.mxu0 %v15780_v35 }
0x13be   : > { %15782 = vmatprep.subr.bf16.mxu0 %v17464_v30 }
0x13c0   : > { %15494 = vmatmul.mubr.msk.f32.vlgmr.msra.gmra.mrb[38].mxu0 %vm10782_vm12, %v14924_v47 }
0x13c1   : > { %15784 = vmatpush3.bf16.msra.mxu0 %v15783_v37  ;;  %15504 = vmatprep.mubr.msk.f32.mxu0 %vm17478_vm1, %v17443_v0 }
0x13c2   : > { %15785 = vmatprep.subr.bf16.mxu0 %v17464_v30 }
0x13c5   : > { %15787 = vmatpush3.bf16.msra.mxu0 %v15786_v31 }
0x13c6   : > { %15788 = vmatprep.subr.bf16.mxu0 %v17464_v30 }
0x13c8   : > { %15505 = vmatmul.mubr.msk.f32.vlgmr.msra.gmra.mrb[38].mxu0 %vm10782_vm12, %v14926_v54 }
0x13c9   : > { %15790 = vmatpush3.bf16.msra.mxu0 %v15789_v57  ;;  %15515 = vmatprep.mubr.msk.f32.mxu0 %vm17478_vm1, %v17443_v0 }
0x13ca   : > { %15791 = vmatprep.subr.bf16.mxu0 %v17464_v30 }
0x13cd   : > { %15793 = vmatpush3.bf16.msra.mxu0 %v15792_v59 }
0x13ce   : > { %15794 = vmatprep.subr.bf16.mxu0 %v17464_v30 }
0x13d0   : > { %15516 = vmatmul.mubr.msk.f32.vlgmr.msra.gmra.mrb[38].mxu0 %vm10782_vm12, %v14928_v63 }
0x13d1   : > { %15796 = vmatpush3.bf16.msra.mxu0 %v15795_v1  ;;  %15526 = vmatprep.mubr.msk.f32.mxu0 %vm17478_vm1, %v17443_v0 }
0x13d2   : > { %15797 = vmatprep.subr.bf16.mxu0 %v17464_v30 }
0x13d5   : > { %15799 = vmatpush3.bf16.msra.mxu0 %v15798_v3 }
0x13d6   : > { %15800 = vmatprep.subr.bf16.mxu0 %v17464_v30 }
0x13d8   : > { %15527 = vmatmul.mubr.msk.f32.vlgmr.msra.gmra.mrb[38].mxu0 %vm10782_vm12, %v14930_v9 }
0x13d9   : > { %15802 = vmatpush3.bf16.msra.mxu0 %v15801_v13  ;;  %15537 = vmatprep.mubr.msk.f32.mxu0 %vm17478_vm1, %v17443_v0 }
0x13da   : > { %15803 = vmatprep.subr.bf16.mxu0 %v17464_v30 }
0x13dd   : > { %15805 = vmatpush3.bf16.msra.mxu0 %v15804_v42 }
0x13de   : > { %15806 = vmatprep.subr.bf16.mxu0 %v17464_v30 }
0x13e0   : > { %15538 = vmatmul.mubr.msk.f32.vlgmr.msra.gmra.mrb[38].mxu0 %vm10782_vm12, %v14932_v15 }
0x13e1   : > { %15808 = vmatpush3.bf16.msra.mxu0 %v15807_v18  ;;  %15548 = vmatprep.mubr.msk.f32.mxu0 %vm17478_vm1, %v17443_v0 }
0x13e2   : > { %15809 = vmatprep.subr.bf16.mxu0 %v17464_v30 }
0x13e5   : > { %15811 = vmatpush3.bf16.msra.mxu0 %v15810_v19 }
0x13e8   : > { %15549 = vmatmul.mubr.msk.f32.vlgmr.msra.gmra.mrb[38].mxu0 %vm10782_vm12, %v14934_v20 }
0x13e9   : > { %15553 = vmatprep.mubr.msk.f32.mxu0 %vm9025_vm11, %v13573_v22 }
0x14bb   : > { %v13568_v23 = vpop.f32.mrb[38].mxu0 }
0x14bc   : > { %v15550_v27 = vpop.f32.mrb[39].mxu0  ;;  %15551 = vmatprep.subr.mxu0 %v13568_v23 }
0x14bd   : > { %15552 = vmatpush3.msra.mxu0 %v13568_v23 }
0x14be   : > { %15554 = vmatmul.mubr.msk.f32.vlgmr.msra.gmra.mrb[40].mxu0 %vm9025_vm11, %v13574_v26  ;;  %15812 = vmatprep.subr.bf16.mxu0 %v17464_v30  ;;  %v13661_v30 = vld [vmem:[%s21302_s20] sm:$0xff] }
0x14bf   : > { %15560 = vmatprep.mubr.msk.f32.mxu0 %vm17478_vm1, %v17443_v0  ;;  %v13660_v0 = vld [vmem:[%s21301_s19] sm:$0xff] }
0x1591   : > { %v15555_v39 = vpop.f32.mrb[40].mxu0 }
0x1592   : > { %v13655_v40 = vadd.f32 %v15555_v39, %v13576_v28  ;;  %v13649_v5 = vpop.f32.mrb[41].mxu0 }
0x1593   : > { %v13650_v6 = vadd.f32 %v13649_v5, %v13575_v38 }
0x1594   : > { %v13659_v32 = vmax.f32 %v13655_v40, 0.0 }
0x1595   : > { %v13658_v33 = vmax.f32 %v13650_v6, 0.0 }
0x1597   : > { %v15813_v36 = vpack.c.bf16 %v13659_v32, %v13658_v33 }
0x1599   : > { %15814 = vmatpush3.bf16.msra.mxu0 %v15813_v36 }
0x159c   : > { %15561 = vmatmul.mubr.msk.f32.vlgmr.msra.gmra.mrb[42].mxu0 %vm10943_vm13, %v13660_v0 }
0x166f   : > { %v13731_v41 = vpop.f32.mrb[42].mxu0 }
0x1670   : > { %v13732_v24 = vadd.f32 %v13731_v41, %v13661_v30  ;;  %v15562_v43 = vpop.f32.mrb[43].mxu0 }
0x1672   : > { %13736 = vst.msk [vmem:[%s654_s29] sm:$0xff] %vm13735_vm2, %v13732_v24 }
0x1673 PF: > { %s21339_s4 = sld [smem:[#allocation2_spill]] }
0x1679   : > { %s31_s2 = sadd.s32 1, %s21339_s4  }
0x167a   : > { %p28_p4 = scmp.ge.s32.totalorder %s31_s2, 4  }
0x167c   :  { %30 = sbr.rel (!%p28_p4) target bundleno = 7 (0x7), region = 195 }

</bundles_post_ra>
